<compile_context>
chip_gen: v5e
topology: v5e:2x2
jax: 0.10.0
libtpu: 0.0.40
codegen_flags: <defaults>
</compile_context>

<pallas_src>
import jax
import jax.numpy as jnp
from jax import lax
from jax.experimental import pallas as pl
from jax.experimental.pallas import tpu as pltpu

# ---------------------------------------------------------------------------
# Conv geometry implied by the PyTorch module (84x84 Atari frames).
# ---------------------------------------------------------------------------
H_IN = 84
K1, S1, OC1 = 8, 4, 32
K2, S2, OC2 = 4, 2, 64
K3, S3, OC3 = 3, 1, 64
OH1 = (H_IN - K1) // S1 + 1          # 20
OH2 = (OH1 - K2) // S2 + 1           # 9
OH3 = (OH2 - K3) // S3 + 1           # 7
FLAT = OH3 * OH3 * OC3               # 3136


# ---------------------------------------------------------------------------
# In-kernel helper: ContextEncoder conv stack + fc + Predictor for ONE frame.
# ---------------------------------------------------------------------------
def _context_and_pred(p_ref, w1, b1, w2, b2, w3, b3, fcw, fcb,
                      pw1, pb1, pw2, pb2, y1_ref, y2_ref):
    """p_ref  : (1, OH1*OH1, K1*K1*C) conv1 im2col patches; rows ordered
                (oh1, ow1 % 2, ow1 // 2) so conv2's stride-2 gather below is a
                set of contiguous VMEM slices.
       y1_ref : (OH1*OH1, OC1) bf16 VMEM scratch (same row order as p_ref).
       y2_ref : (OH2, OH2, OC2) bf16 VMEM scratch (natural (oh2, ow2, oc))."""
    f32, bf16 = jnp.float32, jnp.bfloat16

    # ---- conv1 + ReLU: one MXU matmul over the pre-extracted patches -------
    y1 = jnp.dot(p_ref[0], w1[...], preferred_element_type=f32) + b1[...]
    y1_ref[...] = jnp.maximum(y1, 0.0).astype(bf16)

    # ---- conv2 (k=4, s=2) + ReLU: per-output-row im2col, contiguous slices --
    half = OH1 // 2
    for oh2 in range(OH2):
        pieces = []
        for kh in range(K2):
            h1 = S2 * oh2 + kh
            for kw in range(K2):
                c, q = kw % 2, kw // 2
                start = h1 * OH1 + c * half + q
                pieces.append(y1_ref[pl.ds(start, OH2), :])        # (9, 32)
        row = jnp.concatenate(pieces, axis=1)                      # (9, 512)
        z = jnp.dot(row, w2[...], preferred_element_type=f32) + b2[...]
        y2_ref[oh2] = jnp.maximum(z, 0.0).astype(bf16)             # (9, 64)

    # ---- conv3 (k=3, s=1) + ReLU: contiguous slices, rows kept as values ----
    y3_rows = []
    for oh3 in range(OH3):
        pieces = []
        for kh in range(K3):
            for kw in range(K3):
                pieces.append(y2_ref[oh3 + kh, pl.ds(kw, OH3), :])  # (7, 64)
        row = jnp.concatenate(pieces, axis=1)                       # (7, 576)
        z = jnp.dot(row, w3[...], preferred_element_type=f32) + b3[...]
        y3_rows.append(jnp.maximum(z, 0.0).astype(bf16))

    # ---- flatten in NHWC (h, w, c) order via lane-concat (no value reshape) --
    flat = jnp.concatenate(
        [r[i:i + 1, :] for r in y3_rows for i in range(OH3)], axis=1)  # (1, 3136)

    # ---- fc (ContextEncoder output) + Predictor MLP -------------------------
    ctx = jnp.dot(flat, fcw[...], preferred_element_type=f32) + fcb[...]
    p = jnp.dot(ctx.astype(bf16), pw1[...], preferred_element_type=f32) + pb1[...]
    p = jnp.maximum(p, 0.0).astype(bf16)
    pred = jnp.dot(p, pw2[...], preferred_element_type=f32) + pb2[...]
    return ctx, pred


def _jepa_kernel(p_ref, a_ref, w1, b1, w2, b2, w3, b3, fcw, fcb,
                 pw1, pb1, pw2, pb2, tw1, tb1, tw2, tb2,
                 ctx_ref, pred_ref, tgt_ref, y1_ref, y2_ref):
    ctx, pred = _context_and_pred(p_ref, w1, b1, w2, b2, w3, b3, fcw, fcb,
                                  pw1, pb1, pw2, pb2, y1_ref, y2_ref)
    ctx_ref[0] = ctx
    pred_ref[0] = pred
    # TargetEncoder: Linear + ReLU + Linear on the (padded) one-hot action.
    t = jnp.dot(a_ref[0], tw1[...], preferred_element_type=jnp.float32) + tb1[...]
    t = jnp.maximum(t, 0.0).astype(jnp.bfloat16)
    tgt_ref[0] = jnp.dot(t, tw2[...], preferred_element_type=jnp.float32) + tb2[...]


def _jepa_kernel_no_tgt(p_ref, w1, b1, w2, b2, w3, b3, fcw, fcb,
                        pw1, pb1, pw2, pb2, ctx_ref, pred_ref, y1_ref, y2_ref):
    ctx, pred = _context_and_pred(p_ref, w1, b1, w2, b2, w3, b3, fcw, fcb,
                                  pw1, pb1, pw2, pb2, y1_ref, y2_ref)
    ctx_ref[0] = ctx
    pred_ref[0] = pred


# ---------------------------------------------------------------------------
# pallas_call wrapper: one fused kernel, grid over the batch ("parallel").
# ---------------------------------------------------------------------------
_CTX_KEYS = ('conv1_w', 'conv1_b', 'conv2_w', 'conv2_b', 'conv3_w', 'conv3_b',
             'fc_w', 'fc_b', 'pred_w1', 'pred_b1', 'pred_w2', 'pred_b2')
_TGT_KEYS = ('tgt_w1', 'tgt_b1', 'tgt_w2', 'tgt_b2')


def jepa_fused(params, patches, actions_padded=None):
    """patches: (B, OH1*OH1, K1*K1*C) bf16; actions_padded: (B, 1, A_pad) bf16
    or None.  Returns 2 or 3 (B, 1, embed) f32 embedding arrays."""
    B, npix, kcols = patches.shape
    E = params['fc_w'].shape[1]
    Hd = params['pred_w1'].shape[1]

    if actions_padded is not None:
        kernel = _jepa_kernel
        keys = _CTX_KEYS + _TGT_KEYS
        a_pad = actions_padded.shape[-1]
        inputs = [patches, actions_padded] + [params[k] for k in keys]
        in_specs = [pl.BlockSpec((1, npix, kcols), lambda i: (i, 0, 0)),
                    pl.BlockSpec((1, 1, a_pad), lambda i: (i, 0, 0))]
        n_out = 3
    else:
        kernel = _jepa_kernel_no_tgt
        keys = _CTX_KEYS
        inputs = [patches] + [params[k] for k in keys]
        in_specs = [pl.BlockSpec((1, npix, kcols), lambda i: (i, 0, 0))]
        n_out = 2
    # all weights/biases: full-extent blocks, invariant index_map -> resident.
    in_specs += [pl.BlockSpec(params[k].shape, lambda i: (0, 0)) for k in keys]

    emb = jax.ShapeDtypeStruct((B, 1, E), jnp.float32)

    # advisory cost hint so XLA schedules cleanly around the single custom call
    flops_per = (2 * npix * kcols * OC1
                 + 2 * OH2 * OH2 * (K2 * K2 * OC1) * OC2
                 + 2 * OH3 * OH3 * (K3 * K3 * OC2) * OC3
                 + 2 * FLAT * E + 4 * E * Hd)
    if actions_padded is not None:
        flops_per += 2 * actions_padded.shape[-1] * Hd + 2 * Hd * E
    bytes_accessed = sum(int(a.size) * a.dtype.itemsize for a in inputs)
    bytes_accessed += n_out * B * E * 4

    return pl.pallas_call(
        kernel,
        out_shape=tuple(emb for _ in range(n_out)),
        grid=(B,),
        in_specs=in_specs,
        out_specs=tuple(pl.BlockSpec((1, 1, E), lambda i: (i, 0, 0))
                        for _ in range(n_out)),
        scratch_shapes=[pltpu.VMEM((OH1 * OH1, OC1), jnp.bfloat16),
                        pltpu.VMEM((OH2, OH2, OC2), jnp.bfloat16)],
        compiler_params=pltpu.CompilerParams(
            dimension_semantics=("parallel",)),
        cost_estimate=pl.CostEstimate(flops=B * flops_per, transcendentals=0,
                                      bytes_accessed=int(bytes_accessed)),
    )(*inputs)


# ---------------------------------------------------------------------------
# Wrapper-side conv1 im2col (XLA-fused under jit, ~1.8x the raw frame bytes).
# ---------------------------------------------------------------------------
def _conv1_patches(frames_nchw, dtype=jnp.bfloat16):
    """im2col for conv1 (k=8, s=4).  Rows ordered (oh1, ow1 % 2, ow1 // 2) and
    columns (kh, kw, ic) so the in-kernel stride-2 conv2 gather is contiguous."""
    B, C = frames_nchw.shape[0], frames_nchw.shape[1]
    x = jnp.transpose(frames_nchw, (0, 2, 3, 1)).astype(dtype)   # (B, 84, 84, C)
    lim = S1 * (OH1 - 1) + 1
    cols = []
    for i in range(K1):
        for j in range(K1):
            cols.append(lax.slice(x, (0, i, j, 0), (B, i + lim, j + lim, C),
                                  (1, S1, S1, 1)))               # (B, 20, 20, C)
    p = jnp.stack(cols, axis=3)                                  # (B,20,20,kk,C)
    p = p.reshape(B, OH1, OH1, K1 * K1 * C)                      # cols (kh,kw,ic)
    p = p.reshape(B, OH1, OH1 // 2, 2, K1 * K1 * C)              # ow1 -> (j, parity)
    p = jnp.transpose(p, (0, 1, 3, 2, 4))                        # (oh1, parity, j)
    return p.reshape(B, OH1 * OH1, K1 * K1 * C)


# ---------------------------------------------------------------------------
# Deterministic synthetic parameter init in kernel-ready layouts:
# bf16 matmul matrices + (1, N) f32 biases (no per-forward reshuffling).
# ---------------------------------------------------------------------------
def init_jepa_params(key, *, input_channels=1, action_dim=18,
                     embedding_dim=128, hidden_dim=256, action_pad=128):
    keys = jax.random.split(key, 16)
    kit = iter(keys)

    def dense(kin, kout, pad_kin=None):
        w = jax.random.normal(next(kit), (kin, kout), jnp.float32) * jnp.sqrt(2.0 / kin)
        if pad_kin is not None and pad_kin > kin:
            w = jnp.pad(w, ((0, pad_kin - kin), (0, 0)))   # zero rows: exact no-op
        return w.astype(jnp.bfloat16), jnp.zeros((1, kout), jnp.float32)

    def conv(oc, ic, k):
        fan_in = ic * k * k
        w_oihw = jax.random.normal(next(kit), (oc, ic, k, k), jnp.float32) * jnp.sqrt(2.0 / fan_in)
        # one-time reorder OIHW -> rows (kh, kw, ic) x OC to match im2col order
        w_mat = jnp.transpose(w_oihw, (2, 3, 1, 0)).reshape(k * k * ic, oc)
        return w_mat.astype(jnp.bfloat16), jnp.zeros((1, oc), jnp.float32)

    p = {}
    p['conv1_w'], p['conv1_b'] = conv(OC1, input_channels, K1)
    p['conv2_w'], p['conv2_b'] = conv(OC2, OC1, K2)
    p['conv3_w'], p['conv3_b'] = conv(OC3, OC2, K3)
    # fc rows laid out in NHWC (h, w, c) flatten order (matches the in-kernel
    # lane-concat flatten).
    # TODO(synk): real PyTorch checkpoints store Linear as (out, in) with a
    # (c, h, w) flatten order; transpose + row-permute fc_w once at load time.
    p['fc_w'], p['fc_b'] = dense(FLAT, embedding_dim)
    p['pred_w1'], p['pred_b1'] = dense(embedding_dim, hidden_dim)
    p['pred_w2'], p['pred_b2'] = dense(hidden_dim, embedding_dim)
    # action-dim contraction zero-padded to 128 lanes once at init (exact no-op)
    p['tgt_w1'], p['tgt_b1'] = dense(action_dim, hidden_dim, pad_kin=action_pad)
    p['tgt_w2'], p['tgt_b2'] = dense(hidden_dim, embedding_dim)
    return p


# ---------------------------------------------------------------------------
# JEPA forward (use_masking=False default -> no masking path), single jit.
# ---------------------------------------------------------------------------
def _jepa_forward(params, frames_nchw, actions=None):
    # frames_nchw: (B, C, 84, 84) f32; actions: (B, action_dim) one-hot or None.
    # TODO(synk): the use_masking=True random-permutation masking branch uses
    # host RNG in PyTorch and is not reproduced (module default is off).
    patches = _conv1_patches(frames_nchw)
    a = None
    if actions is not None:
        a = actions.astype(jnp.bfloat16)
        a_pad = params['tgt_w1'].shape[0]
        if a_pad > a.shape[1]:
            a = jnp.pad(a, ((0, 0), (0, a_pad - a.shape[1])))
        a = a[:, None, :]                                  # (B, 1, A_pad)

    outs = jepa_fused(params, patches, a)
    if actions is not None:
        ctx, pred, tgt = outs
        return {'context_embeddings': ctx[:, 0, :],
                'predicted_target_embeddings': pred[:, 0, :],
                'target_embeddings': tgt[:, 0, :]}
    ctx, pred = outs
    return {'context_embeddings': ctx[:, 0, :],
            'predicted_target_embeddings': pred[:, 0, :]}


jepa_forward = jax.jit(_jepa_forward)


if __name__ == "__main__":
    key = jax.random.PRNGKey(0)
    k_param, k_frames, k_act = jax.random.split(key, 3)

    BATCH, C, H, W = 2, 1, 84, 84            # Atari frame shape (84x84 required
    ACTION_DIM, EMBED, HIDDEN = 18, 128, 256  # by the conv arithmetic -> 7x7x64)

    params = init_jepa_params(k_param, input_channels=C, action_dim=ACTION_DIM,
                              embedding_dim=EMBED, hidden_dim=HIDDEN)

    frames = jax.random.uniform(k_frames, (BATCH, C, H, W), jnp.float32)
    action_idx = jax.random.randint(k_act, (BATCH,), 0, ACTION_DIM)
    actions = jax.nn.one_hot(action_idx, ACTION_DIM, dtype=jnp.float32)

    outputs = jepa_forward(params, frames, actions)
    jax.block_until_ready(outputs)

    assert outputs['context_embeddings'].shape == (BATCH, EMBED)
    assert outputs['predicted_target_embeddings'].shape == (BATCH, EMBED)
    assert outputs['target_embeddings'].shape == (BATCH, EMBED)
    print("KERNEL_OK")
</pallas_src>

<mosaic_0001>
module attributes {stable_mosaic.version = 11 : i64} {
  func.func @_jepa_kernel(%arg0: i32, %arg1: memref<1x400x64xbf16, #tpu.memory_space<vmem>>, %arg2: memref<1x1x128xbf16, #tpu.memory_space<vmem>>, %arg3: memref<64x32xbf16, #tpu.memory_space<vmem>>, %arg4: memref<1x32xf32, #tpu.memory_space<vmem>>, %arg5: memref<512x64xbf16, #tpu.memory_space<vmem>>, %arg6: memref<1x64xf32, #tpu.memory_space<vmem>>, %arg7: memref<576x64xbf16, #tpu.memory_space<vmem>>, %arg8: memref<1x64xf32, #tpu.memory_space<vmem>>, %arg9: memref<3136x128xbf16, #tpu.memory_space<vmem>>, %arg10: memref<1x128xf32, #tpu.memory_space<vmem>>, %arg11: memref<128x256xbf16, #tpu.memory_space<vmem>>, %arg12: memref<1x256xf32, #tpu.memory_space<vmem>>, %arg13: memref<256x128xbf16, #tpu.memory_space<vmem>>, %arg14: memref<1x128xf32, #tpu.memory_space<vmem>>, %arg15: memref<128x256xbf16, #tpu.memory_space<vmem>>, %arg16: memref<1x256xf32, #tpu.memory_space<vmem>>, %arg17: memref<256x128xbf16, #tpu.memory_space<vmem>>, %arg18: memref<1x128xf32, #tpu.memory_space<vmem>>, %arg19: memref<1x1x128xf32, #tpu.memory_space<vmem>>, %arg20: memref<1x1x128xf32, #tpu.memory_space<vmem>>, %arg21: memref<1x1x128xf32, #tpu.memory_space<vmem>>, %arg22: memref<400x32xbf16, #tpu.memory_space<vmem>>, %arg23: memref<9x9x64xbf16, #tpu.memory_space<vmem>>) attributes {dimension_semantics = [#tpu.dimension_semantics<parallel>], iteration_bounds = array<i64: 2>, scalar_prefetch = 0 : i64, scratch_operands = 2 : i64, tpu.core_type = #tpu.core_type<tc>, window_params = [{transform_indices = @transform_0, window_bounds = array<i64: 1, 400, 64>}, {transform_indices = @transform_1, window_bounds = array<i64: 1, 1, 128>}, {pipeline_mode = #tpu.pipeline_mode<synchronous>, transform_indices = @transform_2, window_bounds = array<i64: 64, 32>}, {pipeline_mode = #tpu.pipeline_mode<synchronous>, transform_indices = @transform_3, window_bounds = array<i64: 1, 32>}, {pipeline_mode = #tpu.pipeline_mode<synchronous>, transform_indices = @transform_4, window_bounds = array<i64: 512, 64>}, {pipeline_mode = #tpu.pipeline_mode<synchronous>, transform_indices = @transform_5, window_bounds = array<i64: 1, 64>}, {pipeline_mode = #tpu.pipeline_mode<synchronous>, transform_indices = @transform_6, window_bounds = array<i64: 576, 64>}, {pipeline_mode = #tpu.pipeline_mode<synchronous>, transform_indices = @transform_7, window_bounds = array<i64: 1, 64>}, {pipeline_mode = #tpu.pipeline_mode<synchronous>, transform_indices = @transform_8, window_bounds = array<i64: 3136, 128>}, {pipeline_mode = #tpu.pipeline_mode<synchronous>, transform_indices = @transform_9, window_bounds = array<i64: 1, 128>}, {pipeline_mode = #tpu.pipeline_mode<synchronous>, transform_indices = @transform_10, window_bounds = array<i64: 128, 256>}, {pipeline_mode = #tpu.pipeline_mode<synchronous>, transform_indices = @transform_11, window_bounds = array<i64: 1, 256>}, {pipeline_mode = #tpu.pipeline_mode<synchronous>, transform_indices = @transform_12, window_bounds = array<i64: 256, 128>}, {pipeline_mode = #tpu.pipeline_mode<synchronous>, transform_indices = @transform_13, window_bounds = array<i64: 1, 128>}, {pipeline_mode = #tpu.pipeline_mode<synchronous>, transform_indices = @transform_14, window_bounds = array<i64: 128, 256>}, {pipeline_mode = #tpu.pipeline_mode<synchronous>, transform_indices = @transform_15, window_bounds = array<i64: 1, 256>}, {pipeline_mode = #tpu.pipeline_mode<synchronous>, transform_indices = @transform_16, window_bounds = array<i64: 256, 128>}, {pipeline_mode = #tpu.pipeline_mode<synchronous>, transform_indices = @transform_17, window_bounds = array<i64: 1, 128>}, {transform_indices = @transform_18, window_bounds = array<i64: 1, 1, 128>}, {transform_indices = @transform_19, window_bounds = array<i64: 1, 1, 128>}, {transform_indices = @transform_20, window_bounds = array<i64: 1, 1, 128>}]} {
    %c0 = arith.constant 0 : index
    %c0_0 = arith.constant 0 : index
    %c0_1 = arith.constant 0 : index
    %0 = vector.load %arg1[%c0, %c0_0, %c0_1] : memref<1x400x64xbf16, #tpu.memory_space<vmem>>, vector<1x400x64xbf16>
    %1 = vector.shape_cast %0 : vector<1x400x64xbf16> to vector<400x64xbf16>
    %c0_2 = arith.constant 0 : index
    %c0_3 = arith.constant 0 : index
    %2 = vector.load %arg3[%c0_2, %c0_3] : memref<64x32xbf16, #tpu.memory_space<vmem>>, vector<64x32xbf16>
    %cst = arith.constant dense<0.000000e+00> : vector<400x32xf32>
    %3 = tpu.matmul %1, %2, %cst {dimension_numbers = #tpu.dot_dimension_numbers<[1], [0], [0], [1], [0, 0, 1, 1], [], []>} : vector<400x64xbf16>, vector<64x32xbf16>, vector<400x32xf32> -> vector<400x32xf32>
    %c0_4 = arith.constant 0 : index
    %c0_5 = arith.constant 0 : index
    %4 = vector.load %arg4[%c0_4, %c0_5] : memref<1x32xf32, #tpu.memory_space<vmem>>, vector<1x32xf32>
    %5 = vector.broadcast %4 : vector<1x32xf32> to vector<400x32xf32>
    %6 = arith.addf %3, %5 : vector<400x32xf32>
    %cst_6 = arith.constant 0.000000e+00 : f32
    %7 = vector.broadcast %cst_6 : f32 to vector<400x32xf32>
    %8 = arith.maximumf %6, %7 : vector<400x32xf32>
    %9 = arith.truncf %8 : vector<400x32xf32> to vector<400x32xbf16>
    %c0_7 = arith.constant 0 : index
    %c0_8 = arith.constant 0 : index
    %10 = vector.load %arg22[%c0_7, %c0_8] : memref<400x32xbf16, #tpu.memory_space<vmem>>, vector<400x32xbf16>
    tpu.vector_store %arg22[%c0_7, %c0_8], %9 {strides = array<i32>} : memref<400x32xbf16, #tpu.memory_space<vmem>>, vector<400x32xbf16>,
    %c0_9 = arith.constant 0 : index
    %c0_10 = arith.constant 0 : index
    %11 = vector.load %arg22[%c0_9, %c0_10] : memref<400x32xbf16, #tpu.memory_space<vmem>>, vector<9x32xbf16>
    %c10 = arith.constant 10 : index
    %c0_11 = arith.constant 0 : index
    %12 = vector.load %arg22[%c10, %c0_11] : memref<400x32xbf16, #tpu.memory_space<vmem>>, vector<9x32xbf16>
    %c1 = arith.constant 1 : index
    %c0_12 = arith.constant 0 : index
    %13 = vector.load %arg22[%c1, %c0_12] : memref<400x32xbf16, #tpu.memory_space<vmem>>, vector<9x32xbf16>
    %c11 = arith.constant 11 : index
    %c0_13 = arith.constant 0 : index
    %14 = vector.load %arg22[%c11, %c0_13] : memref<400x32xbf16, #tpu.memory_space<vmem>>, vector<9x32xbf16>
    %c20 = arith.constant 20 : index
    %c0_14 = arith.constant 0 : index
    %15 = vector.load %arg22[%c20, %c0_14] : memref<400x32xbf16, #tpu.memory_space<vmem>>, vector<9x32xbf16>
    %c30 = arith.constant 30 : index
    %c0_15 = arith.constant 0 : index
    %16 = vector.load %arg22[%c30, %c0_15] : memref<400x32xbf16, #tpu.memory_space<vmem>>, vector<9x32xbf16>
    %c21 = arith.constant 21 : index
    %c0_16 = arith.constant 0 : index
    %17 = vector.load %arg22[%c21, %c0_16] : memref<400x32xbf16, #tpu.memory_space<vmem>>, vector<9x32xbf16>
    %c31 = arith.constant 31 : index
    %c0_17 = arith.constant 0 : index
    %18 = vector.load %arg22[%c31, %c0_17] : memref<400x32xbf16, #tpu.memory_space<vmem>>, vector<9x32xbf16>
    %c40 = arith.constant 40 : index
    %c0_18 = arith.constant 0 : index
    %19 = vector.load %arg22[%c40, %c0_18] : memref<400x32xbf16, #tpu.memory_space<vmem>>, vector<9x32xbf16>
    %c50 = arith.constant 50 : index
    %c0_19 = arith.constant 0 : index
    %20 = vector.load %arg22[%c50, %c0_19] : memref<400x32xbf16, #tpu.memory_space<vmem>>, vector<9x32xbf16>
    %c41 = arith.constant 41 : index
    %c0_20 = arith.constant 0 : index
    %21 = vector.load %arg22[%c41, %c0_20] : memref<400x32xbf16, #tpu.memory_space<vmem>>, vector<9x32xbf16>
    %c51 = arith.constant 51 : index
    %c0_21 = arith.constant 0 : index
    %22 = vector.load %arg22[%c51, %c0_21] : memref<400x32xbf16, #tpu.memory_space<vmem>>, vector<9x32xbf16>
    %c60 = arith.constant 60 : index
    %c0_22 = arith.constant 0 : index
    %23 = vector.load %arg22[%c60, %c0_22] : memref<400x32xbf16, #tpu.memory_space<vmem>>, vector<9x32xbf16>
    %c70 = arith.constant 70 : index
    %c0_23 = arith.constant 0 : index
    %24 = vector.load %arg22[%c70, %c0_23] : memref<400x32xbf16, #tpu.memory_space<vmem>>, vector<9x32xbf16>
    %c61 = arith.constant 61 : index
    %c0_24 = arith.constant 0 : index
    %25 = vector.load %arg22[%c61, %c0_24] : memref<400x32xbf16, #tpu.memory_space<vmem>>, vector<9x32xbf16>
    %c71 = arith.constant 71 : index
    %c0_25 = arith.constant 0 : index
    %26 = vector.load %arg22[%c71, %c0_25] : memref<400x32xbf16, #tpu.memory_space<vmem>>, vector<9x32xbf16>
    %27 = tpu.concatenate %11, %12, %13, %14, %15, %16, %17, %18, %19, %20, %21, %22, %23, %24, %25, %26 in 1 : vector<9x32xbf16>, vector<9x32xbf16>, vector<9x32xbf16>, vector<9x32xbf16>, vector<9x32xbf16>, vector<9x32xbf16>, vector<9x32xbf16>, vector<9x32xbf16>, vector<9x32xbf16>, vector<9x32xbf16>, vector<9x32xbf16>, vector<9x32xbf16>, vector<9x32xbf16>, vector<9x32xbf16>, vector<9x32xbf16>, vector<9x32xbf16> -> vector<9x512xbf16>
    %c0_26 = arith.constant 0 : index
    %c0_27 = arith.constant 0 : index
    %28 = vector.load %arg5[%c0_26, %c0_27] : memref<512x64xbf16, #tpu.memory_space<vmem>>, vector<512x64xbf16>
    %cst_28 = arith.constant dense<0.000000e+00> : vector<9x64xf32>
    %29 = tpu.matmul %27, %28, %cst_28 {dimension_numbers = #tpu.dot_dimension_numbers<[1], [0], [0], [1], [0, 0, 1, 1], [], []>} : vector<9x512xbf16>, vector<512x64xbf16>, vector<9x64xf32> -> vector<9x64xf32>
    %c0_29 = arith.constant 0 : index
    %c0_30 = arith.constant 0 : index
    %30 = vector.load %arg6[%c0_29, %c0_30] : memref<1x64xf32, #tpu.memory_space<vmem>>, vector<1x64xf32>
    %31 = vector.broadcast %30 : vector<1x64xf32> to vector<9x64xf32>
    %32 = arith.addf %29, %31 : vector<9x64xf32>
    %cst_31 = arith.constant 0.000000e+00 : f32
    %33 = vector.broadcast %cst_31 : f32 to vector<9x64xf32>
    %34 = arith.maximumf %32, %33 : vector<9x64xf32>
    %35 = arith.truncf %34 : vector<9x64xf32> to vector<9x64xbf16>
    %c0_32 = arith.constant 0 : index
    %c0_33 = arith.constant 0 : index
    %c0_34 = arith.constant 0 : index
    %36 = vector.load %arg23[%c0_32, %c0_33, %c0_34] : memref<9x9x64xbf16, #tpu.memory_space<vmem>>, vector<1x9x64xbf16>
    %37 = vector.shape_cast %36 : vector<1x9x64xbf16> to vector<9x64xbf16>
    %38 = vector.shape_cast %35 : vector<9x64xbf16> to vector<1x9x64xbf16>
    tpu.vector_store %arg23[%c0_32, %c0_33, %c0_34], %38 {strides = array<i32>} : memref<9x9x64xbf16, #tpu.memory_space<vmem>>, vector<1x9x64xbf16>,
    %c40_35 = arith.constant 40 : index
    %c0_36 = arith.constant 0 : index
    %39 = vector.load %arg22[%c40_35, %c0_36] : memref<400x32xbf16, #tpu.memory_space<vmem>>, vector<9x32xbf16>
    %c50_37 = arith.constant 50 : index
    %c0_38 = arith.constant 0 : index
    %40 = vector.load %arg22[%c50_37, %c0_38] : memref<400x32xbf16, #tpu.memory_space<vmem>>, vector<9x32xbf16>
    %c41_39 = arith.constant 41 : index
    %c0_40 = arith.constant 0 : index
    %41 = vector.load %arg22[%c41_39, %c0_40] : memref<400x32xbf16, #tpu.memory_space<vmem>>, vector<9x32xbf16>
    %c51_41 = arith.constant 51 : index
    %c0_42 = arith.constant 0 : index
    %42 = vector.load %arg22[%c51_41, %c0_42] : memref<400x32xbf16, #tpu.memory_space<vmem>>, vector<9x32xbf16>
    %c60_43 = arith.constant 60 : index
    %c0_44 = arith.constant 0 : index
    %43 = vector.load %arg22[%c60_43, %c0_44] : memref<400x32xbf16, #tpu.memory_space<vmem>>, vector<9x32xbf16>
    %c70_45 = arith.constant 70 : index
    %c0_46 = arith.constant 0 : index
    %44 = vector.load %arg22[%c70_45, %c0_46] : memref<400x32xbf16, #tpu.memory_space<vmem>>, vector<9x32xbf16>
    %c61_47 = arith.constant 61 : index
    %c0_48 = arith.constant 0 : index
    %45 = vector.load %arg22[%c61_47, %c0_48] : memref<400x32xbf16, #tpu.memory_space<vmem>>, vector<9x32xbf16>
    %c71_49 = arith.constant 71 : index
    %c0_50 = arith.constant 0 : index
    %46 = vector.load %arg22[%c71_49, %c0_50] : memref<400x32xbf16, #tpu.memory_space<vmem>>, vector<9x32xbf16>
    %c80 = arith.constant 80 : index
    %c0_51 = arith.constant 0 : index
    %47 = vector.load %arg22[%c80, %c0_51] : memref<400x32xbf16, #tpu.memory_space<vmem>>, vector<9x32xbf16>
    %c90 = arith.constant 90 : index
    %c0_52 = arith.constant 0 : index
    %48 = vector.load %arg22[%c90, %c0_52] : memref<400x32xbf16, #tpu.memory_space<vmem>>, vector<9x32xbf16>
    %c81 = arith.constant 81 : index
    %c0_53 = arith.constant 0 : index
    %49 = vector.load %arg22[%c81, %c0_53] : memref<400x32xbf16, #tpu.memory_space<vmem>>, vector<9x32xbf16>
    %c91 = arith.constant 91 : index
    %c0_54 = arith.constant 0 : index
    %50 = vector.load %arg22[%c91, %c0_54] : memref<400x32xbf16, #tpu.memory_space<vmem>>, vector<9x32xbf16>
    %c100 = arith.constant 100 : index
    %c0_55 = arith.constant 0 : index
    %51 = vector.load %arg22[%c100, %c0_55] : memref<400x32xbf16, #tpu.memory_space<vmem>>, vector<9x32xbf16>
    %c110 = arith.constant 110 : index
    %c0_56 = arith.constant 0 : index
    %52 = vector.load %arg22[%c110, %c0_56] : memref<400x32xbf16, #tpu.memory_space<vmem>>, vector<9x32xbf16>
    %c101 = arith.constant 101 : index
    %c0_57 = arith.constant 0 : index
    %53 = vector.load %arg22[%c101, %c0_57] : memref<400x32xbf16, #tpu.memory_space<vmem>>, vector<9x32xbf16>
    %c111 = arith.constant 111 : index
    %c0_58 = arith.constant 0 : index
    %54 = vector.load %arg22[%c111, %c0_58] : memref<400x32xbf16, #tpu.memory_space<vmem>>, vector<9x32xbf16>
    %55 = tpu.concatenate %39, %40, %41, %42, %43, %44, %45, %46, %47, %48, %49, %50, %51, %52, %53, %54 in 1 : vector<9x32xbf16>, vector<9x32xbf16>, vector<9x32xbf16>, vector<9x32xbf16>, vector<9x32xbf16>, vector<9x32xbf16>, vector<9x32xbf16>, vector<9x32xbf16>, vector<9x32xbf16>, vector<9x32xbf16>, vector<9x32xbf16>, vector<9x32xbf16>, vector<9x32xbf16>, vector<9x32xbf16>, vector<9x32xbf16>, vector<9x32xbf16> -> vector<9x512xbf16>
    %c0_59 = arith.constant 0 : index
    %c0_60 = arith.constant 0 : index
    %56 = vector.load %arg5[%c0_59, %c0_60] : memref<512x64xbf16, #tpu.memory_space<vmem>>, vector<512x64xbf16>
    %cst_61 = arith.constant dense<0.000000e+00> : vector<9x64xf32>
    %57 = tpu.matmul %55, %56, %cst_61 {dimension_numbers = #tpu.dot_dimension_numbers<[1], [0], [0], [1], [0, 0, 1, 1], [], []>} : vector<9x512xbf16>, vector<512x64xbf16>, vector<9x64xf32> -> vector<9x64xf32>
    %c0_62 = arith.constant 0 : index
    %c0_63 = arith.constant 0 : index
    %58 = vector.load %arg6[%c0_62, %c0_63] : memref<1x64xf32, #tpu.memory_space<vmem>>, vector<1x64xf32>
    %59 = vector.broadcast %58 : vector<1x64xf32> to vector<9x64xf32>
    %60 = arith.addf %57, %59 : vector<9x64xf32>
    %cst_64 = arith.constant 0.000000e+00 : f32
    %61 = vector.broadcast %cst_64 : f32 to vector<9x64xf32>
    %62 = arith.maximumf %60, %61 : vector<9x64xf32>
    %63 = arith.truncf %62 : vector<9x64xf32> to vector<9x64xbf16>
    %c1_65 = arith.constant 1 : index
    %c0_66 = arith.constant 0 : index
    %c0_67 = arith.constant 0 : index
    %64 = vector.load %arg23[%c1_65, %c0_66, %c0_67] : memref<9x9x64xbf16, #tpu.memory_space<vmem>>, vector<1x9x64xbf16>
    %65 = vector.shape_cast %64 : vector<1x9x64xbf16> to vector<9x64xbf16>
    %66 = vector.shape_cast %63 : vector<9x64xbf16> to vector<1x9x64xbf16>
    tpu.vector_store %arg23[%c1_65, %c0_66, %c0_67], %66 {strides = array<i32>} : memref<9x9x64xbf16, #tpu.memory_space<vmem>>, vector<1x9x64xbf16>,
    %c80_68 = arith.constant 80 : index
    %c0_69 = arith.constant 0 : index
    %67 = vector.load %arg22[%c80_68, %c0_69] : memref<400x32xbf16, #tpu.memory_space<vmem>>, vector<9x32xbf16>
    %c90_70 = arith.constant 90 : index
    %c0_71 = arith.constant 0 : index
    %68 = vector.load %arg22[%c90_70, %c0_71] : memref<400x32xbf16, #tpu.memory_space<vmem>>, vector<9x32xbf16>
    %c81_72 = arith.constant 81 : index
    %c0_73 = arith.constant 0 : index
    %69 = vector.load %arg22[%c81_72, %c0_73] : memref<400x32xbf16, #tpu.memory_space<vmem>>, vector<9x32xbf16>
    %c91_74 = arith.constant 91 : index
    %c0_75 = arith.constant 0 : index
    %70 = vector.load %arg22[%c91_74, %c0_75] : memref<400x32xbf16, #tpu.memory_space<vmem>>, vector<9x32xbf16>
    %c100_76 = arith.constant 100 : index
    %c0_77 = arith.constant 0 : index
    %71 = vector.load %arg22[%c100_76, %c0_77] : memref<400x32xbf16, #tpu.memory_space<vmem>>, vector<9x32xbf16>
    %c110_78 = arith.constant 110 : index
    %c0_79 = arith.constant 0 : index
    %72 = vector.load %arg22[%c110_78, %c0_79] : memref<400x32xbf16, #tpu.memory_space<vmem>>, vector<9x32xbf16>
    %c101_80 = arith.constant 101 : index
    %c0_81 = arith.constant 0 : index
    %73 = vector.load %arg22[%c101_80, %c0_81] : memref<400x32xbf16, #tpu.memory_space<vmem>>, vector<9x32xbf16>
    %c111_82 = arith.constant 111 : index
    %c0_83 = arith.constant 0 : index
    %74 = vector.load %arg22[%c111_82, %c0_83] : memref<400x32xbf16, #tpu.memory_space<vmem>>, vector<9x32xbf16>
    %c120 = arith.constant 120 : index
    %c0_84 = arith.constant 0 : index
    %75 = vector.load %arg22[%c120, %c0_84] : memref<400x32xbf16, #tpu.memory_space<vmem>>, vector<9x32xbf16>
    %c130 = arith.constant 130 : index
    %c0_85 = arith.constant 0 : index
    %76 = vector.load %arg22[%c130, %c0_85] : memref<400x32xbf16, #tpu.memory_space<vmem>>, vector<9x32xbf16>
    %c121 = arith.constant 121 : index
    %c0_86 = arith.constant 0 : index
    %77 = vector.load %arg22[%c121, %c0_86] : memref<400x32xbf16, #tpu.memory_space<vmem>>, vector<9x32xbf16>
    %c131 = arith.constant 131 : index
    %c0_87 = arith.constant 0 : index
    %78 = vector.load %arg22[%c131, %c0_87] : memref<400x32xbf16, #tpu.memory_space<vmem>>, vector<9x32xbf16>
    %c140 = arith.constant 140 : index
    %c0_88 = arith.constant 0 : index
    %79 = vector.load %arg22[%c140, %c0_88] : memref<400x32xbf16, #tpu.memory_space<vmem>>, vector<9x32xbf16>
    %c150 = arith.constant 150 : index
    %c0_89 = arith.constant 0 : index
    %80 = vector.load %arg22[%c150, %c0_89] : memref<400x32xbf16, #tpu.memory_space<vmem>>, vector<9x32xbf16>
    %c141 = arith.constant 141 : index
    %c0_90 = arith.constant 0 : index
    %81 = vector.load %arg22[%c141, %c0_90] : memref<400x32xbf16, #tpu.memory_space<vmem>>, vector<9x32xbf16>
    %c151 = arith.constant 151 : index
    %c0_91 = arith.constant 0 : index
    %82 = vector.load %arg22[%c151, %c0_91] : memref<400x32xbf16, #tpu.memory_space<vmem>>, vector<9x32xbf16>
    %83 = tpu.concatenate %67, %68, %69, %70, %71, %72, %73, %74, %75, %76, %77, %78, %79, %80, %81, %82 in 1 : vector<9x32xbf16>, vector<9x32xbf16>, vector<9x32xbf16>, vector<9x32xbf16>, vector<9x32xbf16>, vector<9x32xbf16>, vector<9x32xbf16>, vector<9x32xbf16>, vector<9x32xbf16>, vector<9x32xbf16>, vector<9x32xbf16>, vector<9x32xbf16>, vector<9x32xbf16>, vector<9x32xbf16>, vector<9x32xbf16>, vector<9x32xbf16> -> vector<9x512xbf16>
    %c0_92 = arith.constant 0 : index
    %c0_93 = arith.constant 0 : index
    %84 = vector.load %arg5[%c0_92, %c0_93] : memref<512x64xbf16, #tpu.memory_space<vmem>>, vector<512x64xbf16>
    %cst_94 = arith.constant dense<0.000000e+00> : vector<9x64xf32>
    %85 = tpu.matmul %83, %84, %cst_94 {dimension_numbers = #tpu.dot_dimension_numbers<[1], [0], [0], [1], [0, 0, 1, 1], [], []>} : vector<9x512xbf16>, vector<512x64xbf16>, vector<9x64xf32> -> vector<9x64xf32>
    %c0_95 = arith.constant 0 : index
    %c0_96 = arith.constant 0 : index
    %86 = vector.load %arg6[%c0_95, %c0_96] : memref<1x64xf32, #tpu.memory_space<vmem>>, vector<1x64xf32>
    %87 = vector.broadcast %86 : vector<1x64xf32> to vector<9x64xf32>
    %88 = arith.addf %85, %87 : vector<9x64xf32>
    %cst_97 = arith.constant 0.000000e+00 : f32
    %89 = vector.broadcast %cst_97 : f32 to vector<9x64xf32>
    %90 = arith.maximumf %88, %89 : vector<9x64xf32>
    %91 = arith.truncf %90 : vector<9x64xf32> to vector<9x64xbf16>
    %c2 = arith.constant 2 : index
    %c0_98 = arith.constant 0 : index
    %c0_99 = arith.constant 0 : index
    %92 = vector.load %arg23[%c2, %c0_98, %c0_99] : memref<9x9x64xbf16, #tpu.memory_space<vmem>>, vector<1x9x64xbf16>
    %93 = vector.shape_cast %92 : vector<1x9x64xbf16> to vector<9x64xbf16>
    %94 = vector.shape_cast %91 : vector<9x64xbf16> to vector<1x9x64xbf16>
    tpu.vector_store %arg23[%c2, %c0_98, %c0_99], %94 {strides = array<i32>} : memref<9x9x64xbf16, #tpu.memory_space<vmem>>, vector<1x9x64xbf16>,
    %c120_100 = arith.constant 120 : index
    %c0_101 = arith.constant 0 : index
    %95 = vector.load %arg22[%c120_100, %c0_101] : memref<400x32xbf16, #tpu.memory_space<vmem>>, vector<9x32xbf16>
    %c130_102 = arith.constant 130 : index
    %c0_103 = arith.constant 0 : index
    %96 = vector.load %arg22[%c130_102, %c0_103] : memref<400x32xbf16, #tpu.memory_space<vmem>>, vector<9x32xbf16>
    %c121_104 = arith.constant 121 : index
    %c0_105 = arith.constant 0 : index
    %97 = vector.load %arg22[%c121_104, %c0_105] : memref<400x32xbf16, #tpu.memory_space<vmem>>, vector<9x32xbf16>
    %c131_106 = arith.constant 131 : index
    %c0_107 = arith.constant 0 : index
    %98 = vector.load %arg22[%c131_106, %c0_107] : memref<400x32xbf16, #tpu.memory_space<vmem>>, vector<9x32xbf16>
    %c140_108 = arith.constant 140 : index
    %c0_109 = arith.constant 0 : index
    %99 = vector.load %arg22[%c140_108, %c0_109] : memref<400x32xbf16, #tpu.memory_space<vmem>>, vector<9x32xbf16>
    %c150_110 = arith.constant 150 : index
    %c0_111 = arith.constant 0 : index
    %100 = vector.load %arg22[%c150_110, %c0_111] : memref<400x32xbf16, #tpu.memory_space<vmem>>, vector<9x32xbf16>
    %c141_112 = arith.constant 141 : index
    %c0_113 = arith.constant 0 : index
    %101 = vector.load %arg22[%c141_112, %c0_113] : memref<400x32xbf16, #tpu.memory_space<vmem>>, vector<9x32xbf16>
    %c151_114 = arith.constant 151 : index
    %c0_115 = arith.constant 0 : index
    %102 = vector.load %arg22[%c151_114, %c0_115] : memref<400x32xbf16, #tpu.memory_space<vmem>>, vector<9x32xbf16>
    %c160 = arith.constant 160 : index
    %c0_116 = arith.constant 0 : index
    %103 = vector.load %arg22[%c160, %c0_116] : memref<400x32xbf16, #tpu.memory_space<vmem>>, vector<9x32xbf16>
    %c170 = arith.constant 170 : index
    %c0_117 = arith.constant 0 : index
    %104 = vector.load %arg22[%c170, %c0_117] : memref<400x32xbf16, #tpu.memory_space<vmem>>, vector<9x32xbf16>
    %c161 = arith.constant 161 : index
    %c0_118 = arith.constant 0 : index
    %105 = vector.load %arg22[%c161, %c0_118] : memref<400x32xbf16, #tpu.memory_space<vmem>>, vector<9x32xbf16>
    %c171 = arith.constant 171 : index
    %c0_119 = arith.constant 0 : index
    %106 = vector.load %arg22[%c171, %c0_119] : memref<400x32xbf16, #tpu.memory_space<vmem>>, vector<9x32xbf16>
    %c180 = arith.constant 180 : index
    %c0_120 = arith.constant 0 : index
    %107 = vector.load %arg22[%c180, %c0_120] : memref<400x32xbf16, #tpu.memory_space<vmem>>, vector<9x32xbf16>
    %c190 = arith.constant 190 : index
    %c0_121 = arith.constant 0 : index
    %108 = vector.load %arg22[%c190, %c0_121] : memref<400x32xbf16, #tpu.memory_space<vmem>>, vector<9x32xbf16>
    %c181 = arith.constant 181 : index
    %c0_122 = arith.constant 0 : index
    %109 = vector.load %arg22[%c181, %c0_122] : memref<400x32xbf16, #tpu.memory_space<vmem>>, vector<9x32xbf16>
    %c191 = arith.constant 191 : index
    %c0_123 = arith.constant 0 : index
    %110 = vector.load %arg22[%c191, %c0_123] : memref<400x32xbf16, #tpu.memory_space<vmem>>, vector<9x32xbf16>
    %111 = tpu.concatenate %95, %96, %97, %98, %99, %100, %101, %102, %103, %104, %105, %106, %107, %108, %109, %110 in 1 : vector<9x32xbf16>, vector<9x32xbf16>, vector<9x32xbf16>, vector<9x32xbf16>, vector<9x32xbf16>, vector<9x32xbf16>, vector<9x32xbf16>, vector<9x32xbf16>, vector<9x32xbf16>, vector<9x32xbf16>, vector<9x32xbf16>, vector<9x32xbf16>, vector<9x32xbf16>, vector<9x32xbf16>, vector<9x32xbf16>, vector<9x32xbf16> -> vector<9x512xbf16>
    %c0_124 = arith.constant 0 : index
    %c0_125 = arith.constant 0 : index
    %112 = vector.load %arg5[%c0_124, %c0_125] : memref<512x64xbf16, #tpu.memory_space<vmem>>, vector<512x64xbf16>
    %cst_126 = arith.constant dense<0.000000e+00> : vector<9x64xf32>
    %113 = tpu.matmul %111, %112, %cst_126 {dimension_numbers = #tpu.dot_dimension_numbers<[1], [0], [0], [1], [0, 0, 1, 1], [], []>} : vector<9x512xbf16>, vector<512x64xbf16>, vector<9x64xf32> -> vector<9x64xf32>
    %c0_127 = arith.constant 0 : index
    %c0_128 = arith.constant 0 : index
    %114 = vector.load %arg6[%c0_127, %c0_128] : memref<1x64xf32, #tpu.memory_space<vmem>>, vector<1x64xf32>
    %115 = vector.broadcast %114 : vector<1x64xf32> to vector<9x64xf32>
    %116 = arith.addf %113, %115 : vector<9x64xf32>
    %cst_129 = arith.constant 0.000000e+00 : f32
    %117 = vector.broadcast %cst_129 : f32 to vector<9x64xf32>
    %118 = arith.maximumf %116, %117 : vector<9x64xf32>
    %119 = arith.truncf %118 : vector<9x64xf32> to vector<9x64xbf16>
    %c3 = arith.constant 3 : index
    %c0_130 = arith.constant 0 : index
    %c0_131 = arith.constant 0 : index
    %120 = vector.load %arg23[%c3, %c0_130, %c0_131] : memref<9x9x64xbf16, #tpu.memory_space<vmem>>, vector<1x9x64xbf16>
    %121 = vector.shape_cast %120 : vector<1x9x64xbf16> to vector<9x64xbf16>
    %122 = vector.shape_cast %119 : vector<9x64xbf16> to vector<1x9x64xbf16>
    tpu.vector_store %arg23[%c3, %c0_130, %c0_131], %122 {strides = array<i32>} : memref<9x9x64xbf16, #tpu.memory_space<vmem>>, vector<1x9x64xbf16>,
    %c160_132 = arith.constant 160 : index
    %c0_133 = arith.constant 0 : index
    %123 = vector.load %arg22[%c160_132, %c0_133] : memref<400x32xbf16, #tpu.memory_space<vmem>>, vector<9x32xbf16>
    %c170_134 = arith.constant 170 : index
    %c0_135 = arith.constant 0 : index
    %124 = vector.load %arg22[%c170_134, %c0_135] : memref<400x32xbf16, #tpu.memory_space<vmem>>, vector<9x32xbf16>
    %c161_136 = arith.constant 161 : index
    %c0_137 = arith.constant 0 : index
    %125 = vector.load %arg22[%c161_136, %c0_137] : memref<400x32xbf16, #tpu.memory_space<vmem>>, vector<9x32xbf16>
    %c171_138 = arith.constant 171 : index
    %c0_139 = arith.constant 0 : index
    %126 = vector.load %arg22[%c171_138, %c0_139] : memref<400x32xbf16, #tpu.memory_space<vmem>>, vector<9x32xbf16>
    %c180_140 = arith.constant 180 : index
    %c0_141 = arith.constant 0 : index
    %127 = vector.load %arg22[%c180_140, %c0_141] : memref<400x32xbf16, #tpu.memory_space<vmem>>, vector<9x32xbf16>
    %c190_142 = arith.constant 190 : index
    %c0_143 = arith.constant 0 : index
    %128 = vector.load %arg22[%c190_142, %c0_143] : memref<400x32xbf16, #tpu.memory_space<vmem>>, vector<9x32xbf16>
    %c181_144 = arith.constant 181 : index
    %c0_145 = arith.constant 0 : index
    %129 = vector.load %arg22[%c181_144, %c0_145] : memref<400x32xbf16, #tpu.memory_space<vmem>>, vector<9x32xbf16>
    %c191_146 = arith.constant 191 : index
    %c0_147 = arith.constant 0 : index
    %130 = vector.load %arg22[%c191_146, %c0_147] : memref<400x32xbf16, #tpu.memory_space<vmem>>, vector<9x32xbf16>
    %c200 = arith.constant 200 : index
    %c0_148 = arith.constant 0 : index
    %131 = vector.load %arg22[%c200, %c0_148] : memref<400x32xbf16, #tpu.memory_space<vmem>>, vector<9x32xbf16>
    %c210 = arith.constant 210 : index
    %c0_149 = arith.constant 0 : index
    %132 = vector.load %arg22[%c210, %c0_149] : memref<400x32xbf16, #tpu.memory_space<vmem>>, vector<9x32xbf16>
    %c201 = arith.constant 201 : index
    %c0_150 = arith.constant 0 : index
    %133 = vector.load %arg22[%c201, %c0_150] : memref<400x32xbf16, #tpu.memory_space<vmem>>, vector<9x32xbf16>
    %c211 = arith.constant 211 : index
    %c0_151 = arith.constant 0 : index
    %134 = vector.load %arg22[%c211, %c0_151] : memref<400x32xbf16, #tpu.memory_space<vmem>>, vector<9x32xbf16>
    %c220 = arith.constant 220 : index
    %c0_152 = arith.constant 0 : index
    %135 = vector.load %arg22[%c220, %c0_152] : memref<400x32xbf16, #tpu.memory_space<vmem>>, vector<9x32xbf16>
    %c230 = arith.constant 230 : index
    %c0_153 = arith.constant 0 : index
    %136 = vector.load %arg22[%c230, %c0_153] : memref<400x32xbf16, #tpu.memory_space<vmem>>, vector<9x32xbf16>
    %c221 = arith.constant 221 : index
    %c0_154 = arith.constant 0 : index
    %137 = vector.load %arg22[%c221, %c0_154] : memref<400x32xbf16, #tpu.memory_space<vmem>>, vector<9x32xbf16>
    %c231 = arith.constant 231 : index
    %c0_155 = arith.constant 0 : index
    %138 = vector.load %arg22[%c231, %c0_155] : memref<400x32xbf16, #tpu.memory_space<vmem>>, vector<9x32xbf16>
    %139 = tpu.concatenate %123, %124, %125, %126, %127, %128, %129, %130, %131, %132, %133, %134, %135, %136, %137, %138 in 1 : vector<9x32xbf16>, vector<9x32xbf16>, vector<9x32xbf16>, vector<9x32xbf16>, vector<9x32xbf16>, vector<9x32xbf16>, vector<9x32xbf16>, vector<9x32xbf16>, vector<9x32xbf16>, vector<9x32xbf16>, vector<9x32xbf16>, vector<9x32xbf16>, vector<9x32xbf16>, vector<9x32xbf16>, vector<9x32xbf16>, vector<9x32xbf16> -> vector<9x512xbf16>
    %c0_156 = arith.constant 0 : index
    %c0_157 = arith.constant 0 : index
    %140 = vector.load %arg5[%c0_156, %c0_157] : memref<512x64xbf16, #tpu.memory_space<vmem>>, vector<512x64xbf16>
    %cst_158 = arith.constant dense<0.000000e+00> : vector<9x64xf32>
    %141 = tpu.matmul %139, %140, %cst_158 {dimension_numbers = #tpu.dot_dimension_numbers<[1], [0], [0], [1], [0, 0, 1, 1], [], []>} : vector<9x512xbf16>, vector<512x64xbf16>, vector<9x64xf32> -> vector<9x64xf32>
    %c0_159 = arith.constant 0 : index
    %c0_160 = arith.constant 0 : index
    %142 = vector.load %arg6[%c0_159, %c0_160] : memref<1x64xf32, #tpu.memory_space<vmem>>, vector<1x64xf32>
    %143 = vector.broadcast %142 : vector<1x64xf32> to vector<9x64xf32>
    %144 = arith.addf %141, %143 : vector<9x64xf32>
    %cst_161 = arith.constant 0.000000e+00 : f32
    %145 = vector.broadcast %cst_161 : f32 to vector<9x64xf32>
    %146 = arith.maximumf %144, %145 : vector<9x64xf32>
    %147 = arith.truncf %146 : vector<9x64xf32> to vector<9x64xbf16>
    %c4 = arith.constant 4 : index
    %c0_162 = arith.constant 0 : index
    %c0_163 = arith.constant 0 : index
    %148 = vector.load %arg23[%c4, %c0_162, %c0_163] : memref<9x9x64xbf16, #tpu.memory_space<vmem>>, vector<1x9x64xbf16>
    %149 = vector.shape_cast %148 : vector<1x9x64xbf16> to vector<9x64xbf16>
    %150 = vector.shape_cast %147 : vector<9x64xbf16> to vector<1x9x64xbf16>
    tpu.vector_store %arg23[%c4, %c0_162, %c0_163], %150 {strides = array<i32>} : memref<9x9x64xbf16, #tpu.memory_space<vmem>>, vector<1x9x64xbf16>,
    %c200_164 = arith.constant 200 : index
    %c0_165 = arith.constant 0 : index
    %151 = vector.load %arg22[%c200_164, %c0_165] : memref<400x32xbf16, #tpu.memory_space<vmem>>, vector<9x32xbf16>
    %c210_166 = arith.constant 210 : index
    %c0_167 = arith.constant 0 : index
    %152 = vector.load %arg22[%c210_166, %c0_167] : memref<400x32xbf16, #tpu.memory_space<vmem>>, vector<9x32xbf16>
    %c201_168 = arith.constant 201 : index
    %c0_169 = arith.constant 0 : index
    %153 = vector.load %arg22[%c201_168, %c0_169] : memref<400x32xbf16, #tpu.memory_space<vmem>>, vector<9x32xbf16>
    %c211_170 = arith.constant 211 : index
    %c0_171 = arith.constant 0 : index
    %154 = vector.load %arg22[%c211_170, %c0_171] : memref<400x32xbf16, #tpu.memory_space<vmem>>, vector<9x32xbf16>
    %c220_172 = arith.constant 220 : index
    %c0_173 = arith.constant 0 : index
    %155 = vector.load %arg22[%c220_172, %c0_173] : memref<400x32xbf16, #tpu.memory_space<vmem>>, vector<9x32xbf16>
    %c230_174 = arith.constant 230 : index
    %c0_175 = arith.constant 0 : index
    %156 = vector.load %arg22[%c230_174, %c0_175] : memref<400x32xbf16, #tpu.memory_space<vmem>>, vector<9x32xbf16>
    %c221_176 = arith.constant 221 : index
    %c0_177 = arith.constant 0 : index
    %157 = vector.load %arg22[%c221_176, %c0_177] : memref<400x32xbf16, #tpu.memory_space<vmem>>, vector<9x32xbf16>
    %c231_178 = arith.constant 231 : index
    %c0_179 = arith.constant 0 : index
    %158 = vector.load %arg22[%c231_178, %c0_179] : memref<400x32xbf16, #tpu.memory_space<vmem>>, vector<9x32xbf16>
    %c240 = arith.constant 240 : index
    %c0_180 = arith.constant 0 : index
    %159 = vector.load %arg22[%c240, %c0_180] : memref<400x32xbf16, #tpu.memory_space<vmem>>, vector<9x32xbf16>
    %c250 = arith.constant 250 : index
    %c0_181 = arith.constant 0 : index
    %160 = vector.load %arg22[%c250, %c0_181] : memref<400x32xbf16, #tpu.memory_space<vmem>>, vector<9x32xbf16>
    %c241 = arith.constant 241 : index
    %c0_182 = arith.constant 0 : index
    %161 = vector.load %arg22[%c241, %c0_182] : memref<400x32xbf16, #tpu.memory_space<vmem>>, vector<9x32xbf16>
    %c251 = arith.constant 251 : index
    %c0_183 = arith.constant 0 : index
    %162 = vector.load %arg22[%c251, %c0_183] : memref<400x32xbf16, #tpu.memory_space<vmem>>, vector<9x32xbf16>
    %c260 = arith.constant 260 : index
    %c0_184 = arith.constant 0 : index
    %163 = vector.load %arg22[%c260, %c0_184] : memref<400x32xbf16, #tpu.memory_space<vmem>>, vector<9x32xbf16>
    %c270 = arith.constant 270 : index
    %c0_185 = arith.constant 0 : index
    %164 = vector.load %arg22[%c270, %c0_185] : memref<400x32xbf16, #tpu.memory_space<vmem>>, vector<9x32xbf16>
    %c261 = arith.constant 261 : index
    %c0_186 = arith.constant 0 : index
    %165 = vector.load %arg22[%c261, %c0_186] : memref<400x32xbf16, #tpu.memory_space<vmem>>, vector<9x32xbf16>
    %c271 = arith.constant 271 : index
    %c0_187 = arith.constant 0 : index
    %166 = vector.load %arg22[%c271, %c0_187] : memref<400x32xbf16, #tpu.memory_space<vmem>>, vector<9x32xbf16>
    %167 = tpu.concatenate %151, %152, %153, %154, %155, %156, %157, %158, %159, %160, %161, %162, %163, %164, %165, %166 in 1 : vector<9x32xbf16>, vector<9x32xbf16>, vector<9x32xbf16>, vector<9x32xbf16>, vector<9x32xbf16>, vector<9x32xbf16>, vector<9x32xbf16>, vector<9x32xbf16>, vector<9x32xbf16>, vector<9x32xbf16>, vector<9x32xbf16>, vector<9x32xbf16>, vector<9x32xbf16>, vector<9x32xbf16>, vector<9x32xbf16>, vector<9x32xbf16> -> vector<9x512xbf16>
    %c0_188 = arith.constant 0 : index
    %c0_189 = arith.constant 0 : index
    %168 = vector.load %arg5[%c0_188, %c0_189] : memref<512x64xbf16, #tpu.memory_space<vmem>>, vector<512x64xbf16>
    %cst_190 = arith.constant dense<0.000000e+00> : vector<9x64xf32>
    %169 = tpu.matmul %167, %168, %cst_190 {dimension_numbers = #tpu.dot_dimension_numbers<[1], [0], [0], [1], [0, 0, 1, 1], [], []>} : vector<9x512xbf16>, vector<512x64xbf16>, vector<9x64xf32> -> vector<9x64xf32>
    %c0_191 = arith.constant 0 : index
    %c0_192 = arith.constant 0 : index
    %170 = vector.load %arg6[%c0_191, %c0_192] : memref<1x64xf32, #tpu.memory_space<vmem>>, vector<1x64xf32>
    %171 = vector.broadcast %170 : vector<1x64xf32> to vector<9x64xf32>
    %172 = arith.addf %169, %171 : vector<9x64xf32>
    %cst_193 = arith.constant 0.000000e+00 : f32
    %173 = vector.broadcast %cst_193 : f32 to vector<9x64xf32>
    %174 = arith.maximumf %172, %173 : vector<9x64xf32>
    %175 = arith.truncf %174 : vector<9x64xf32> to vector<9x64xbf16>
    %c5 = arith.constant 5 : index
    %c0_194 = arith.constant 0 : index
    %c0_195 = arith.constant 0 : index
    %176 = vector.load %arg23[%c5, %c0_194, %c0_195] : memref<9x9x64xbf16, #tpu.memory_space<vmem>>, vector<1x9x64xbf16>
    %177 = vector.shape_cast %176 : vector<1x9x64xbf16> to vector<9x64xbf16>
    %178 = vector.shape_cast %175 : vector<9x64xbf16> to vector<1x9x64xbf16>
    tpu.vector_store %arg23[%c5, %c0_194, %c0_195], %178 {strides = array<i32>} : memref<9x9x64xbf16, #tpu.memory_space<vmem>>, vector<1x9x64xbf16>,
    %c240_196 = arith.constant 240 : index
    %c0_197 = arith.constant 0 : index
    %179 = vector.load %arg22[%c240_196, %c0_197] : memref<400x32xbf16, #tpu.memory_space<vmem>>, vector<9x32xbf16>
    %c250_198 = arith.constant 250 : index
    %c0_199 = arith.constant 0 : index
    %180 = vector.load %arg22[%c250_198, %c0_199] : memref<400x32xbf16, #tpu.memory_space<vmem>>, vector<9x32xbf16>
    %c241_200 = arith.constant 241 : index
    %c0_201 = arith.constant 0 : index
    %181 = vector.load %arg22[%c241_200, %c0_201] : memref<400x32xbf16, #tpu.memory_space<vmem>>, vector<9x32xbf16>
    %c251_202 = arith.constant 251 : index
    %c0_203 = arith.constant 0 : index
    %182 = vector.load %arg22[%c251_202, %c0_203] : memref<400x32xbf16, #tpu.memory_space<vmem>>, vector<9x32xbf16>
    %c260_204 = arith.constant 260 : index
    %c0_205 = arith.constant 0 : index
    %183 = vector.load %arg22[%c260_204, %c0_205] : memref<400x32xbf16, #tpu.memory_space<vmem>>, vector<9x32xbf16>
    %c270_206 = arith.constant 270 : index
    %c0_207 = arith.constant 0 : index
    %184 = vector.load %arg22[%c270_206, %c0_207] : memref<400x32xbf16, #tpu.memory_space<vmem>>, vector<9x32xbf16>
    %c261_208 = arith.constant 261 : index
    %c0_209 = arith.constant 0 : index
    %185 = vector.load %arg22[%c261_208, %c0_209] : memref<400x32xbf16, #tpu.memory_space<vmem>>, vector<9x32xbf16>
    %c271_210 = arith.constant 271 : index
    %c0_211 = arith.constant 0 : index
    %186 = vector.load %arg22[%c271_210, %c0_211] : memref<400x32xbf16, #tpu.memory_space<vmem>>, vector<9x32xbf16>
    %c280 = arith.constant 280 : index
    %c0_212 = arith.constant 0 : index
    %187 = vector.load %arg22[%c280, %c0_212] : memref<400x32xbf16, #tpu.memory_space<vmem>>, vector<9x32xbf16>
    %c290 = arith.constant 290 : index
    %c0_213 = arith.constant 0 : index
    %188 = vector.load %arg22[%c290, %c0_213] : memref<400x32xbf16, #tpu.memory_space<vmem>>, vector<9x32xbf16>
    %c281 = arith.constant 281 : index
    %c0_214 = arith.constant 0 : index
    %189 = vector.load %arg22[%c281, %c0_214] : memref<400x32xbf16, #tpu.memory_space<vmem>>, vector<9x32xbf16>
    %c291 = arith.constant 291 : index
    %c0_215 = arith.constant 0 : index
    %190 = vector.load %arg22[%c291, %c0_215] : memref<400x32xbf16, #tpu.memory_space<vmem>>, vector<9x32xbf16>
    %c300 = arith.constant 300 : index
    %c0_216 = arith.constant 0 : index
    %191 = vector.load %arg22[%c300, %c0_216] : memref<400x32xbf16, #tpu.memory_space<vmem>>, vector<9x32xbf16>
    %c310 = arith.constant 310 : index
    %c0_217 = arith.constant 0 : index
    %192 = vector.load %arg22[%c310, %c0_217] : memref<400x32xbf16, #tpu.memory_space<vmem>>, vector<9x32xbf16>
    %c301 = arith.constant 301 : index
    %c0_218 = arith.constant 0 : index
    %193 = vector.load %arg22[%c301, %c0_218] : memref<400x32xbf16, #tpu.memory_space<vmem>>, vector<9x32xbf16>
    %c311 = arith.constant 311 : index
    %c0_219 = arith.constant 0 : index
    %194 = vector.load %arg22[%c311, %c0_219] : memref<400x32xbf16, #tpu.memory_space<vmem>>, vector<9x32xbf16>
    %195 = tpu.concatenate %179, %180, %181, %182, %183, %184, %185, %186, %187, %188, %189, %190, %191, %192, %193, %194 in 1 : vector<9x32xbf16>, vector<9x32xbf16>, vector<9x32xbf16>, vector<9x32xbf16>, vector<9x32xbf16>, vector<9x32xbf16>, vector<9x32xbf16>, vector<9x32xbf16>, vector<9x32xbf16>, vector<9x32xbf16>, vector<9x32xbf16>, vector<9x32xbf16>, vector<9x32xbf16>, vector<9x32xbf16>, vector<9x32xbf16>, vector<9x32xbf16> -> vector<9x512xbf16>
    %c0_220 = arith.constant 0 : index
    %c0_221 = arith.constant 0 : index
    %196 = vector.load %arg5[%c0_220, %c0_221] : memref<512x64xbf16, #tpu.memory_space<vmem>>, vector<512x64xbf16>
    %cst_222 = arith.constant dense<0.000000e+00> : vector<9x64xf32>
    %197 = tpu.matmul %195, %196, %cst_222 {dimension_numbers = #tpu.dot_dimension_numbers<[1], [0], [0], [1], [0, 0, 1, 1], [], []>} : vector<9x512xbf16>, vector<512x64xbf16>, vector<9x64xf32> -> vector<9x64xf32>
    %c0_223 = arith.constant 0 : index
    %c0_224 = arith.constant 0 : index
    %198 = vector.load %arg6[%c0_223, %c0_224] : memref<1x64xf32, #tpu.memory_space<vmem>>, vector<1x64xf32>
    %199 = vector.broadcast %198 : vector<1x64xf32> to vector<9x64xf32>
    %200 = arith.addf %197, %199 : vector<9x64xf32>
    %cst_225 = arith.constant 0.000000e+00 : f32
    %201 = vector.broadcast %cst_225 : f32 to vector<9x64xf32>
    %202 = arith.maximumf %200, %201 : vector<9x64xf32>
    %203 = arith.truncf %202 : vector<9x64xf32> to vector<9x64xbf16>
    %c6 = arith.constant 6 : index
    %c0_226 = arith.constant 0 : index
    %c0_227 = arith.constant 0 : index
    %204 = vector.load %arg23[%c6, %c0_226, %c0_227] : memref<9x9x64xbf16, #tpu.memory_space<vmem>>, vector<1x9x64xbf16>
    %205 = vector.shape_cast %204 : vector<1x9x64xbf16> to vector<9x64xbf16>
    %206 = vector.shape_cast %203 : vector<9x64xbf16> to vector<1x9x64xbf16>
    tpu.vector_store %arg23[%c6, %c0_226, %c0_227], %206 {strides = array<i32>} : memref<9x9x64xbf16, #tpu.memory_space<vmem>>, vector<1x9x64xbf16>,
    %c280_228 = arith.constant 280 : index
    %c0_229 = arith.constant 0 : index
    %207 = vector.load %arg22[%c280_228, %c0_229] : memref<400x32xbf16, #tpu.memory_space<vmem>>, vector<9x32xbf16>
    %c290_230 = arith.constant 290 : index
    %c0_231 = arith.constant 0 : index
    %208 = vector.load %arg22[%c290_230, %c0_231] : memref<400x32xbf16, #tpu.memory_space<vmem>>, vector<9x32xbf16>
    %c281_232 = arith.constant 281 : index
    %c0_233 = arith.constant 0 : index
    %209 = vector.load %arg22[%c281_232, %c0_233] : memref<400x32xbf16, #tpu.memory_space<vmem>>, vector<9x32xbf16>
    %c291_234 = arith.constant 291 : index
    %c0_235 = arith.constant 0 : index
    %210 = vector.load %arg22[%c291_234, %c0_235] : memref<400x32xbf16, #tpu.memory_space<vmem>>, vector<9x32xbf16>
    %c300_236 = arith.constant 300 : index
    %c0_237 = arith.constant 0 : index
    %211 = vector.load %arg22[%c300_236, %c0_237] : memref<400x32xbf16, #tpu.memory_space<vmem>>, vector<9x32xbf16>
    %c310_238 = arith.constant 310 : index
    %c0_239 = arith.constant 0 : index
    %212 = vector.load %arg22[%c310_238, %c0_239] : memref<400x32xbf16, #tpu.memory_space<vmem>>, vector<9x32xbf16>
    %c301_240 = arith.constant 301 : index
    %c0_241 = arith.constant 0 : index
    %213 = vector.load %arg22[%c301_240, %c0_241] : memref<400x32xbf16, #tpu.memory_space<vmem>>, vector<9x32xbf16>
    %c311_242 = arith.constant 311 : index
    %c0_243 = arith.constant 0 : index
    %214 = vector.load %arg22[%c311_242, %c0_243] : memref<400x32xbf16, #tpu.memory_space<vmem>>, vector<9x32xbf16>
    %c320 = arith.constant 320 : index
    %c0_244 = arith.constant 0 : index
    %215 = vector.load %arg22[%c320, %c0_244] : memref<400x32xbf16, #tpu.memory_space<vmem>>, vector<9x32xbf16>
    %c330 = arith.constant 330 : index
    %c0_245 = arith.constant 0 : index
    %216 = vector.load %arg22[%c330, %c0_245] : memref<400x32xbf16, #tpu.memory_space<vmem>>, vector<9x32xbf16>
    %c321 = arith.constant 321 : index
    %c0_246 = arith.constant 0 : index
    %217 = vector.load %arg22[%c321, %c0_246] : memref<400x32xbf16, #tpu.memory_space<vmem>>, vector<9x32xbf16>
    %c331 = arith.constant 331 : index
    %c0_247 = arith.constant 0 : index
    %218 = vector.load %arg22[%c331, %c0_247] : memref<400x32xbf16, #tpu.memory_space<vmem>>, vector<9x32xbf16>
    %c340 = arith.constant 340 : index
    %c0_248 = arith.constant 0 : index
    %219 = vector.load %arg22[%c340, %c0_248] : memref<400x32xbf16, #tpu.memory_space<vmem>>, vector<9x32xbf16>
    %c350 = arith.constant 350 : index
    %c0_249 = arith.constant 0 : index
    %220 = vector.load %arg22[%c350, %c0_249] : memref<400x32xbf16, #tpu.memory_space<vmem>>, vector<9x32xbf16>
    %c341 = arith.constant 341 : index
    %c0_250 = arith.constant 0 : index
    %221 = vector.load %arg22[%c341, %c0_250] : memref<400x32xbf16, #tpu.memory_space<vmem>>, vector<9x32xbf16>
    %c351 = arith.constant 351 : index
    %c0_251 = arith.constant 0 : index
    %222 = vector.load %arg22[%c351, %c0_251] : memref<400x32xbf16, #tpu.memory_space<vmem>>, vector<9x32xbf16>
    %223 = tpu.concatenate %207, %208, %209, %210, %211, %212, %213, %214, %215, %216, %217, %218, %219, %220, %221, %222 in 1 : vector<9x32xbf16>, vector<9x32xbf16>, vector<9x32xbf16>, vector<9x32xbf16>, vector<9x32xbf16>, vector<9x32xbf16>, vector<9x32xbf16>, vector<9x32xbf16>, vector<9x32xbf16>, vector<9x32xbf16>, vector<9x32xbf16>, vector<9x32xbf16>, vector<9x32xbf16>, vector<9x32xbf16>, vector<9x32xbf16>, vector<9x32xbf16> -> vector<9x512xbf16>
    %c0_252 = arith.constant 0 : index
    %c0_253 = arith.constant 0 : index
    %224 = vector.load %arg5[%c0_252, %c0_253] : memref<512x64xbf16, #tpu.memory_space<vmem>>, vector<512x64xbf16>
    %cst_254 = arith.constant dense<0.000000e+00> : vector<9x64xf32>
    %225 = tpu.matmul %223, %224, %cst_254 {dimension_numbers = #tpu.dot_dimension_numbers<[1], [0], [0], [1], [0, 0, 1, 1], [], []>} : vector<9x512xbf16>, vector<512x64xbf16>, vector<9x64xf32> -> vector<9x64xf32>
    %c0_255 = arith.constant 0 : index
    %c0_256 = arith.constant 0 : index
    %226 = vector.load %arg6[%c0_255, %c0_256] : memref<1x64xf32, #tpu.memory_space<vmem>>, vector<1x64xf32>
    %227 = vector.broadcast %226 : vector<1x64xf32> to vector<9x64xf32>
    %228 = arith.addf %225, %227 : vector<9x64xf32>
    %cst_257 = arith.constant 0.000000e+00 : f32
    %229 = vector.broadcast %cst_257 : f32 to vector<9x64xf32>
    %230 = arith.maximumf %228, %229 : vector<9x64xf32>
    %231 = arith.truncf %230 : vector<9x64xf32> to vector<9x64xbf16>
    %c7 = arith.constant 7 : index
    %c0_258 = arith.constant 0 : index
    %c0_259 = arith.constant 0 : index
    %232 = vector.load %arg23[%c7, %c0_258, %c0_259] : memref<9x9x64xbf16, #tpu.memory_space<vmem>>, vector<1x9x64xbf16>
    %233 = vector.shape_cast %232 : vector<1x9x64xbf16> to vector<9x64xbf16>
    %234 = vector.shape_cast %231 : vector<9x64xbf16> to vector<1x9x64xbf16>
    tpu.vector_store %arg23[%c7, %c0_258, %c0_259], %234 {strides = array<i32>} : memref<9x9x64xbf16, #tpu.memory_space<vmem>>, vector<1x9x64xbf16>,
    %c320_260 = arith.constant 320 : index
    %c0_261 = arith.constant 0 : index
    %235 = vector.load %arg22[%c320_260, %c0_261] : memref<400x32xbf16, #tpu.memory_space<vmem>>, vector<9x32xbf16>
    %c330_262 = arith.constant 330 : index
    %c0_263 = arith.constant 0 : index
    %236 = vector.load %arg22[%c330_262, %c0_263] : memref<400x32xbf16, #tpu.memory_space<vmem>>, vector<9x32xbf16>
    %c321_264 = arith.constant 321 : index
    %c0_265 = arith.constant 0 : index
    %237 = vector.load %arg22[%c321_264, %c0_265] : memref<400x32xbf16, #tpu.memory_space<vmem>>, vector<9x32xbf16>
    %c331_266 = arith.constant 331 : index
    %c0_267 = arith.constant 0 : index
    %238 = vector.load %arg22[%c331_266, %c0_267] : memref<400x32xbf16, #tpu.memory_space<vmem>>, vector<9x32xbf16>
    %c340_268 = arith.constant 340 : index
    %c0_269 = arith.constant 0 : index
    %239 = vector.load %arg22[%c340_268, %c0_269] : memref<400x32xbf16, #tpu.memory_space<vmem>>, vector<9x32xbf16>
    %c350_270 = arith.constant 350 : index
    %c0_271 = arith.constant 0 : index
    %240 = vector.load %arg22[%c350_270, %c0_271] : memref<400x32xbf16, #tpu.memory_space<vmem>>, vector<9x32xbf16>
    %c341_272 = arith.constant 341 : index
    %c0_273 = arith.constant 0 : index
    %241 = vector.load %arg22[%c341_272, %c0_273] : memref<400x32xbf16, #tpu.memory_space<vmem>>, vector<9x32xbf16>
    %c351_274 = arith.constant 351 : index
    %c0_275 = arith.constant 0 : index
    %242 = vector.load %arg22[%c351_274, %c0_275] : memref<400x32xbf16, #tpu.memory_space<vmem>>, vector<9x32xbf16>
    %c360 = arith.constant 360 : index
    %c0_276 = arith.constant 0 : index
    %243 = vector.load %arg22[%c360, %c0_276] : memref<400x32xbf16, #tpu.memory_space<vmem>>, vector<9x32xbf16>
    %c370 = arith.constant 370 : index
    %c0_277 = arith.constant 0 : index
    %244 = vector.load %arg22[%c370, %c0_277] : memref<400x32xbf16, #tpu.memory_space<vmem>>, vector<9x32xbf16>
    %c361 = arith.constant 361 : index
    %c0_278 = arith.constant 0 : index
    %245 = vector.load %arg22[%c361, %c0_278] : memref<400x32xbf16, #tpu.memory_space<vmem>>, vector<9x32xbf16>
    %c371 = arith.constant 371 : index
    %c0_279 = arith.constant 0 : index
    %246 = vector.load %arg22[%c371, %c0_279] : memref<400x32xbf16, #tpu.memory_space<vmem>>, vector<9x32xbf16>
    %c380 = arith.constant 380 : index
    %c0_280 = arith.constant 0 : index
    %247 = vector.load %arg22[%c380, %c0_280] : memref<400x32xbf16, #tpu.memory_space<vmem>>, vector<9x32xbf16>
    %c390 = arith.constant 390 : index
    %c0_281 = arith.constant 0 : index
    %248 = vector.load %arg22[%c390, %c0_281] : memref<400x32xbf16, #tpu.memory_space<vmem>>, vector<9x32xbf16>
    %c381 = arith.constant 381 : index
    %c0_282 = arith.constant 0 : index
    %249 = vector.load %arg22[%c381, %c0_282] : memref<400x32xbf16, #tpu.memory_space<vmem>>, vector<9x32xbf16>
    %c391 = arith.constant 391 : index
    %c0_283 = arith.constant 0 : index
    %250 = vector.load %arg22[%c391, %c0_283] : memref<400x32xbf16, #tpu.memory_space<vmem>>, vector<9x32xbf16>
    %251 = tpu.concatenate %235, %236, %237, %238, %239, %240, %241, %242, %243, %244, %245, %246, %247, %248, %249, %250 in 1 : vector<9x32xbf16>, vector<9x32xbf16>, vector<9x32xbf16>, vector<9x32xbf16>, vector<9x32xbf16>, vector<9x32xbf16>, vector<9x32xbf16>, vector<9x32xbf16>, vector<9x32xbf16>, vector<9x32xbf16>, vector<9x32xbf16>, vector<9x32xbf16>, vector<9x32xbf16>, vector<9x32xbf16>, vector<9x32xbf16>, vector<9x32xbf16> -> vector<9x512xbf16>
    %c0_284 = arith.constant 0 : index
    %c0_285 = arith.constant 0 : index
    %252 = vector.load %arg5[%c0_284, %c0_285] : memref<512x64xbf16, #tpu.memory_space<vmem>>, vector<512x64xbf16>
    %cst_286 = arith.constant dense<0.000000e+00> : vector<9x64xf32>
    %253 = tpu.matmul %251, %252, %cst_286 {dimension_numbers = #tpu.dot_dimension_numbers<[1], [0], [0], [1], [0, 0, 1, 1], [], []>} : vector<9x512xbf16>, vector<512x64xbf16>, vector<9x64xf32> -> vector<9x64xf32>
    %c0_287 = arith.constant 0 : index
    %c0_288 = arith.constant 0 : index
    %254 = vector.load %arg6[%c0_287, %c0_288] : memref<1x64xf32, #tpu.memory_space<vmem>>, vector<1x64xf32>
    %255 = vector.broadcast %254 : vector<1x64xf32> to vector<9x64xf32>
    %256 = arith.addf %253, %255 : vector<9x64xf32>
    %cst_289 = arith.constant 0.000000e+00 : f32
    %257 = vector.broadcast %cst_289 : f32 to vector<9x64xf32>
    %258 = arith.maximumf %256, %257 : vector<9x64xf32>
    %259 = arith.truncf %258 : vector<9x64xf32> to vector<9x64xbf16>
    %c8 = arith.constant 8 : index
    %c0_290 = arith.constant 0 : index
    %c0_291 = arith.constant 0 : index
    %260 = vector.load %arg23[%c8, %c0_290, %c0_291] : memref<9x9x64xbf16, #tpu.memory_space<vmem>>, vector<1x9x64xbf16>
    %261 = vector.shape_cast %260 : vector<1x9x64xbf16> to vector<9x64xbf16>
    %262 = vector.shape_cast %259 : vector<9x64xbf16> to vector<1x9x64xbf16>
    tpu.vector_store %arg23[%c8, %c0_290, %c0_291], %262 {strides = array<i32>} : memref<9x9x64xbf16, #tpu.memory_space<vmem>>, vector<1x9x64xbf16>,
    %c0_292 = arith.constant 0 : index
    %c0_293 = arith.constant 0 : index
    %c0_294 = arith.constant 0 : index
    %263 = vector.load %arg23[%c0_292, %c0_293, %c0_294] : memref<9x9x64xbf16, #tpu.memory_space<vmem>>, vector<1x7x64xbf16>
    %264 = vector.shape_cast %263 : vector<1x7x64xbf16> to vector<7x64xbf16>
    %c0_295 = arith.constant 0 : index
    %c1_296 = arith.constant 1 : index
    %c0_297 = arith.constant 0 : index
    %265 = vector.load %arg23[%c0_295, %c1_296, %c0_297] : memref<9x9x64xbf16, #tpu.memory_space<vmem>>, vector<1x7x64xbf16>
    %266 = vector.shape_cast %265 : vector<1x7x64xbf16> to vector<7x64xbf16>
    %c0_298 = arith.constant 0 : index
    %c2_299 = arith.constant 2 : index
    %c0_300 = arith.constant 0 : index
    %267 = vector.load %arg23[%c0_298, %c2_299, %c0_300] : memref<9x9x64xbf16, #tpu.memory_space<vmem>>, vector<1x7x64xbf16>
    %268 = vector.shape_cast %267 : vector<1x7x64xbf16> to vector<7x64xbf16>
    %c1_301 = arith.constant 1 : index
    %c0_302 = arith.constant 0 : index
    %c0_303 = arith.constant 0 : index
    %269 = vector.load %arg23[%c1_301, %c0_302, %c0_303] : memref<9x9x64xbf16, #tpu.memory_space<vmem>>, vector<1x7x64xbf16>
    %270 = vector.shape_cast %269 : vector<1x7x64xbf16> to vector<7x64xbf16>
    %c1_304 = arith.constant 1 : index
    %c1_305 = arith.constant 1 : index
    %c0_306 = arith.constant 0 : index
    %271 = vector.load %arg23[%c1_304, %c1_305, %c0_306] : memref<9x9x64xbf16, #tpu.memory_space<vmem>>, vector<1x7x64xbf16>
    %272 = vector.shape_cast %271 : vector<1x7x64xbf16> to vector<7x64xbf16>
    %c1_307 = arith.constant 1 : index
    %c2_308 = arith.constant 2 : index
    %c0_309 = arith.constant 0 : index
    %273 = vector.load %arg23[%c1_307, %c2_308, %c0_309] : memref<9x9x64xbf16, #tpu.memory_space<vmem>>, vector<1x7x64xbf16>
    %274 = vector.shape_cast %273 : vector<1x7x64xbf16> to vector<7x64xbf16>
    %c2_310 = arith.constant 2 : index
    %c0_311 = arith.constant 0 : index
    %c0_312 = arith.constant 0 : index
    %275 = vector.load %arg23[%c2_310, %c0_311, %c0_312] : memref<9x9x64xbf16, #tpu.memory_space<vmem>>, vector<1x7x64xbf16>
    %276 = vector.shape_cast %275 : vector<1x7x64xbf16> to vector<7x64xbf16>
    %c2_313 = arith.constant 2 : index
    %c1_314 = arith.constant 1 : index
    %c0_315 = arith.constant 0 : index
    %277 = vector.load %arg23[%c2_313, %c1_314, %c0_315] : memref<9x9x64xbf16, #tpu.memory_space<vmem>>, vector<1x7x64xbf16>
    %278 = vector.shape_cast %277 : vector<1x7x64xbf16> to vector<7x64xbf16>
    %c2_316 = arith.constant 2 : index
    %c2_317 = arith.constant 2 : index
    %c0_318 = arith.constant 0 : index
    %279 = vector.load %arg23[%c2_316, %c2_317, %c0_318] : memref<9x9x64xbf16, #tpu.memory_space<vmem>>, vector<1x7x64xbf16>
    %280 = vector.shape_cast %279 : vector<1x7x64xbf16> to vector<7x64xbf16>
    %281 = tpu.concatenate %264, %266, %268, %270, %272, %274, %276, %278, %280 in 1 : vector<7x64xbf16>, vector<7x64xbf16>, vector<7x64xbf16>, vector<7x64xbf16>, vector<7x64xbf16>, vector<7x64xbf16>, vector<7x64xbf16>, vector<7x64xbf16>, vector<7x64xbf16> -> vector<7x576xbf16>
    %c0_319 = arith.constant 0 : index
    %c0_320 = arith.constant 0 : index
    %282 = vector.load %arg7[%c0_319, %c0_320] : memref<576x64xbf16, #tpu.memory_space<vmem>>, vector<576x64xbf16>
    %cst_321 = arith.constant dense<0.000000e+00> : vector<7x64xf32>
    %283 = tpu.matmul %281, %282, %cst_321 {dimension_numbers = #tpu.dot_dimension_numbers<[1], [0], [0], [1], [0, 0, 1, 1], [], []>} : vector<7x576xbf16>, vector<576x64xbf16>, vector<7x64xf32> -> vector<7x64xf32>
    %c0_322 = arith.constant 0 : index
    %c0_323 = arith.constant 0 : index
    %284 = vector.load %arg8[%c0_322, %c0_323] : memref<1x64xf32, #tpu.memory_space<vmem>>, vector<1x64xf32>
    %285 = vector.broadcast %284 : vector<1x64xf32> to vector<7x64xf32>
    %286 = arith.addf %283, %285 : vector<7x64xf32>
    %cst_324 = arith.constant 0.000000e+00 : f32
    %287 = vector.broadcast %cst_324 : f32 to vector<7x64xf32>
    %288 = arith.maximumf %286, %287 : vector<7x64xf32>
    %289 = arith.truncf %288 : vector<7x64xf32> to vector<7x64xbf16>
    %c1_325 = arith.constant 1 : index
    %c0_326 = arith.constant 0 : index
    %c0_327 = arith.constant 0 : index
    %290 = vector.load %arg23[%c1_325, %c0_326, %c0_327] : memref<9x9x64xbf16, #tpu.memory_space<vmem>>, vector<1x7x64xbf16>
    %291 = vector.shape_cast %290 : vector<1x7x64xbf16> to vector<7x64xbf16>
    %c1_328 = arith.constant 1 : index
    %c1_329 = arith.constant 1 : index
    %c0_330 = arith.constant 0 : index
    %292 = vector.load %arg23[%c1_328, %c1_329, %c0_330] : memref<9x9x64xbf16, #tpu.memory_space<vmem>>, vector<1x7x64xbf16>
    %293 = vector.shape_cast %292 : vector<1x7x64xbf16> to vector<7x64xbf16>
    %c1_331 = arith.constant 1 : index
    %c2_332 = arith.constant 2 : index
    %c0_333 = arith.constant 0 : index
    %294 = vector.load %arg23[%c1_331, %c2_332, %c0_333] : memref<9x9x64xbf16, #tpu.memory_space<vmem>>, vector<1x7x64xbf16>
    %295 = vector.shape_cast %294 : vector<1x7x64xbf16> to vector<7x64xbf16>
    %c2_334 = arith.constant 2 : index
    %c0_335 = arith.constant 0 : index
    %c0_336 = arith.constant 0 : index
    %296 = vector.load %arg23[%c2_334, %c0_335, %c0_336] : memref<9x9x64xbf16, #tpu.memory_space<vmem>>, vector<1x7x64xbf16>
    %297 = vector.shape_cast %296 : vector<1x7x64xbf16> to vector<7x64xbf16>
    %c2_337 = arith.constant 2 : index
    %c1_338 = arith.constant 1 : index
    %c0_339 = arith.constant 0 : index
    %298 = vector.load %arg23[%c2_337, %c1_338, %c0_339] : memref<9x9x64xbf16, #tpu.memory_space<vmem>>, vector<1x7x64xbf16>
    %299 = vector.shape_cast %298 : vector<1x7x64xbf16> to vector<7x64xbf16>
    %c2_340 = arith.constant 2 : index
    %c2_341 = arith.constant 2 : index
    %c0_342 = arith.constant 0 : index
    %300 = vector.load %arg23[%c2_340, %c2_341, %c0_342] : memref<9x9x64xbf16, #tpu.memory_space<vmem>>, vector<1x7x64xbf16>
    %301 = vector.shape_cast %300 : vector<1x7x64xbf16> to vector<7x64xbf16>
    %c3_343 = arith.constant 3 : index
    %c0_344 = arith.constant 0 : index
    %c0_345 = arith.constant 0 : index
    %302 = vector.load %arg23[%c3_343, %c0_344, %c0_345] : memref<9x9x64xbf16, #tpu.memory_space<vmem>>, vector<1x7x64xbf16>
    %303 = vector.shape_cast %302 : vector<1x7x64xbf16> to vector<7x64xbf16>
    %c3_346 = arith.constant 3 : index
    %c1_347 = arith.constant 1 : index
    %c0_348 = arith.constant 0 : index
    %304 = vector.load %arg23[%c3_346, %c1_347, %c0_348] : memref<9x9x64xbf16, #tpu.memory_space<vmem>>, vector<1x7x64xbf16>
    %305 = vector.shape_cast %304 : vector<1x7x64xbf16> to vector<7x64xbf16>
    %c3_349 = arith.constant 3 : index
    %c2_350 = arith.constant 2 : index
    %c0_351 = arith.constant 0 : index
    %306 = vector.load %arg23[%c3_349, %c2_350, %c0_351] : memref<9x9x64xbf16, #tpu.memory_space<vmem>>, vector<1x7x64xbf16>
    %307 = vector.shape_cast %306 : vector<1x7x64xbf16> to vector<7x64xbf16>
    %308 = tpu.concatenate %291, %293, %295, %297, %299, %301, %303, %305, %307 in 1 : vector<7x64xbf16>, vector<7x64xbf16>, vector<7x64xbf16>, vector<7x64xbf16>, vector<7x64xbf16>, vector<7x64xbf16>, vector<7x64xbf16>, vector<7x64xbf16>, vector<7x64xbf16> -> vector<7x576xbf16>
    %c0_352 = arith.constant 0 : index
    %c0_353 = arith.constant 0 : index
    %309 = vector.load %arg7[%c0_352, %c0_353] : memref<576x64xbf16, #tpu.memory_space<vmem>>, vector<576x64xbf16>
    %cst_354 = arith.constant dense<0.000000e+00> : vector<7x64xf32>
    %310 = tpu.matmul %308, %309, %cst_354 {dimension_numbers = #tpu.dot_dimension_numbers<[1], [0], [0], [1], [0, 0, 1, 1], [], []>} : vector<7x576xbf16>, vector<576x64xbf16>, vector<7x64xf32> -> vector<7x64xf32>
    %c0_355 = arith.constant 0 : index
    %c0_356 = arith.constant 0 : index
    %311 = vector.load %arg8[%c0_355, %c0_356] : memref<1x64xf32, #tpu.memory_space<vmem>>, vector<1x64xf32>
    %312 = vector.broadcast %311 : vector<1x64xf32> to vector<7x64xf32>
    %313 = arith.addf %310, %312 : vector<7x64xf32>
    %cst_357 = arith.constant 0.000000e+00 : f32
    %314 = vector.broadcast %cst_357 : f32 to vector<7x64xf32>
    %315 = arith.maximumf %313, %314 : vector<7x64xf32>
    %316 = arith.truncf %315 : vector<7x64xf32> to vector<7x64xbf16>
    %c2_358 = arith.constant 2 : index
    %c0_359 = arith.constant 0 : index
    %c0_360 = arith.constant 0 : index
    %317 = vector.load %arg23[%c2_358, %c0_359, %c0_360] : memref<9x9x64xbf16, #tpu.memory_space<vmem>>, vector<1x7x64xbf16>
    %318 = vector.shape_cast %317 : vector<1x7x64xbf16> to vector<7x64xbf16>
    %c2_361 = arith.constant 2 : index
    %c1_362 = arith.constant 1 : index
    %c0_363 = arith.constant 0 : index
    %319 = vector.load %arg23[%c2_361, %c1_362, %c0_363] : memref<9x9x64xbf16, #tpu.memory_space<vmem>>, vector<1x7x64xbf16>
    %320 = vector.shape_cast %319 : vector<1x7x64xbf16> to vector<7x64xbf16>
    %c2_364 = arith.constant 2 : index
    %c2_365 = arith.constant 2 : index
    %c0_366 = arith.constant 0 : index
    %321 = vector.load %arg23[%c2_364, %c2_365, %c0_366] : memref<9x9x64xbf16, #tpu.memory_space<vmem>>, vector<1x7x64xbf16>
    %322 = vector.shape_cast %321 : vector<1x7x64xbf16> to vector<7x64xbf16>
    %c3_367 = arith.constant 3 : index
    %c0_368 = arith.constant 0 : index
    %c0_369 = arith.constant 0 : index
    %323 = vector.load %arg23[%c3_367, %c0_368, %c0_369] : memref<9x9x64xbf16, #tpu.memory_space<vmem>>, vector<1x7x64xbf16>
    %324 = vector.shape_cast %323 : vector<1x7x64xbf16> to vector<7x64xbf16>
    %c3_370 = arith.constant 3 : index
    %c1_371 = arith.constant 1 : index
    %c0_372 = arith.constant 0 : index
    %325 = vector.load %arg23[%c3_370, %c1_371, %c0_372] : memref<9x9x64xbf16, #tpu.memory_space<vmem>>, vector<1x7x64xbf16>
    %326 = vector.shape_cast %325 : vector<1x7x64xbf16> to vector<7x64xbf16>
    %c3_373 = arith.constant 3 : index
    %c2_374 = arith.constant 2 : index
    %c0_375 = arith.constant 0 : index
    %327 = vector.load %arg23[%c3_373, %c2_374, %c0_375] : memref<9x9x64xbf16, #tpu.memory_space<vmem>>, vector<1x7x64xbf16>
    %328 = vector.shape_cast %327 : vector<1x7x64xbf16> to vector<7x64xbf16>
    %c4_376 = arith.constant 4 : index
    %c0_377 = arith.constant 0 : index
    %c0_378 = arith.constant 0 : index
    %329 = vector.load %arg23[%c4_376, %c0_377, %c0_378] : memref<9x9x64xbf16, #tpu.memory_space<vmem>>, vector<1x7x64xbf16>
    %330 = vector.shape_cast %329 : vector<1x7x64xbf16> to vector<7x64xbf16>
    %c4_379 = arith.constant 4 : index
    %c1_380 = arith.constant 1 : index
    %c0_381 = arith.constant 0 : index
    %331 = vector.load %arg23[%c4_379, %c1_380, %c0_381] : memref<9x9x64xbf16, #tpu.memory_space<vmem>>, vector<1x7x64xbf16>
    %332 = vector.shape_cast %331 : vector<1x7x64xbf16> to vector<7x64xbf16>
    %c4_382 = arith.constant 4 : index
    %c2_383 = arith.constant 2 : index
    %c0_384 = arith.constant 0 : index
    %333 = vector.load %arg23[%c4_382, %c2_383, %c0_384] : memref<9x9x64xbf16, #tpu.memory_space<vmem>>, vector<1x7x64xbf16>
    %334 = vector.shape_cast %333 : vector<1x7x64xbf16> to vector<7x64xbf16>
    %335 = tpu.concatenate %318, %320, %322, %324, %326, %328, %330, %332, %334 in 1 : vector<7x64xbf16>, vector<7x64xbf16>, vector<7x64xbf16>, vector<7x64xbf16>, vector<7x64xbf16>, vector<7x64xbf16>, vector<7x64xbf16>, vector<7x64xbf16>, vector<7x64xbf16> -> vector<7x576xbf16>
    %c0_385 = arith.constant 0 : index
    %c0_386 = arith.constant 0 : index
    %336 = vector.load %arg7[%c0_385, %c0_386] : memref<576x64xbf16, #tpu.memory_space<vmem>>, vector<576x64xbf16>
    %cst_387 = arith.constant dense<0.000000e+00> : vector<7x64xf32>
    %337 = tpu.matmul %335, %336, %cst_387 {dimension_numbers = #tpu.dot_dimension_numbers<[1], [0], [0], [1], [0, 0, 1, 1], [], []>} : vector<7x576xbf16>, vector<576x64xbf16>, vector<7x64xf32> -> vector<7x64xf32>
    %c0_388 = arith.constant 0 : index
    %c0_389 = arith.constant 0 : index
    %338 = vector.load %arg8[%c0_388, %c0_389] : memref<1x64xf32, #tpu.memory_space<vmem>>, vector<1x64xf32>
    %339 = vector.broadcast %338 : vector<1x64xf32> to vector<7x64xf32>
    %340 = arith.addf %337, %339 : vector<7x64xf32>
    %cst_390 = arith.constant 0.000000e+00 : f32
    %341 = vector.broadcast %cst_390 : f32 to vector<7x64xf32>
    %342 = arith.maximumf %340, %341 : vector<7x64xf32>
    %343 = arith.truncf %342 : vector<7x64xf32> to vector<7x64xbf16>
    %c3_391 = arith.constant 3 : index
    %c0_392 = arith.constant 0 : index
    %c0_393 = arith.constant 0 : index
    %344 = vector.load %arg23[%c3_391, %c0_392, %c0_393] : memref<9x9x64xbf16, #tpu.memory_space<vmem>>, vector<1x7x64xbf16>
    %345 = vector.shape_cast %344 : vector<1x7x64xbf16> to vector<7x64xbf16>
    %c3_394 = arith.constant 3 : index
    %c1_395 = arith.constant 1 : index
    %c0_396 = arith.constant 0 : index
    %346 = vector.load %arg23[%c3_394, %c1_395, %c0_396] : memref<9x9x64xbf16, #tpu.memory_space<vmem>>, vector<1x7x64xbf16>
    %347 = vector.shape_cast %346 : vector<1x7x64xbf16> to vector<7x64xbf16>
    %c3_397 = arith.constant 3 : index
    %c2_398 = arith.constant 2 : index
    %c0_399 = arith.constant 0 : index
    %348 = vector.load %arg23[%c3_397, %c2_398, %c0_399] : memref<9x9x64xbf16, #tpu.memory_space<vmem>>, vector<1x7x64xbf16>
    %349 = vector.shape_cast %348 : vector<1x7x64xbf16> to vector<7x64xbf16>
    %c4_400 = arith.constant 4 : index
    %c0_401 = arith.constant 0 : index
    %c0_402 = arith.constant 0 : index
    %350 = vector.load %arg23[%c4_400, %c0_401, %c0_402] : memref<9x9x64xbf16, #tpu.memory_space<vmem>>, vector<1x7x64xbf16>
    %351 = vector.shape_cast %350 : vector<1x7x64xbf16> to vector<7x64xbf16>
    %c4_403 = arith.constant 4 : index
    %c1_404 = arith.constant 1 : index
    %c0_405 = arith.constant 0 : index
    %352 = vector.load %arg23[%c4_403, %c1_404, %c0_405] : memref<9x9x64xbf16, #tpu.memory_space<vmem>>, vector<1x7x64xbf16>
    %353 = vector.shape_cast %352 : vector<1x7x64xbf16> to vector<7x64xbf16>
    %c4_406 = arith.constant 4 : index
    %c2_407 = arith.constant 2 : index
    %c0_408 = arith.constant 0 : index
    %354 = vector.load %arg23[%c4_406, %c2_407, %c0_408] : memref<9x9x64xbf16, #tpu.memory_space<vmem>>, vector<1x7x64xbf16>
    %355 = vector.shape_cast %354 : vector<1x7x64xbf16> to vector<7x64xbf16>
    %c5_409 = arith.constant 5 : index
    %c0_410 = arith.constant 0 : index
    %c0_411 = arith.constant 0 : index
    %356 = vector.load %arg23[%c5_409, %c0_410, %c0_411] : memref<9x9x64xbf16, #tpu.memory_space<vmem>>, vector<1x7x64xbf16>
    %357 = vector.shape_cast %356 : vector<1x7x64xbf16> to vector<7x64xbf16>
    %c5_412 = arith.constant 5 : index
    %c1_413 = arith.constant 1 : index
    %c0_414 = arith.constant 0 : index
    %358 = vector.load %arg23[%c5_412, %c1_413, %c0_414] : memref<9x9x64xbf16, #tpu.memory_space<vmem>>, vector<1x7x64xbf16>
    %359 = vector.shape_cast %358 : vector<1x7x64xbf16> to vector<7x64xbf16>
    %c5_415 = arith.constant 5 : index
    %c2_416 = arith.constant 2 : index
    %c0_417 = arith.constant 0 : index
    %360 = vector.load %arg23[%c5_415, %c2_416, %c0_417] : memref<9x9x64xbf16, #tpu.memory_space<vmem>>, vector<1x7x64xbf16>
    %361 = vector.shape_cast %360 : vector<1x7x64xbf16> to vector<7x64xbf16>
    %362 = tpu.concatenate %345, %347, %349, %351, %353, %355, %357, %359, %361 in 1 : vector<7x64xbf16>, vector<7x64xbf16>, vector<7x64xbf16>, vector<7x64xbf16>, vector<7x64xbf16>, vector<7x64xbf16>, vector<7x64xbf16>, vector<7x64xbf16>, vector<7x64xbf16> -> vector<7x576xbf16>
    %c0_418 = arith.constant 0 : index
    %c0_419 = arith.constant 0 : index
    %363 = vector.load %arg7[%c0_418, %c0_419] : memref<576x64xbf16, #tpu.memory_space<vmem>>, vector<576x64xbf16>
    %cst_420 = arith.constant dense<0.000000e+00> : vector<7x64xf32>
    %364 = tpu.matmul %362, %363, %cst_420 {dimension_numbers = #tpu.dot_dimension_numbers<[1], [0], [0], [1], [0, 0, 1, 1], [], []>} : vector<7x576xbf16>, vector<576x64xbf16>, vector<7x64xf32> -> vector<7x64xf32>
    %c0_421 = arith.constant 0 : index
    %c0_422 = arith.constant 0 : index
    %365 = vector.load %arg8[%c0_421, %c0_422] : memref<1x64xf32, #tpu.memory_space<vmem>>, vector<1x64xf32>
    %366 = vector.broadcast %365 : vector<1x64xf32> to vector<7x64xf32>
    %367 = arith.addf %364, %366 : vector<7x64xf32>
    %cst_423 = arith.constant 0.000000e+00 : f32
    %368 = vector.broadcast %cst_423 : f32 to vector<7x64xf32>
    %369 = arith.maximumf %367, %368 : vector<7x64xf32>
    %370 = arith.truncf %369 : vector<7x64xf32> to vector<7x64xbf16>
    %c4_424 = arith.constant 4 : index
    %c0_425 = arith.constant 0 : index
    %c0_426 = arith.constant 0 : index
    %371 = vector.load %arg23[%c4_424, %c0_425, %c0_426] : memref<9x9x64xbf16, #tpu.memory_space<vmem>>, vector<1x7x64xbf16>
    %372 = vector.shape_cast %371 : vector<1x7x64xbf16> to vector<7x64xbf16>
    %c4_427 = arith.constant 4 : index
    %c1_428 = arith.constant 1 : index
    %c0_429 = arith.constant 0 : index
    %373 = vector.load %arg23[%c4_427, %c1_428, %c0_429] : memref<9x9x64xbf16, #tpu.memory_space<vmem>>, vector<1x7x64xbf16>
    %374 = vector.shape_cast %373 : vector<1x7x64xbf16> to vector<7x64xbf16>
    %c4_430 = arith.constant 4 : index
    %c2_431 = arith.constant 2 : index
    %c0_432 = arith.constant 0 : index
    %375 = vector.load %arg23[%c4_430, %c2_431, %c0_432] : memref<9x9x64xbf16, #tpu.memory_space<vmem>>, vector<1x7x64xbf16>
    %376 = vector.shape_cast %375 : vector<1x7x64xbf16> to vector<7x64xbf16>
    %c5_433 = arith.constant 5 : index
    %c0_434 = arith.constant 0 : index
    %c0_435 = arith.constant 0 : index
    %377 = vector.load %arg23[%c5_433, %c0_434, %c0_435] : memref<9x9x64xbf16, #tpu.memory_space<vmem>>, vector<1x7x64xbf16>
    %378 = vector.shape_cast %377 : vector<1x7x64xbf16> to vector<7x64xbf16>
    %c5_436 = arith.constant 5 : index
    %c1_437 = arith.constant 1 : index
    %c0_438 = arith.constant 0 : index
    %379 = vector.load %arg23[%c5_436, %c1_437, %c0_438] : memref<9x9x64xbf16, #tpu.memory_space<vmem>>, vector<1x7x64xbf16>
    %380 = vector.shape_cast %379 : vector<1x7x64xbf16> to vector<7x64xbf16>
    %c5_439 = arith.constant 5 : index
    %c2_440 = arith.constant 2 : index
    %c0_441 = arith.constant 0 : index
    %381 = vector.load %arg23[%c5_439, %c2_440, %c0_441] : memref<9x9x64xbf16, #tpu.memory_space<vmem>>, vector<1x7x64xbf16>
    %382 = vector.shape_cast %381 : vector<1x7x64xbf16> to vector<7x64xbf16>
    %c6_442 = arith.constant 6 : index
    %c0_443 = arith.constant 0 : index
    %c0_444 = arith.constant 0 : index
    %383 = vector.load %arg23[%c6_442, %c0_443, %c0_444] : memref<9x9x64xbf16, #tpu.memory_space<vmem>>, vector<1x7x64xbf16>
    %384 = vector.shape_cast %383 : vector<1x7x64xbf16> to vector<7x64xbf16>
    %c6_445 = arith.constant 6 : index
    %c1_446 = arith.constant 1 : index
    %c0_447 = arith.constant 0 : index
    %385 = vector.load %arg23[%c6_445, %c1_446, %c0_447] : memref<9x9x64xbf16, #tpu.memory_space<vmem>>, vector<1x7x64xbf16>
    %386 = vector.shape_cast %385 : vector<1x7x64xbf16> to vector<7x64xbf16>
    %c6_448 = arith.constant 6 : index
    %c2_449 = arith.constant 2 : index
    %c0_450 = arith.constant 0 : index
    %387 = vector.load %arg23[%c6_448, %c2_449, %c0_450] : memref<9x9x64xbf16, #tpu.memory_space<vmem>>, vector<1x7x64xbf16>
    %388 = vector.shape_cast %387 : vector<1x7x64xbf16> to vector<7x64xbf16>
    %389 = tpu.concatenate %372, %374, %376, %378, %380, %382, %384, %386, %388 in 1 : vector<7x64xbf16>, vector<7x64xbf16>, vector<7x64xbf16>, vector<7x64xbf16>, vector<7x64xbf16>, vector<7x64xbf16>, vector<7x64xbf16>, vector<7x64xbf16>, vector<7x64xbf16> -> vector<7x576xbf16>
    %c0_451 = arith.constant 0 : index
    %c0_452 = arith.constant 0 : index
    %390 = vector.load %arg7[%c0_451, %c0_452] : memref<576x64xbf16, #tpu.memory_space<vmem>>, vector<576x64xbf16>
    %cst_453 = arith.constant dense<0.000000e+00> : vector<7x64xf32>
    %391 = tpu.matmul %389, %390, %cst_453 {dimension_numbers = #tpu.dot_dimension_numbers<[1], [0], [0], [1], [0, 0, 1, 1], [], []>} : vector<7x576xbf16>, vector<576x64xbf16>, vector<7x64xf32> -> vector<7x64xf32>
    %c0_454 = arith.constant 0 : index
    %c0_455 = arith.constant 0 : index
    %392 = vector.load %arg8[%c0_454, %c0_455] : memref<1x64xf32, #tpu.memory_space<vmem>>, vector<1x64xf32>
    %393 = vector.broadcast %392 : vector<1x64xf32> to vector<7x64xf32>
    %394 = arith.addf %391, %393 : vector<7x64xf32>
    %cst_456 = arith.constant 0.000000e+00 : f32
    %395 = vector.broadcast %cst_456 : f32 to vector<7x64xf32>
    %396 = arith.maximumf %394, %395 : vector<7x64xf32>
    %397 = arith.truncf %396 : vector<7x64xf32> to vector<7x64xbf16>
    %c5_457 = arith.constant 5 : index
    %c0_458 = arith.constant 0 : index
    %c0_459 = arith.constant 0 : index
    %398 = vector.load %arg23[%c5_457, %c0_458, %c0_459] : memref<9x9x64xbf16, #tpu.memory_space<vmem>>, vector<1x7x64xbf16>
    %399 = vector.shape_cast %398 : vector<1x7x64xbf16> to vector<7x64xbf16>
    %c5_460 = arith.constant 5 : index
    %c1_461 = arith.constant 1 : index
    %c0_462 = arith.constant 0 : index
    %400 = vector.load %arg23[%c5_460, %c1_461, %c0_462] : memref<9x9x64xbf16, #tpu.memory_space<vmem>>, vector<1x7x64xbf16>
    %401 = vector.shape_cast %400 : vector<1x7x64xbf16> to vector<7x64xbf16>
    %c5_463 = arith.constant 5 : index
    %c2_464 = arith.constant 2 : index
    %c0_465 = arith.constant 0 : index
    %402 = vector.load %arg23[%c5_463, %c2_464, %c0_465] : memref<9x9x64xbf16, #tpu.memory_space<vmem>>, vector<1x7x64xbf16>
    %403 = vector.shape_cast %402 : vector<1x7x64xbf16> to vector<7x64xbf16>
    %c6_466 = arith.constant 6 : index
    %c0_467 = arith.constant 0 : index
    %c0_468 = arith.constant 0 : index
    %404 = vector.load %arg23[%c6_466, %c0_467, %c0_468] : memref<9x9x64xbf16, #tpu.memory_space<vmem>>, vector<1x7x64xbf16>
    %405 = vector.shape_cast %404 : vector<1x7x64xbf16> to vector<7x64xbf16>
    %c6_469 = arith.constant 6 : index
    %c1_470 = arith.constant 1 : index
    %c0_471 = arith.constant 0 : index
    %406 = vector.load %arg23[%c6_469, %c1_470, %c0_471] : memref<9x9x64xbf16, #tpu.memory_space<vmem>>, vector<1x7x64xbf16>
    %407 = vector.shape_cast %406 : vector<1x7x64xbf16> to vector<7x64xbf16>
    %c6_472 = arith.constant 6 : index
    %c2_473 = arith.constant 2 : index
    %c0_474 = arith.constant 0 : index
    %408 = vector.load %arg23[%c6_472, %c2_473, %c0_474] : memref<9x9x64xbf16, #tpu.memory_space<vmem>>, vector<1x7x64xbf16>
    %409 = vector.shape_cast %408 : vector<1x7x64xbf16> to vector<7x64xbf16>
    %c7_475 = arith.constant 7 : index
    %c0_476 = arith.constant 0 : index
    %c0_477 = arith.constant 0 : index
    %410 = vector.load %arg23[%c7_475, %c0_476, %c0_477] : memref<9x9x64xbf16, #tpu.memory_space<vmem>>, vector<1x7x64xbf16>
    %411 = vector.shape_cast %410 : vector<1x7x64xbf16> to vector<7x64xbf16>
    %c7_478 = arith.constant 7 : index
    %c1_479 = arith.constant 1 : index
    %c0_480 = arith.constant 0 : index
    %412 = vector.load %arg23[%c7_478, %c1_479, %c0_480] : memref<9x9x64xbf16, #tpu.memory_space<vmem>>, vector<1x7x64xbf16>
    %413 = vector.shape_cast %412 : vector<1x7x64xbf16> to vector<7x64xbf16>
    %c7_481 = arith.constant 7 : index
    %c2_482 = arith.constant 2 : index
    %c0_483 = arith.constant 0 : index
    %414 = vector.load %arg23[%c7_481, %c2_482, %c0_483] : memref<9x9x64xbf16, #tpu.memory_space<vmem>>, vector<1x7x64xbf16>
    %415 = vector.shape_cast %414 : vector<1x7x64xbf16> to vector<7x64xbf16>
    %416 = tpu.concatenate %399, %401, %403, %405, %407, %409, %411, %413, %415 in 1 : vector<7x64xbf16>, vector<7x64xbf16>, vector<7x64xbf16>, vector<7x64xbf16>, vector<7x64xbf16>, vector<7x64xbf16>, vector<7x64xbf16>, vector<7x64xbf16>, vector<7x64xbf16> -> vector<7x576xbf16>
    %c0_484 = arith.constant 0 : index
    %c0_485 = arith.constant 0 : index
    %417 = vector.load %arg7[%c0_484, %c0_485] : memref<576x64xbf16, #tpu.memory_space<vmem>>, vector<576x64xbf16>
    %cst_486 = arith.constant dense<0.000000e+00> : vector<7x64xf32>
    %418 = tpu.matmul %416, %417, %cst_486 {dimension_numbers = #tpu.dot_dimension_numbers<[1], [0], [0], [1], [0, 0, 1, 1], [], []>} : vector<7x576xbf16>, vector<576x64xbf16>, vector<7x64xf32> -> vector<7x64xf32>
    %c0_487 = arith.constant 0 : index
    %c0_488 = arith.constant 0 : index
    %419 = vector.load %arg8[%c0_487, %c0_488] : memref<1x64xf32, #tpu.memory_space<vmem>>, vector<1x64xf32>
    %420 = vector.broadcast %419 : vector<1x64xf32> to vector<7x64xf32>
    %421 = arith.addf %418, %420 : vector<7x64xf32>
    %cst_489 = arith.constant 0.000000e+00 : f32
    %422 = vector.broadcast %cst_489 : f32 to vector<7x64xf32>
    %423 = arith.maximumf %421, %422 : vector<7x64xf32>
    %424 = arith.truncf %423 : vector<7x64xf32> to vector<7x64xbf16>
    %c6_490 = arith.constant 6 : index
    %c0_491 = arith.constant 0 : index
    %c0_492 = arith.constant 0 : index
    %425 = vector.load %arg23[%c6_490, %c0_491, %c0_492] : memref<9x9x64xbf16, #tpu.memory_space<vmem>>, vector<1x7x64xbf16>
    %426 = vector.shape_cast %425 : vector<1x7x64xbf16> to vector<7x64xbf16>
    %c6_493 = arith.constant 6 : index
    %c1_494 = arith.constant 1 : index
    %c0_495 = arith.constant 0 : index
    %427 = vector.load %arg23[%c6_493, %c1_494, %c0_495] : memref<9x9x64xbf16, #tpu.memory_space<vmem>>, vector<1x7x64xbf16>
    %428 = vector.shape_cast %427 : vector<1x7x64xbf16> to vector<7x64xbf16>
    %c6_496 = arith.constant 6 : index
    %c2_497 = arith.constant 2 : index
    %c0_498 = arith.constant 0 : index
    %429 = vector.load %arg23[%c6_496, %c2_497, %c0_498] : memref<9x9x64xbf16, #tpu.memory_space<vmem>>, vector<1x7x64xbf16>
    %430 = vector.shape_cast %429 : vector<1x7x64xbf16> to vector<7x64xbf16>
    %c7_499 = arith.constant 7 : index
    %c0_500 = arith.constant 0 : index
    %c0_501 = arith.constant 0 : index
    %431 = vector.load %arg23[%c7_499, %c0_500, %c0_501] : memref<9x9x64xbf16, #tpu.memory_space<vmem>>, vector<1x7x64xbf16>
    %432 = vector.shape_cast %431 : vector<1x7x64xbf16> to vector<7x64xbf16>
    %c7_502 = arith.constant 7 : index
    %c1_503 = arith.constant 1 : index
    %c0_504 = arith.constant 0 : index
    %433 = vector.load %arg23[%c7_502, %c1_503, %c0_504] : memref<9x9x64xbf16, #tpu.memory_space<vmem>>, vector<1x7x64xbf16>
    %434 = vector.shape_cast %433 : vector<1x7x64xbf16> to vector<7x64xbf16>
    %c7_505 = arith.constant 7 : index
    %c2_506 = arith.constant 2 : index
    %c0_507 = arith.constant 0 : index
    %435 = vector.load %arg23[%c7_505, %c2_506, %c0_507] : memref<9x9x64xbf16, #tpu.memory_space<vmem>>, vector<1x7x64xbf16>
    %436 = vector.shape_cast %435 : vector<1x7x64xbf16> to vector<7x64xbf16>
    %c8_508 = arith.constant 8 : index
    %c0_509 = arith.constant 0 : index
    %c0_510 = arith.constant 0 : index
    %437 = vector.load %arg23[%c8_508, %c0_509, %c0_510] : memref<9x9x64xbf16, #tpu.memory_space<vmem>>, vector<1x7x64xbf16>
    %438 = vector.shape_cast %437 : vector<1x7x64xbf16> to vector<7x64xbf16>
    %c8_511 = arith.constant 8 : index
    %c1_512 = arith.constant 1 : index
    %c0_513 = arith.constant 0 : index
    %439 = vector.load %arg23[%c8_511, %c1_512, %c0_513] : memref<9x9x64xbf16, #tpu.memory_space<vmem>>, vector<1x7x64xbf16>
    %440 = vector.shape_cast %439 : vector<1x7x64xbf16> to vector<7x64xbf16>
    %c8_514 = arith.constant 8 : index
    %c2_515 = arith.constant 2 : index
    %c0_516 = arith.constant 0 : index
    %441 = vector.load %arg23[%c8_514, %c2_515, %c0_516] : memref<9x9x64xbf16, #tpu.memory_space<vmem>>, vector<1x7x64xbf16>
    %442 = vector.shape_cast %441 : vector<1x7x64xbf16> to vector<7x64xbf16>
    %443 = tpu.concatenate %426, %428, %430, %432, %434, %436, %438, %440, %442 in 1 : vector<7x64xbf16>, vector<7x64xbf16>, vector<7x64xbf16>, vector<7x64xbf16>, vector<7x64xbf16>, vector<7x64xbf16>, vector<7x64xbf16>, vector<7x64xbf16>, vector<7x64xbf16> -> vector<7x576xbf16>
    %c0_517 = arith.constant 0 : index
    %c0_518 = arith.constant 0 : index
    %444 = vector.load %arg7[%c0_517, %c0_518] : memref<576x64xbf16, #tpu.memory_space<vmem>>, vector<576x64xbf16>
    %cst_519 = arith.constant dense<0.000000e+00> : vector<7x64xf32>
    %445 = tpu.matmul %443, %444, %cst_519 {dimension_numbers = #tpu.dot_dimension_numbers<[1], [0], [0], [1], [0, 0, 1, 1], [], []>} : vector<7x576xbf16>, vector<576x64xbf16>, vector<7x64xf32> -> vector<7x64xf32>
    %c0_520 = arith.constant 0 : index
    %c0_521 = arith.constant 0 : index
    %446 = vector.load %arg8[%c0_520, %c0_521] : memref<1x64xf32, #tpu.memory_space<vmem>>, vector<1x64xf32>
    %447 = vector.broadcast %446 : vector<1x64xf32> to vector<7x64xf32>
    %448 = arith.addf %445, %447 : vector<7x64xf32>
    %cst_522 = arith.constant 0.000000e+00 : f32
    %449 = vector.broadcast %cst_522 : f32 to vector<7x64xf32>
    %450 = arith.maximumf %448, %449 : vector<7x64xf32>
    %451 = arith.truncf %450 : vector<7x64xf32> to vector<7x64xbf16>
    %452 = vector.extract_strided_slice %289 {offsets = [0, 0], sizes = [1, 64], strides = [1, 1]} : vector<7x64xbf16> to vector<1x64xbf16>
    %453 = vector.extract_strided_slice %289 {offsets = [1, 0], sizes = [1, 64], strides = [1, 1]} : vector<7x64xbf16> to vector<1x64xbf16>
    %454 = vector.extract_strided_slice %289 {offsets = [2, 0], sizes = [1, 64], strides = [1, 1]} : vector<7x64xbf16> to vector<1x64xbf16>
    %455 = vector.extract_strided_slice %289 {offsets = [3, 0], sizes = [1, 64], strides = [1, 1]} : vector<7x64xbf16> to vector<1x64xbf16>
    %456 = vector.extract_strided_slice %289 {offsets = [4, 0], sizes = [1, 64], strides = [1, 1]} : vector<7x64xbf16> to vector<1x64xbf16>
    %457 = vector.extract_strided_slice %289 {offsets = [5, 0], sizes = [1, 64], strides = [1, 1]} : vector<7x64xbf16> to vector<1x64xbf16>
    %458 = vector.extract_strided_slice %289 {offsets = [6, 0], sizes = [1, 64], strides = [1, 1]} : vector<7x64xbf16> to vector<1x64xbf16>
    %459 = vector.extract_strided_slice %316 {offsets = [0, 0], sizes = [1, 64], strides = [1, 1]} : vector<7x64xbf16> to vector<1x64xbf16>
    %460 = vector.extract_strided_slice %316 {offsets = [1, 0], sizes = [1, 64], strides = [1, 1]} : vector<7x64xbf16> to vector<1x64xbf16>
    %461 = vector.extract_strided_slice %316 {offsets = [2, 0], sizes = [1, 64], strides = [1, 1]} : vector<7x64xbf16> to vector<1x64xbf16>
    %462 = vector.extract_strided_slice %316 {offsets = [3, 0], sizes = [1, 64], strides = [1, 1]} : vector<7x64xbf16> to vector<1x64xbf16>
    %463 = vector.extract_strided_slice %316 {offsets = [4, 0], sizes = [1, 64], strides = [1, 1]} : vector<7x64xbf16> to vector<1x64xbf16>
    %464 = vector.extract_strided_slice %316 {offsets = [5, 0], sizes = [1, 64], strides = [1, 1]} : vector<7x64xbf16> to vector<1x64xbf16>
    %465 = vector.extract_strided_slice %316 {offsets = [6, 0], sizes = [1, 64], strides = [1, 1]} : vector<7x64xbf16> to vector<1x64xbf16>
    %466 = vector.extract_strided_slice %343 {offsets = [0, 0], sizes = [1, 64], strides = [1, 1]} : vector<7x64xbf16> to vector<1x64xbf16>
    %467 = vector.extract_strided_slice %343 {offsets = [1, 0], sizes = [1, 64], strides = [1, 1]} : vector<7x64xbf16> to vector<1x64xbf16>
    %468 = vector.extract_strided_slice %343 {offsets = [2, 0], sizes = [1, 64], strides = [1, 1]} : vector<7x64xbf16> to vector<1x64xbf16>
    %469 = vector.extract_strided_slice %343 {offsets = [3, 0], sizes = [1, 64], strides = [1, 1]} : vector<7x64xbf16> to vector<1x64xbf16>
    %470 = vector.extract_strided_slice %343 {offsets = [4, 0], sizes = [1, 64], strides = [1, 1]} : vector<7x64xbf16> to vector<1x64xbf16>
    %471 = vector.extract_strided_slice %343 {offsets = [5, 0], sizes = [1, 64], strides = [1, 1]} : vector<7x64xbf16> to vector<1x64xbf16>
    %472 = vector.extract_strided_slice %343 {offsets = [6, 0], sizes = [1, 64], strides = [1, 1]} : vector<7x64xbf16> to vector<1x64xbf16>
    %473 = vector.extract_strided_slice %370 {offsets = [0, 0], sizes = [1, 64], strides = [1, 1]} : vector<7x64xbf16> to vector<1x64xbf16>
    %474 = vector.extract_strided_slice %370 {offsets = [1, 0], sizes = [1, 64], strides = [1, 1]} : vector<7x64xbf16> to vector<1x64xbf16>
    %475 = vector.extract_strided_slice %370 {offsets = [2, 0], sizes = [1, 64], strides = [1, 1]} : vector<7x64xbf16> to vector<1x64xbf16>
    %476 = vector.extract_strided_slice %370 {offsets = [3, 0], sizes = [1, 64], strides = [1, 1]} : vector<7x64xbf16> to vector<1x64xbf16>
    %477 = vector.extract_strided_slice %370 {offsets = [4, 0], sizes = [1, 64], strides = [1, 1]} : vector<7x64xbf16> to vector<1x64xbf16>
    %478 = vector.extract_strided_slice %370 {offsets = [5, 0], sizes = [1, 64], strides = [1, 1]} : vector<7x64xbf16> to vector<1x64xbf16>
    %479 = vector.extract_strided_slice %370 {offsets = [6, 0], sizes = [1, 64], strides = [1, 1]} : vector<7x64xbf16> to vector<1x64xbf16>
    %480 = vector.extract_strided_slice %397 {offsets = [0, 0], sizes = [1, 64], strides = [1, 1]} : vector<7x64xbf16> to vector<1x64xbf16>
    %481 = vector.extract_strided_slice %397 {offsets = [1, 0], sizes = [1, 64], strides = [1, 1]} : vector<7x64xbf16> to vector<1x64xbf16>
    %482 = vector.extract_strided_slice %397 {offsets = [2, 0], sizes = [1, 64], strides = [1, 1]} : vector<7x64xbf16> to vector<1x64xbf16>
    %483 = vector.extract_strided_slice %397 {offsets = [3, 0], sizes = [1, 64], strides = [1, 1]} : vector<7x64xbf16> to vector<1x64xbf16>
    %484 = vector.extract_strided_slice %397 {offsets = [4, 0], sizes = [1, 64], strides = [1, 1]} : vector<7x64xbf16> to vector<1x64xbf16>
    %485 = vector.extract_strided_slice %397 {offsets = [5, 0], sizes = [1, 64], strides = [1, 1]} : vector<7x64xbf16> to vector<1x64xbf16>
    %486 = vector.extract_strided_slice %397 {offsets = [6, 0], sizes = [1, 64], strides = [1, 1]} : vector<7x64xbf16> to vector<1x64xbf16>
    %487 = vector.extract_strided_slice %424 {offsets = [0, 0], sizes = [1, 64], strides = [1, 1]} : vector<7x64xbf16> to vector<1x64xbf16>
    %488 = vector.extract_strided_slice %424 {offsets = [1, 0], sizes = [1, 64], strides = [1, 1]} : vector<7x64xbf16> to vector<1x64xbf16>
    %489 = vector.extract_strided_slice %424 {offsets = [2, 0], sizes = [1, 64], strides = [1, 1]} : vector<7x64xbf16> to vector<1x64xbf16>
    %490 = vector.extract_strided_slice %424 {offsets = [3, 0], sizes = [1, 64], strides = [1, 1]} : vector<7x64xbf16> to vector<1x64xbf16>
    %491 = vector.extract_strided_slice %424 {offsets = [4, 0], sizes = [1, 64], strides = [1, 1]} : vector<7x64xbf16> to vector<1x64xbf16>
    %492 = vector.extract_strided_slice %424 {offsets = [5, 0], sizes = [1, 64], strides = [1, 1]} : vector<7x64xbf16> to vector<1x64xbf16>
    %493 = vector.extract_strided_slice %424 {offsets = [6, 0], sizes = [1, 64], strides = [1, 1]} : vector<7x64xbf16> to vector<1x64xbf16>
    %494 = vector.extract_strided_slice %451 {offsets = [0, 0], sizes = [1, 64], strides = [1, 1]} : vector<7x64xbf16> to vector<1x64xbf16>
    %495 = vector.extract_strided_slice %451 {offsets = [1, 0], sizes = [1, 64], strides = [1, 1]} : vector<7x64xbf16> to vector<1x64xbf16>
    %496 = vector.extract_strided_slice %451 {offsets = [2, 0], sizes = [1, 64], strides = [1, 1]} : vector<7x64xbf16> to vector<1x64xbf16>
    %497 = vector.extract_strided_slice %451 {offsets = [3, 0], sizes = [1, 64], strides = [1, 1]} : vector<7x64xbf16> to vector<1x64xbf16>
    %498 = vector.extract_strided_slice %451 {offsets = [4, 0], sizes = [1, 64], strides = [1, 1]} : vector<7x64xbf16> to vector<1x64xbf16>
    %499 = vector.extract_strided_slice %451 {offsets = [5, 0], sizes = [1, 64], strides = [1, 1]} : vector<7x64xbf16> to vector<1x64xbf16>
    %500 = vector.extract_strided_slice %451 {offsets = [6, 0], sizes = [1, 64], strides = [1, 1]} : vector<7x64xbf16> to vector<1x64xbf16>
    %501 = tpu.concatenate %452, %453, %454, %455, %456, %457, %458, %459, %460, %461, %462, %463, %464, %465, %466, %467 in 1 : vector<1x64xbf16>, vector<1x64xbf16>, vector<1x64xbf16>, vector<1x64xbf16>, vector<1x64xbf16>, vector<1x64xbf16>, vector<1x64xbf16>, vector<1x64xbf16>, vector<1x64xbf16>, vector<1x64xbf16>, vector<1x64xbf16>, vector<1x64xbf16>, vector<1x64xbf16>, vector<1x64xbf16>, vector<1x64xbf16>, vector<1x64xbf16> -> vector<1x1024xbf16>
    %502 = tpu.concatenate %468, %469, %470, %471, %472, %473, %474, %475, %476, %477, %478, %479, %480, %481, %482, %483 in 1 : vector<1x64xbf16>, vector<1x64xbf16>, vector<1x64xbf16>, vector<1x64xbf16>, vector<1x64xbf16>, vector<1x64xbf16>, vector<1x64xbf16>, vector<1x64xbf16>, vector<1x64xbf16>, vector<1x64xbf16>, vector<1x64xbf16>, vector<1x64xbf16>, vector<1x64xbf16>, vector<1x64xbf16>, vector<1x64xbf16>, vector<1x64xbf16> -> vector<1x1024xbf16>
    %503 = tpu.concatenate %484, %485, %486, %487, %488, %489, %490, %491, %492, %493, %494, %495, %496, %497, %498, %499 in 1 : vector<1x64xbf16>, vector<1x64xbf16>, vector<1x64xbf16>, vector<1x64xbf16>, vector<1x64xbf16>, vector<1x64xbf16>, vector<1x64xbf16>, vector<1x64xbf16>, vector<1x64xbf16>, vector<1x64xbf16>, vector<1x64xbf16>, vector<1x64xbf16>, vector<1x64xbf16>, vector<1x64xbf16>, vector<1x64xbf16>, vector<1x64xbf16> -> vector<1x1024xbf16>
    %504 = tpu.concatenate %501, %502, %503, %500 in 1 : vector<1x1024xbf16>, vector<1x1024xbf16>, vector<1x1024xbf16>, vector<1x64xbf16> -> vector<1x3136xbf16>
    %c0_523 = arith.constant 0 : index
    %c0_524 = arith.constant 0 : index
    %505 = vector.load %arg9[%c0_523, %c0_524] : memref<3136x128xbf16, #tpu.memory_space<vmem>>, vector<3136x128xbf16>
    %cst_525 = arith.constant dense<0.000000e+00> : vector<1x128xf32>
    %506 = tpu.matmul %504, %505, %cst_525 {dimension_numbers = #tpu.dot_dimension_numbers<[1], [0], [0], [1], [0, 0, 1, 1], [], []>} : vector<1x3136xbf16>, vector<3136x128xbf16>, vector<1x128xf32> -> vector<1x128xf32>
    %c0_526 = arith.constant 0 : index
    %c0_527 = arith.constant 0 : index
    %507 = vector.load %arg10[%c0_526, %c0_527] : memref<1x128xf32, #tpu.memory_space<vmem>>, vector<1x128xf32>
    %508 = arith.addf %506, %507 : vector<1x128xf32>
    %509 = arith.truncf %508 : vector<1x128xf32> to vector<1x128xbf16>
    %c0_528 = arith.constant 0 : index
    %c0_529 = arith.constant 0 : index
    %510 = vector.load %arg11[%c0_528, %c0_529] : memref<128x256xbf16, #tpu.memory_space<vmem>>, vector<128x256xbf16>
    %cst_530 = arith.constant dense<0.000000e+00> : vector<1x256xf32>
    %511 = tpu.matmul %509, %510, %cst_530 {dimension_numbers = #tpu.dot_dimension_numbers<[1], [0], [0], [1], [0, 0, 1, 1], [], []>} : vector<1x128xbf16>, vector<128x256xbf16>, vector<1x256xf32> -> vector<1x256xf32>
    %c0_531 = arith.constant 0 : index
    %c0_532 = arith.constant 0 : index
    %512 = vector.load %arg12[%c0_531, %c0_532] : memref<1x256xf32, #tpu.memory_space<vmem>>, vector<1x256xf32>
    %513 = arith.addf %511, %512 : vector<1x256xf32>
    %cst_533 = arith.constant 0.000000e+00 : f32
    %514 = vector.broadcast %cst_533 : f32 to vector<1x256xf32>
    %515 = arith.maximumf %513, %514 : vector<1x256xf32>
    %516 = arith.truncf %515 : vector<1x256xf32> to vector<1x256xbf16>
    %c0_534 = arith.constant 0 : index
    %c0_535 = arith.constant 0 : index
    %517 = vector.load %arg13[%c0_534, %c0_535] : memref<256x128xbf16, #tpu.memory_space<vmem>>, vector<256x128xbf16>
    %cst_536 = arith.constant dense<0.000000e+00> : vector<1x128xf32>
    %518 = tpu.matmul %516, %517, %cst_536 {dimension_numbers = #tpu.dot_dimension_numbers<[1], [0], [0], [1], [0, 0, 1, 1], [], []>} : vector<1x256xbf16>, vector<256x128xbf16>, vector<1x128xf32> -> vector<1x128xf32>
    %c0_537 = arith.constant 0 : index
    %c0_538 = arith.constant 0 : index
    %519 = vector.load %arg14[%c0_537, %c0_538] : memref<1x128xf32, #tpu.memory_space<vmem>>, vector<1x128xf32>
    %520 = arith.addf %518, %519 : vector<1x128xf32>
    %c0_539 = arith.constant 0 : index
    %c0_540 = arith.constant 0 : index
    %c0_541 = arith.constant 0 : index
    %521 = vector.load %arg19[%c0_539, %c0_540, %c0_541] : memref<1x1x128xf32, #tpu.memory_space<vmem>>, vector<1x1x128xf32>
    %522 = vector.shape_cast %521 : vector<1x1x128xf32> to vector<1x128xf32>
    %523 = vector.shape_cast %508 : vector<1x128xf32> to vector<1x1x128xf32>
    tpu.vector_store %arg19[%c0_539, %c0_540, %c0_541], %523 {strides = array<i32>} : memref<1x1x128xf32, #tpu.memory_space<vmem>>, vector<1x1x128xf32>,
    %c0_542 = arith.constant 0 : index
    %c0_543 = arith.constant 0 : index
    %c0_544 = arith.constant 0 : index
    %524 = vector.load %arg20[%c0_542, %c0_543, %c0_544] : memref<1x1x128xf32, #tpu.memory_space<vmem>>, vector<1x1x128xf32>
    %525 = vector.shape_cast %524 : vector<1x1x128xf32> to vector<1x128xf32>
    %526 = vector.shape_cast %520 : vector<1x128xf32> to vector<1x1x128xf32>
    tpu.vector_store %arg20[%c0_542, %c0_543, %c0_544], %526 {strides = array<i32>} : memref<1x1x128xf32, #tpu.memory_space<vmem>>, vector<1x1x128xf32>,
    %c0_545 = arith.constant 0 : index
    %c0_546 = arith.constant 0 : index
    %c0_547 = arith.constant 0 : index
    %527 = vector.load %arg2[%c0_545, %c0_546, %c0_547] : memref<1x1x128xbf16, #tpu.memory_space<vmem>>, vector<1x1x128xbf16>
    %528 = vector.shape_cast %527 : vector<1x1x128xbf16> to vector<1x128xbf16>
    %c0_548 = arith.constant 0 : index
    %c0_549 = arith.constant 0 : index
    %529 = vector.load %arg15[%c0_548, %c0_549] : memref<128x256xbf16, #tpu.memory_space<vmem>>, vector<128x256xbf16>
    %cst_550 = arith.constant dense<0.000000e+00> : vector<1x256xf32>
    %530 = tpu.matmul %528, %529, %cst_550 {dimension_numbers = #tpu.dot_dimension_numbers<[1], [0], [0], [1], [0, 0, 1, 1], [], []>} : vector<1x128xbf16>, vector<128x256xbf16>, vector<1x256xf32> -> vector<1x256xf32>
    %c0_551 = arith.constant 0 : index
    %c0_552 = arith.constant 0 : index
    %531 = vector.load %arg16[%c0_551, %c0_552] : memref<1x256xf32, #tpu.memory_space<vmem>>, vector<1x256xf32>
    %532 = arith.addf %530, %531 : vector<1x256xf32>
    %cst_553 = arith.constant 0.000000e+00 : f32
    %533 = vector.broadcast %cst_553 : f32 to vector<1x256xf32>
    %534 = arith.maximumf %532, %533 : vector<1x256xf32>
    %535 = arith.truncf %534 : vector<1x256xf32> to vector<1x256xbf16>
    %c0_554 = arith.constant 0 : index
    %c0_555 = arith.constant 0 : index
    %536 = vector.load %arg17[%c0_554, %c0_555] : memref<256x128xbf16, #tpu.memory_space<vmem>>, vector<256x128xbf16>
    %cst_556 = arith.constant dense<0.000000e+00> : vector<1x128xf32>
    %537 = tpu.matmul %535, %536, %cst_556 {dimension_numbers = #tpu.dot_dimension_numbers<[1], [0], [0], [1], [0, 0, 1, 1], [], []>} : vector<1x256xbf16>, vector<256x128xbf16>, vector<1x128xf32> -> vector<1x128xf32>
    %c0_557 = arith.constant 0 : index
    %c0_558 = arith.constant 0 : index
    %538 = vector.load %arg18[%c0_557, %c0_558] : memref<1x128xf32, #tpu.memory_space<vmem>>, vector<1x128xf32>
    %539 = arith.addf %537, %538 : vector<1x128xf32>
    %c0_559 = arith.constant 0 : index
    %c0_560 = arith.constant 0 : index
    %c0_561 = arith.constant 0 : index
    %540 = vector.load %arg21[%c0_559, %c0_560, %c0_561] : memref<1x1x128xf32, #tpu.memory_space<vmem>>, vector<1x1x128xf32>
    %541 = vector.shape_cast %540 : vector<1x1x128xf32> to vector<1x128xf32>
    %542 = vector.shape_cast %539 : vector<1x128xf32> to vector<1x1x128xf32>
    tpu.vector_store %arg21[%c0_559, %c0_560, %c0_561], %542 {strides = array<i32>} : memref<1x1x128xf32, #tpu.memory_space<vmem>>, vector<1x1x128xf32>,
    return
  }
  func.func @transform_0(%arg0: i32) -> (i32, i32, i32) {
    %c0_i32 = arith.constant 0 : i32
    %c0_i32_0 = arith.constant 0 : i32
    %c0_i32_1 = arith.constant 0 : i32
    return %arg0, %c0_i32, %c0_i32_0 : i32, i32, i32
  }
  func.func @transform_1(%arg0: i32) -> (i32, i32, i32) {
    %c0_i32 = arith.constant 0 : i32
    %c0_i32_0 = arith.constant 0 : i32
    %c0_i32_1 = arith.constant 0 : i32
    return %arg0, %c0_i32, %c0_i32_0 : i32, i32, i32
  }
  func.func @transform_2(%arg0: i32) -> (i32, i32) {
    %c0_i32 = arith.constant 0 : i32
    %c0_i32_0 = arith.constant 0 : i32
    %c0_i32_1 = arith.constant 0 : i32
    return %c0_i32, %c0_i32_0 : i32, i32
  }
  func.func @transform_3(%arg0: i32) -> (i32, i32) {
    %c0_i32 = arith.constant 0 : i32
    %c0_i32_0 = arith.constant 0 : i32
    %c0_i32_1 = arith.constant 0 : i32
    return %c0_i32, %c0_i32_0 : i32, i32
  }
  func.func @transform_4(%arg0: i32) -> (i32, i32) {
    %c0_i32 = arith.constant 0 : i32
    %c0_i32_0 = arith.constant 0 : i32
    %c0_i32_1 = arith.constant 0 : i32
    return %c0_i32, %c0_i32_0 : i32, i32
  }
  func.func @transform_5(%arg0: i32) -> (i32, i32) {
    %c0_i32 = arith.constant 0 : i32
    %c0_i32_0 = arith.constant 0 : i32
    %c0_i32_1 = arith.constant 0 : i32
    return %c0_i32, %c0_i32_0 : i32, i32
  }
  func.func @transform_6(%arg0: i32) -> (i32, i32) {
    %c0_i32 = arith.constant 0 : i32
    %c0_i32_0 = arith.constant 0 : i32
    %c0_i32_1 = arith.constant 0 : i32
    return %c0_i32, %c0_i32_0 : i32, i32
  }
  func.func @transform_7(%arg0: i32) -> (i32, i32) {
    %c0_i32 = arith.constant 0 : i32
    %c0_i32_0 = arith.constant 0 : i32
    %c0_i32_1 = arith.constant 0 : i32
    return %c0_i32, %c0_i32_0 : i32, i32
  }
  func.func @transform_8(%arg0: i32) -> (i32, i32) {
    %c0_i32 = arith.constant 0 : i32
    %c0_i32_0 = arith.constant 0 : i32
    %c0_i32_1 = arith.constant 0 : i32
    return %c0_i32, %c0_i32_0 : i32, i32
  }
  func.func @transform_9(%arg0: i32) -> (i32, i32) {
    %c0_i32 = arith.constant 0 : i32
    %c0_i32_0 = arith.constant 0 : i32
    %c0_i32_1 = arith.constant 0 : i32
    return %c0_i32, %c0_i32_0 : i32, i32
  }
  func.func @transform_10(%arg0: i32) -> (i32, i32) {
    %c0_i32 = arith.constant 0 : i32
    %c0_i32_0 = arith.constant 0 : i32
    %c0_i32_1 = arith.constant 0 : i32
    return %c0_i32, %c0_i32_0 : i32, i32
  }
  func.func @transform_11(%arg0: i32) -> (i32, i32) {
    %c0_i32 = arith.constant 0 : i32
    %c0_i32_0 = arith.constant 0 : i32
    %c0_i32_1 = arith.constant 0 : i32
    return %c0_i32, %c0_i32_0 : i32, i32
  }
  func.func @transform_12(%arg0: i32) -> (i32, i32) {
    %c0_i32 = arith.constant 0 : i32
    %c0_i32_0 = arith.constant 0 : i32
    %c0_i32_1 = arith.constant 0 : i32
    return %c0_i32, %c0_i32_0 : i32, i32
  }
  func.func @transform_13(%arg0: i32) -> (i32, i32) {
    %c0_i32 = arith.constant 0 : i32
    %c0_i32_0 = arith.constant 0 : i32
    %c0_i32_1 = arith.constant 0 : i32
    return %c0_i32, %c0_i32_0 : i32, i32
  }
  func.func @transform_14(%arg0: i32) -> (i32, i32) {
    %c0_i32 = arith.constant 0 : i32
    %c0_i32_0 = arith.constant 0 : i32
    %c0_i32_1 = arith.constant 0 : i32
    return %c0_i32, %c0_i32_0 : i32, i32
  }
  func.func @transform_15(%arg0: i32) -> (i32, i32) {
    %c0_i32 = arith.constant 0 : i32
    %c0_i32_0 = arith.constant 0 : i32
    %c0_i32_1 = arith.constant 0 : i32
    return %c0_i32, %c0_i32_0 : i32, i32
  }
  func.func @transform_16(%arg0: i32) -> (i32, i32) {
    %c0_i32 = arith.constant 0 : i32
    %c0_i32_0 = arith.constant 0 : i32
    %c0_i32_1 = arith.constant 0 : i32
    return %c0_i32, %c0_i32_0 : i32, i32
  }
  func.func @transform_17(%arg0: i32) -> (i32, i32) {
    %c0_i32 = arith.constant 0 : i32
    %c0_i32_0 = arith.constant 0 : i32
    %c0_i32_1 = arith.constant 0 : i32
    return %c0_i32, %c0_i32_0 : i32, i32
  }
  func.func @transform_18(%arg0: i32) -> (i32, i32, i32) {
    %c0_i32 = arith.constant 0 : i32
    %c0_i32_0 = arith.constant 0 : i32
    %c0_i32_1 = arith.constant 0 : i32
    return %arg0, %c0_i32, %c0_i32_0 : i32, i32, i32
  }
  func.func @transform_19(%arg0: i32) -> (i32, i32, i32) {
    %c0_i32 = arith.constant 0 : i32
    %c0_i32_0 = arith.constant 0 : i32
    %c0_i32_1 = arith.constant 0 : i32
    return %arg0, %c0_i32, %c0_i32_0 : i32, i32, i32
  }
  func.func @transform_20(%arg0: i32) -> (i32, i32, i32) {
    %c0_i32 = arith.constant 0 : i32
    %c0_i32_0 = arith.constant 0 : i32
    %c0_i32_1 = arith.constant 0 : i32
    return %arg0, %c0_i32, %c0_i32_0 : i32, i32, i32
  }
}

</mosaic_0001>

<bundles_post_ra>
// kernel: _jepa_forward.1
= control target key start
LH: loop header
LB: loop body
LE: loop exit
PB: predicated region body
PF: predicated region fallthrough
CT: control target
= control target key end

     0   :  { %s17052_s0 = inlined_call_operand.vmem [shape: bf16[2,400,64], index: 0, kind: input, shape index: {}]   ;;  %s17053_s1 = inlined_call_operand.vmem [shape: bf16[2,1,128], index: 1, kind: input, shape index: {}]   ;;  %s17054_s2 = inlined_call_operand.vmem [shape: bf16[64,32], index: 2, kind: input, shape index: {}]   ;;  %s17055_s3 = inlined_call_operand.vmem [shape: f32[1,32], index: 3, kind: input, shape index: {}]   ;;  %s17056_s4 = inlined_call_operand.vmem [shape: bf16[512,64], index: 4, kind: input, shape index: {}]   ;;  %s17057_s5 = inlined_call_operand.vmem [shape: f32[1,64], index: 5, kind: input, shape index: {}]   ;;  %s17058_s6 = inlined_call_operand.vmem [shape: bf16[576,64], index: 6, kind: input, shape index: {}]   ;;  %s17059_s7 = inlined_call_operand.vmem [shape: f32[1,64], index: 7, kind: input, shape index: {}]   ;;  %s17060_s8 = inlined_call_operand.vmem [shape: bf16[3136,128], index: 8, kind: input, shape index: {}]   ;;  %s17061_s9 = inlined_call_operand.vmem [shape: f32[1,128], index: 9, kind: input, shape index: {}]   ;;  %s17062_s10 = inlined_call_operand.vmem [shape: bf16[128,256], index: 10, kind: input, shape index: {}]   ;;  %s17063_s11 = inlined_call_operand.vmem [shape: f32[1,256], index: 11, kind: input, shape index: {}]   ;;  %s17064_s12 = inlined_call_operand.vmem [shape: bf16[256,128], index: 12, kind: input, shape index: {}]   ;;  %s17065_s13 = inlined_call_operand.vmem [shape: f32[1,128], index: 13, kind: input, shape index: {}]   ;;  %s17066_s14 = inlined_call_operand.vmem [shape: bf16[128,256], index: 14, kind: input, shape index: {}]   ;;  %s17067_s15 = inlined_call_operand.vmem [shape: f32[1,256], index: 15, kind: input, shape index: {}]   ;;  %s17068_s16 = inlined_call_operand.vmem [shape: bf16[256,128], index: 16, kind: input, shape index: {}]   ;;  %s17069_s17 = inlined_call_operand.vmem [shape: f32[1,128], index: 17, kind: input, shape index: {}]   ;;  %s17070_s18 = inlined_call_operand.hbm [shape: f32[2,1,128], index: 18, kind: output, shape index: {0}]   ;;  %s17071_s19 = inlined_call_operand.hbm [shape: f32[2,1,128], index: 19, kind: output, shape index: {1}]   ;;  %s17072_s20 = inlined_call_operand.hbm [shape: f32[2,1,128], index: 20, kind: output, shape index: {2}]  }
   0x1   :  { %17095 = sst [smem:[#allocation17_spill]] %s17052_s0 }
   0x2   :  { %17096 = sst [smem:[#allocation18_spill]] %s17053_s1 }
   0x3   :  { %17097 = sst [smem:[#allocation19_spill]] %s17054_s2 }
   0x4   :  { %17098 = sst [smem:[#allocation20_spill]] %s17055_s3 }
   0x5   :  { %17099 = sst [smem:[#allocation21_spill]] %s17056_s4 }
   0x6   :  { %17100 = sst [smem:[#allocation22_spill]] %s17057_s5 }
   0x7   :  { %17101 = sst [smem:[#allocation23_spill]] %s17069_s17 }
   0x8   :  { %17102 = sst [smem:[#allocation24_spill]] %s17072_s20 }
   0x9   :  { %26 = vsyncpa [#allocation5], 0 }
   0xa   :  { %28 = vsyncpa [#allocation5 + $0x1], 0 }
   0xb   :  { %29 = vsyncpa [#allocation7], 0 }
   0xc   :  { %31 = vsyncpa [#allocation7 + $0x1], 0  ;;  %s13572_s1 = smov 0   ;;  %s13574_s22 = smov 0  }
   0xd   :  { %s13576_s23 = smov 0   ;;  %s13578_s24 = smov 0  }
   0xe LB: > { %17103 = sst [smem:[#allocation11_spill]] %s13450_s1  ;;  %s13593_s2 = sadd.s32 4294967295, %s13462_s24   ;;  %s13462_s24 = sphi %s13578_s24, %s17130_s24   ;;  %s13458_s23 = sphi %s13576_s23, %s17132_s23   ;;  %s13454_s22 = sphi %s13574_s22, %s17134_s22   ;;  %s13450_s1 = sphi %s13572_s1, %s17133_s1  }
   0xf   : > { %17104 = sst [smem:[#allocation12_spill]] %s13458_s23  ;;  %s17076_s25 = sadd.s32 4294967294, %s13462_s24  }
  0x10   : > { %17105 = sst [smem:[#allocation13_spill]] %s13462_s24  ;;  %s13597_s3 = sadd.s32 1, %s13462_s24  }
  0x11   : > { %17106 = sst [smem:[#allocation14_spill]] %s13597_s3  ;;  %s432_s26 = sadd.s32 1, %s13458_s23 }
  0x12   : > { %s429_s27 = ssub.s32 %s13462_s24, %s13597_s3  ;;  %p442_p0 = scmp.ne.s32.totalorder %s13458_s23, %s13454_s22 }
  0x13   : > { %p430_p1 = scmp.eq.s32.totalorder %s429_s27, 0  ;;  %p443_p2 = scmp.eq.s32.totalorder %s13593_s2, 1 }
  0x14   : > { %p448_p3 = scmp.ne.s32.totalorder %s13454_s22, %s13450_s1  ;;  %p449_p4 = scmp.eq.s32.totalorder %s17076_s25, 1 }
  0x15   : > { %s13610_s28 = scalar_select %p430_p1, %s13458_s23, %s432_s26  }
  0x16   : > { %p13612_p5 = por %p443_p2, %p442_p0  ;;  %p13616_p6 = por %p449_p4, %p448_p3 }
  0x17   : > { %17107 = sst [smem:[#allocation15_spill]] %s13610_s28  ;;  %p9729_p7 = scmp.ge.s32.totalorder %s13462_s24, 1 }
  0x18   : > { %s17109_s29 = scalar_select %p13616_p6, 1, 0 }
  0x19   : > { %p581_p8 = scmp.lt.s32.totalorder %s13462_s24, 3 }
  0x1a   : > { %17110 = sst [smem:[#allocation16_spill]] %s17109_s29 }
  0x1b   : > { %p582_p9 = pnand %p9729_p7, %p581_p8 }
  0x1c   : > { %s17111_s21 = sld [smem:[#allocation19_spill]] (!%p582_p9)  ;;  %p649_p10 = scmp.lt.s32.totalorder (!%p582_p9), %s13593_s2, 1 }
  0x1d   : > { %585 = sbr.rel (%p582_p9) target bundleno = 1687 (0x697), region = 92  ;;  %s17112_s24 = sld [smem:[#allocation17_spill]] (!%p582_p9) }
  0x1e   : > { %s17086_s28 = smov (!%p582_p9), 64   ;;  %s17089_s29 = smov (!%p582_p9), 32  }
  0x1f   : > { %s17084_s26 = smov (!%p582_p9), 96   ;;  %s17115_s0 = sld [smem:[#allocation21_spill]] (!%p582_p9) }
  0x20   : > { %s17117_s23 = smov (!%p582_p9), 64   ;;  %s17119_s5 = sld [smem:[#allocation22_spill]] (!%p582_p9) }
  0x21   : > { %s16881_s27 = sand.u32 (!%p582_p9), 1, %s13454_s22  }
  0x22   : > { %v12570_v0 = vld [vmem:[%s17111_s21 + $0x18] sm:$0xff]  ;;  %v12569_v1 = vld [vmem:[%s17111_s21 + $0x10] sm:$0xff]  ;;  %s13630_s25 = scalar_select %p649_p10, %s13593_s2, 1  ;;  %v12568_v2 = vld [vmem:[%s17111_s21 + $0x8] sm:$0xff]  ;;  %vm869_vm0 = vcmask 523264   ;;  %vm1179_vm1 = vcmask 257024  }
  0x23   : > { %949 = vmatpush.bf16.msra.mxu0 %v12570_v0  ;;  %v12567_v3 = vld [vmem:[%s17111_s21] sm:$0xff]  ;;  %vm1378_vm2 = vcmask 261120   ;;  %vm1383_vm3 = vcmask 785408   ;;  %vm1730_vm4 = vcmask 519168   ;;  %vm1732_vm5 = vcmask 516096   ;;  %s17123_s30 = scalar_lea.vmem [#allocation4], %s16881_s27 }
  0x24   : > { %s13236_s3 = smul.u32 200, %s13630_s25  ;;  %vm1733_vm6 = vsmask.f32 256 }
  0x25   : > { %vm14717_vm7 = vmand %vm1732_vm5, %vm1733_vm6 }
  0x26   : > { %s13642_s17 = scalar_lea.vmem %s17112_s24, %s13236_s3  ;;  %s17113_s24 = sld [smem:[#allocation20_spill]] }
  0x27   : > { %950 = vmatpush.bf16.msra.mxu0 %v12569_v1  ;;  %v12542_v4 = vld [vmem:[%s13642_s17] sm:$0xff]  ;;  %v12543_v5 = vld [vmem:[%s13642_s17 + $0x8] sm:$0xff]  ;;  %v12544_v6 = vld [vmem:[%s13642_s17 + $0x10] sm:$0xff] }
  0x28   : > { %v12545_v7 = vld [vmem:[%s13642_s17 + $0x18] sm:$0xff]  ;;  %v12546_v8 = vld [vmem:[%s13642_s17 + $0x20] sm:$0xff]  ;;  %v12547_v9 = vld [vmem:[%s13642_s17 + $0x28] sm:$0xff] }
  0x29   : > { %v12548_v10 = vld [vmem:[%s13642_s17 + $0x30] sm:$0xff]  ;;  %v12549_v11 = vld [vmem:[%s13642_s17 + $0x38] sm:$0xff]  ;;  %v12550_v13 = vld [vmem:[%s13642_s17 + $0x40] sm:$0xff] }
  0x2a   : > { %v12551_v22 = vld [vmem:[%s13642_s17 + $0x48] sm:$0xff]  ;;  %v12552_v40 = vld [vmem:[%s13642_s17 + $0x50] sm:$0xff] }
  0x2b   : > { %951 = vmatpush.bf16.msra.mxu0 %v12568_v2  ;;  %v12553_v2 = vld [vmem:[%s13642_s17 + $0x58] sm:$0xff] }
  0x2c   : > { %s17114_s3 = smov %s17113_s24  ;;  %v13663_v12 = vld [vmem:[%s17113_s24] ss:$0 sm:$0xff]  ;;  %s13360_s24 = scalar_lea.hbm %s17070_s18, 2 }
  0x2f   : > { %952 = vmatpush.bf16.msra.mxu0 %v12567_v3 }
  0x32   : > { %9847 = vmatmul.msk.bf16.vlgmr.msra.gmra.mxu0 %vm869_vm0, %v12542_v4 }
  0x42   : > { %9848 = vmatmul.msk.bf16.gmra.mxu0 %vm869_vm0, %v12543_v5 }
  0x52   : > { %9849 = vmatmul.msk.bf16.gmra.mxu0 %vm869_vm0, %v12544_v6 }
  0x62   : > { %9850 = vmatmul.msk.bf16.gmra.mxu0 %vm869_vm0, %v12545_v7 }
  0x72   : > { %9851 = vmatmul.msk.bf16.gmra.mxu0 %vm869_vm0, %v12546_v8 }
  0x82   : > { %9852 = vmatmul.msk.bf16.gmra.mxu0 %vm869_vm0, %v12547_v9 }
  0x92   : > { %9853 = vmatmul.msk.bf16.gmra.mxu0 %vm869_vm0, %v12548_v10 }
  0xa2   : > { %9854 = vmatmul.msk.bf16.gmra.mxu0 %vm869_vm0, %v12549_v11 }
  0xaf   : > { %v954_v14 = vpop.f32.mrf.mxu0 }
  0xb0   : > { %v955_v15 = vadd.f32 %v13663_v12, %v954_v14 }
  0xb2   : > { %v1079_v16 = vmax.f32 %v955_v15, 0.0  ;;  %9855 = vmatmul.msk.bf16.gmra.mxu0 %vm869_vm0, %v12550_v13 }
  0xb4   : > { %v1129_v17 = vpack.c.bf16 %v1079_v16, %v1079_v16 }
  0xb6   : > { %1180 = vst.msk [vmem:[#allocation2] sm:$0xf] %vm1179_vm1, %v1129_v17 }
  0xb7   : > { %v956_v18 = vpop.f32.mrf.mxu0 }
  0xb8   : > { %v957_v19 = vadd.f32 %v13663_v12, %v956_v18 }
  0xba   : > { %v1080_v20 = vmax.f32 %v957_v19, 0.0 }
  0xbc   : > { %v1130_v21 = vpack.c.bf16 %v1080_v20, %v1080_v20 }
  0xbd   : > { %v9874_v27 = vld [vmem:[#allocation2] sm:$0xf] }
  0xbe   : > { %1181 = vst.msk [vmem:[#allocation2 + $0x4] sm:$0xf] %vm1179_vm1, %v1130_v21 }
  0xbf   : > { %v959_v23 = vpop.f32.mrf.mxu0 }
  0xc0   : > { %v960_v24 = vadd.f32 %v13663_v12, %v959_v23  ;;  %v12554_v23 = vld [vmem:[%s13642_s17 + $0x60] sm:$0xff] }
  0xc2   : > { %v1081_v25 = vmax.f32 %v960_v24, 0.0  ;;  %9856 = vmatmul.msk.bf16.gmra.mxu0 %vm869_vm0, %v12551_v22 }
  0xc4   : > { %v1131_v26 = vpack.c.bf16 %v1081_v25, %v1081_v25 }
  0xc5   : > { %v12571_v28 = vld [vmem:[#allocation2] sm:$0x10]  ;;  %v9878_v38 = vld [vmem:[#allocation2 + $0x4] sm:$0xe] }
  0xc6   : > { %1182 = vst.msk [vmem:[#allocation2 + $0x8] sm:$0xf] %vm1179_vm1, %v1131_v26  ;;  %v13675_v29 = vor.u32 %v12571_v28, %v9874_v27 }
  0xc7   : > { %v961_v30 = vpop.f32.mrf.mxu0 }
  0xc8   : > { %v962_v31 = vadd.f32 %v13663_v12, %v961_v30  ;;  %v1262_v32 = vshll.u32 %v13675_v29, 16  ;;  %v1260_v34 = vshrl.u32 %v13675_v29, 16 }
  0xca   : > { %v1082_v33 = vmax.f32 %v962_v31, 0.0  ;;  %v1264_v35 = vrot.slane %v1262_v32, 1 }
  0xcc   : > { %v1132_v36 = vpack.c.bf16 %v1082_v33, %v1082_v33  ;;  %v1265_v37 = vor.u32 %v1264_v35, %v1260_v34 }
  0xcd   : > { %v12572_v39 = vld [vmem:[#allocation2 + $0x4] sm:$0x30]  ;;  %v9882_v51 = vld [vmem:[#allocation2 + $0x8] sm:$0xc] }
  0xce   : > { %1183 = vst.msk [vmem:[#allocation2 + $0xc] sm:$0xf] %vm1179_vm1, %v1132_v36  ;;  %1266 = vrot.lane.b32.xlu2 %v1265_v37, %s17086_s28  ;;  %v9879_v41 = vor.u32 %v12572_v39, %v9878_v38 }
  0xcf   : > { %v964_v42 = vpop.f32.mrf.mxu0 }
  0xd0   : > { %v965_v43 = vadd.f32 %v13663_v12, %v964_v42  ;;  %v1256_v44 = vrot.slane %v9879_v41, 1  ;;  %v1269_v45 = vshrl.u32 %v9879_v41, 16  ;;  %v1272_v46 = vshll.u32 %v9879_v41, 16 }
  0xd2   : > { %v1083_v47 = vmax.f32 %v965_v43, 0.0  ;;  %9857 = vmatmul.msk.bf16.gmra.mxu0 %vm869_vm0, %v12552_v40  ;;  %1257 = vrot.lane.b32.xlu1 %v1256_v44, %s17089_s29  ;;  %v1271_v49 = vrot.slane %v1269_v45, 1  ;;  %v1274_v50 = vrot.slane %v1272_v46, 2 }
  0xd4   : > { %v1133_v48 = vpack.c.bf16 %v1083_v47, %v1083_v47  ;;  %v1275_v56 = vor.u32 %v1274_v50, %v1271_v49 }
  0xd5   : > { %v12573_v52 = vld [vmem:[#allocation2 + $0x8] sm:$0x70]  ;;  %v9886_v0 = vld [vmem:[#allocation2 + $0xc] sm:$0x8] }
  0xd6   : > { %1184 = vst.msk [vmem:[#allocation2 + $0x10] sm:$0xf] %vm1179_vm1, %v1133_v48  ;;  %v13687_v53 = vor.u32 %v12573_v52, %v9882_v51 }
  0xd7   : > { %v966_v54 = vpop.f32.mrf.mxu0 }
  0xd8   : > { %v967_v55 = vadd.f32 %v13663_v12, %v966_v54  ;;  %v1293_v57 = vshrl.u32 %v13687_v53, 16  ;;  %v1296_v58 = vshll.u32 %v13687_v53, 16 }
  0xda   : > { %v1084_v59 = vmax.f32 %v967_v55, 0.0  ;;  %1276 = vrot.lane.b32.xlu1 %v1275_v56, %s17084_s26  ;;  %v1295_v60 = vrot.slane %v1293_v57, 2  ;;  %v1298_v61 = vrot.slane %v1296_v58, 3 }
  0xdc   : > { %v1134_v62 = vpack.c.bf16 %v1084_v59, %v1084_v59  ;;  %v1299_v63 = vor.u32 %v1298_v61, %v1295_v60  ;;  %v12555_v61 = vld [vmem:[%s13642_s17 + $0x68] sm:$0xff] }
  0xdd   : > { %v12574_v1 = vld [vmem:[#allocation2 + $0xc] sm:$0xf0] }
  0xde   : > { %1185 = vst.msk [vmem:[#allocation2 + $0x14] sm:$0xf] %vm1179_vm1, %v1134_v62  ;;  %1300 = vrot.lane.b32.xlu0 %v1299_v63, %s17086_s28  ;;  %v9887_v3 = vor.u32 %v12574_v1, %v9886_v0 }
  0xdf   : > { %v969_v4 = vpop.f32.mrf.mxu0 }
  0xe0   : > { %v970_v5 = vadd.f32 %v13663_v12, %v969_v4  ;;  %v1303_v6 = vshrl.u32 %v9887_v3, 16  ;;  %v1306_v7 = vshll.u32 %v9887_v3, 16  ;;  %v1289_v13 = vrot.slane %v9887_v3, 3 }
  0xe2   : > { %v1085_v8 = vmax.f32 %v970_v5, 0.0  ;;  %9858 = vmatmul.msk.bf16.gmra.mxu0 %vm869_vm0, %v12553_v2  ;;  %v1305_v9 = vrot.slane %v1303_v6, 3  ;;  %v1308_v10 = vrot.slane %v1306_v7, 4 }
  0xe4   : > { %v1135_v11 = vpack.c.bf16 %v1085_v8, %v1085_v8  ;;  %v1309_v14 = vor.u32 %v1308_v10, %v1305_v9 }
  0xe5   : > { %v9890_v19 = vld [vmem:[#allocation2 + $0x14] sm:$0xf] }
  0xe6   : > { %1186 = vst.msk [vmem:[#allocation2 + $0x18] sm:$0xf] %vm1179_vm1, %v1135_v11  ;;  %1290 = vrot.lane.b32.xlu0 %v1289_v13, %s17089_s29  ;;  %1310 = vrot.lane.b32.xlu1 %v1309_v14, %s17084_s26  ;;  %v10034_v21 = vld [vmem:[#allocation2 + $0x14] sm:$0xf] }
  0xe7   : > { %v971_v15 = vpop.f32.mrf.mxu0 }
  0xe8   : > { %v972_v16 = vadd.f32 %v13663_v12, %v971_v15 }
  0xea   : > { %v1086_v17 = vmax.f32 %v972_v16, 0.0 }
  0xec   : > { %v1136_v18 = vpack.c.bf16 %v1086_v17, %v1086_v17 }
  0xed   : > { %v12575_v20 = vld [vmem:[#allocation2 + $0x14] sm:$0x10]  ;;  %v9894_v39 = vld [vmem:[#allocation2 + $0x18] sm:$0xe] }
  0xee   : > { %v12611_v22 = vld [vmem:[#allocation2 + $0x14] sm:$0x10]  ;;  %1187 = vst.msk [vmem:[#allocation2 + $0x1c] sm:$0xf] %vm1179_vm1, %v1136_v18  ;;  %v13704_v24 = vor.u32 %v12575_v20, %v9890_v19  ;;  %v10038_v43 = vld [vmem:[#allocation2 + $0x18] sm:$0xe] }
  0xef   : > { %v13706_v25 = vor.u32 %v12611_v22, %v10034_v21  ;;  %v974_v26 = vpop.f32.mrf.mxu0 }
  0xf0   : > { %v975_v27 = vadd.f32 %v13663_v12, %v974_v26  ;;  %v1328_v28 = vshll.u32 %v13704_v24, 16  ;;  %v1326_v32 = vshrl.u32 %v13704_v24, 16 }
  0xf1   : > { %v1770_v30 = vshll.u32 %v13706_v25, 16  ;;  %v1768_v34 = vshrl.u32 %v13706_v25, 16 }
  0xf2   : > { %v1087_v31 = vmax.f32 %v975_v27, 0.0  ;;  %9859 = vmatmul.msk.bf16.gmra.mxu0 %vm869_vm0, %v12554_v23  ;;  %v1330_v33 = vrot.slane %v1328_v28, 1 }
  0xf3   : > { %v1772_v35 = vrot.slane %v1770_v30, 1 }
  0xf4   : > { %v1137_v36 = vpack.c.bf16 %v1087_v31, %v1087_v31  ;;  %v1331_v37 = vor.u32 %v1330_v33, %v1326_v32 }
  0xf5   : > { %v1773_v38 = vor.u32 %v1772_v35, %v1768_v34  ;;  %v12576_v40 = vld [vmem:[#allocation2 + $0x18] sm:$0x30]  ;;  %v9898_v58 = vld [vmem:[#allocation2 + $0x1c] sm:$0xc] }
  0xf6   : > { %v12612_v41 = vld [vmem:[#allocation2 + $0x18] sm:$0x30]  ;;  %1188 = vst.msk [vmem:[#allocation2 + $0x20] sm:$0xf] %vm1179_vm1, %v1137_v36  ;;  %1332 = vrot.lane.b32.xlu0 %v1331_v37, %s17086_s28  ;;  %v9895_v42 = vor.u32 %v12576_v40, %v9894_v39  ;;  %v10042_v63 = vld [vmem:[#allocation2 + $0x1c] sm:$0xc] }
  0xf7   : > { %1774 = vrot.lane.b32.xlu1 %v1773_v38, %s17086_s28  ;;  %v976_v44 = vpop.f32.mrf.mxu0  ;;  %v10039_v45 = vor.u32 %v12612_v41, %v10038_v43  ;;  %v12556_v38 = vld [vmem:[%s13642_s17 + $0x70] sm:$0xff]  ;;  %v12586_v39 = vld [vmem:[%s17115_s0 + $0x38] sm:$0xff] }
  0xf8   : > { %v977_v46 = vadd.f32 %v13663_v12, %v976_v44  ;;  %v1322_v47 = vrot.slane %v9895_v42, 1  ;;  %v1335_v48 = vshrl.u32 %v9895_v42, 16  ;;  %v1338_v49 = vshll.u32 %v9895_v42, 16  ;;  %1670 = vmatpush.bf16.msra.mxu1 %v12586_v39 }
  0xf9   : > { %v1777_v51 = vshrl.u32 %v10039_v45, 16  ;;  %v1780_v52 = vshll.u32 %v10039_v45, 16  ;;  %v1764_v55 = vrot.slane %v10039_v45, 1 }
  0xfa   : > { %v1088_v50 = vmax.f32 %v977_v46, 0.0  ;;  %1323 = vrot.lane.b32.xlu2 %v1322_v47, %s17089_s29  ;;  %v1337_v56 = vrot.slane %v1335_v48, 1  ;;  %v1340_v57 = vrot.slane %v1338_v49, 2  ;;  %v12585_v47 = vld [vmem:[%s17115_s0 + $0x30] sm:$0xff] }
  0xfb   : > { %v1779_v1 = vrot.slane %v1777_v51, 1  ;;  %v1782_v2 = vrot.slane %v1780_v52, 2 }
  0xfc   : > { %v1138_v54 = vpack.c.bf16 %v1088_v50, %v1088_v50  ;;  %v1341_v5 = vor.u32 %v1340_v57, %v1337_v56  ;;  %1671 = vmatpush.bf16.msra.mxu1 %v12585_v47 }
  0xfd   : > { %v12577_v59 = vld [vmem:[#allocation2 + $0x1c] sm:$0x70]  ;;  %v1783_v15 = vor.u32 %v1782_v2, %v1779_v1  ;;  %v10046_v16 = vld [vmem:[#allocation2 + $0x20] sm:$0x8] }
  0xfe   : > { %v12613_v60 = vld [vmem:[#allocation2 + $0x1c] sm:$0x70]  ;;  %1189 = vst.msk [vmem:[#allocation2 + $0x24] sm:$0xf] %vm1179_vm1, %v1138_v54  ;;  %1765 = vrot.lane.b32.xlu0 %v1764_v55, %s17089_s29  ;;  %v13722_v62 = vor.u32 %v12577_v59, %v9898_v58  ;;  %v9902_v18 = vld [vmem:[#allocation2 + $0x20] sm:$0x8] }
  0xff   : > { %v979_v0 = vpop.f32.mrf.mxu0  ;;  %v13724_v3 = vor.u32 %v12613_v60, %v10042_v63  ;;  %v12584_v58 = vld [vmem:[%s17115_s0 + $0x28] sm:$0xff] }
 0x100   : > { %v980_v4 = vadd.f32 %v13663_v12, %v979_v0  ;;  %v1359_v6 = vshrl.u32 %v13722_v62, 16  ;;  %v1362_v7 = vshll.u32 %v13722_v62, 16  ;;  %1672 = vmatpush.bf16.msra.mxu1 %v12584_v58  ;;  %v12579_v58 = vld [vmem:[%s17115_s0] sm:$0xff] }
 0x101   : > { %v1801_v11 = vshrl.u32 %v13724_v3, 16  ;;  %v1804_v13 = vshll.u32 %v13724_v3, 16 }
 0x102   : > { %v1089_v8 = vmax.f32 %v980_v4, 0.0  ;;  %9860 = vmatmul.msk.bf16.gmra.mxu0 %vm869_vm0, %v12555_v61  ;;  %1342 = vrot.lane.b32.xlu2 %v1341_v5, %s17084_s26  ;;  %v1361_v9 = vrot.slane %v1359_v6, 2  ;;  %v1364_v10 = vrot.slane %v1362_v7, 3  ;;  %v12583_v5 = vld [vmem:[%s17115_s0 + $0x20] sm:$0xff] }
 0x103   : > { %v1803_v26 = vrot.slane %v1801_v11, 2  ;;  %v1806_v27 = vrot.slane %v1804_v13, 3 }
 0x104   : > { %v1139_v14 = vpack.c.bf16 %v1089_v8, %v1089_v8  ;;  %v1365_v23 = vor.u32 %v1364_v10, %v1361_v9  ;;  %1673 = vmatpush.bf16.msra.mxu1 %v12583_v5  ;;  %v12594_v10 = vld [vmem:[%s17115_s0 + $0x78] sm:$0xff] }
 0x105   : > { %v12614_v17 = vld [vmem:[#allocation2 + $0x20] sm:$0xf0]  ;;  %v1807_v35 = vor.u32 %v1806_v27, %v1803_v26  ;;  %1684 = vmatpush.bf16.msra.mxu2 %v12594_v10  ;;  %v12590_v5 = vld [vmem:[%s17115_s0 + $0x58] sm:$0xff] }
 0x106   : > { %v12578_v19 = vld [vmem:[#allocation2 + $0x20] sm:$0xf0]  ;;  %1190 = vst.msk [vmem:[#allocation2 + $0x28] sm:$0xf] %vm1179_vm1, %v1139_v14  ;;  %1784 = vrot.lane.b32.xlu0 %v1783_v15, %s17084_s26  ;;  %v10047_v20 = vor.u32 %v12614_v17, %v10046_v16  ;;  %v12557_v15 = vld [vmem:[%s13642_s17 + $0x78] sm:$0xff] }
 0x107   : > { %v9903_v21 = vor.u32 %v12578_v19, %v9902_v18  ;;  %v981_v22 = vpop.f32.mrf.mxu0  ;;  %v12582_v18 = vld [vmem:[%s17115_s0 + $0x18] sm:$0xff]  ;;  %v12558_v10 = vld [vmem:[%s13642_s17 + $0x80] sm:$0xff] }
 0x108   : > { %v982_v28 = vadd.f32 %v13663_v12, %v981_v22  ;;  %v1797_v30 = vrot.slane %v10047_v20, 3  ;;  %v1811_v43 = vshrl.u32 %v10047_v20, 16  ;;  %v1814_v44 = vshll.u32 %v10047_v20, 16  ;;  %v12602_v19 = vld [vmem:[%s17115_s0 + $0xb8] sm:$0xff]  ;;  %1674 = vmatpush.bf16.msra.mxu1 %v12582_v18  ;;  %v12609_v18 = vld [vmem:[%s17115_s0 + $0xf0] sm:$0xff] }
 0x109   : > { %v1369_v31 = vshrl.u32 %v9903_v21, 16  ;;  %v1372_v32 = vshll.u32 %v9903_v21, 16  ;;  %v1355_v45 = vrot.slane %v9903_v21, 3  ;;  %1698 = vmatpush.bf16.msra.mxu3 %v12602_v19 }
 0x10a   : > { %v1090_v33 = vmax.f32 %v982_v28, 0.0  ;;  %1798 = vrot.lane.b32.xlu1 %v1797_v30, %s17089_s29  ;;  %1366 = vrot.lane.b32.xlu2 %v1365_v23, %s17086_s28  ;;  %v1813_v49 = vrot.slane %v1811_v43, 3  ;;  %v1816_v50 = vrot.slane %v1814_v44, 4  ;;  %v12593_v28 = vld [vmem:[%s17115_s0 + $0x70] sm:$0xff] }
 0x10b   : > { %v1371_v36 = vrot.slane %v1369_v31, 3  ;;  %v1374_v37 = vrot.slane %v1372_v32, 4  ;;  %v12581_v32 = vld [vmem:[%s17115_s0 + $0x10] sm:$0xff]  ;;  %1685 = vmatpush.bf16.msra.mxu2 %v12593_v28 }
 0x10c   : > { %v1140_v34 = vpack.c.bf16 %v1090_v33, %v1090_v33  ;;  %v1817_v63 = vor.u32 %v1816_v50, %v1813_v49  ;;  %v12601_v33 = vld [vmem:[%s17115_s0 + $0xb0] sm:$0xff]  ;;  %1675 = vmatpush.bf16.msra.mxu1 %v12581_v32  ;;  %v12591_v49 = vld [vmem:[%s17115_s0 + $0x60] sm:$0xff] }
 0x10d   : > { %v1375_v42 = vor.u32 %v1374_v37, %v1371_v36  ;;  %v10194_v51 = vld [vmem:[#allocation2 + $0x28] sm:$0xf]  ;;  %1699 = vmatpush.bf16.msra.mxu3 %v12601_v33  ;;  %v12597_v32 = vld [vmem:[%s17115_s0 + $0x90] sm:$0xff] }
 0x10e   : > { %1191 = vst.msk [vmem:[#allocation2 + $0x2c] sm:$0xf] %vm1179_vm1, %v1140_v34  ;;  %1808 = vrot.lane.b32.xlu0 %v1807_v35, %s17086_s28  ;;  %v10050_v54 = vld [vmem:[#allocation2 + $0x28] sm:$0xf] }
 0x10f   : > { %v984_v40 = vpop.f32.mrf.mxu0  ;;  %v12592_v37 = vld [vmem:[%s17115_s0 + $0x68] sm:$0xff] }
 0x110   : > { %v985_v41 = vadd.f32 %v13663_v12, %v984_v40  ;;  %1686 = vmatpush.bf16.msra.mxu2 %v12592_v37  ;;  %v12608_v33 = vld [vmem:[%s17115_s0 + $0xe8] sm:$0xff] }
 0x111   : > { %v12588_v37 = vld [vmem:[%s17115_s0 + $0x48] sm:$0xff] }
 0x112   : > { %v1091_v46 = vmax.f32 %v985_v41, 0.0  ;;  %9861 = vmatmul.msk.bf16.gmra.mxu0 %vm869_vm0, %v12556_v38  ;;  %1376 = vrot.lane.b32.xlu1 %v1375_v42, %s17084_s26  ;;  %v12580_v41 = vld [vmem:[%s17115_s0 + $0x8] sm:$0xff] }
 0x113   : > { %1356 = vrot.lane.b32.xlu2 %v1355_v45, %s17089_s29  ;;  %v12600_v45 = vld [vmem:[%s17115_s0 + $0xa8] sm:$0xff]  ;;  %1676 = vmatpush.bf16.msra.mxu1 %v12580_v41 }
 0x114   : > { %v1141_v48 = vpack.c.bf16 %v1091_v46, %v1091_v46  ;;  %1700 = vmatpush.bf16.msra.mxu3 %v12600_v45  ;;  %1687 = vmatpush.bf16.msra.mxu2 %v12591_v49  ;;  %v12607_v45 = vld [vmem:[%s17115_s0 + $0xe0] sm:$0xff] }
 0x115   : > { %v12651_v52 = vld [vmem:[#allocation2 + $0x28] sm:$0x10]  ;;  %v10198_v8 = vld [vmem:[#allocation2 + $0x2c] sm:$0xe] }
 0x116   : > { %v12615_v55 = vld [vmem:[#allocation2 + $0x28] sm:$0x10]  ;;  %1192 = vst.msk [vmem:[#allocation2 + $0x30] sm:$0xf] %vm1179_vm1, %v1141_v48  ;;  %v13752_v56 = vor.u32 %v12651_v52, %v10194_v51  ;;  %v10054_v9 = vld [vmem:[#allocation2 + $0x2c] sm:$0xe] }
 0x117   : > { %v13754_v57 = vor.u32 %v12615_v55, %v10050_v54  ;;  %v986_v59 = vpop.f32.mrf.mxu0  ;;  %1677 = vmatpush.bf16.msra.mxu1 %v12579_v58  ;;  %v12634_v58 = vld [vmem:[%s17115_s0 + $0x78] sm:$0xff] }
 0x118   : > { %v987_v60 = vadd.f32 %v13663_v12, %v986_v59  ;;  %v2273_v61 = vshll.u32 %v13752_v56, 16  ;;  %v2271_v2 = vshrl.u32 %v13752_v56, 16  ;;  %v12599_v59 = vld [vmem:[%s17115_s0 + $0xa0] sm:$0xff]  ;;  %1688 = vmatpush.bf16.msra.mxu2 %v12590_v5 }
 0x119   : > { %v1836_v0 = vshll.u32 %v13754_v57, 16  ;;  %v1834_v21 = vshrl.u32 %v13754_v57, 16  ;;  %1701 = vmatpush.bf16.msra.mxu3 %v12599_v59 }
 0x11a   : > { %v1092_v1 = vmax.f32 %v987_v60, 0.0  ;;  %v2275_v4 = vrot.slane %v2273_v61, 1 }
 0x11b   : > { %1818 = vrot.lane.b32.xlu2 %v1817_v63, %s17084_s26  ;;  %v1838_v13 = vrot.slane %v1836_v0, 1  ;;  %s17116_s26 = smov 96   ;;  %v12610_v0 = vld [vmem:[%s17115_s0 + $0xf8] sm:$0xff] }
 0x11c   : > { %v1142_v6 = vpack.c.bf16 %v1092_v1, %v1092_v1  ;;  %v2276_v7 = vor.u32 %v2275_v4, %v2271_v2  ;;  %1712 = vmatpush.bf16.msrb.mxu1 %v12610_v0 }
 0x11d   : > { %v12652_v11 = vld [vmem:[#allocation2 + $0x2c] sm:$0x30]  ;;  %v1839_v30 = vor.u32 %v1838_v13, %v1834_v21  ;;  %v10058_v38 = vld [vmem:[#allocation2 + $0x30] sm:$0xc] }
 0x11e   : > { %v12616_v14 = vld [vmem:[#allocation2 + $0x2c] sm:$0x30]  ;;  %1193 = vst.msk [vmem:[#allocation2 + $0x34] sm:$0xf] %vm1179_vm1, %v1142_v6  ;;  %2277 = vrot.lane.b32.xlu0 %v2276_v7, %s17086_s28  ;;  %v10199_v16 = vor.u32 %v12652_v11, %v10198_v8  ;;  %v10202_v55 = vld [vmem:[#allocation2 + $0x30] sm:$0xc] }
 0x11f   : > { %v10055_v17 = vor.u32 %v12616_v14, %v10054_v9  ;;  %v989_v20 = vpop.f32.mrf.mxu0  ;;  %v12598_v14 = vld [vmem:[%s17115_s0 + $0x98] sm:$0xff] }
 0x120   : > { %v990_v22 = vadd.f32 %v13663_v12, %v989_v20  ;;  %v2267_v23 = vrot.slane %v10199_v16, 1  ;;  %v2280_v43 = vshrl.u32 %v10199_v16, 16  ;;  %v2283_v44 = vshll.u32 %v10199_v16, 16  ;;  %1702 = vmatpush.bf16.msra.mxu3 %v12598_v14  ;;  %1713 = vmatpush.bf16.msrb.mxu1 %v12609_v18 }
 0x121   : > { %v1843_v26 = vshrl.u32 %v10055_v17, 16  ;;  %v1846_v27 = vshll.u32 %v10055_v17, 16  ;;  %v1830_v50 = vrot.slane %v10055_v17, 1 }
 0x122   : > { %v1093_v31 = vmax.f32 %v990_v22, 0.0  ;;  %9862 = vmatmul.msk.bf16.gmra.mxu0 %vm869_vm0, %v12557_v15  ;;  %2268 = vrot.lane.b32.xlu1 %v2267_v23, %s17089_s29  ;;  %v2282_v60 = vrot.slane %v2280_v43, 1  ;;  %v2285_v61 = vrot.slane %v2283_v44, 2  ;;  %v12589_v23 = vld [vmem:[%s17115_s0 + $0x50] sm:$0xff]  ;;  %v12596_v43 = vld [vmem:[%s17115_s0 + $0x88] sm:$0xff] }
 0x123   : > { %1840 = vrot.lane.b32.xlu2 %v1839_v30, %s17086_s28  ;;  %v1845_v35 = vrot.slane %v1843_v26, 1  ;;  %v1848_v36 = vrot.slane %v1846_v27, 2  ;;  %1689 = vmatpush.bf16.msra.mxu2 %v12589_v23  ;;  %s17118_s28 = smov 32  }
 0x124   : > { %v1143_v34 = vpack.c.bf16 %v1093_v31, %v1093_v31  ;;  %v2286_v16 = vor.u32 %v2285_v61, %v2282_v60  ;;  %1703 = vmatpush.bf16.msra.mxu3 %v12597_v32  ;;  %1714 = vmatpush.bf16.msrb.mxu1 %v12608_v33 }
 0x125   : > { %v12617_v39 = vld [vmem:[#allocation2 + $0x30] sm:$0x70]  ;;  %v1849_v47 = vor.u32 %v1848_v36, %v1845_v35  ;;  %v10062_v2 = vld [vmem:[#allocation2 + $0x34] sm:$0x8] }
 0x126   : > { %1194 = vst.msk [vmem:[#allocation2 + $0x38] sm:$0xf] %vm1179_vm1, %v1143_v34  ;;  %v13797_v40 = vor.u32 %v12617_v39, %v10058_v38  ;;  %v12653_v48 = vld [vmem:[#allocation2 + $0x30] sm:$0x70]  ;;  %v10206_v4 = vld [vmem:[#allocation2 + $0x34] sm:$0x8] }
 0x127   : > { %v991_v42 = vpop.f32.mrf.mxu0  ;;  %v13819_v63 = vor.u32 %v12653_v48, %v10202_v55  ;;  %1690 = vmatpush.bf16.msra.mxu2 %v12588_v37  ;;  %v12587_v48 = vld [vmem:[%s17115_s0 + $0x40] sm:$0xff]  ;;  %v12606_v55 = vld [vmem:[%s17115_s0 + $0xd8] sm:$0xff] }
 0x128   : > { %v992_v46 = vadd.f32 %v13663_v12, %v991_v42  ;;  %v1867_v51 = vshrl.u32 %v13797_v40, 16  ;;  %v1870_v52 = vshll.u32 %v13797_v40, 16  ;;  %1704 = vmatpush.bf16.msra.mxu3 %v12596_v43  ;;  %1715 = vmatpush.bf16.msrb.mxu1 %v12607_v45  ;;  %v12603_v37 = vld [vmem:[%s17115_s0 + $0xc0] sm:$0xff] }
 0x129   : > { %v2304_v17 = vshrl.u32 %v13819_v63, 16  ;;  %v2307_v30 = vshll.u32 %v13819_v63, 16 }
 0x12a   : > { %v1094_v54 = vmax.f32 %v992_v46, 0.0  ;;  %1850 = vrot.lane.b32.xlu1 %v1849_v47, %s17116_s26  ;;  %v1869_v7 = vrot.slane %v1867_v51, 2  ;;  %v1872_v8 = vrot.slane %v1870_v52, 3  ;;  %v12595_v52 = vld [vmem:[%s17115_s0 + $0x80] sm:$0xff] }
 0x12b   : > { %1831 = vrot.lane.b32.xlu2 %v1830_v50, %s17089_s29  ;;  %v2306_v41 = vrot.slane %v2304_v17, 2  ;;  %v2309_v42 = vrot.slane %v2307_v30, 3  ;;  %1691 = vmatpush.bf16.msra.mxu2 %v12587_v48 }
 0x12c   : > { %v1144_v1 = vpack.c.bf16 %v1094_v54, %v1094_v54  ;;  %v1873_v26 = vor.u32 %v1872_v8, %v1869_v7  ;;  %v12626_v54 = vld [vmem:[%s17115_s0 + $0x38] sm:$0xff]  ;;  %1705 = vmatpush.bf16.msra.mxu3 %v12595_v52  ;;  %1716 = vmatpush.bf16.msrb.mxu1 %v12606_v55  ;;  %v12605_v8 = vld [vmem:[%s17115_s0 + $0xd0] sm:$0xff]  ;;  %v1267_v52 = vpop.permute.xlu2 %1266 }
 0x12d   : > { %v12618_v6 = vld [vmem:[#allocation2 + $0x34] sm:$0xf0]  ;;  %v2310_v50 = vor.u32 %v2309_v42, %v2306_v41 }
 0x12e   : > { %v12654_v9 = vld [vmem:[#allocation2 + $0x34] sm:$0xf0]  ;;  %1195 = vst.msk [vmem:[#allocation2 + $0x3c] sm:$0xf] %vm1179_vm1, %v1144_v1  ;;  %v10063_v11 = vor.u32 %v12618_v6, %v10062_v2  ;;  %v12559_v2 = vld [vmem:[%s13642_s17 + $0x88] sm:$0xff]  ;;  %v12625_v6 = vld [vmem:[%s17115_s0 + $0x30] sm:$0xff] }
 0x12f   : > { %v13829_v13 = vor.u32 %v12654_v9, %v10206_v4  ;;  %v994_v15 = vpop.f32.mrf.mxu0  ;;  %2176 = vmatpush.bf16.msrb.mxu2 %v12626_v54  ;;  %v12633_v9 = vld [vmem:[%s17115_s0 + $0x70] sm:$0xff]  ;;  %v12642_v55 = vld [vmem:[%s17115_s0 + $0xb8] sm:$0xff] }
 0x130   : > { %v995_v19 = vadd.f32 %v13663_v12, %v994_v15  ;;  %v1863_v20 = vrot.slane %v10063_v11, 3  ;;  %v1877_v21 = vshrl.u32 %v10063_v11, 16  ;;  %v1880_v22 = vshll.u32 %v10063_v11, 16  ;;  %2190 = vmatpush.bf16.msrb.mxu3 %v12634_v58  ;;  %1717 = vmatpush.bf16.msrb.mxu1 %v12605_v8  ;;  %v12630_v58 = vld [vmem:[%s17115_s0 + $0x58] sm:$0xff] }
 0x131   : > { %v2314_v27 = vshrl.u32 %v13829_v13, 16  ;;  %v2317_v28 = vshll.u32 %v13829_v13, 16  ;;  %v2300_v14 = vrot.slane %v13829_v13, 3  ;;  %v12604_v13 = vld [vmem:[%s17115_s0 + $0xc8] sm:$0xff] }
 0x132   : > { %v1095_v31 = vmax.f32 %v995_v19, 0.0  ;;  %9863 = vmatmul.msk.bf16.gmra.mxu0 %vm869_vm0, %v12558_v10  ;;  %1864 = vrot.lane.b32.xlu0 %v1863_v20, %s17089_s29  ;;  %v1879_v35 = vrot.slane %v1877_v21, 3  ;;  %v1882_v36 = vrot.slane %v1880_v22, 4  ;;  %v12624_v19 = vld [vmem:[%s17115_s0 + $0x28] sm:$0xff]  ;;  %s9563_s29 = scalar_lea.sflag [#allocation5], %s16881_s27 }
 0x133   : > { %1874 = vrot.lane.b32.xlu1 %v1873_v26, %s17117_s23  ;;  %2287 = vrot.lane.b32.xlu2 %v2286_v16, %s17116_s26  ;;  %v2316_v38 = vrot.slane %v2314_v27, 3  ;;  %v2319_v39 = vrot.slane %v2317_v28, 4  ;;  %v12632_v20 = vld [vmem:[%s17115_s0 + $0x68] sm:$0xff] }
 0x134   : > { %v1145_v34 = vpack.c.bf16 %v1095_v31, %v1095_v31  ;;  %v1883_v47 = vor.u32 %v1882_v36, %v1879_v35  ;;  %2177 = vmatpush.bf16.msrb.mxu2 %v12625_v6  ;;  %2191 = vmatpush.bf16.msrb.mxu3 %v12633_v9  ;;  %v12560_v9 = vld [vmem:[%s13642_s17 + $0x90] sm:$0xff] }
 0x135   : > { %v2320_v49 = vor.u32 %v2319_v39, %v2316_v38  ;;  %v10210_v60 = vld [vmem:[#allocation2 + $0x3c] sm:$0xf]  ;;  %1718 = vmatpush.bf16.msrb.mxu1 %v12604_v13  ;;  %v12631_v38 = vld [vmem:[%s17115_s0 + $0x60] sm:$0xff] }
 0x136   : > { %1196 = vst.msk [vmem:[#allocation2 + $0x40] sm:$0xf] %vm1179_vm1, %v1145_v34  ;;  %v10354_v0 = vld [vmem:[#allocation2 + $0x3c] sm:$0xf]  ;;  %v12623_v34 = vld [vmem:[%s17115_s0 + $0x20] sm:$0xff] }
 0x137   : > { %v996_v44 = vpop.f32.mrf.mxu0 }
 0x138   : > { %v997_v46 = vadd.f32 %v13663_v12, %v996_v44  ;;  %2178 = vmatpush.bf16.msrb.mxu2 %v12624_v19  ;;  %2192 = vmatpush.bf16.msrb.mxu3 %v12632_v20 }
 0x139   : > { %1719 = vmatpush.bf16.msrb.mxu1 %v12603_v37 }
 0x13a   : > { %v1096_v51 = vmax.f32 %v997_v46, 0.0  ;;  %1884 = vrot.lane.b32.xlu0 %v1883_v47, %s17116_s26 }
 0x13b   : > { %2321 = vrot.lane.b32.xlu1 %v2320_v49, %s17116_s26  ;;  %2311 = vrot.lane.b32.xlu2 %v2310_v50, %s17117_s23 }
 0x13c   : > { %v1146_v59 = vpack.c.bf16 %v1096_v51, %v1096_v51  ;;  %2179 = vmatpush.bf16.msrb.mxu2 %v12623_v34  ;;  %v12622_v51 = vld [vmem:[%s17115_s0 + $0x18] sm:$0xff]  ;;  %2193 = vmatpush.bf16.msrb.mxu3 %v12631_v38  ;;  %v12628_v38 = vld [vmem:[%s17115_s0 + $0x48] sm:$0xff] }
 0x13d   : > { %v12655_v61 = vld [vmem:[#allocation2 + $0x3c] sm:$0x10]  ;;  %v10214_v26 = vld [vmem:[#allocation2 + $0x40] sm:$0xe] }
 0x13e   : > { %v12691_v1 = vld [vmem:[#allocation2 + $0x3c] sm:$0x10]  ;;  %1197 = vst.msk [vmem:[#allocation2 + $0x44] sm:$0xf] %vm1179_vm1, %v1146_v59  ;;  %v13886_v4 = vor.u32 %v12655_v61, %v10210_v60  ;;  %v10358_v27 = vld [vmem:[#allocation2 + $0x40] sm:$0xe] }
 0x13f   : > { %v13888_v5 = vor.u32 %v12691_v1, %v10354_v0  ;;  %v999_v7 = vpop.f32.mrf.mxu0 }
 0x140   : > { %v1000_v10 = vadd.f32 %v13663_v12, %v999_v7  ;;  %v2339_v11 = vshll.u32 %v13886_v4, 16  ;;  %v2337_v17 = vshrl.u32 %v13886_v4, 16  ;;  %2180 = vmatpush.bf16.msrb.mxu2 %v12622_v51  ;;  %2194 = vmatpush.bf16.msrb.mxu3 %v12630_v58 }
 0x141   : > { %v2776_v15 = vshll.u32 %v13888_v5, 16  ;;  %v2774_v36 = vshrl.u32 %v13888_v5, 16 }
 0x142   : > { %v1097_v16 = vmax.f32 %v1000_v10, 0.0  ;;  %9864 = vmatmul.msk.bf16.gmra.mxu0 %vm869_vm0, %v12559_v2  ;;  %v2341_v18 = vrot.slane %v2339_v11, 1 }
 0x143   : > { %2301 = vrot.lane.b32.xlu2 %v2300_v14, %s17118_s28  ;;  %v2778_v30 = vrot.slane %v2776_v15, 1  ;;  %v12621_v14 = vld [vmem:[%s17115_s0 + $0x10] sm:$0xff] }
 0x144   : > { %v1147_v21 = vpack.c.bf16 %v1097_v16, %v1097_v16  ;;  %v1258_v22 = vpop.permute.xlu1 %1257  ;;  %v2342_v23 = vor.u32 %v2341_v18, %v2337_v17  ;;  %v12641_v17 = vld [vmem:[%s17115_s0 + $0xb0] sm:$0xff]  ;;  %2181 = vmatpush.bf16.msrb.mxu2 %v12621_v14  ;;  %v12561_v14 = vld [vmem:[%s13642_s17 + $0x98] sm:$0xff] }
 0x145   : > { %v12656_v28 = vld [vmem:[#allocation2 + $0x40] sm:$0x30]  ;;  %v1380_v44 = vsel %vm1378_vm2, %v13675_v29, %v1258_v22  ;;  %v2779_v45 = vor.u32 %v2778_v30, %v2774_v36  ;;  %v10362_v1 = vld [vmem:[#allocation2 + $0x44] sm:$0xc]  ;;  %v12629_v22 = vld [vmem:[%s17115_s0 + $0x50] sm:$0xff] }
 0x146   : > { %v12692_v31 = vld [vmem:[#allocation2 + $0x40] sm:$0x30]  ;;  %1198 = vst.msk [vmem:[#allocation2 + $0x48] sm:$0xf] %vm1179_vm1, %v1147_v21  ;;  %2343 = vrot.lane.b32.xlu1 %v2342_v23, %s17117_s23  ;;  %v10215_v32 = vor.u32 %v12656_v28, %v10214_v26  ;;  %v1382_v0 = vsel %vm869_vm0, %v1380_v44, %v1267_v52  ;;  %v10218_v7 = vld [vmem:[#allocation2 + $0x44] sm:$0xc]  ;;  %2195 = vmatpush.bf16.msrb.mxu3 %v12629_v22 }
 0x147   : > { %v13917_v33 = vor.u32 %v12692_v31, %v10358_v27  ;;  %v1001_v35 = vpop.f32.mrf.mxu0  ;;  %v12620_v31 = vld [vmem:[%s17115_s0 + $0x8] sm:$0xff]  ;;  %v12627_v52 = vld [vmem:[%s17115_s0 + $0x40] sm:$0xff] }
 0x148   : > { %v1002_v39 = vadd.f32 %v13663_v12, %v1001_v35  ;;  %v2333_v41 = vrot.slane %v10215_v32, 1  ;;  %v2346_v46 = vshrl.u32 %v10215_v32, 16  ;;  %v2349_v47 = vshll.u32 %v10215_v32, 16  ;;  %v12640_v32 = vld [vmem:[%s17115_s0 + $0xa8] sm:$0xff]  ;;  %2182 = vmatpush.bf16.msrb.mxu2 %v12620_v31 }
 0x149   : > { %v2783_v42 = vshrl.u32 %v13917_v33, 16  ;;  %v2786_v43 = vshll.u32 %v13917_v33, 16  ;;  %v2770_v23 = vrot.slane %v13917_v33, 1 }
 0x14a   : > { %v1098_v48 = vmax.f32 %v1002_v39, 0.0  ;;  %2334 = vrot.lane.b32.xlu0 %v2333_v41, %s17118_s28  ;;  %v2348_v54 = vrot.slane %v2346_v46, 1  ;;  %v2351_v29 = vrot.slane %v2349_v47, 2  ;;  %v12639_v46 = vld [vmem:[%s17115_s0 + $0xa0] sm:$0xff]  ;;  %2196 = vmatpush.bf16.msrb.mxu3 %v12628_v38 }
 0x14b   : > { %v2785_v49 = vrot.slane %v2783_v42, 1  ;;  %v2788_v50 = vrot.slane %v2786_v43, 2  ;;  %2780 = vrot.lane.b32.xlu2 %v2779_v45, %s17117_s23  ;;  %v12619_v43 = vld [vmem:[%s17115_s0] sm:$0xff]  ;;  %v1283_v45 = vrot.slane %v13687_v53, 2 }
 0x14c   : > { %v1148_v59 = vpack.c.bf16 %v1098_v48, %v1098_v48  ;;  %v1277_v60 = vpop.permute.xlu1 %1276  ;;  %v2352_v16 = vor.u32 %v2351_v29, %v2348_v54  ;;  %2183 = vmatpush.bf16.msrb.mxu2 %v12619_v43 }
 0x14d   : > { %v2789_v61 = vor.u32 %v2788_v50, %v2785_v49  ;;  %v1385_v2 = vsel %vm1383_vm3, %v1382_v0, %v1277_v60  ;;  %v12693_v6 = vld [vmem:[#allocation2 + $0x44] sm:$0x70]  ;;  %v10222_v39 = vld [vmem:[#allocation2 + $0x48] sm:$0x8]  ;;  %v12650_v60 = vld [vmem:[%s17115_s0 + $0xf8] sm:$0xff] }
 0x14e   : > { %v12657_v8 = vld [vmem:[#allocation2 + $0x44] sm:$0x70]  ;;  %1199 = vst.msk [vmem:[#allocation2 + $0x4c] sm:$0xf] %vm1179_vm1, %v1148_v59  ;;  %1678 = vmatmul.bf16.vlgmr.msra.gmra.mxu1 %v1385_v2  ;;  %v13950_v10 = vor.u32 %v12693_v6, %v10362_v1  ;;  %v10366_v0 = vld [vmem:[#allocation2 + $0x48] sm:$0x8]  ;;  %2197 = vmatpush.bf16.msrb.mxu3 %v12627_v52 }
 0x14f   : > { %2790 = vrot.lane.b32.xlu1 %v2789_v61, %s17116_s26  ;;  %v13952_v11 = vor.u32 %v12657_v8, %v10218_v7  ;;  %v1004_v15 = vpop.f32.mrf.mxu0  ;;  %2204 = vmatpush.bf16.msra.mxu1 %v12642_v55  ;;  %v12638_v1 = vld [vmem:[%s17115_s0 + $0x98] sm:$0xff] }
 0x150   : > { %v1005_v18 = vadd.f32 %v13663_v12, %v1004_v15  ;;  %v1301_v19 = vpop.permute.xlu0 %1300  ;;  %v2807_v13 = vshrl.u32 %v13950_v10, 16  ;;  %v2810_v20 = vshll.u32 %v13950_v10, 16  ;;  %v12649_v15 = vld [vmem:[%s17115_s0 + $0xf0] sm:$0xff] }
 0x151   : > { %v2370_v21 = vshrl.u32 %v13952_v11, 16  ;;  %v2373_v26 = vshll.u32 %v13952_v11, 16 }
 0x152   : > { %v1099_v27 = vmax.f32 %v1005_v18, 0.0  ;;  %9865 = vmatmul.msk.bf16.gmra.mxu0 %vm869_vm0, %v12560_v9  ;;  %2353 = vrot.lane.b32.xlu0 %v2352_v16, %s17116_s26  ;;  %v2809_v28 = vrot.slane %v2807_v13, 2  ;;  %v2812_v30 = vrot.slane %v2810_v20, 3  ;;  %v14019_v18 = vld [vmem:[%s17114_s3] ss:$0 sm:$0xff] }
 0x153   : > { %2771 = vrot.lane.b32.xlu2 %v2770_v23, %s17118_s28  ;;  %2205 = vmatpush.bf16.msra.mxu1 %v12641_v17  ;;  %v2372_v36 = vrot.slane %v2370_v21, 2  ;;  %v2375_v37 = vrot.slane %v2373_v26, 3  ;;  %v12637_v17 = vld [vmem:[%s17115_s0 + $0x90] sm:$0xff]  ;;  %v12648_v23 = vld [vmem:[%s17115_s0 + $0xe8] sm:$0xff] }
 0x154   : > { %v1149_v33 = vpack.c.bf16 %v1099_v27, %v1099_v27  ;;  %v13978_v34 = vpop.permute.xlu2 %1323  ;;  %v2813_v35 = vor.u32 %v2812_v30, %v2809_v28  ;;  %v12636_v26 = vld [vmem:[%s17115_s0 + $0x88] sm:$0xff] }
 0x155   : > { %v12658_v41 = vld [vmem:[#allocation2 + $0x48] sm:$0xf0]  ;;  %v2376_v49 = vor.u32 %v2375_v37, %v2372_v36  ;;  %v1396_v43 = vsel %vm1378_vm2, %v13704_v24, %v13978_v34 }
 0x156   : > { %1200 = vst.msk [vmem:[#allocation2 + $0x50] sm:$0xf] %vm1179_vm1, %v1149_v33  ;;  %v10223_v42 = vor.u32 %v12658_v41, %v10222_v39  ;;  %v12694_v29 = vld [vmem:[#allocation2 + $0x48] sm:$0xf0]  ;;  %v12647_v39 = vld [vmem:[%s17115_s0 + $0xe0] sm:$0xff] }
 0x157   : > { %2814 = vrot.lane.b32.xlu1 %v2813_v35, %s17117_s23  ;;  %v1006_v44 = vpop.f32.mrf.mxu0  ;;  %2206 = vmatpush.bf16.msra.mxu1 %v12640_v32  ;;  %v10367_v9 = vor.u32 %v12694_v29, %v10366_v0 }
 0x158   : > { %v1007_v47 = vadd.f32 %v13663_v12, %v1006_v44  ;;  %v1291_v48 = vpop.permute.xlu0 %1290  ;;  %v2380_v50 = vshrl.u32 %v10223_v42, 16  ;;  %v2383_v51 = vshll.u32 %v10223_v42, 16  ;;  %v1311_v55 = vpop.permute.xlu1 %1310  ;;  %v2366_v7 = vrot.slane %v10223_v42, 3  ;;  %v12635_v42 = vld [vmem:[%s17115_s0 + $0x80] sm:$0xff] }
 0x159   : > { %v1389_v54 = vsel %vm1378_vm2, %v1283_v45, %v1291_v48  ;;  %v2803_v13 = vrot.slane %v10367_v9, 3  ;;  %v2817_v20 = vshrl.u32 %v10367_v9, 16  ;;  %v2820_v21 = vshll.u32 %v10367_v9, 16  ;;  %v12666_v48 = vld [vmem:[%s17115_s0 + $0x38] sm:$0xff] }
 0x15a   : > { %v1100_v53 = vmax.f32 %v1007_v47, 0.0  ;;  %2377 = vrot.lane.b32.xlu0 %v2376_v49, %s17117_s23  ;;  %v1391_v58 = vsel %vm869_vm0, %v1389_v54, %v1301_v19  ;;  %v2382_v12 = vrot.slane %v2380_v50, 3  ;;  %v2385_v59 = vrot.slane %v2383_v51, 4  ;;  %v12646_v54 = vld [vmem:[%s17115_s0 + $0xd8] sm:$0xff] }
 0x15b   : > { %v1393_v61 = vsel %vm1383_vm3, %v1391_v58, %v1311_v55  ;;  %2207 = vmatpush.bf16.msra.mxu1 %v12639_v46  ;;  %v2819_v30 = vrot.slane %v2817_v20, 3  ;;  %v2822_v31 = vrot.slane %v2820_v21, 4  ;;  %v12665_v58 = vld [vmem:[%s17115_s0 + $0x30] sm:$0xff] }
 0x15c   : > { %v1150_v2 = vpack.c.bf16 %v1100_v53, %v1100_v53  ;;  %1692 = vmatmul.bf16.vlgmr.msra.gmra.mxu2 %v1393_v61  ;;  %v1343_v6 = vpop.permute.xlu2 %1342  ;;  %v2386_v8 = vor.u32 %v2385_v59, %v2382_v12  ;;  %v12562_v61 = vld [vmem:[%s13642_s17 + $0xa0] sm:$0xff] }
 0x15d   : > { %2218 = vmatpush.bf16.msra.mxu2 %v12650_v60  ;;  %v10514_v32 = vld [vmem:[#allocation2 + $0x50] sm:$0xf]  ;;  %v2823_v46 = vor.u32 %v2822_v31, %v2819_v30 }
 0x15e   : > { %1201 = vst.msk [vmem:[#allocation2 + $0x54] sm:$0xf] %vm1179_vm1, %v1150_v2  ;;  %2387 = vrot.lane.b32.xlu2 %v2386_v8, %s17116_s26  ;;  %v10370_v35 = vld [vmem:[#allocation2 + $0x50] sm:$0xf] }
 0x15f   : > { %2367 = vrot.lane.b32.xlu1 %v2366_v7, %s17118_s28  ;;  %v1009_v16 = vpop.f32.mrf.mxu0  ;;  %2208 = vmatpush.bf16.msra.mxu1 %v12638_v1  ;;  %v12645_v2 = vld [vmem:[%s17115_s0 + $0xd0] sm:$0xff] }
 0x160   : > { %v1010_v19 = vadd.f32 %v14019_v18, %v1009_v16 }
 0x161   : > { %2219 = vmatpush.bf16.msra.mxu2 %v12649_v15 }
 0x162   : > { %v1101_v22 = vmax.f32 %v1010_v19, 0.0  ;;  %9866 = vmatmul.msk.bf16.gmra.mxu0 %vm869_vm0, %v12561_v14  ;;  %2804 = vrot.lane.b32.xlu0 %v2803_v13, %s17118_s28 }
 0x163   : > { %2209 = vmatpush.bf16.msra.mxu1 %v12637_v17  ;;  %v12664_v17 = vld [vmem:[%s17115_s0 + $0x28] sm:$0xff] }
 0x164   : > { %v1151_v27 = vpack.c.bf16 %v1101_v22, %v1101_v22  ;;  %v14030_v28 = vpop.permute.xlu2 %1366  ;;  %v12644_v22 = vld [vmem:[%s17115_s0 + $0xc8] sm:$0xff] }
 0x165   : > { %v12731_v33 = vld [vmem:[#allocation2 + $0x50] sm:$0x10]  ;;  %2220 = vmatpush.bf16.msra.mxu2 %v12648_v23  ;;  %v10374_v59 = vld [vmem:[#allocation2 + $0x54] sm:$0xe] }
 0x166   : > { %v12695_v36 = vld [vmem:[#allocation2 + $0x50] sm:$0x10]  ;;  %1202 = vst.msk [vmem:[#allocation2 + $0x58] sm:$0xf] %vm1179_vm1, %v1151_v27  ;;  %v14033_v37 = vor.u32 %v12731_v33, %v10514_v32  ;;  %v10518_v21 = vld [vmem:[#allocation2 + $0x54] sm:$0xe] }
 0x167   : > { %v14035_v38 = vor.u32 %v12695_v36, %v10370_v35  ;;  %v1011_v41 = vpop.f32.mrf.mxu0  ;;  %2210 = vmatpush.bf16.msra.mxu1 %v12636_v26  ;;  %v12663_v32 = vld [vmem:[%s17115_s0 + $0x20] sm:$0xff] }
 0x168   : > { %v1012_v44 = vadd.f32 %v14019_v18, %v1011_v41  ;;  %v1333_v45 = vpop.permute.xlu0 %1332  ;;  %v3279_v47 = vshll.u32 %v14033_v37, 16  ;;  %v3277_v34 = vshrl.u32 %v14033_v37, 16 }
 0x169   : > { %v1398_v49 = vsel %vm869_vm0, %v1396_v43, %v1333_v45  ;;  %v2842_v50 = vshll.u32 %v14035_v38, 16  ;;  %2221 = vmatpush.bf16.msra.mxu2 %v12647_v39  ;;  %v2840_v0 = vshrl.u32 %v14035_v38, 16  ;;  %v1775_v26 = vpop.permute.xlu1 %1774 }
 0x16a   : > { %v1102_v51 = vmax.f32 %v1012_v44, 0.0  ;;  %2824 = vrot.lane.b32.xlu0 %v2823_v46, %s17116_s26  ;;  %v1400_v24 = vsel %vm1383_vm3, %v1398_v49, %v1343_v6  ;;  %v3281_v52 = vrot.slane %v3279_v47, 1  ;;  %v12682_v46 = vld [vmem:[%s17115_s0 + $0xb8] sm:$0xff] }
 0x16b   : > { %1706 = vmatmul.bf16.vlgmr.msra.gmra.mxu3 %v1400_v24  ;;  %2211 = vmatpush.bf16.msra.mxu1 %v12635_v42  ;;  %v2844_v55 = vrot.slane %v2842_v50, 1  ;;  %v12643_v42 = vld [vmem:[%s17115_s0 + $0xc0] sm:$0xff]  ;;  %v12662_v24 = vld [vmem:[%s17115_s0 + $0x18] sm:$0xff] }
 0x16c   : > { %v1152_v29 = vpack.c.bf16 %v1102_v51, %v1102_v51  ;;  %v3282_v53 = vor.u32 %v3281_v52, %v3277_v34  ;;  %2679 = vmatpush.bf16.msra.mxu3 %v12666_v48 }
 0x16d   : > { %v14062_v12 = vpop.permute.xlu2 %1356  ;;  %v12696_v60 = vld [vmem:[#allocation2 + $0x54] sm:$0x30]  ;;  %2222 = vmatpush.bf16.msra.mxu2 %v12646_v54  ;;  %v2845_v9 = vor.u32 %v2844_v55, %v2840_v0  ;;  %v10378_v36 = vld [vmem:[#allocation2 + $0x58] sm:$0xc] }
 0x16e   : > { %1203 = vst.msk [vmem:[#allocation2 + $0x5c] sm:$0xf] %vm1179_vm1, %v1152_v29  ;;  %3283 = vrot.lane.b32.xlu1 %v3282_v53, %s17117_s23  ;;  %v10375_v1 = vor.u32 %v12696_v60, %v10374_v59  ;;  %v12732_v16 = vld [vmem:[#allocation2 + $0x54] sm:$0x30]  ;;  %v10522_v55 = vld [vmem:[#allocation2 + $0x58] sm:$0xc] }
 0x16f   : > { %v1014_v6 = vpop.f32.mrf.mxu0  ;;  %v10519_v23 = vor.u32 %v12732_v16, %v10518_v21  ;;  %v12681_v60 = vld [vmem:[%s17115_s0 + $0xb0] sm:$0xff]  ;;  %v1791_v16 = vrot.slane %v13724_v3, 2 }
 0x170   : > { %v1015_v7 = vadd.f32 %v14019_v18, %v1014_v6  ;;  %v1766_v8 = vpop.permute.xlu0 %1765  ;;  %v2849_v14 = vshrl.u32 %v10375_v1, 16  ;;  %v2852_v15 = vshll.u32 %v10375_v1, 16  ;;  %2680 = vmatpush.bf16.msra.mxu3 %v12665_v58  ;;  %v2836_v30 = vrot.slane %v10375_v1, 1 }
 0x171   : > { %2223 = vmatpush.bf16.msra.mxu2 %v12645_v2  ;;  %v1887_v33 = vsel %vm1378_vm2, %v13706_v25, %v1766_v8  ;;  %v3273_v44 = vrot.slane %v10519_v23, 1  ;;  %v3286_v25 = vshrl.u32 %v10519_v23, 16  ;;  %v3289_v45 = vshll.u32 %v10519_v23, 16  ;;  %v12661_v8 = vld [vmem:[%s17115_s0 + $0x10] sm:$0xff] }
 0x172   : > { %v1103_v19 = vmax.f32 %v1015_v7, 0.0  ;;  %9867 = vmatmul.msk.bf16.gmra.mxu0 %vm869_vm0, %v12562_v61  ;;  %2846 = vrot.lane.b32.xlu0 %v2845_v9, %s17117_s23  ;;  %v2851_v13 = vrot.slane %v2849_v14, 1  ;;  %v2854_v20 = vrot.slane %v2852_v15, 2  ;;  %v1889_v49 = vsel %vm869_vm0, %v1887_v33, %v1775_v26 }
 0x173   : > { %v1349_v58 = vrot.slane %v13722_v62, 2  ;;  %v3288_v2 = vrot.slane %v3286_v25, 1  ;;  %v3291_v6 = vrot.slane %v3289_v45, 2  ;;  %v12674_v25 = vld [vmem:[%s17115_s0 + $0x78] sm:$0xff] }
 0x174   : > { %v1153_v27 = vpack.c.bf16 %v1103_v19, %v1103_v19  ;;  %v2855_v31 = vor.u32 %v2854_v20, %v2851_v13  ;;  %2681 = vmatpush.bf16.msra.mxu3 %v12664_v17  ;;  %v12563_v17 = vld [vmem:[%s13642_s17 + $0xa8] sm:$0xff] }
 0x175   : > { %v14085_v35 = vpop.permute.xlu2 %1818  ;;  %v12697_v39 = vld [vmem:[#allocation2 + $0x58] sm:$0x70]  ;;  %2224 = vmatpush.bf16.msra.mxu2 %v12644_v22  ;;  %v10526_v7 = vld [vmem:[#allocation2 + $0x5c] sm:$0x8]  ;;  %v1404_v20 = vsel %vm1378_vm2, %v1349_v58, %v14062_v12  ;;  %v3292_v3 = vor.u32 %v3291_v6, %v3288_v2  ;;  %v12680_v12 = vld [vmem:[%s17115_s0 + $0xa8] sm:$0xff] }
 0x176   : > { %1204 = vst.msk [vmem:[#allocation2 + $0x60] sm:$0xf] %vm1179_vm1, %v1153_v27  ;;  %2837 = vrot.lane.b32.xlu1 %v2836_v30, %s17118_s28  ;;  %2856 = vrot.lane.b32.xlu2 %v2855_v31, %s17116_s26  ;;  %v14090_v41 = vor.u32 %v12697_v39, %v10378_v36  ;;  %v12733_v34 = vld [vmem:[#allocation2 + $0x58] sm:$0x70]  ;;  %v10382_v14 = vld [vmem:[#allocation2 + $0x5c] sm:$0x8] }
 0x177   : > { %v1016_v43 = vpop.f32.mrf.mxu0  ;;  %v14108_v59 = vor.u32 %v12733_v34, %v10522_v55  ;;  %v12673_v55 = vld [vmem:[%s17115_s0 + $0x70] sm:$0xff] }
 0x178   : > { %v1017_v47 = vadd.f32 %v14019_v18, %v1016_v43  ;;  %v1785_v48 = vpop.permute.xlu0 %1784  ;;  %v2873_v50 = vshrl.u32 %v14090_v41, 16  ;;  %v2876_v51 = vshll.u32 %v14090_v41, 16  ;;  %2682 = vmatpush.bf16.msra.mxu3 %v12663_v32  ;;  %v12660_v32 = vld [vmem:[%s17115_s0 + $0x8] sm:$0xff]  ;;  %v12689_v6 = vld [vmem:[%s17115_s0 + $0xf0] sm:$0xff] }
 0x179   : > { %v1891_v52 = vsel %vm1383_vm3, %v1889_v49, %v1785_v48  ;;  %2225 = vmatpush.bf16.msra.mxu2 %v12643_v42  ;;  %v3310_v22 = vshrl.u32 %v14108_v59, 16  ;;  %v3313_v23 = vshll.u32 %v14108_v59, 16 }
 0x17a   : > { %v1104_v54 = vmax.f32 %v1017_v47, 0.0  ;;  %3274 = vrot.lane.b32.xlu0 %v3273_v44, %s17118_s28  ;;  %2184 = vmatmul.bf16.vlgmr.msrb.gmra.mxu2 %v1891_v52  ;;  %v2875_v29 = vrot.slane %v2873_v50, 2  ;;  %v2878_v53 = vrot.slane %v2876_v51, 3  ;;  %v1406_v44 = vsel %vm869_vm0, %v1404_v20, %v14030_v28  ;;  %v12679_v28 = vld [vmem:[%s17115_s0 + $0xa0] sm:$0xff] }
 0x17b   : > { %v3312_v45 = vrot.slane %v3310_v22, 2 }
 0x17c   : > { %v1154_v61 = vpack.c.bf16 %v1104_v54, %v1104_v54  ;;  %v1799_v0 = vpop.permute.xlu1 %1798  ;;  %v2879_v1 = vor.u32 %v2878_v53, %v2875_v29  ;;  %2683 = vmatpush.bf16.msra.mxu3 %v12662_v24  ;;  %v12690_v54 = vld [vmem:[%s17115_s0 + $0xf8] sm:$0xff] }
 0x17d   : > { %2707 = vmatpush.bf16.msrb.mxu2 %v12682_v46  ;;  %v14116_v62 = vpop.permute.xlu2 %1840  ;;  %v12734_v9 = vld [vmem:[#allocation2 + $0x5c] sm:$0xf0]  ;;  %v1895_v26 = vsel %vm1378_vm2, %v1791_v16, %v1799_v0  ;;  %v3315_v46 = vrot.slane %v3313_v23, 3  ;;  %v12688_v16 = vld [vmem:[%s17115_s0 + $0xe8] sm:$0xff] }
 0x17e   : > { %v12698_v15 = vld [vmem:[#allocation2 + $0x5c] sm:$0xf0]  ;;  %1205 = vst.msk [vmem:[#allocation2 + $0x64] sm:$0xf] %vm1179_vm1, %v1154_v61  ;;  %2880 = vrot.lane.b32.xlu2 %v2879_v1, %s17117_s23  ;;  %v10527_v19 = vor.u32 %v12734_v9, %v10526_v7  ;;  %v12678_v1 = vld [vmem:[%s17115_s0 + $0x98] sm:$0xff] }
 0x17f   : > { %v10383_v13 = vor.u32 %v12698_v15, %v10382_v14  ;;  %v1019_v21 = vpop.f32.mrf.mxu0 }
 0x180   : > { %v1020_v27 = vadd.f32 %v14019_v18, %v1019_v21  ;;  %v1809_v30 = vpop.permute.xlu0 %1808  ;;  %v3306_v31 = vrot.slane %v10527_v19, 3  ;;  %2684 = vmatpush.bf16.msra.mxu3 %v12661_v8  ;;  %v3320_v50 = vshrl.u32 %v10527_v19, 16  ;;  %v3323_v51 = vshll.u32 %v10527_v19, 16  ;;  %v12672_v8 = vld [vmem:[%s17115_s0 + $0x68] sm:$0xff]  ;;  %v12564_v21 = vld [vmem:[%s13642_s17 + $0xb0] sm:$0xff] }
 0x181   : > { %2708 = vmatpush.bf16.msrb.mxu2 %v12681_v60  ;;  %v1897_v33 = vsel %vm869_vm0, %v1895_v26, %v1809_v30  ;;  %v2883_v36 = vshrl.u32 %v10383_v13, 16  ;;  %v2886_v39 = vshll.u32 %v10383_v13, 16  ;;  %v2869_v49 = vrot.slane %v10383_v13, 3 }
 0x182   : > { %v1105_v42 = vmax.f32 %v1020_v27, 0.0  ;;  %9868 = vmatmul.msk.bf16.gmra.mxu0 %vm869_vm0, %v12563_v17  ;;  %3293 = vrot.lane.b32.xlu0 %v3292_v3, %s17116_s26  ;;  %v1899_v43 = vsel %vm1383_vm3, %v1897_v33, %v14085_v35  ;;  %v12659_v35 = vld [vmem:[%s17115_s0] sm:$0xff]  ;;  %v3316_v60 = vor.u32 %v3315_v46, %v3312_v45  ;;  %v3322_v61 = vrot.slane %v3320_v50, 3  ;;  %v12677_v17 = vld [vmem:[%s17115_s0 + $0x90] sm:$0xff] }
 0x183   : > { %3307 = vrot.lane.b32.xlu1 %v3306_v31, %s17118_s28  ;;  %2198 = vmatmul.bf16.vlgmr.msrb.gmra.mxu3 %v1899_v43  ;;  %v2885_v34 = vrot.slane %v2883_v36, 3  ;;  %v2888_v52 = vrot.slane %v2886_v39, 4  ;;  %v3325_v0 = vrot.slane %v3323_v51, 4  ;;  %v12671_v27 = vld [vmem:[%s17115_s0 + $0x60] sm:$0xff] }
 0x184   : > { %v1155_v47 = vpack.c.bf16 %v1105_v42, %v1105_v42  ;;  %v1377_v48 = vpop.permute.xlu1 %1376  ;;  %2685 = vmatpush.bf16.msra.mxu3 %v12660_v32  ;;  %v12676_v32 = vld [vmem:[%s17115_s0 + $0x88] sm:$0xff]  ;;  %v12687_v33 = vld [vmem:[%s17115_s0 + $0xe0] sm:$0xff] }
 0x185   : > { %2709 = vmatpush.bf16.msrb.mxu2 %v12680_v12  ;;  %v1408_v24 = vsel %vm1383_vm3, %v1406_v44, %v1377_v48  ;;  %v14156_v29 = vpop.permute.xlu2 %1831  ;;  %v2889_v2 = vor.u32 %v2888_v52, %v2885_v34  ;;  %v3326_v14 = vor.u32 %v3325_v0, %v3322_v61  ;;  %v10674_v15 = vld [vmem:[#allocation2 + $0x64] sm:$0xf] }
 0x186   : > { %1206 = vst.msk [vmem:[#allocation2 + $0x68] sm:$0xf] %vm1179_vm1, %v1155_v47  ;;  %2870 = vrot.lane.b32.xlu2 %v2869_v49, %s17118_s28  ;;  %1720 = vmatmul.bf16.vlgmr.msrb.gmra.mxu1 %v1408_v24  ;;  %v10530_v13 = vld [vmem:[#allocation2 + $0x64] sm:$0xf]  ;;  %v12686_v49 = vld [vmem:[%s17115_s0 + $0xd8] sm:$0xff]  ;;  %v1902_v61 = vsel %vm1378_vm2, %v13754_v57, %v14156_v29  ;;  %v12668_v29 = vld [vmem:[%s17115_s0 + $0x48] sm:$0xff] }
 0x187   : > { %2693 = vmatpush.bf16.msrb.mxu1 %v12674_v25  ;;  %v1021_v53 = vpop.f32.mrf.mxu0  ;;  %v12670_v25 = vld [vmem:[%s17115_s0 + $0x58] sm:$0xff]  ;;  %v12675_v50 = vld [vmem:[%s17115_s0 + $0x80] sm:$0xff]  ;;  %v1904_v57 = vsel %vm869_vm0, %v1902_v61, %v14116_v62 }
 0x188   : > { %v1022_v58 = vadd.f32 %v14019_v18, %v1021_v53  ;;  %2686 = vmatpush.bf16.msra.mxu3 %v12659_v35 }
 0x189   : > { %2710 = vmatpush.bf16.msrb.mxu2 %v12679_v28 }
 0x18a   : > { %v1106_v7 = vmax.f32 %v1022_v58, 0.0  ;;  %3317 = vrot.lane.b32.xlu0 %v3316_v60, %s17117_s23 }
 0x18b   : > { %2890 = vrot.lane.b32.xlu1 %v2889_v2, %s17116_s26  ;;  %2694 = vmatpush.bf16.msrb.mxu1 %v12673_v55 }
 0x18c   : > { %2721 = vmatpush.bf16.msrb.mxu3 %v12690_v54  ;;  %v1156_v9 = vpack.c.bf16 %v1106_v7, %v1106_v7  ;;  %v12685_v7 = vld [vmem:[%s17115_s0 + $0xd0] sm:$0xff] }
 0x18d   : > { %2711 = vmatpush.bf16.msrb.mxu2 %v12678_v1  ;;  %v12771_v19 = vld [vmem:[#allocation2 + $0x64] sm:$0x10]  ;;  %v2288_v30 = vpop.permute.xlu2 %2287  ;;  %v10678_v48 = vld [vmem:[#allocation2 + $0x68] sm:$0xe] }
 0x18e   : > { %v12735_v20 = vld [vmem:[#allocation2 + $0x64] sm:$0x10]  ;;  %1207 = vst.msk [vmem:[#allocation2 + $0x6c] sm:$0xf] %vm1179_vm1, %v1156_v9  ;;  %3327 = vrot.lane.b32.xlu2 %v3326_v14, %s17116_s26  ;;  %v14183_v22 = vor.u32 %v12771_v19, %v10674_v15  ;;  %v10534_v34 = vld [vmem:[#allocation2 + $0x68] sm:$0xe] }
 0x18f   : > { %v14185_v23 = vor.u32 %v12735_v20, %v10530_v13  ;;  %2695 = vmatpush.bf16.msrb.mxu1 %v12672_v8  ;;  %v1024_v26 = vpop.f32.mrf.mxu0  ;;  %v12684_v20 = vld [vmem:[%s17115_s0 + $0xc8] sm:$0xff] }
 0x190   : > { %2722 = vmatpush.bf16.msrb.mxu3 %v12689_v6  ;;  %v1025_v3 = vadd.f32 %v14019_v18, %v1024_v26  ;;  %v3782_v31 = vshll.u32 %v14183_v22, 16  ;;  %v3780_v39 = vshrl.u32 %v14183_v22, 16  ;;  %v2278_v51 = vpop.permute.xlu0 %2277 }
 0x191   : > { %2712 = vmatpush.bf16.msrb.mxu2 %v12677_v17  ;;  %v3345_v12 = vshll.u32 %v14185_v23, 16  ;;  %v3343_v43 = vshrl.u32 %v14185_v23, 16 }
 0x192   : > { %v1107_v36 = vmax.f32 %v1025_v3, 0.0  ;;  %9869 = vmatmul.msk.bf16.gmra.mxu0 %vm869_vm0, %v12564_v21  ;;  %v3784_v42 = vrot.slane %v3782_v31, 1  ;;  %v12565_v3 = vld [vmem:[%s13642_s17 + $0xb8] sm:$0xff] }
 0x193   : > { %2696 = vmatpush.bf16.msrb.mxu1 %v12671_v27  ;;  %v3347_v44 = vrot.slane %v3345_v12, 1 }
 0x194   : > { %2723 = vmatpush.bf16.msrb.mxu3 %v12688_v16  ;;  %v1157_v45 = vpack.c.bf16 %v1107_v36, %v1107_v36  ;;  %v2269_v46 = vpop.permute.xlu1 %2268  ;;  %v3785_v47 = vor.u32 %v3784_v42, %v3780_v39 }
 0x195   : > { %2713 = vmatpush.bf16.msrb.mxu2 %v12676_v32  ;;  %v2390_v35 = vsel %vm1378_vm2, %v13752_v56, %v2269_v46  ;;  %v3348_v28 = vor.u32 %v3347_v44, %v3343_v43  ;;  %v12772_v24 = vld [vmem:[#allocation2 + $0x68] sm:$0x30]  ;;  %v12669_v56 = vld [vmem:[%s17115_s0 + $0x50] sm:$0xff]  ;;  %v14228_v8 = vpop.permute.xlu2 %2311  ;;  %v10538_v13 = vld [vmem:[#allocation2 + $0x6c] sm:$0xc] }
 0x196   : > { %v12736_v52 = vld [vmem:[#allocation2 + $0x68] sm:$0x30]  ;;  %1208 = vst.msk [vmem:[#allocation2 + $0x70] sm:$0xf] %vm1179_vm1, %v1157_v45  ;;  %v2392_v54 = vsel %vm869_vm0, %v2390_v35, %v2278_v51  ;;  %3786 = vrot.lane.b32.xlu0 %v3785_v47, %s17117_s23  ;;  %v10679_v53 = vor.u32 %v12772_v24, %v10678_v48  ;;  %v10682_v32 = vld [vmem:[#allocation2 + $0x6c] sm:$0xc] }
 0x197   : > { %v10535_v55 = vor.u32 %v12736_v52, %v10534_v34  ;;  %3349 = vrot.lane.b32.xlu2 %v3348_v28, %s17117_s23  ;;  %2697 = vmatpush.bf16.msrb.mxu1 %v12670_v25  ;;  %v1026_v58 = vpop.f32.mrf.mxu0  ;;  %v2394_v60 = vsel %vm1383_vm3, %v2392_v54, %v2288_v30  ;;  %v12706_v43 = vld [vmem:[%s17115_s0 + $0x38] sm:$0xff]  ;;  %v12683_v47 = vld [vmem:[%s17115_s0 + $0xc0] sm:$0xff]  ;;  %v12705_v52 = vld [vmem:[%s17115_s0 + $0x30] sm:$0xff] }
 0x198   : > { %2724 = vmatpush.bf16.msrb.mxu3 %v12687_v33  ;;  %v1027_v0 = vadd.f32 %v14019_v18, %v1026_v58  ;;  %v3776_v1 = vrot.slane %v10679_v53, 1  ;;  %v3789_v26 = vshrl.u32 %v10679_v53, 16  ;;  %v3792_v27 = vshll.u32 %v10679_v53, 16  ;;  %v12667_v33 = vld [vmem:[%s17115_s0 + $0x40] sm:$0xff] }
 0x199   : > { %2687 = vmatmul.bf16.vlgmr.msra.gmra.mxu3 %v2394_v60  ;;  %v3352_v2 = vshrl.u32 %v10535_v55, 16  ;;  %2714 = vmatpush.bf16.msrb.mxu2 %v12675_v50  ;;  %v3355_v6 = vshll.u32 %v10535_v55, 16  ;;  %v3339_v16 = vrot.slane %v10535_v55, 1  ;;  %v2294_v55 = vrot.slane %v13819_v63, 2 }
 0x19a   : > { %v1108_v9 = vmax.f32 %v1027_v0, 0.0  ;;  %3777 = vrot.lane.b32.xlu1 %v3776_v1, %s17118_s28  ;;  %v3791_v45 = vrot.slane %v3789_v26, 1  ;;  %v3794_v46 = vrot.slane %v3792_v27, 2  ;;  %v1857_v63 = vrot.slane %v13797_v40, 2 }
 0x19b   : > { %2698 = vmatpush.bf16.msrb.mxu1 %v12669_v56  ;;  %v3354_v17 = vrot.slane %v3352_v2, 1  ;;  %v3357_v19 = vrot.slane %v3355_v6, 2  ;;  %v12941_v6 = vld [vmem:[%s17058_s6 + $0x38] sm:$0xff] }
 0x19c   : > { %2725 = vmatpush.bf16.msrb.mxu3 %v12686_v49  ;;  %v1158_v14 = vpack.c.bf16 %v1108_v9, %v1108_v9  ;;  %v1851_v15 = vpop.permute.xlu1 %1850  ;;  %v12722_v49 = vld [vmem:[%s17115_s0 + $0xb8] sm:$0xff]  ;;  %v3795_v60 = vor.u32 %v3794_v46, %v3791_v45  ;;  %6138 = vmatpush.bf16.msrb.mxu0 %v12941_v6  ;;  %v12720_v46 = vld [vmem:[%s17115_s0 + $0xa8] sm:$0xff] }
 0x19d   : > { %v1906_v21 = vsel %vm1383_vm3, %v1904_v57, %v1851_v15  ;;  %v12737_v62 = vld [vmem:[#allocation2 + $0x6c] sm:$0x70]  ;;  %v3358_v42 = vor.u32 %v3357_v19, %v3354_v17  ;;  %v2302_v28 = vpop.permute.xlu2 %2301  ;;  %v10542_v54 = vld [vmem:[#allocation2 + $0x70] sm:$0x8]  ;;  %v12704_v17 = vld [vmem:[%s17115_s0 + $0x28] sm:$0xff] }
 0x19e   : > { %v12773_v30 = vld [vmem:[#allocation2 + $0x6c] sm:$0x70]  ;;  %1209 = vst.msk [vmem:[#allocation2 + $0x74] sm:$0xf] %vm1179_vm1, %v1158_v14  ;;  %2212 = vmatmul.bf16.vlgmr.msra.gmra.mxu1 %v1906_v21  ;;  %v14242_v31 = vor.u32 %v12737_v62, %v10538_v13  ;;  %v10686_v53 = vld [vmem:[#allocation2 + $0x70] sm:$0x8] }
 0x19f   : > { %3340 = vrot.lane.b32.xlu2 %v3339_v16, %s17118_s28  ;;  %2699 = vmatpush.bf16.msrb.mxu1 %v12668_v29  ;;  %v1029_v12 = vpop.f32.mrf.mxu0  ;;  %v14248_v36 = vor.u32 %v12773_v30, %v10682_v32  ;;  %v12721_v14 = vld [vmem:[%s17115_s0 + $0xb0] sm:$0xff] }
 0x1a0   : > { %2726 = vmatpush.bf16.msrb.mxu3 %v12685_v7  ;;  %v1030_v39 = vadd.f32 %v14019_v18, %v1029_v12  ;;  %v3376_v44 = vshrl.u32 %v14242_v31, 16  ;;  %v3379_v25 = vshll.u32 %v14242_v31, 16  ;;  %v2398_v7 = vsel %vm1378_vm2, %v2294_v55, %v2302_v28  ;;  %v12703_v12 = vld [vmem:[%s17115_s0 + $0x20] sm:$0xff]  ;;  %v12702_v28 = vld [vmem:[%s17115_s0 + $0x18] sm:$0xff] }
 0x1a1   : > { %v3813_v35 = vshrl.u32 %v14248_v36, 16  ;;  %v3816_v61 = vshll.u32 %v14248_v36, 16  ;;  %v2400_v62 = vsel %vm869_vm0, %v2398_v7, %v14228_v8 }
 0x1a2   : > { %v1109_v48 = vmax.f32 %v1030_v39, 0.0  ;;  %9870 = vmatmul.msk.bf16.gmra.mxu0 %vm869_vm0, %v12565_v3  ;;  %3359 = vrot.lane.b32.xlu1 %v3358_v42, %s17116_s26  ;;  %v3378_v50 = vrot.slane %v3376_v44, 2  ;;  %v3381_v51 = vrot.slane %v3379_v25, 3  ;;  %v12714_v42 = vld [vmem:[%s17115_s0 + $0x78] sm:$0xff] }
 0x1a3   : > { %2700 = vmatpush.bf16.msrb.mxu1 %v12667_v33  ;;  %v3815_v29 = vrot.slane %v3813_v35, 2 }
 0x1a4   : > { %2727 = vmatpush.bf16.msrb.mxu3 %v12684_v20  ;;  %v1159_v24 = vpack.c.bf16 %v1109_v48, %v1109_v48  ;;  %v1865_v34 = vpop.permute.xlu0 %1864  ;;  %v3382_v57 = vor.u32 %v3381_v51, %v3378_v50  ;;  %v3818_v20 = vrot.slane %v3816_v61, 3  ;;  %v12566_v48 = vld [vmem:[%s13642_s17 + $0xc0] sm:$0xff]  ;;  %s9579_s17 = scalar_lea.hbm %s17070_s18, %s13593_s2 }
 0x1a5   : > { %v1875_v58 = vpop.permute.xlu1 %1874  ;;  %v12738_v56 = vld [vmem:[#allocation2 + $0x70] sm:$0xf0]  ;;  %v1910_v40 = vsel %vm1378_vm2, %v1857_v63, %v1865_v34  ;;  %s9583_s20 = sshll.u32 %s9579_s17, 4  ;;  %s9584_s20 = int_to_ptr.hbm [resolvable:$true] %s9583_s20 }
 0x1a6   : > { %v12774_v0 = vld [vmem:[#allocation2 + $0x70] sm:$0xf0]  ;;  %1210 = vst.msk [vmem:[#allocation2 + $0x78] sm:$0xf] %vm1179_vm1, %v1159_v24  ;;  %v10543_v1 = vor.u32 %v12738_v56, %v10542_v54  ;;  %v1912_v30 = vsel %vm869_vm0, %v1910_v40, %v1875_v58  ;;  %v3819_v44 = vor.u32 %v3818_v20, %v3815_v29  ;;  %v12718_v56 = vld [vmem:[%s17115_s0 + $0x98] sm:$0xff]  ;;  %v12700_v29 = vld [vmem:[%s17115_s0 + $0x8] sm:$0xff] }
 0x1a7   : > { %3182 = vmatpush.bf16.msra.mxu1 %v12706_v43  ;;  %v14271_v2 = vor.u32 %v12774_v0, %v10686_v53  ;;  %3796 = vrot.lane.b32.xlu2 %v3795_v60, %s17116_s26  ;;  %v1031_v9 = vpop.f32.mrf.mxu0  ;;  %v12713_v24 = vld [vmem:[%s17115_s0 + $0x70] sm:$0xff]  ;;  %v12712_v60 = vld [vmem:[%s17115_s0 + $0x68] sm:$0xff]  ;;  %v12699_v20 = vld [vmem:[%s17115_s0] sm:$0xff] }
 0x1a8   : > { %2728 = vmatpush.bf16.msrb.mxu3 %v12683_v47  ;;  %v1032_v15 = vadd.f32 %v14019_v18, %v1031_v9  ;;  %v3372_v16 = vrot.slane %v10543_v1, 3  ;;  %v3386_v19 = vshrl.u32 %v10543_v1, 16  ;;  %v3389_v13 = vshll.u32 %v10543_v1, 16  ;;  %v12701_v58 = vld [vmem:[%s17115_s0 + $0x10] sm:$0xff] }
 0x1a9   : > { %v3823_v21 = vshrl.u32 %v14271_v2, 16  ;;  %v3826_v26 = vshll.u32 %v14271_v2, 16  ;;  %v3809_v55 = vrot.slane %v14271_v2, 3 }
 0x1aa   : > { %v1110_v27 = vmax.f32 %v1032_v15, 0.0  ;;  %3373 = vrot.lane.b32.xlu0 %v3372_v16, %s17118_s28  ;;  %3383 = vrot.lane.b32.xlu1 %v3382_v57, %s17117_s23  ;;  %v3388_v33 = vrot.slane %v3386_v19, 3  ;;  %v3391_v39 = vrot.slane %v3389_v13, 4  ;;  %v12711_v15 = vld [vmem:[%s17115_s0 + $0x60] sm:$0xff] }
 0x1ab   : > { %3183 = vmatpush.bf16.msra.mxu1 %v12705_v52  ;;  %v3825_v25 = vrot.slane %v3823_v21, 3  ;;  %v3828_v45 = vrot.slane %v3826_v26, 4  ;;  %v12719_v52 = vld [vmem:[%s17115_s0 + $0xa0] sm:$0xff]  ;;  %v12710_v21 = vld [vmem:[%s17115_s0 + $0x58] sm:$0xff] }
 0x1ac   : > { %3210 = vmatpush.bf16.msra.mxu3 %v12722_v49  ;;  %v1160_v3 = vpack.c.bf16 %v1110_v27, %v1110_v27  ;;  %v1885_v32 = vpop.permute.xlu0 %1884  ;;  %v14307_v49 = vpop.permute.xlu2 %2780  ;;  %v3392_v35 = vor.u32 %v3391_v39, %v3388_v33  ;;  %v12716_v33 = vld [vmem:[%s17115_s0 + $0x88] sm:$0xff] }
 0x1ad   : > { %v1914_v43 = vsel %vm1383_vm3, %v1912_v30, %v1885_v32  ;;  %v2322_v8 = vpop.permute.xlu1 %2321  ;;  %v3829_v34 = vor.u32 %v3828_v45, %v3825_v25  ;;  %v10690_v61 = vld [vmem:[#allocation2 + $0x78] sm:$0xf] }
 0x1ae   : > { %1211 = vst.msk [vmem:[#allocation2 + $0x7c] sm:$0xf] %vm1179_vm1, %v1160_v3  ;;  %v2402_v47 = vsel %vm1383_vm3, %v2400_v62, %v2322_v8  ;;  %2226 = vmatmul.bf16.vlgmr.msra.gmra.mxu2 %v1914_v43  ;;  %v10834_v6 = vld [vmem:[#allocation2 + $0x78] sm:$0xf] }
 0x1af   : > { %3184 = vmatpush.bf16.msra.mxu1 %v12704_v17  ;;  %3820 = vrot.lane.b32.xlu2 %v3819_v44, %s17117_s23  ;;  %v1034_v50 = vpop.f32.mrf.mxu0  ;;  %v12717_v17 = vld [vmem:[%s17115_s0 + $0x90] sm:$0xff] }
 0x1b0   : > { %3211 = vmatpush.bf16.msra.mxu3 %v12721_v14  ;;  %2701 = vmatmul.bf16.vlgmr.msrb.gmra.mxu1 %v2402_v47  ;;  %v1035_v51 = vadd.f32 %v14019_v18, %v1034_v50 }
 0x1b1   : > { %3196 = vmatpush.bf16.msra.mxu2 %v12714_v42 }
 0x1b2   : > { %v1111_v54 = vmax.f32 %v1035_v51, 0.0  ;;  %9871 = vmatmul.msk.bf16.gmra.mxu0 %vm869_vm0, %v12566_v48  ;;  %3393 = vrot.lane.b32.xlu0 %v3392_v35, %s17116_s26  ;;  %v12709_v35 = vld [vmem:[%s17115_s0 + $0x50] sm:$0xff] }
 0x1b3   : > { %3185 = vmatpush.bf16.msra.mxu1 %v12703_v12  ;;  %3830 = vrot.lane.b32.xlu1 %v3829_v34, %s17116_s26  ;;  %v12730_v12 = vld [vmem:[%s17115_s0 + $0xf8] sm:$0xff]  ;;  %v12715_v34 = vld [vmem:[%s17115_s0 + $0x80] sm:$0xff] }
 0x1b4   : > { %3212 = vmatpush.bf16.msra.mxu3 %v12720_v46  ;;  %v1161_v53 = vpack.c.bf16 %v1111_v54, %v1111_v54  ;;  %v2772_v16 = vpop.permute.xlu2 %2771 }
 0x1b5   : > { %3197 = vmatpush.bf16.msra.mxu2 %v12713_v24  ;;  %v12775_v0 = vld [vmem:[#allocation2 + $0x78] sm:$0x10]  ;;  %v2893_v27 = vsel %vm1378_vm2, %v13888_v5, %v2772_v16  ;;  %v10694_v32 = vld [vmem:[#allocation2 + $0x7c] sm:$0xe] }
 0x1b6   : > { %v12811_v1 = vld [vmem:[#allocation2 + $0x78] sm:$0x10]  ;;  %1212 = vst.msk [vmem:[#allocation2 + $0x80] sm:$0xf] %vm1179_vm1, %v1161_v53  ;;  %v14334_v2 = vor.u32 %v12775_v0, %v10690_v61  ;;  %v10838_v42 = vld [vmem:[#allocation2 + $0x7c] sm:$0xe]  ;;  %v2895_v25 = vsel %vm869_vm0, %v2893_v27, %v14307_v49 }
 0x1b7   : > { %3186 = vmatpush.bf16.msra.mxu1 %v12702_v28  ;;  %3810 = vrot.lane.b32.xlu2 %v3809_v55, %s17118_s28  ;;  %v1036_v7 = vpop.f32.mrf.mxu0  ;;  %v14337_v63 = vor.u32 %v12811_v1, %v10834_v6  ;;  %v12729_v49 = vld [vmem:[%s17115_s0 + $0xf0] sm:$0xff]  ;;  %v12708_v0 = vld [vmem:[%s17115_s0 + $0x48] sm:$0xff]  ;;  %v12746_v27 = vld [vmem:[%s17115_s0 + $0x38] sm:$0xff] }
 0x1b8   : > { %3213 = vmatpush.bf16.msra.mxu3 %v12719_v52  ;;  %v1037_v9 = vadd.f32 %v14019_v18, %v1036_v7  ;;  %v2344_v57 = vpop.permute.xlu1 %2343  ;;  %v3848_v14 = vshll.u32 %v14334_v2, 16  ;;  %v3846_v13 = vshrl.u32 %v14334_v2, 16 }
 0x1b9   : > { %3198 = vmatpush.bf16.msra.mxu2 %v12712_v60  ;;  %v4285_v26 = vshll.u32 %v14337_v63, 16  ;;  %v4283_v54 = vshrl.u32 %v14337_v63, 16 }
 0x1ba   : > { %v1112_v19 = vmax.f32 %v1037_v9, 0.0  ;;  %v3850_v40 = vrot.slane %v3848_v14, 1  ;;  %v12728_v9 = vld [vmem:[%s17115_s0 + $0xe8] sm:$0xff] }
 0x1bb   : > { %3187 = vmatpush.bf16.msra.mxu1 %v12701_v58  ;;  %v4287_v45 = vrot.slane %v4285_v26, 1 }
 0x1bc   : > { %3214 = vmatpush.bf16.msra.mxu3 %v12718_v56  ;;  %v1162_v62 = vpack.c.bf16 %v1112_v19, %v1112_v19  ;;  %v2335_v30 = vpop.permute.xlu0 %2334  ;;  %v3851_v3 = vor.u32 %v3850_v40, %v3846_v13  ;;  %v2388_v16 = vpop.permute.xlu2 %2387 }
 0x1bd   : > { %3199 = vmatpush.bf16.msra.mxu2 %v12711_v15  ;;  %v12776_v39 = vld [vmem:[#allocation2 + $0x7c] sm:$0x30]  ;;  %v2405_v28 = vsel %vm1378_vm2, %v13886_v4, %v2335_v30  ;;  %v4288_v56 = vor.u32 %v4287_v45, %v4283_v54  ;;  %v10842_v6 = vld [vmem:[#allocation2 + $0x80] sm:$0xc] }
 0x1be   : > { %v12812_v43 = vld [vmem:[#allocation2 + $0x7c] sm:$0x30]  ;;  %1213 = vst.msk [vmem:[#allocation2 + $0x84] sm:$0xf] %vm1179_vm1, %v1162_v62  ;;  %3852 = vrot.lane.b32.xlu1 %v3851_v3, %s17117_s23  ;;  %v14368_v5 = vor.u32 %v12776_v39, %v10694_v32  ;;  %v2407_v60 = vsel %vm869_vm0, %v2405_v28, %v2344_v57  ;;  %v10698_v32 = vld [vmem:[#allocation2 + $0x80] sm:$0xc] }
 0x1bf   : > { %3188 = vmatpush.bf16.msra.mxu1 %v12700_v29  ;;  %v10839_v8 = vor.u32 %v12812_v43, %v10838_v42  ;;  %v1039_v44 = vpop.f32.mrf.mxu0 }
 0x1c0   : > { %3215 = vmatpush.bf16.msra.mxu3 %v12717_v17  ;;  %v1040_v46 = vadd.f32 %v14019_v18, %v1039_v44  ;;  %v3842_v48 = vrot.slane %v14368_v5, 1  ;;  %v3855_v14 = vshrl.u32 %v14368_v5, 16  ;;  %v3858_v15 = vshll.u32 %v14368_v5, 16  ;;  %v12726_v44 = vld [vmem:[%s17115_s0 + $0xd8] sm:$0xff] }
 0x1c1   : > { %v2791_v47 = vpop.permute.xlu1 %2790  ;;  %3200 = vmatpush.bf16.msra.mxu2 %v12710_v21  ;;  %v4292_v50 = vshrl.u32 %v10839_v8, 16  ;;  %v4295_v51 = vshll.u32 %v10839_v8, 16  ;;  %v4279_v13 = vrot.slane %v10839_v8, 1  ;;  %v12707_v21 = vld [vmem:[%s17115_s0 + $0x40] sm:$0xff]  ;;  %v12745_v8 = vld [vmem:[%s17115_s0 + $0x30] sm:$0xff] }
 0x1c2   : > { %v2897_v24 = vsel %vm1383_vm3, %v2895_v25, %v2791_v47  ;;  %v1113_v52 = vmax.f32 %v1040_v46, 0.0  ;;  %3843 = vrot.lane.b32.xlu0 %v3842_v48, %s17118_s28 }
 0x1c3   : > { %3189 = vmatpush.bf16.msra.mxu1 %v12699_v20  ;;  %v4294_v53 = vrot.slane %v4292_v50, 1  ;;  %v4297_v55 = vrot.slane %v4295_v51, 2  ;;  %v2360_v50 = vrot.slane %v13952_v11, 2 }
 0x1c4   : > { %3216 = vmatpush.bf16.msra.mxu3 %v12716_v33  ;;  %v1163_v4 = vpack.c.bf16 %v1113_v52, %v1113_v52  ;;  %v2354_v58 = vpop.permute.xlu0 %2353  ;;  %v3860_v33 = vrot.slane %v3858_v15, 2 }
 0x1c5   : > { %v4298_v61 = vor.u32 %v4297_v55, %v4294_v53  ;;  %3201 = vmatpush.bf16.msra.mxu2 %v12709_v35  ;;  %v2409_v1 = vsel %vm1383_vm3, %v2407_v60, %v2354_v58  ;;  %v12813_v7 = vld [vmem:[#allocation2 + $0x80] sm:$0x70]  ;;  %v10702_v25 = vld [vmem:[#allocation2 + $0x84] sm:$0x8]  ;;  %v12754_v58 = vld [vmem:[%s17115_s0 + $0x78] sm:$0xff] }
 0x1c6   : > { %3190 = vmatmul.bf16.vlgmr.msra.gmra.mxu1 %v2897_v24  ;;  %1214 = vst.msk [vmem:[#allocation2 + $0x88] sm:$0xf] %vm1179_vm1, %v1163_v4  ;;  %4289 = vrot.lane.b32.xlu1 %v4288_v56, %s17117_s23  ;;  %v14398_v57 = vor.u32 %v12813_v7, %v10842_v6  ;;  %v12777_v26 = vld [vmem:[#allocation2 + $0x80] sm:$0x70]  ;;  %v10846_v24 = vld [vmem:[#allocation2 + $0x84] sm:$0x8] }
 0x1c7   : > { %3224 = vmatpush.bf16.msrb.mxu1 %v12730_v12  ;;  %2715 = vmatmul.bf16.vlgmr.msrb.gmra.mxu2 %v2409_v1  ;;  %v1041_v29 = vpop.f32.mrf.mxu0  ;;  %v3857_v12 = vrot.slane %v3855_v14, 1  ;;  %v14418_v39 = vor.u32 %v12777_v26, %v10698_v32  ;;  %v12744_v60 = vld [vmem:[%s17115_s0 + $0x28] sm:$0xff]  ;;  %v12725_v14 = vld [vmem:[%s17115_s0 + $0xd0] sm:$0xff] }
 0x1c8   : > { %3217 = vmatpush.bf16.msra.mxu3 %v12715_v34  ;;  %4299 = vrot.lane.b32.xlu2 %v4298_v61, %s17116_s26  ;;  %v1042_v17 = vadd.f32 %v14019_v18, %v1041_v29  ;;  %v4316_v40 = vshrl.u32 %v14398_v57, 16  ;;  %v4319_v20 = vshll.u32 %v14398_v57, 16  ;;  %v12727_v18 = vld [vmem:[%s17115_s0 + $0xe0] sm:$0xff]  ;;  %v12940_v26 = vld [vmem:[%s17058_s6 + $0x30] sm:$0xff] }
 0x1c9   : > { %v14404_v19 = vpop.permute.xlu1 %2814  ;;  %3202 = vmatpush.bf16.msra.mxu2 %v12708_v0  ;;  %v3861_v51 = vor.u32 %v3860_v33, %v3857_v12  ;;  %v3879_v35 = vshrl.u32 %v14418_v39, 16  ;;  %v3882_v28 = vshll.u32 %v14418_v39, 16  ;;  %6139 = vmatpush.bf16.msrb.mxu0 %v12940_v26  ;;  %v12770_v26 = vld [vmem:[%s17115_s0 + $0xf8] sm:$0xff] }
 0x1ca   : > { %v1114_v62 = vmax.f32 %v1042_v17, 0.0  ;;  %4280 = vrot.lane.b32.xlu0 %v4279_v13, %s17118_s28  ;;  %v4318_v30 = vrot.slane %v4316_v40, 2  ;;  %v4321_v3 = vrot.slane %v4319_v20, 3 }
 0x1cb   : > { %3225 = vmatpush.bf16.msrb.mxu1 %v12729_v49  ;;  %v14434_v49 = vld [vmem:[%s17114_s3] ss:$0 sm:$0xff]  ;;  %v3884_v29 = vrot.slane %v3882_v28, 3 }
 0x1cc   : > { %v1164_v42 = vpack.c.bf16 %v1114_v62, %v1114_v62  ;;  %v2378_v43 = vpop.permute.xlu0 %2377  ;;  %v4322_v5 = vor.u32 %v4321_v3, %v4318_v30  ;;  %v12724_v62 = vld [vmem:[%s17115_s0 + $0xc8] sm:$0xff] }
 0x1cd   : > { %3203 = vmatpush.bf16.msra.mxu2 %v12707_v21  ;;  %v12778_v45 = vld [vmem:[#allocation2 + $0x84] sm:$0xf0]  ;;  %v12743_v21 = vld [vmem:[%s17115_s0 + $0x20] sm:$0xff] }
 0x1ce   : > { %v12814_v46 = vld [vmem:[#allocation2 + $0x84] sm:$0xf0]  ;;  %1215 = vst.msk [vmem:[#allocation2 + $0x8c] sm:$0xf] %vm1179_vm1, %v1164_v42  ;;  %4323 = vrot.lane.b32.xlu1 %v4322_v5, %s17117_s23  ;;  %v10703_v47 = vor.u32 %v12778_v45, %v10702_v25 }
 0x1cf   : > { %3226 = vmatpush.bf16.msrb.mxu1 %v12728_v9  ;;  %v1044_v48 = vpop.f32.mrf.mxu0  ;;  %v14439_v4 = vor.u32 %v12814_v46, %v10846_v24  ;;  %v3881_v9 = vrot.slane %v3879_v35, 2 }
 0x1d0   : > { %v1045_v34 = vadd.f32 %v14434_v49, %v1044_v48  ;;  %v14437_v54 = vpop.permute.xlu2 %2856  ;;  %v3889_v53 = vshrl.u32 %v10703_v47, 16  ;;  %v3892_v55 = vshll.u32 %v10703_v47, 16  ;;  %v3875_v7 = vrot.slane %v10703_v47, 3  ;;  %v12751_v47 = vld [vmem:[%s17115_s0 + $0x60] sm:$0xff]  ;;  %v12741_v48 = vld [vmem:[%s17115_s0 + $0x10] sm:$0xff] }
 0x1d1   : > { %3685 = vmatpush.bf16.msrb.mxu2 %v12746_v27  ;;  %v2368_v52 = vpop.permute.xlu1 %2367  ;;  %v4326_v40 = vshrl.u32 %v14439_v4, 16  ;;  %v4329_v20 = vshll.u32 %v14439_v4, 16  ;;  %v2797_v27 = vrot.slane %v13950_v10, 2  ;;  %v3885_v3 = vor.u32 %v3884_v29, %v3881_v9  ;;  %v12752_v10 = vld [vmem:[%s17115_s0 + $0x68] sm:$0xff] }
 0x1d2   : > { %v2413_v11 = vsel %vm1378_vm2, %v2360_v50, %v2368_v52  ;;  %v1115_v56 = vmax.f32 %v1045_v34, 0.0  ;;  %3862 = vrot.lane.b32.xlu0 %v3861_v51, %s17116_s26  ;;  %v3891_v0 = vrot.slane %v3889_v53, 3  ;;  %v3894_v1 = vrot.slane %v3892_v55, 4  ;;  %v12762_v50 = vld [vmem:[%s17115_s0 + $0xb8] sm:$0xff] }
 0x1d3   : > { %3227 = vmatpush.bf16.msrb.mxu1 %v12727_v18  ;;  %v2415_v61 = vsel %vm869_vm0, %v2413_v11, %v2378_v43  ;;  %v4328_v32 = vrot.slane %v4326_v40, 3  ;;  %v4331_v12 = vrot.slane %v4329_v20, 4  ;;  %v12742_v43 = vld [vmem:[%s17115_s0 + $0x18] sm:$0xff]  ;;  %v4312_v11 = vrot.slane %v14439_v4, 3 }
 0x1d4   : > { %v2417_v6 = vsel %vm1383_vm3, %v2415_v61, %v2388_v16  ;;  %v1165_v15 = vpack.c.bf16 %v1115_v56, %v1115_v56  ;;  %v2805_v17 = vpop.permute.xlu0 %2804  ;;  %v3895_v13 = vor.u32 %v3894_v1, %v3891_v0  ;;  %v12753_v16 = vld [vmem:[%s17115_s0 + $0x70] sm:$0xff]  ;;  %v12750_v61 = vld [vmem:[%s17115_s0 + $0x58] sm:$0xff]  ;;  %v12740_v0 = vld [vmem:[%s17115_s0 + $0x8] sm:$0xff] }
 0x1d5   : > { %3686 = vmatpush.bf16.msrb.mxu2 %v12745_v8  ;;  %2729 = vmatmul.bf16.vlgmr.msrb.gmra.mxu3 %v2417_v6  ;;  %v2901_v33 = vsel %vm1378_vm2, %v2797_v27, %v2805_v17  ;;  %v12723_v8 = vld [vmem:[%s17115_s0 + $0xc0] sm:$0xff]  ;;  %v4332_v46 = vor.u32 %v4331_v12, %v4328_v32  ;;  %v10850_v35 = vld [vmem:[#allocation2 + $0x8c] sm:$0xf] }
 0x1d6   : > { %3699 = vmatpush.bf16.msrb.mxu3 %v12754_v58  ;;  %1216 = vst.msk [vmem:[#allocation2 + $0x90] sm:$0xf] %vm1179_vm1, %v1165_v15  ;;  %3876 = vrot.lane.b32.xlu1 %v3875_v7, %s17118_s28  ;;  %v2903_v45 = vsel %vm869_vm0, %v2901_v33, %v14404_v19  ;;  %v10994_v52 = vld [vmem:[#allocation2 + $0x8c] sm:$0xf]  ;;  %v12749_v15 = vld [vmem:[%s17115_s0 + $0x50] sm:$0xff] }
 0x1d7   : > { %3228 = vmatpush.bf16.msrb.mxu1 %v12726_v44  ;;  %3896 = vrot.lane.b32.xlu2 %v3895_v13, %s17116_s26  ;;  %v1046_v18 = vpop.f32.mrf.mxu0  ;;  %v12760_v13 = vld [vmem:[%s17115_s0 + $0xa8] sm:$0xff] }
 0x1d8   : > { %v1047_v30 = vadd.f32 %v14434_v49, %v1046_v18  ;;  %v14474_v42 = vpop.permute.xlu2 %2880 }
 0x1d9   : > { %3687 = vmatpush.bf16.msrb.mxu2 %v12744_v60  ;;  %v12761_v60 = vld [vmem:[%s17115_s0 + $0xb0] sm:$0xff] }
 0x1da   : > { %3700 = vmatpush.bf16.msrb.mxu3 %v12753_v16  ;;  %v1116_v5 = vmax.f32 %v1047_v30, 0.0  ;;  %3886 = vrot.lane.b32.xlu0 %v3885_v3, %s17117_s23  ;;  %v12739_v16 = vld [vmem:[%s17115_s0] sm:$0xff] }
 0x1db   : > { %3229 = vmatpush.bf16.msrb.mxu1 %v12725_v14 }
 0x1dc   : > { %v1166_v44 = vpack.c.bf16 %v1116_v5, %v1116_v5  ;;  %v2825_v25 = vpop.permute.xlu0 %2824  ;;  %v12748_v5 = vld [vmem:[%s17115_s0 + $0x48] sm:$0xff] }
 0x1dd   : > { %3688 = vmatpush.bf16.msrb.mxu2 %v12743_v21  ;;  %v2905_v51 = vsel %vm1383_vm3, %v2903_v45, %v2825_v25  ;;  %v12815_v28 = vld [vmem:[#allocation2 + $0x8c] sm:$0x10]  ;;  %v10854_v40 = vld [vmem:[#allocation2 + $0x90] sm:$0xe] }
 0x1de   : > { %3701 = vmatpush.bf16.msrb.mxu3 %v12752_v10  ;;  %v12851_v19 = vld [vmem:[#allocation2 + $0x8c] sm:$0x10]  ;;  %1217 = vst.msk [vmem:[#allocation2 + $0x94] sm:$0xf] %vm1179_vm1, %v1166_v44  ;;  %3204 = vmatmul.bf16.vlgmr.msra.gmra.mxu2 %v2905_v51  ;;  %v14500_v24 = vor.u32 %v12815_v28, %v10850_v35  ;;  %v10998_v33 = vld [vmem:[#allocation2 + $0x90] sm:$0xe] }
 0x1df   : > { %3230 = vmatpush.bf16.msrb.mxu1 %v12724_v62  ;;  %4333 = vrot.lane.b32.xlu2 %v4332_v46, %s17116_s26  ;;  %v1049_v34 = vpop.f32.mrf.mxu0  ;;  %v14510_v56 = vor.u32 %v12851_v19, %v10994_v52  ;;  %v12759_v10 = vld [vmem:[%s17115_s0 + $0xa0] sm:$0xff]  ;;  %v12758_v52 = vld [vmem:[%s17115_s0 + $0x98] sm:$0xff] }
 0x1e0   : > { %v1050_v53 = vadd.f32 %v14434_v49, %v1049_v34  ;;  %v14503_v55 = vpop.permute.xlu1 %3283  ;;  %v4351_v58 = vshll.u32 %v14500_v24, 16  ;;  %v4349_v1 = vshrl.u32 %v14500_v24, 16  ;;  %v14520_v7 = vpop.permute.xlu2 %2870  ;;  %v12747_v19 = vld [vmem:[%s17115_s0 + $0x40] sm:$0xff] }
 0x1e1   : > { %3689 = vmatpush.bf16.msrb.mxu2 %v12742_v43  ;;  %v4788_v17 = vshll.u32 %v14510_v56, 16  ;;  %v4786_v46 = vshrl.u32 %v14510_v56, 16 }
 0x1e2   : > { %3702 = vmatpush.bf16.msrb.mxu3 %v12751_v47  ;;  %v1117_v4 = vmax.f32 %v1050_v53, 0.0  ;;  %4313 = vrot.lane.b32.xlu0 %v4312_v11, %s17118_s28  ;;  %v4353_v6 = vrot.slane %v4351_v58, 1 }
 0x1e3   : > { %3231 = vmatpush.bf16.msrb.mxu1 %v12723_v8  ;;  %v4790_v32 = vrot.slane %v4788_v17, 1 }
 0x1e4   : > { %v1167_v9 = vpack.c.bf16 %v1117_v4, %v1117_v4  ;;  %v2847_v29 = vpop.permute.xlu0 %2846  ;;  %v4354_v14 = vor.u32 %v4353_v6, %v4349_v1 }
 0x1e5   : > { %3690 = vmatpush.bf16.msrb.mxu2 %v12741_v48  ;;  %v12816_v20 = vld [vmem:[#allocation2 + $0x90] sm:$0x30]  ;;  %v4791_v28 = vor.u32 %v4790_v32, %v4786_v46  ;;  %v10858_v34 = vld [vmem:[#allocation2 + $0x94] sm:$0xc] }
 0x1e6   : > { %3703 = vmatpush.bf16.msrb.mxu3 %v12750_v61  ;;  %1218 = vst.msk [vmem:[#allocation2 + $0x98] sm:$0xf] %vm1179_vm1, %v1167_v9  ;;  %4355 = vrot.lane.b32.xlu1 %v4354_v14, %s17117_s23  ;;  %v10855_v21 = vor.u32 %v12816_v20, %v10854_v40  ;;  %v12852_v27 = vld [vmem:[#allocation2 + $0x90] sm:$0x30]  ;;  %v11002_v1 = vld [vmem:[#allocation2 + $0x94] sm:$0xc]  ;;  %v14581_v20 = vpop.f32.mrf.mxu1 }
 0x1e7   : > { %3713 = vmatpush.bf16.msra.mxu1 %v12762_v50  ;;  %v1051_v18 = vpop.f32.mrf.mxu0  ;;  %v10999_v44 = vor.u32 %v12852_v27, %v10998_v33  ;;  %v12768_v9 = vld [vmem:[%s17115_s0 + $0xe8] sm:$0xff]  ;;  %v12757_v40 = vld [vmem:[%s17115_s0 + $0x90] sm:$0xff] }
 0x1e8   : > { %v1052_v62 = vadd.f32 %v14434_v49, %v1051_v18  ;;  %v2838_v30 = vpop.permute.xlu1 %2837  ;;  %v4345_v3 = vrot.slane %v10855_v21, 1  ;;  %v4358_v12 = vshrl.u32 %v10855_v21, 16  ;;  %v4361_v8 = vshll.u32 %v10855_v21, 16  ;;  %v14560_v53 = vpop.permute.xlu2 %3327  ;;  %v12785_v18 = vld [vmem:[%s17115_s0 + $0x30] sm:$0xff] }
 0x1e9   : > { %3691 = vmatpush.bf16.msrb.mxu2 %v12740_v0  ;;  %v2908_v43 = vsel %vm1378_vm2, %v14035_v38, %v2838_v30  ;;  %v12769_v38 = vld [vmem:[%s17115_s0 + $0xf0] sm:$0xff]  ;;  %v4795_v58 = vshrl.u32 %v10999_v44, 16  ;;  %v12786_v0 = vld [vmem:[%s17115_s0 + $0x38] sm:$0xff] }
 0x1ea   : > { %3704 = vmatpush.bf16.msrb.mxu3 %v12749_v15  ;;  %v1118_v25 = vmax.f32 %v1052_v62, 0.0  ;;  %v2910_v45 = vsel %vm869_vm0, %v2908_v43, %v2847_v29  ;;  %4346 = vrot.lane.b32.xlu0 %v4345_v3, %s17118_s28  ;;  %v4360_v47 = vrot.slane %v4358_v12, 1  ;;  %v4363_v50 = vrot.slane %v4361_v8, 2  ;;  %v12767_v43 = vld [vmem:[%s17115_s0 + $0xe0] sm:$0xff] }
 0x1eb   : > { %3714 = vmatpush.bf16.msra.mxu1 %v12761_v60  ;;  %v2912_v48 = vsel %vm1383_vm3, %v2910_v45, %v14437_v54  ;;  %v4798_v60 = vshll.u32 %v10999_v44, 16  ;;  %v4782_v15 = vrot.slane %v10999_v44, 1  ;;  %v4797_v21 = vrot.slane %v4795_v58, 1  ;;  %v12755_v58 = vld [vmem:[%s17115_s0 + $0x80] sm:$0xff] }
 0x1ec   : > { %v1168_v51 = vpack.c.bf16 %v1118_v25, %v1118_v25  ;;  %v3275_v35 = vpop.permute.xlu0 %3274  ;;  %3218 = vmatmul.bf16.vlgmr.msra.gmra.mxu3 %v2912_v48  ;;  %v4364_v11 = vor.u32 %v4363_v50, %v4360_v47  ;;  %v2863_v48 = vrot.slane %v14090_v41, 2 }
 0x1ed   : > { %3692 = vmatpush.bf16.msrb.mxu2 %v12739_v16  ;;  %v12817_v54 = vld [vmem:[#allocation2 + $0x94] sm:$0x70]  ;;  %v3396_v16 = vsel %vm1378_vm2, %v14033_v37, %v3275_v35  ;;  %v10862_v45 = vld [vmem:[#allocation2 + $0x98] sm:$0x8] }
 0x1ee   : > { %3705 = vmatpush.bf16.msrb.mxu3 %v12748_v5  ;;  %v12853_v61 = vld [vmem:[#allocation2 + $0x94] sm:$0x70]  ;;  %1219 = vst.msk [vmem:[#allocation2 + $0x9c] sm:$0xf] %vm1179_vm1, %v1168_v51  ;;  %4792 = vrot.lane.b32.xlu1 %v4791_v28, %s17117_s23  ;;  %v14567_v4 = vor.u32 %v12817_v54, %v10858_v34  ;;  %v3398_v33 = vsel %vm869_vm0, %v3396_v16, %v14503_v55  ;;  %v12756_v5 = vld [vmem:[%s17115_s0 + $0x88] sm:$0xff] }
 0x1ef   : > { %3715 = vmatpush.bf16.msra.mxu1 %v12760_v13  ;;  %4365 = vrot.lane.b32.xlu2 %v4364_v11, %s17116_s26  ;;  %v1054_v6 = vpop.f32.mrf.mxu0  ;;  %v14573_v29 = vor.u32 %v12853_v61, %v11002_v1  ;;  %v12784_v55 = vld [vmem:[%s17115_s0 + $0x28] sm:$0xff]  ;;  %v11006_v41 = vld [vmem:[#allocation2 + $0x98] sm:$0x8]  ;;  %v2916_v1 = vsel %vm1378_vm2, %v2863_v48, %v14520_v7  ;;  %v12765_v7 = vld [vmem:[%s17115_s0 + $0xd0] sm:$0xff] }
 0x1f0   : > { %v1055_v14 = vadd.f32 %v14434_v49, %v1054_v6  ;;  %v4382_v17 = vshrl.u32 %v14567_v4, 16  ;;  %v4385_v13 = vshll.u32 %v14567_v4, 16 }
 0x1f1   : > { %3727 = vmatpush.bf16.msra.mxu2 %v12770_v26  ;;  %v4800_v26 = vrot.slane %v4798_v60, 2  ;;  %v4819_v3 = vshrl.u32 %v14573_v29, 16  ;;  %v4822_v32 = vshll.u32 %v14573_v29, 16  ;;  %v14606_v50 = vpop.permute.xlu2 %3349  ;;  %v3300_v60 = vrot.slane %v14108_v59, 2  ;;  %v1681_v59 = vpop.f32.mrf.mxu1 }
 0x1f2   : > { %3706 = vmatpush.bf16.msrb.mxu3 %v12747_v19  ;;  %v1119_v27 = vmax.f32 %v1055_v14, 0.0  ;;  %4783 = vrot.lane.b32.xlu0 %v4782_v15, %s17118_s28  ;;  %v4384_v62 = vrot.slane %v4382_v17, 2  ;;  %v4387_v30 = vrot.slane %v4385_v13, 3  ;;  %v12766_v19 = vld [vmem:[%s17115_s0 + $0xd8] sm:$0xff]  ;;  %v1693_v17 = vpop.f32.mrf.mxu2 }
 0x1f3   : > { %3716 = vmatpush.bf16.msra.mxu1 %v12759_v10  ;;  %v4801_v25 = vor.u32 %v4800_v26, %v4797_v21  ;;  %v4821_v35 = vrot.slane %v4819_v3, 2  ;;  %v4824_v28 = vrot.slane %v4822_v32, 3  ;;  %v12794_v3 = vld [vmem:[%s17115_s0 + $0x78] sm:$0xff] }
 0x1f4   : > { %v1169_v12 = vpack.c.bf16 %v1119_v27, %v1119_v27  ;;  %v3294_v37 = vpop.permute.xlu0 %3293  ;;  %v4388_v10 = vor.u32 %v4387_v30, %v4384_v62  ;;  %v1707_v27 = vpop.f32.mrf.mxu3  ;;  %v2918_v30 = vsel %vm869_vm0, %v2916_v1, %v14474_v42  ;;  %v12782_v42 = vld [vmem:[%s17115_s0 + $0x18] sm:$0xff]  ;;  %v12780_v1 = vld [vmem:[%s17115_s0 + $0x8] sm:$0xff] }
 0x1f5   : > { %3728 = vmatpush.bf16.msra.mxu2 %v12769_v38  ;;  %v3400_v8 = vsel %vm1383_vm3, %v3398_v33, %v3294_v37  ;;  %v3308_v44 = vpop.permute.xlu1 %3307  ;;  %v12818_v46 = vld [vmem:[#allocation2 + $0x98] sm:$0xf0]  ;;  %v4825_v13 = vor.u32 %v4824_v28, %v4821_v35  ;;  %v12763_v28 = vld [vmem:[%s17115_s0 + $0xc0] sm:$0xff] }
 0x1f6   : > { %4188 = vmatpush.bf16.msra.mxu3 %v12786_v0  ;;  %1220 = vst.msk [vmem:[#allocation2 + $0xa0] sm:$0xf] %vm1179_vm1, %v1169_v12  ;;  %4389 = vrot.lane.b32.xlu1 %v4388_v10, %s17117_s23  ;;  %v10863_v47 = vor.u32 %v12818_v46, %v10862_v45  ;;  %v12854_v38 = vld [vmem:[#allocation2 + $0x98] sm:$0xf0]  ;;  %v14620_v0 = vld [vmem:[%s17119_s5] ss:$0 sm:$0xff] }
 0x1f7   : > { %3717 = vmatpush.bf16.msra.mxu1 %v12758_v52  ;;  %3693 = vmatmul.bf16.vlgmr.msrb.gmra.mxu2 %v3400_v8  ;;  %v1056_v51 = vpop.f32.mrf.mxu0  ;;  %v11007_v61 = vor.u32 %v12854_v38, %v11006_v41  ;;  %v1680_v37 = vadd.f32 %v14620_v0, %v14581_v20  ;;  %v12793_v46 = vld [vmem:[%s17115_s0 + $0x70] sm:$0xff] }
 0x1f8   : > { %4802 = vrot.lane.b32.xlu2 %v4801_v25, %s17116_s26  ;;  %v1057_v34 = vadd.f32 %v14434_v49, %v1056_v51  ;;  %v4378_v52 = vrot.slane %v10863_v47, 3  ;;  %v4392_v11 = vshrl.u32 %v10863_v47, 16  ;;  %v4395_v54 = vshll.u32 %v10863_v47, 16  ;;  %v12781_v38 = vld [vmem:[%s17115_s0 + $0x10] sm:$0xff] }
 0x1f9   : > { %3729 = vmatpush.bf16.msra.mxu2 %v12768_v9  ;;  %v12783_v9 = vld [vmem:[%s17115_s0 + $0x20] sm:$0xff]  ;;  %v4829_v32 = vshrl.u32 %v11007_v61, 16  ;;  %v4832_v12 = vshll.u32 %v11007_v61, 16  ;;  %v4815_v8 = vrot.slane %v11007_v61, 3  ;;  %v14653_v25 = vpop.permute.xlu2 %3340 }
 0x1fa   : > { %4189 = vmatpush.bf16.msra.mxu3 %v12785_v18  ;;  %v1120_v6 = vmax.f32 %v1057_v34, 0.0  ;;  %4379 = vrot.lane.b32.xlu0 %v4378_v52, %s17118_s28  ;;  %v4394_v14 = vrot.slane %v4392_v11, 3  ;;  %v4397_v15 = vrot.slane %v4395_v54, 4  ;;  %v12792_v34 = vld [vmem:[%s17115_s0 + $0x68] sm:$0xff]  ;;  %v1695_v52 = vpop.f32.mrf.mxu2 }
 0x1fb   : > { %3718 = vmatpush.bf16.msra.mxu1 %v12757_v40  ;;  %v3404_v40 = vsel %vm1378_vm2, %v3300_v60, %v3308_v44  ;;  %v12764_v44 = vld [vmem:[%s17115_s0 + $0xc8] sm:$0xff]  ;;  %v4834_v45 = vrot.slane %v4832_v12, 4  ;;  %v1682_v60 = vadd.f32 %v14620_v0, %v1681_v59  ;;  %v12810_v12 = vld [vmem:[%s17115_s0 + $0xf8] sm:$0xff] }
 0x1fc   : > { %v1170_v16 = vpack.c.bf16 %v1120_v6, %v1120_v6  ;;  %v3318_v21 = vpop.permute.xlu0 %3317  ;;  %v4398_v26 = vor.u32 %v4397_v15, %v4394_v14  ;;  %v1709_v14 = vpop.f32.mrf.mxu3 }
 0x1fd   : > { %3730 = vmatpush.bf16.msra.mxu2 %v12767_v43  ;;  %v3406_v18 = vsel %vm869_vm0, %v3404_v40, %v3318_v21  ;;  %v2891_v62 = vpop.permute.xlu1 %2890  ;;  %v11154_v54 = vld [vmem:[#allocation2 + $0xa0] sm:$0xf]  ;;  %v12801_v21 = vld [vmem:[%s17115_s0 + $0xb0] sm:$0xff] }
 0x1fe   : > { %4190 = vmatpush.bf16.msra.mxu3 %v12784_v55  ;;  %1221 = vst.msk [vmem:[#allocation2 + $0xa4] sm:$0xf] %vm1179_vm1, %v1170_v16  ;;  %v2920_v33 = vsel %vm1383_vm3, %v2918_v30, %v2891_v62  ;;  %4826 = vrot.lane.b32.xlu1 %v4825_v13, %s17117_s23  ;;  %v3408_v10 = vsel %vm1383_vm3, %v3406_v18, %v14560_v53  ;;  %v4831_v53 = vrot.slane %v4829_v32, 3  ;;  %v12791_v16 = vld [vmem:[%s17115_s0 + $0x60] sm:$0xff] }
 0x1ff   : > { %3719 = vmatpush.bf16.msra.mxu1 %v12756_v5  ;;  %v1059_v43 = vpop.f32.mrf.mxu0  ;;  %v1694_v5 = vadd.f32 %v1693_v17, %v1680_v37  ;;  %3707 = vmatmul.bf16.vlgmr.msrb.gmra.mxu3 %v3408_v10  ;;  %v1696_v13 = vadd.f32 %v1695_v52, %v1682_v60  ;;  %v12799_v60 = vld [vmem:[%s17115_s0 + $0xa0] sm:$0xff] }
 0x200   : > { %4399 = vrot.lane.b32.xlu2 %v4398_v26, %s17116_s26  ;;  %3232 = vmatmul.bf16.vlgmr.msrb.gmra.mxu1 %v2920_v33  ;;  %v1060_v20 = vadd.f32 %v14434_v49, %v1059_v43  ;;  %v4835_v11 = vor.u32 %v4834_v45, %v4831_v53  ;;  %v12800_v43 = vld [vmem:[%s17115_s0 + $0xa8] sm:$0xff] }
 0x201   : > { %3731 = vmatpush.bf16.msra.mxu2 %v12766_v19  ;;  %v1708_v55 = vadd.f32 %v1707_v27, %v1694_v5  ;;  %v12802_v19 = vld [vmem:[%s17115_s0 + $0xb8] sm:$0xff]  ;;  %v1710_v26 = vadd.f32 %v1709_v14, %v1696_v13  ;;  %v12779_v27 = vld [vmem:[%s17115_s0] sm:$0xff]  ;;  %v3797_v30 = vpop.permute.xlu2 %3796 }
 0x202   : > { %4191 = vmatpush.bf16.msra.mxu3 %v12783_v9  ;;  %v1121_v47 = vmax.f32 %v1060_v20, 0.0  ;;  %4816 = vrot.lane.b32.xlu0 %v4815_v8, %s17118_s28  ;;  %v12790_v5 = vld [vmem:[%s17115_s0 + $0x58] sm:$0xff] }
 0x203   : > { %3720 = vmatpush.bf16.msra.mxu1 %v12755_v58  ;;  %v1721_v48 = vpop.f32.mrf.mxu1  ;;  %v11010_v58 = vld [vmem:[#allocation2 + $0xa0] sm:$0xf] }
 0x204   : > { %v1171_v51 = vpack.c.bf16 %v1121_v47, %v1121_v47  ;;  %v1722_v35 = vadd.f32 %v1721_v48, %v1708_v55  ;;  %v12939_v48 = vld [vmem:[%s17058_s6 + $0x28] sm:$0xff] }
 0x205   : > { %3732 = vmatpush.bf16.msra.mxu2 %v12765_v7  ;;  %v12891_v41 = vld [vmem:[#allocation2 + $0xa0] sm:$0x10]  ;;  %6140 = vmatpush.bf16.msrb.mxu0 %v12939_v48 }
 0x206   : > { %4192 = vmatpush.bf16.msra.mxu3 %v12782_v42  ;;  %1222 = vst.msk [vmem:[#allocation2 + $0xa8] sm:$0xf] %vm1179_vm1, %v1171_v51  ;;  %v1726_v61 = vmax.f32 %v1722_v35, 0.0  ;;  %v14676_v6 = vor.u32 %v12891_v41, %v11154_v54  ;;  %v12855_v9 = vld [vmem:[#allocation2 + $0xa0] sm:$0x10] }
 0x207   : > { %4202 = vmatpush.bf16.msrb.mxu1 %v12794_v3  ;;  %v1061_v15 = vpop.f32.mrf.mxu0  ;;  %v14679_v17 = vor.u32 %v12855_v9, %v11010_v58  ;;  %v1735_v35 = vld [vmem:[#allocation3 + $0x4] sm:$0x1] }
 0x208   : > { %4836 = vrot.lane.b32.xlu2 %v4835_v11, %s17116_s26  ;;  %v1728_v0 = vpack.c.bf16 %v1726_v61, %v1726_v61  ;;  %v1062_v59 = vadd.f32 %v14434_v49, %v1061_v15  ;;  %v5291_v40 = vshll.u32 %v14676_v6, 16  ;;  %v5289_v18 = vshrl.u32 %v14676_v6, 16  ;;  %v3787_v20 = vpop.permute.xlu0 %3786  ;;  %v12809_v11 = vld [vmem:[%s17115_s0 + $0xf0] sm:$0xff] }
 0x209   : > { %3733 = vmatpush.bf16.msra.mxu2 %v12764_v44  ;;  %v4854_v32 = vshll.u32 %v14679_v17, 16  ;;  %v11158_v44 = vld [vmem:[#allocation2 + $0xa4] sm:$0xe]  ;;  %v4852_v13 = vshrl.u32 %v14679_v17, 16 }
 0x20a   : > { %4193 = vmatpush.bf16.msra.mxu3 %v12781_v38  ;;  %1731 = vst.msk [vmem:[#allocation3] sm:$0xf] %vm1730_vm4, %v1728_v0  ;;  %v1122_v7 = vmax.f32 %v1062_v59, 0.0  ;;  %v5293_v62 = vrot.slane %v5291_v40, 1  ;;  %v11014_v38 = vld [vmem:[#allocation2 + $0xa4] sm:$0xe] }
 0x20b   : > { %4203 = vmatpush.bf16.msrb.mxu1 %v12793_v46  ;;  %v1723_v3 = vpop.f32.mrf.mxu1  ;;  %v4856_v52 = vrot.slane %v4854_v32, 1  ;;  %v12789_v59 = vld [vmem:[%s17115_s0 + $0x50] sm:$0xff]  ;;  %v12808_v40 = vld [vmem:[%s17115_s0 + $0xe8] sm:$0xff] }
 0x20c   : > { %v1172_v37 = vpack.c.bf16 %v1122_v7, %v1122_v7  ;;  %v1724_v33 = vadd.f32 %v1723_v3, %v1710_v26  ;;  %v3778_v10 = vpop.permute.xlu1 %3777  ;;  %v5294_v42 = vor.u32 %v5293_v62, %v5289_v18  ;;  %v12798_v18 = vld [vmem:[%s17115_s0 + $0x98] sm:$0xff]  ;;  %v14745_v62 = vpop.permute.xlu2 %3820 }
 0x20d   : > { %3734 = vmatpush.bf16.msra.mxu2 %v12763_v28  ;;  %v3899_v8 = vsel %vm1378_vm2, %v14183_v22, %v3778_v10  ;;  %v12892_v53 = vld [vmem:[#allocation2 + $0xa4] sm:$0x30]  ;;  %v3411_v22 = vsel %vm1378_vm2, %v14185_v23, %v14653_v25  ;;  %v4857_v26 = vor.u32 %v4856_v52, %v4852_v13  ;;  %v11018_v32 = vld [vmem:[#allocation2 + $0xa8] sm:$0xc] }
 0x20e   : > { %4194 = vmatpush.bf16.msra.mxu3 %v12780_v1  ;;  %v12856_v45 = vld [vmem:[#allocation2 + $0xa4] sm:$0x30]  ;;  %1223 = vst.msk [vmem:[#allocation2 + $0xac] sm:$0xf] %vm1179_vm1, %v1172_v37  ;;  %v1727_v46 = vmax.f32 %v1724_v33, 0.0  ;;  %v3901_v55 = vsel %vm869_vm0, %v3899_v8, %v3787_v20  ;;  %5295 = vrot.lane.b32.xlu1 %v5294_v42, %s17117_s23  ;;  %v11159_v47 = vor.u32 %v12892_v53, %v11158_v44  ;;  %v12807_v8 = vld [vmem:[%s17115_s0 + $0xe0] sm:$0xff] }
 0x20f   : > { %4204 = vmatpush.bf16.msrb.mxu1 %v12792_v34  ;;  %v1064_v28 = vpop.f32.mrf.mxu0  ;;  %v11015_v34 = vor.u32 %v12856_v45, %v11014_v38  ;;  %v3413_v0 = vsel %vm869_vm0, %v3411_v22, %v14606_v50  ;;  %v12788_v10 = vld [vmem:[%s17115_s0 + $0x48] sm:$0xff]  ;;  %v12797_v53 = vld [vmem:[%s17115_s0 + $0x90] sm:$0xff] }
 0x210   : > { %v1729_v54 = vpack.c.bf16 %v1727_v46, %v1727_v46  ;;  %v1065_v23 = vadd.f32 %v14434_v49, %v1064_v28  ;;  %v5285_v25 = vrot.slane %v11159_v47, 1  ;;  %v5298_v41 = vshrl.u32 %v11159_v47, 16  ;;  %v12826_v28 = vld [vmem:[%s17115_s0 + $0x38] sm:$0xff] }
 0x211   : > { %4216 = vmatpush.bf16.msrb.mxu2 %v12802_v19  ;;  %v3903_v19 = vsel %vm1383_vm3, %v3901_v55, %v3797_v30  ;;  %v4848_v58 = vrot.slane %v11015_v34, 1  ;;  %v5301_v61 = vshll.u32 %v11159_v47, 16  ;;  %v4861_v1 = vshrl.u32 %v11015_v34, 16  ;;  %v12787_v47 = vld [vmem:[%s17115_s0 + $0x40] sm:$0xff] }
 0x212   : > { %4195 = vmatpush.bf16.msra.mxu3 %v12779_v27  ;;  %v4864_v9 = vshll.u32 %v11015_v34, 16  ;;  %v1736_v14 = vsel %vm14717_vm7, %v1729_v54, %v1735_v35  ;;  %v1123_v15 = vmax.f32 %v1065_v23, 0.0  ;;  %5286 = vrot.lane.b32.xlu0 %v5285_v25, %s17118_s28  ;;  %v5300_v7 = vrot.slane %v5298_v41, 1  ;;  %v2185_v54 = vpop.f32.mrf.mxu2 }
 0x213   : > { %4205 = vmatpush.bf16.msrb.mxu1 %v12791_v16  ;;  %1737 = vst [vmem:[#allocation3 + $0x4] sm:$0x1] %v1736_v14  ;;  %4849 = vrot.lane.b32.xlu2 %v4848_v58, %s17118_s28  ;;  %v5303_v27 = vrot.slane %v5301_v61, 2  ;;  %v4863_v30 = vrot.slane %v4861_v1, 1  ;;  %v3803_v25 = vrot.slane %v14248_v36, 2  ;;  %v3366_v58 = vrot.slane %v14242_v31, 2 }
 0x214   : > { %v1173_v16 = vpack.c.bf16 %v1123_v15, %v1123_v15  ;;  %v4866_v3 = vrot.slane %v4864_v9, 2  ;;  %v3811_v41 = vpop.permute.xlu2 %3810  ;;  %v12825_v9 = vld [vmem:[%s17115_s0 + $0x30] sm:$0xff]  ;;  %v12795_v31 = vld [vmem:[%s17115_s0 + $0x80] sm:$0xff] }
 0x215   : > { %4217 = vmatpush.bf16.msrb.mxu2 %v12801_v21  ;;  %4196 = vmatmul.bf16.vlgmr.msra.gmra.mxu3 %v3903_v19  ;;  %v3360_v21 = vpop.permute.xlu1 %3359  ;;  %v12806_v19 = vld [vmem:[%s17115_s0 + $0xd8] sm:$0xff]  ;;  %v11022_v34 = vld [vmem:[#allocation2 + $0xac] sm:$0x8]  ;;  %v12805_v36 = vld [vmem:[%s17115_s0 + $0xd0] sm:$0xff] }
 0x216   : > { %4230 = vmatpush.bf16.msrb.mxu3 %v12810_v12  ;;  %v3415_v50 = vsel %vm1383_vm3, %v3413_v0, %v3360_v21  ;;  %v12857_v12 = vld [vmem:[#allocation2 + $0xa8] sm:$0x70]  ;;  %1224 = vst.msk [vmem:[#allocation2 + $0xb0] sm:$0xf] %vm1179_vm1, %v1173_v16  ;;  %4858 = vrot.lane.b32.xlu1 %v4857_v26, %s17117_s23  ;;  %v4867_v44 = vor.u32 %v4866_v3, %v4863_v30  ;;  %v12834_v21 = vld [vmem:[%s17115_s0 + $0x78] sm:$0xff] }
 0x217   : > { %4206 = vmatpush.bf16.msrb.mxu1 %v12790_v5  ;;  %v14750_v37 = vor.u32 %v12857_v12, %v11018_v32  ;;  %v1066_v33 = vpop.f32.mrf.mxu0  ;;  %v3907_v0 = vsel %vm1378_vm2, %v3803_v25, %v3811_v41  ;;  %v12831_v41 = vld [vmem:[%s17115_s0 + $0x60] sm:$0xff] }
 0x218   : > { %3721 = vmatmul.bf16.vlgmr.msra.gmra.mxu1 %v3415_v50  ;;  %v1067_v42 = vadd.f32 %v14434_v49, %v1066_v33  ;;  %v12824_v50 = vld [vmem:[%s17115_s0 + $0x28] sm:$0xff]  ;;  %v3909_v32 = vsel %vm869_vm0, %v3907_v0, %v14745_v62  ;;  %v12833_v62 = vld [vmem:[%s17115_s0 + $0x70] sm:$0xff] }
 0x219   : > { %4218 = vmatpush.bf16.msrb.mxu2 %v12800_v43  ;;  %v5304_v43 = vor.u32 %v5303_v27, %v5300_v7  ;;  %v4885_v5 = vshrl.u32 %v14750_v37, 16  ;;  %v4888_v20 = vshll.u32 %v14750_v37, 16  ;;  %v12804_v33 = vld [vmem:[%s17115_s0 + $0xc8] sm:$0xff] }
 0x21a   : > { %4231 = vmatpush.bf16.msrb.mxu3 %v12809_v11  ;;  %v1124_v45 = vmax.f32 %v1067_v42, 0.0  ;;  %v12796_v11 = vld [vmem:[%s17115_s0 + $0x88] sm:$0xff] }
 0x21b   : > { %4207 = vmatpush.bf16.msrb.mxu1 %v12789_v59  ;;  %5305 = vrot.lane.b32.xlu0 %v5304_v43, %s17116_s26  ;;  %v4887_v46 = vrot.slane %v4885_v5, 2  ;;  %v4890_v55 = vrot.slane %v4888_v20, 3  ;;  %v11166_v43 = vld [vmem:[#allocation2 + $0xac] sm:$0x8]  ;;  %v13291_v5 = vld [vmem:[%s17119_s5] ss:$0 sm:$0xff]  ;;  %v2199_v20 = vpop.f32.mrf.mxu3 }
 0x21c   : > { %4868 = vrot.lane.b32.xlu2 %v4867_v44, %s17116_s26  ;;  %v1174_v38 = vpack.c.bf16 %v1124_v45, %v1124_v45  ;;  %v3374_v48 = vpop.permute.xlu0 %3373  ;;  %v12823_v44 = vld [vmem:[%s17115_s0 + $0x20] sm:$0xff]  ;;  %v2187_v45 = vpop.f32.mrf.mxu2 }
 0x21d   : > { %4219 = vmatpush.bf16.msrb.mxu2 %v12799_v60  ;;  %v3384_v22 = vpop.permute.xlu1 %3383  ;;  %v4891_v35 = vor.u32 %v4890_v55, %v4887_v46  ;;  %v12858_v52 = vld [vmem:[#allocation2 + $0xac] sm:$0xf0]  ;;  %v3419_v13 = vsel %vm1378_vm2, %v3366_v58, %v3374_v48  ;;  %v12803_v46 = vld [vmem:[%s17115_s0 + $0xc0] sm:$0xff]  ;;  %v2213_v55 = vpop.f32.mrf.mxu1  ;;  %v12832_v48 = vld [vmem:[%s17115_s0 + $0x68] sm:$0xff] }
 0x21e   : > { %4232 = vmatpush.bf16.msrb.mxu3 %v12808_v40  ;;  %1225 = vst.msk [vmem:[#allocation2 + $0xb4] sm:$0xf] %vm1179_vm1, %v1174_v38  ;;  %v11023_v23 = vor.u32 %v12858_v52, %v11022_v34  ;;  %v3421_v26 = vsel %vm869_vm0, %v3419_v13, %v3384_v22  ;;  %v12894_v12 = vld [vmem:[#allocation2 + $0xac] sm:$0xf0]  ;;  %v12842_v38 = vld [vmem:[%s17115_s0 + $0xb8] sm:$0xff]  ;;  %v2186_v22 = vadd.f32 %v13291_v5, %v2185_v54 }
 0x21f   : > { %4208 = vmatpush.bf16.msrb.mxu1 %v12788_v10  ;;  %4892 = vrot.lane.b32.xlu1 %v4891_v35, %s17117_s23  ;;  %v1069_v60 = vpop.f32.mrf.mxu0  ;;  %v12841_v54 = vld [vmem:[%s17115_s0 + $0xb0] sm:$0xff] }
 0x220   : > { %v1070_v61 = vadd.f32 %v14434_v49, %v1069_v60  ;;  %v4881_v1 = vrot.slane %v11023_v23, 3  ;;  %v4895_v14 = vshrl.u32 %v11023_v23, 16  ;;  %v4898_v15 = vshll.u32 %v11023_v23, 16 }
 0x221   : > { %4220 = vmatpush.bf16.msrb.mxu2 %v12798_v18 }
 0x222   : > { %4233 = vmatpush.bf16.msrb.mxu3 %v12807_v8  ;;  %v1125_v59 = vmax.f32 %v1070_v61, 0.0  ;;  %v4897_v40 = vrot.slane %v4895_v14, 3  ;;  %v4900_v16 = vrot.slane %v4898_v15, 4 }
 0x223   : > { %4209 = vmatpush.bf16.msrb.mxu1 %v12787_v47  ;;  %4882 = vrot.lane.b32.xlu0 %v4881_v1, %s17118_s28  ;;  %v12821_v1 = vld [vmem:[%s17115_s0 + $0x10] sm:$0xff]  ;;  %v2201_v15 = vpop.f32.mrf.mxu3 }
 0x224   : > { %v1175_v7 = vpack.c.bf16 %v1125_v59, %v1125_v59  ;;  %v3394_v27 = vpop.permute.xlu0 %3393  ;;  %v4901_v18 = vor.u32 %v4900_v16, %v4897_v40  ;;  %v2188_v59 = vadd.f32 %v13291_v5, %v2187_v45  ;;  %v12830_v40 = vld [vmem:[%s17115_s0 + $0x58] sm:$0xff] }
 0x225   : > { %4221 = vmatpush.bf16.msrb.mxu2 %v12797_v53  ;;  %v3423_v30 = vsel %vm1383_vm3, %v3421_v26, %v3394_v27  ;;  %v3831_v3 = vpop.permute.xlu1 %3830  ;;  %v14821_v53 = vor.u32 %v12894_v12, %v11166_v43  ;;  %v11170_v34 = vld [vmem:[#allocation2 + $0xb4] sm:$0xf]  ;;  %v2215_v16 = vpop.f32.mrf.mxu1  ;;  %v13302_v43 = vld [vmem:[%s17114_s3] ss:$0 sm:$0xff] }
 0x226   : > { %4234 = vmatpush.bf16.msrb.mxu3 %v12806_v19  ;;  %1226 = vst.msk [vmem:[#allocation2 + $0xb8] sm:$0xf] %vm1179_vm1, %v1175_v7  ;;  %v3911_v10 = vsel %vm1383_vm3, %v3909_v32, %v3831_v3  ;;  %3735 = vmatmul.bf16.vlgmr.msra.gmra.mxu2 %v3423_v30  ;;  %v12822_v19 = vld [vmem:[%s17115_s0 + $0x18] sm:$0xff] }
 0x227   : > { %4691 = vmatpush.bf16.msra.mxu1 %v12826_v28  ;;  %4902 = vrot.lane.b32.xlu2 %v4901_v18, %s17116_s26  ;;  %v1071_v42 = vpop.f32.mrf.mxu0  ;;  %v5318_v28 = vrot.slane %v14821_v53, 3  ;;  %v12820_v18 = vld [vmem:[%s17115_s0 + $0x8] sm:$0xff] }
 0x228   : > { %4210 = vmatmul.bf16.vlgmr.msrb.gmra.mxu1 %v3911_v10  ;;  %v1072_v8 = vadd.f32 %v14434_v49, %v1071_v42 }
 0x229   : > { %4222 = vmatpush.bf16.msrb.mxu2 %v12796_v11  ;;  %v2200_v11 = vadd.f32 %v2199_v20, %v2186_v22 }
 0x22a   : > { %4235 = vmatpush.bf16.msrb.mxu3 %v12805_v36  ;;  %v1126_v47 = vmax.f32 %v1072_v8, 0.0 }
 0x22b   : > { %4692 = vmatpush.bf16.msra.mxu1 %v12825_v9  ;;  %v2214_v58 = vadd.f32 %v2213_v55, %v2200_v11  ;;  %v2238_v11 = vld [vmem:[#allocation3 + $0xc] sm:$0x1] }
 0x22c   : > { %v1176_v35 = vpack.c.bf16 %v1126_v47, %v1126_v47  ;;  %v12850_v47 = vld [vmem:[%s17115_s0 + $0xf8] sm:$0xff] }
 0x22d   : > { %4223 = vmatpush.bf16.msrb.mxu2 %v12795_v31  ;;  %v12895_v52 = vld [vmem:[#allocation2 + $0xb4] sm:$0x10]  ;;  %v11174_v30 = vld [vmem:[#allocation2 + $0xb8] sm:$0xe] }
 0x22e   : > { %4236 = vmatpush.bf16.msrb.mxu3 %v12804_v33  ;;  %1227 = vst.msk [vmem:[#allocation2 + $0xbc] sm:$0xf] %vm1179_vm1, %v1176_v35  ;;  %v14838_v23 = vor.u32 %v12895_v52, %v11170_v34  ;;  %v12839_v33 = vld [vmem:[%s17115_s0 + $0xa0] sm:$0xff] }
 0x22f   : > { %4693 = vmatpush.bf16.msra.mxu1 %v12824_v50  ;;  %5319 = vrot.lane.b32.xlu2 %v5318_v28, %s17118_s28  ;;  %v1074_v25 = vpop.f32.mrf.mxu0  ;;  %v2202_v50 = vadd.f32 %v2201_v15, %v2188_v59  ;;  %v12838_v28 = vld [vmem:[%s17115_s0 + $0x98] sm:$0xff]  ;;  %v12849_v15 = vld [vmem:[%s17115_s0 + $0xf0] sm:$0xff] }
 0x230   : > { %v1075_v60 = vadd.f32 %v14434_v49, %v1074_v25  ;;  %v14847_v61 = vpop.permute.xlu1 %3852  ;;  %v5357_v9 = vshll.u32 %v14838_v23, 16  ;;  %v5355_v36 = vshrl.u32 %v14838_v23, 16  ;;  %v12840_v49 = vld [vmem:[%s17115_s0 + $0xa8] sm:$0xff] }
 0x231   : > { %4705 = vmatpush.bf16.msra.mxu2 %v12834_v21  ;;  %v2227_v14 = vpop.f32.mrf.mxu2  ;;  %v2216_v10 = vadd.f32 %v2215_v16, %v2202_v50  ;;  %v14920_v50 = vld [vmem:[#allocation3] sm:$0xf] }
 0x232   : > { %4237 = vmatpush.bf16.msrb.mxu3 %v12803_v46  ;;  %v1127_v13 = vmax.f32 %v1075_v60, 0.0  ;;  %v2228_v31 = vadd.f32 %v2227_v14, %v2214_v58  ;;  %v5359_v0 = vrot.slane %v5357_v9, 1  ;;  %v12893_v58 = vld [vmem:[#allocation2 + $0xa8] sm:$0x70]  ;;  %v5335_v14 = vshll.u32 %v14821_v53, 16 }
 0x233   : > { %4694 = vmatpush.bf16.msra.mxu1 %v12823_v44  ;;  %v12819_v44 = vld [vmem:[%s17115_s0] sm:$0xff] }
 0x234   : > { %v1177_v21 = vpack.c.bf16 %v1127_v13, %v1127_v13  ;;  %v2232_v26 = vmax.f32 %v2228_v31, 0.0  ;;  %v14860_v7 = vpop.permute.xlu0 %3843  ;;  %v5360_v27 = vor.u32 %v5359_v0, %v5355_v36  ;;  %v4300_v13 = vpop.permute.xlu2 %4299 }
 0x235   : > { %4706 = vmatpush.bf16.msra.mxu2 %v12833_v62  ;;  %v12896_v3 = vld [vmem:[#allocation2 + $0xb8] sm:$0x30]  ;;  %v12829_v62 = vld [vmem:[%s17115_s0 + $0x50] sm:$0xff] }
 0x236   : > { %4719 = vmatpush.bf16.msra.mxu3 %v12842_v38  ;;  %1228 = vst.msk [vmem:[#allocation2 + $0xc0] sm:$0xf] %vm1179_vm1, %v1177_v21  ;;  %v2234_v32 = vpack.c.bf16 %v2232_v26, %v2232_v26  ;;  %5361 = vrot.lane.b32.xlu1 %v5360_v27, %s17117_s23  ;;  %v11175_v12 = vor.u32 %v12896_v3, %v11174_v30 }
 0x237   : > { %4695 = vmatpush.bf16.msra.mxu1 %v12822_v19  ;;  %v1076_v42 = vpop.f32.mrf.mxu0  ;;  %v12828_v19 = vld [vmem:[%s17115_s0 + $0x48] sm:$0xff]  ;;  %v3914_v30 = vsel %vm1378_vm2, %v14334_v2, %v14860_v7  ;;  %v5772_v2 = vunpack.c.l.b16 %v14920_v50 }
 0x238   : > { %2237 = vst.msk [vmem:[#allocation3 + $0x8] sm:$0xf] %vm1730_vm4, %v2234_v32  ;;  %v1077_v5 = vadd.f32 %v13302_v43, %v1076_v42  ;;  %v4290_v20 = vpop.permute.xlu1 %4289  ;;  %v5351_v8 = vrot.slane %v11175_v12, 1  ;;  %v5364_v45 = vshrl.u32 %v11175_v12, 16  ;;  %v5367_v46 = vshll.u32 %v11175_v12, 16  ;;  %v12848_v12 = vld [vmem:[%s17115_s0 + $0xe8] sm:$0xff] }
 0x239   : > { %4707 = vmatpush.bf16.msra.mxu2 %v12832_v48  ;;  %v2229_v55 = vpop.f32.mrf.mxu2  ;;  %v5337_v32 = vrot.slane %v5335_v14, 4  ;;  %v12864_v14 = vld [vmem:[%s17115_s0 + $0x28] sm:$0xff] }
 0x23a   : > { %4720 = vmatpush.bf16.msra.mxu3 %v12841_v54  ;;  %v1128_v38 = vmax.f32 %v1077_v5, 0.0  ;;  %v2230_v48 = vadd.f32 %v2229_v55, %v2216_v10  ;;  %5352 = vrot.lane.b32.xlu0 %v5351_v8, %s17118_s28  ;;  %v5366_v22 = vrot.slane %v5364_v45, 1  ;;  %v5369_v35 = vrot.slane %v5367_v46, 2  ;;  %v12836_v8 = vld [vmem:[%s17115_s0 + $0x88] sm:$0xff]  ;;  %v2688_v45 = vpop.f32.mrf.mxu3 }
 0x23b   : > { %4696 = vmatpush.bf16.msra.mxu1 %v12821_v1  ;;  %v11178_v1 = vld [vmem:[#allocation2 + $0xbc] sm:$0xc]  ;;  %v3916_v5 = vsel %vm869_vm0, %v3914_v30, %v14847_v61  ;;  %v2702_v30 = vpop.f32.mrf.mxu1 }
 0x23c   : > { %v1178_v34 = vpack.c.bf16 %v1128_v38, %v1128_v38  ;;  %v2233_v52 = vmax.f32 %v2230_v48, 0.0  ;;  %v4281_v54 = vpop.permute.xlu0 %4280  ;;  %v5370_v25 = vor.u32 %v5369_v35, %v5366_v22  ;;  %v12847_v22 = vld [vmem:[%s17115_s0 + $0xe0] sm:$0xff]  ;;  %v3897_v61 = vpop.permute.xlu2 %3896 }
 0x23d   : > { %4708 = vmatpush.bf16.msra.mxu2 %v12831_v41  ;;  %v5332_v41 = vshrl.u32 %v14821_v53, 16  ;;  %v4402_v60 = vsel %vm1378_vm2, %v14337_v63, %v4281_v54  ;;  %v12897_v9 = vld [vmem:[#allocation2 + $0xbc] sm:$0x70]  ;;  %v12837_v63 = vld [vmem:[%s17115_s0 + $0x90] sm:$0xff]  ;;  %v11162_v53 = vld [vmem:[#allocation2 + $0xa8] sm:$0xc] }
 0x23e   : > { %4721 = vmatpush.bf16.msra.mxu3 %v12840_v49  ;;  %1229 = vst.msk [vmem:[#allocation2 + $0xc4] sm:$0xf] %vm1179_vm1, %v1178_v34  ;;  %v2235_v31 = vpack.c.bf16 %v2233_v52, %v2233_v52  ;;  %v4404_v36 = vsel %vm869_vm0, %v4402_v60, %v4290_v20  ;;  %5371 = vrot.lane.b32.xlu2 %v5370_v25, %s17116_s26  ;;  %v12938_v49 = vld [vmem:[%s17058_s6 + $0x20] sm:$0xff] }
 0x23f   : > { %4697 = vmatpush.bf16.msra.mxu1 %v12820_v18  ;;  %v14900_v0 = vor.u32 %v12897_v9, %v11178_v1  ;;  %v4406_v59 = vsel %vm1383_vm3, %v4404_v36, %v4300_v13  ;;  %v14912_v16 = vor.u32 %v12893_v58, %v11162_v53  ;;  %6141 = vmatpush.bf16.msrb.mxu0 %v12938_v49  ;;  %v5334_v3 = vrot.slane %v5332_v41, 3  ;;  %v5765_v42 = vld [vmem:[#allocation3 + $0x8] sm:$0xf]  ;;  %v12835_v54 = vld [vmem:[%s17115_s0 + $0x80] sm:$0xff]  ;;  %v12846_v1 = vld [vmem:[%s17115_s0 + $0xd8] sm:$0xff] }
 0x240   : > { %v2239_v21 = vsel %vm14717_vm7, %v2235_v31, %v2238_v11  ;;  %v14916_v26 = vpop.permute.xlu1 %4323  ;;  %v5790_v48 = vunpack.c.l.b16 %v5765_v42  ;;  %v5773_v34 = vpack.c.b16 %v5772_v2, %v5772_v2  ;;  %v3869_v9 = vrot.slane %v14418_v39, 2  ;;  %v12874_v39 = vld [vmem:[%s17115_s0 + $0x78] sm:$0xff]  ;;  %v12844_v2 = vld [vmem:[%s17115_s0 + $0xc8] sm:$0xff] }
 0x241   : > { %4709 = vmatpush.bf16.msra.mxu2 %v12830_v40  ;;  %v12827_v40 = vld [vmem:[%s17115_s0 + $0x40] sm:$0xff]  ;;  %v5388_v27 = vshrl.u32 %v14900_v0, 16  ;;  %v5391_v18 = vshll.u32 %v14900_v0, 16  ;;  %2240 = vst [vmem:[#allocation3 + $0xc] sm:$0x1] %v2239_v21  ;;  %v5322_v43 = vshrl.u32 %v14912_v16, 16  ;;  %v5338_v55 = vor.u32 %v5337_v32, %v5334_v3 }
 0x242   : > { %4722 = vmatpush.bf16.msra.mxu3 %v12839_v33  ;;  %v5791_v60 = vpack.c.b16 %v5790_v48, %v5790_v48  ;;  %v13292_v21 = vld [vmem:[%s17119_s5] ss:$0 sm:$0xff] }
 0x243   : > { %4698 = vmatpush.bf16.msra.mxu1 %v12819_v44  ;;  %v5390_v33 = vrot.slane %v5388_v27, 2  ;;  %v5393_v10 = vrot.slane %v5391_v18, 3  ;;  %v5325_v44 = vshll.u32 %v14912_v16, 16  ;;  %v2690_v18 = vpop.f32.mrf.mxu3  ;;  %v12863_v3 = vld [vmem:[%s17115_s0 + $0x20] sm:$0xff] }
 0x244   : > { %v3863_v7 = vpop.permute.xlu0 %3862  ;;  %v4334_v32 = vpop.permute.xlu2 %4333 }
 0x245   : > { %4710 = vmatpush.bf16.msra.mxu2 %v12829_v62  ;;  %v12866_v62 = vld [vmem:[%s17115_s0 + $0x38] sm:$0xff]  ;;  %v5394_v20 = vor.u32 %v5393_v10, %v5390_v33  ;;  %v3918_v46 = vsel %vm1383_vm3, %v3916_v5, %v3863_v7  ;;  %v12898_v38 = vld [vmem:[#allocation2 + $0xc0] sm:$0xf0]  ;;  %v5327_v11 = vrot.slane %v5325_v44, 3  ;;  %v2689_v7 = vadd.f32 %v13292_v21, %v2688_v45  ;;  %v12872_v45 = vld [vmem:[%s17115_s0 + $0x68] sm:$0xff] }
 0x246   : > { %4723 = vmatpush.bf16.msra.mxu3 %v12838_v28  ;;  %4699 = vmatmul.bf16.vlgmr.msra.gmra.mxu1 %v4406_v59  ;;  %v12865_v28 = vld [vmem:[%s17115_s0 + $0x30] sm:$0xff]  ;;  %v5797_v59 = vshll.u32 %v5791_v60, 16  ;;  %v5775_v5 = vshrl.u32 %v5773_v34, 16  ;;  %v5795_v44 = vshrl.u32 %v5791_v60, 16 }
 0x247   : > { %4733 = vmatpush.bf16.msrb.mxu1 %v12850_v47  ;;  %v11182_v47 = vld [vmem:[#allocation2 + $0xc0] sm:$0x8]  ;;  %5395 = vrot.lane.b32.xlu1 %v5394_v20, %s17117_s23  ;;  %v4306_v20 = vrot.slane %v14398_v57, 2 }
 0x248   : > { %4224 = vmatmul.bf16.vlgmr.msrb.gmra.mxu2 %v3918_v46  ;;  %v11183_v35 = vor.u32 %v12898_v38, %v11182_v47  ;;  %5339 = vrot.lane.b32.xlu2 %v5338_v55, %s17116_s26  ;;  %v3877_v58 = vpop.permute.xlu1 %3876  ;;  %v5799_v42 = vrot.slane %v5797_v59, 1  ;;  %v11318_v46 = vld [vmem:[#allocation3 + $0x8] sm:$0xe]  ;;  %v2703_v55 = vadd.f32 %v2702_v30, %v2689_v7  ;;  %v12843_v57 = vld [vmem:[%s17115_s0 + $0xc0] sm:$0xff]  ;;  %v12890_v30 = vld [vmem:[%s17115_s0 + $0xf8] sm:$0xff] }
 0x249   : > { %4711 = vmatpush.bf16.msra.mxu2 %v12828_v19  ;;  %v5324_v19 = vrot.slane %v5322_v43, 2  ;;  %v3922_v13 = vsel %vm1378_vm2, %v3869_v9, %v3877_v58  ;;  %v12932_v43 = vld [vmem:[#allocation3 + $0x8] sm:$0x10]  ;;  %v2704_v58 = vpop.f32.mrf.mxu1 }
 0x24a   : > { %4724 = vmatpush.bf16.msra.mxu3 %v12837_v63  ;;  %v5384_v52 = vrot.slane %v11183_v35, 3  ;;  %v5398_v25 = vshrl.u32 %v11183_v35, 16  ;;  %v5401_v41 = vshll.u32 %v11183_v35, 16  ;;  %v2716_v10 = vpop.f32.mrf.mxu2  ;;  %v11319_v48 = vor.u32 %v12932_v43, %v11318_v46 }
 0x24b   : > { %4734 = vmatpush.bf16.msrb.mxu1 %v12849_v15  ;;  %v5777_v15 = vshll.u32 %v5773_v34, 16  ;;  %v5328_v36 = vor.u32 %v5327_v11, %v5324_v19  ;;  %v2717_v35 = vadd.f32 %v2716_v10, %v2703_v55  ;;  %v12882_v19 = vld [vmem:[%s17115_s0 + $0xb8] sm:$0xff]  ;;  %v12861_v11 = vld [vmem:[%s17115_s0 + $0x10] sm:$0xff]  ;;  %v12879_v10 = vld [vmem:[%s17115_s0 + $0xa0] sm:$0xff] }
 0x24c   : > { %5385 = vrot.lane.b32.xlu0 %v5384_v52, %s17118_s28  ;;  %v3887_v31 = vpop.permute.xlu0 %3886  ;;  %v5400_v63 = vrot.slane %v5398_v25, 3  ;;  %v5403_v53 = vrot.slane %v5401_v41, 4  ;;  %v15008_v41 = vrot.slane %v11319_v48, 1  ;;  %v12878_v55 = vld [vmem:[%s17115_s0 + $0x98] sm:$0xff]  ;;  %s17093_s28 = scalar_lea.vmem [#allocation4], %s16881_s27 }
 0x24d   : > { %4712 = vmatpush.bf16.msra.mxu2 %v12827_v40  ;;  %v3924_v49 = vsel %vm869_vm0, %v3922_v13, %v3887_v31  ;;  %v12845_v40 = vld [vmem:[%s17115_s0 + $0xd0] sm:$0xff]  ;;  %v5779_v33 = vrot.slane %v5777_v15, 1  ;;  %v12860_v13 = vld [vmem:[%s17115_s0 + $0x8] sm:$0xff] }
 0x24e   : > { %4725 = vmatpush.bf16.msra.mxu3 %v12836_v8  ;;  %v3926_v27 = vsel %vm1383_vm3, %v3924_v49, %v3897_v61  ;;  %v12862_v8 = vld [vmem:[%s17115_s0 + $0x18] sm:$0xff]  ;;  %v14988_v61 = vor.u32 %v5799_v42, %v5795_v44 }
 0x24f   : > { %4735 = vmatpush.bf16.msrb.mxu1 %v12848_v12  ;;  %5329 = vrot.lane.b32.xlu1 %v5328_v36, %s17117_s23  ;;  %v5404_v12 = vor.u32 %v5403_v53, %v5400_v63  ;;  %v5780_v38 = vor.u32 %v5779_v33, %v5775_v5  ;;  %v12870_v49 = vld [vmem:[%s17115_s0 + $0x58] sm:$0xff] }
 0x250   : > { %5792 = vrot.lane.b32.xlu2 %v5791_v60, %s17117_s23  ;;  %4238 = vmatmul.bf16.vlgmr.msrb.gmra.mxu3 %v3926_v27  ;;  %v12871_v60 = vld [vmem:[%s17115_s0 + $0x60] sm:$0xff]  ;;  %v2741_v42 = vld [vmem:[#allocation3 + $0x14] sm:$0x1] }
 0x251   : > { %5194 = vmatpush.bf16.msrb.mxu2 %v12866_v62  ;;  %v12873_v62 = vld [vmem:[%s17115_s0 + $0x70] sm:$0xff]  ;;  %v3191_v48 = vpop.f32.mrf.mxu1 }
 0x252   : > { %4726 = vmatpush.bf16.msra.mxu3 %v12835_v54  ;;  %v4366_v54 = vpop.permute.xlu2 %4365  ;;  %v2718_v15 = vpop.f32.mrf.mxu2 }
 0x253   : > { %4736 = vmatpush.bf16.msrb.mxu1 %v12847_v22 }
 0x254   : > { %5405 = vrot.lane.b32.xlu0 %v5404_v12, %s17116_s26  ;;  %v4314_v47 = vpop.permute.xlu0 %4313 }
 0x255   : > { %5195 = vmatpush.bf16.msrb.mxu2 %v12865_v28  ;;  %v4410_v22 = vsel %vm1378_vm2, %v4306_v20, %v4314_v47  ;;  %v12868_v20 = vld [vmem:[%s17115_s0 + $0x48] sm:$0xff] }
 0x256   : > { %5208 = vmatpush.bf16.msrb.mxu3 %v12874_v39  ;;  %v4412_v28 = vsel %vm869_vm0, %v4410_v22, %v14916_v26  ;;  %v12867_v22 = vld [vmem:[%s17115_s0 + $0x40] sm:$0xff] }
 0x257   : > { %4737 = vmatpush.bf16.msrb.mxu1 %v12846_v1  ;;  %5781 = vrot.lane.b32.xlu1 %v5780_v38, %s17117_s23  ;;  %v4414_v52 = vsel %vm1383_vm3, %v4412_v28, %v4334_v32  ;;  %v2691_v1 = vadd.f32 %v13292_v21, %v2690_v18  ;;  %v12869_v32 = vld [vmem:[%s17115_s0 + $0x50] sm:$0xff]  ;;  %v12888_v38 = vld [vmem:[%s17115_s0 + $0xe8] sm:$0xff] }
 0x258   : > { %6208 = vrot.lane.b32.xlu2 %v14988_v61, %s17117_s23  ;;  %v2730_v34 = vpop.f32.mrf.mxu3  ;;  %v4356_v26 = vpop.permute.xlu1 %4355  ;;  %4713 = vmatmul.bf16.vlgmr.msra.gmra.mxu2 %v4414_v52 }
 0x259   : > { %5196 = vmatpush.bf16.msrb.mxu2 %v12864_v14  ;;  %v2731_v25 = vadd.f32 %v2730_v34, %v2717_v35  ;;  %v12881_v14 = vld [vmem:[%s17115_s0 + $0xb0] sm:$0xff]  ;;  %v2705_v31 = vadd.f32 %v2704_v58, %v2691_v1 }
 0x25a   : > { %5209 = vmatpush.bf16.msrb.mxu3 %v12873_v62  ;;  %v4803_v12 = vpop.permute.xlu2 %4802  ;;  %v12877_v35 = vld [vmem:[%s17115_s0 + $0x90] sm:$0xff] }
 0x25b   : > { %4738 = vmatpush.bf16.msrb.mxu1 %v12845_v40  ;;  %v2735_v9 = vmax.f32 %v2731_v25, 0.0  ;;  %v2719_v39 = vadd.f32 %v2718_v15, %v2705_v31  ;;  %v12880_v40 = vld [vmem:[%s17115_s0 + $0xa8] sm:$0xff]  ;;  %v12905_v1 = vld [vmem:[%s17115_s0 + $0x30] sm:$0xff] }
 0x25c   : > { %5807 = vrot.lane.b32.xlu0 %v15008_v41, %s17117_s23  ;;  %v4347_v63 = vpop.permute.xlu0 %4346 }
 0x25d   : > { %5197 = vmatpush.bf16.msrb.mxu2 %v12863_v3  ;;  %v2737_v36 = vpack.c.bf16 %v2735_v9, %v2735_v9  ;;  %v4417_v53 = vsel %vm1378_vm2, %v14500_v24, %v4347_v63  ;;  %v12859_v24 = vld [vmem:[%s17115_s0] sm:$0xff]  ;;  %v12876_v9 = vld [vmem:[%s17115_s0 + $0x88] sm:$0xff] }
 0x25e   : > { %5210 = vmatpush.bf16.msrb.mxu3 %v12872_v45  ;;  %v4419_v59 = vsel %vm869_vm0, %v4417_v53, %v4356_v26  ;;  %v12906_v45 = vld [vmem:[%s17115_s0 + $0x38] sm:$0xff]  ;;  %v12875_v53 = vld [vmem:[%s17115_s0 + $0x80] sm:$0xff] }
 0x25f   : > { %4739 = vmatpush.bf16.msrb.mxu1 %v12844_v2  ;;  %2740 = vst.msk [vmem:[#allocation3 + $0x10] sm:$0xf] %vm1730_vm4, %v2737_v36  ;;  %v4421_v27 = vsel %vm1383_vm3, %v4419_v59, %v4366_v54  ;;  %v12889_v2 = vld [vmem:[%s17115_s0 + $0xf0] sm:$0xff]  ;;  %v15082_v26 = vld [vmem:[%s17058_s6 + $0x18] sm:$0xff]  ;;  %v12904_v36 = vld [vmem:[%s17115_s0 + $0x28] sm:$0xff]  ;;  %v4809_v59 = vrot.slane %v14573_v29, 2 }
 0x260   : > { %v2732_v21 = vpop.f32.mrf.mxu3  ;;  %4727 = vmatmul.bf16.vlgmr.msra.gmra.mxu3 %v4421_v27  ;;  %v4793_v3 = vpop.permute.xlu1 %4792  ;;  %6142 = vmatpush.bf16.msrb.mxu0 %v15082_v26 }
 0x261   : > { %5198 = vmatpush.bf16.msrb.mxu2 %v12862_v8  ;;  %v2733_v18 = vadd.f32 %v2732_v21, %v2719_v39  ;;  %v3193_v39 = vpop.f32.mrf.mxu1  ;;  %v3205_v21 = vpop.f32.mrf.mxu2 }
 0x262   : > { %5211 = vmatpush.bf16.msrb.mxu3 %v12871_v60  ;;  %v4400_v34 = vpop.permute.xlu2 %4399 }
 0x263   : > { %4740 = vmatpush.bf16.msrb.mxu1 %v12843_v57  ;;  %v2736_v33 = vmax.f32 %v2733_v18, 0.0 }
 0x264   : > { %v4784_v43 = vpop.permute.xlu0 %4783 }
 0x265   : > { %5199 = vmatpush.bf16.msrb.mxu2 %v12861_v11  ;;  %v2738_v62 = vpack.c.bf16 %v2736_v33, %v2736_v33  ;;  %v4905_v7 = vsel %vm1378_vm2, %v14510_v56, %v4784_v43  ;;  %v12887_v11 = vld [vmem:[%s17115_s0 + $0xe0] sm:$0xff]  ;;  %v12884_v43 = vld [vmem:[%s17115_s0 + $0xc8] sm:$0xff] }
 0x266   : > { %5212 = vmatpush.bf16.msrb.mxu3 %v12870_v49  ;;  %v15049_v5 = vld [vmem:[#allocation3 + $0x10] sm:$0xf]  ;;  %v4907_v44 = vsel %vm869_vm0, %v4905_v7, %v4793_v3  ;;  %v13293_v49 = vld [vmem:[%s17119_s5] ss:$0 sm:$0xff] }
 0x267   : > { %5222 = vmatpush.bf16.msra.mxu1 %v12882_v19  ;;  %v2742_v8 = vsel %vm14717_vm7, %v2738_v62, %v2741_v42  ;;  %v5810_v46 = vunpack.c.l.b16 %v15049_v5  ;;  %v4909_v56 = vsel %vm1383_vm3, %v4907_v44, %v4803_v12  ;;  %v4372_v19 = vrot.slane %v14567_v4, 2  ;;  %v11322_v31 = vld [vmem:[#allocation3 + $0x10] sm:$0xe]  ;;  %v12903_v33 = vld [vmem:[%s17115_s0 + $0x20] sm:$0xff]  ;;  %v12913_v62 = vld [vmem:[%s17115_s0 + $0x70] sm:$0xff] }
 0x268   : > { %2743 = vst [vmem:[#allocation3 + $0x14] sm:$0x1] %v2742_v8  ;;  %v4390_v28 = vpop.permute.xlu1 %4389  ;;  %v12902_v7 = vld [vmem:[%s17115_s0 + $0x18] sm:$0xff]  ;;  %v12912_v8 = vld [vmem:[%s17115_s0 + $0x68] sm:$0xff] }
 0x269   : > { %5200 = vmatpush.bf16.msrb.mxu2 %v12860_v13  ;;  %v5811_v47 = vpack.c.b16 %v5810_v46, %v5810_v46  ;;  %v12886_v13 = vld [vmem:[%s17115_s0 + $0xd8] sm:$0xff]  ;;  %v12883_v46 = vld [vmem:[%s17115_s0 + $0xc0] sm:$0xff] }
 0x26a   : > { %5213 = vmatpush.bf16.msrb.mxu3 %v12869_v32  ;;  %v4837_v3 = vpop.permute.xlu2 %4836 }
 0x26b   : > { %5223 = vmatpush.bf16.msra.mxu1 %v12881_v14  ;;  %6210 = vrot.lane.b32.xlu1 %v5811_v47, %s17117_s23  ;;  %v5815_v57 = vshll.u32 %v5811_v47, 16  ;;  %v5813_v54 = vshrl.u32 %v5811_v47, 16  ;;  %v3207_v47 = vpop.f32.mrf.mxu2 }
 0x26c   : > { %v4380_v52 = vpop.permute.xlu0 %4379 }
 0x26d   : > { %5201 = vmatpush.bf16.msrb.mxu2 %v12859_v24  ;;  %v5817_v25 = vrot.slane %v5815_v57, 1  ;;  %v4425_v58 = vsel %vm1378_vm2, %v4372_v19, %v4380_v52  ;;  %v12885_v24 = vld [vmem:[%s17115_s0 + $0xd0] sm:$0xff]  ;;  %v12911_v57 = vld [vmem:[%s17115_s0 + $0x60] sm:$0xff] }
 0x26e   : > { %5214 = vmatpush.bf16.msrb.mxu3 %v12868_v20  ;;  %v4427_v60 = vsel %vm869_vm0, %v4425_v58, %v4390_v28  ;;  %v12921_v52 = vld [vmem:[%s17115_s0 + $0xb0] sm:$0xff] }
 0x26f   : > { %5224 = vmatpush.bf16.msra.mxu1 %v12880_v40  ;;  %v15086_v4 = vor.u32 %v5817_v25, %v5813_v54  ;;  %v4429_v14 = vsel %vm1383_vm3, %v4427_v60, %v4400_v34  ;;  %v12933_v15 = vld [vmem:[#allocation3 + $0x10] sm:$0x10]  ;;  %v3219_v32 = vpop.f32.mrf.mxu3 }
 0x270   : > { %5202 = vmatmul.bf16.vlgmr.msrb.gmra.mxu2 %v4909_v56  ;;  %4741 = vmatmul.bf16.vlgmr.msrb.gmra.mxu1 %v4429_v14  ;;  %v11323_v63 = vor.u32 %v12933_v15, %v11322_v31  ;;  %v12914_v40 = vld [vmem:[%s17115_s0 + $0x78] sm:$0xff]  ;;  %v4827_v18 = vpop.permute.xlu1 %4826  ;;  %v12899_v14 = vld [vmem:[%s17115_s0] sm:$0xff] }
 0x271   : > { %5236 = vmatpush.bf16.msra.mxu2 %v12890_v30  ;;  %5819 = vrot.lane.b32.xlu0 %v15086_v4, %s17117_s23  ;;  %v12922_v56 = vld [vmem:[%s17115_s0 + $0xb8] sm:$0xff] }
 0x272   : > { %5215 = vmatpush.bf16.msrb.mxu3 %v12867_v22  ;;  %v15119_v29 = vrot.slane %v11323_v63, 1  ;;  %v4850_v22 = vpop.permute.xlu2 %4849  ;;  %v12910_v25 = vld [vmem:[%s17115_s0 + $0x58] sm:$0xff] }
 0x273   : > { %5225 = vmatpush.bf16.msra.mxu1 %v12879_v10  ;;  %v3192_v10 = vadd.f32 %v13293_v49, %v3191_v48  ;;  %v3194_v48 = vadd.f32 %v13293_v49, %v3193_v39  ;;  %v4920_v31 = vsel %vm1378_vm2, %v14679_v17, %v4850_v22 }
 0x274   : > { %v4817_v27 = vpop.permute.xlu0 %4816 }
 0x275   : > { %5237 = vmatpush.bf16.msra.mxu2 %v12889_v2  ;;  %v4913_v30 = vsel %vm1378_vm2, %v4809_v59, %v4817_v27  ;;  %v3206_v2 = vadd.f32 %v3205_v21, %v3192_v10  ;;  %v3208_v19 = vadd.f32 %v3207_v47, %v3194_v48  ;;  %v12919_v21 = vld [vmem:[%s17115_s0 + $0xa0] sm:$0xff]  ;;  %v12918_v10 = vld [vmem:[%s17115_s0 + $0x98] sm:$0xff] }
 0x276   : > { %5697 = vmatpush.bf16.msra.mxu3 %v12906_v45  ;;  %v4915_v12 = vsel %vm869_vm0, %v4913_v30, %v4827_v18  ;;  %v12927_v47 = vld [vmem:[%s17115_s0 + $0xe0] sm:$0xff] }
 0x277   : > { %5226 = vmatpush.bf16.msra.mxu1 %v12878_v55  ;;  %v4917_v42 = vsel %vm1383_vm3, %v4915_v12, %v4837_v3  ;;  %v3220_v20 = vadd.f32 %v3219_v32, %v3206_v2  ;;  %v12908_v32 = vld [vmem:[%s17115_s0 + $0x48] sm:$0xff] }
 0x278   : > { %5216 = vmatmul.bf16.vlgmr.msrb.gmra.mxu3 %v4917_v42 }
 0x279   : > { %5238 = vmatpush.bf16.msra.mxu2 %v12888_v38  ;;  %6212 = vrot.lane.b32.xlu0 %v15119_v29, %s17117_s23  ;;  %v12901_v38 = vld [vmem:[%s17115_s0 + $0x10] sm:$0xff] }
 0x27a   : > { %5698 = vmatpush.bf16.msra.mxu3 %v12905_v1  ;;  %v4869_v49 = vpop.permute.xlu2 %4868 }
 0x27b   : > { %5227 = vmatpush.bf16.msra.mxu1 %v12877_v35  ;;  %v3221_v35 = vpop.f32.mrf.mxu3 }
 0x27c   : > { %v3222_v54 = vadd.f32 %v3221_v35, %v3208_v19  ;;  %v15232_v19 = vld [vmem:[%s17058_s6 + $0x70] sm:$0xff] }
 0x27d   : > { %5239 = vmatpush.bf16.msra.mxu2 %v12887_v11  ;;  %v3233_v44 = vpop.f32.mrf.mxu1  ;;  %v12900_v11 = vld [vmem:[%s17115_s0 + $0x8] sm:$0xff] }
 0x27e   : > { %5699 = vmatpush.bf16.msra.mxu3 %v12904_v36  ;;  %v3234_v55 = vadd.f32 %v3233_v44, %v3220_v20  ;;  %v3244_v36 = vld [vmem:[#allocation3 + $0x1c] sm:$0x1]  ;;  %v12917_v20 = vld [vmem:[%s17115_s0 + $0x90] sm:$0xff]  ;;  %v4875_v44 = vrot.slane %v14750_v37, 2  ;;  %v12916_v37 = vld [vmem:[%s17115_s0 + $0x88] sm:$0xff] }
 0x27f   : > { %5228 = vmatpush.bf16.msra.mxu1 %v12876_v9  ;;  %v12920_v9 = vld [vmem:[%s17115_s0 + $0xa8] sm:$0xff] }
 0x280   : > { %v3238_v45 = vmax.f32 %v3234_v55, 0.0  ;;  %v5296_v28 = vpop.permute.xlu1 %5295 }
 0x281   : > { %5240 = vmatpush.bf16.msra.mxu2 %v12886_v13  ;;  %v12930_v13 = vld [vmem:[%s17115_s0 + $0xf8] sm:$0xff] }
 0x282   : > { %5700 = vmatpush.bf16.msra.mxu3 %v12903_v33  ;;  %v3240_v34 = vpack.c.bf16 %v3238_v45, %v3238_v45 }
 0x283   : > { %5229 = vmatpush.bf16.msra.mxu1 %v12875_v53  ;;  %v12909_v53 = vld [vmem:[%s17115_s0 + $0x50] sm:$0xff] }
 0x284   : > { %3243 = vst.msk [vmem:[#allocation3 + $0x18] sm:$0xf] %vm1730_vm4, %v3240_v34  ;;  %v5287_v60 = vpop.permute.xlu0 %5286  ;;  %v3694_v34 = vpop.f32.mrf.mxu2 }
 0x285   : > { %5241 = vmatpush.bf16.msra.mxu2 %v12885_v24  ;;  %v3235_v58 = vpop.f32.mrf.mxu1  ;;  %v5408_v59 = vsel %vm1378_vm2, %v14676_v6, %v5287_v60  ;;  %v12929_v6 = vld [vmem:[%s17115_s0 + $0xf0] sm:$0xff]  ;;  %v15257_v60 = vld [vmem:[%s17058_s6 + $0x68] sm:$0xff] }
 0x286   : > { %5701 = vmatpush.bf16.msra.mxu3 %v12902_v7  ;;  %v3236_v1 = vadd.f32 %v3235_v58, %v3222_v54  ;;  %v5410_v3 = vsel %vm869_vm0, %v5408_v59, %v5296_v28  ;;  %v12915_v54 = vld [vmem:[%s17115_s0 + $0x80] sm:$0xff]  ;;  %v15251_v58 = vld [vmem:[%s17058_s6 + $0xb8] sm:$0xff] }
 0x287   : > { %5711 = vmatpush.bf16.msrb.mxu1 %v12914_v40  ;;  %v15307_v59 = vld [vmem:[%s17058_s6 + $0x58] sm:$0xff] }
 0x288   : > { %v3239_v15 = vmax.f32 %v3236_v1, 0.0  ;;  %v4859_v63 = vpop.permute.xlu1 %4858  ;;  %v12925_v1 = vld [vmem:[%s17115_s0 + $0xd0] sm:$0xff] }
 0x289   : > { %5242 = vmatpush.bf16.msra.mxu2 %v12884_v43  ;;  %v4922_v40 = vsel %vm869_vm0, %v4920_v31, %v4859_v63  ;;  %v12907_v43 = vld [vmem:[%s17115_s0 + $0x40] sm:$0xff] }
 0x28a   : > { %5702 = vmatpush.bf16.msra.mxu3 %v12901_v38  ;;  %v3241_v39 = vpack.c.bf16 %v3239_v15, %v3239_v15  ;;  %v4924_v17 = vsel %vm1383_vm3, %v4922_v40, %v4869_v49  ;;  %v15278_v15 = vld [vmem:[%s17058_s6 + $0x60] sm:$0xff]  ;;  %v15295_v49 = vld [vmem:[%s17058_s6 + $0x118] sm:$0xff] }
 0x28b   : > { %5712 = vmatpush.bf16.msrb.mxu1 %v12913_v62  ;;  %v15182_v27 = vld [vmem:[#allocation3 + $0x18] sm:$0xf]  ;;  %v12928_v62 = vld [vmem:[%s17115_s0 + $0xe8] sm:$0xff] }
 0x28c   : > { %v3245_v24 = vsel %vm14717_vm7, %v3241_v39, %v3244_v36  ;;  %5230 = vmatmul.bf16.vlgmr.msra.gmra.mxu1 %v4924_v17  ;;  %v6215_v18 = vunpack.c.l.b16 %v15182_v27  ;;  %v11471_v55 = vld [vmem:[#allocation3 + $0x18] sm:$0xe]  ;;  %v13294_v36 = vld [vmem:[%s17119_s5] ss:$0 sm:$0xff]  ;;  %v3696_v63 = vpop.f32.mrf.mxu2  ;;  %v15301_v39 = vld [vmem:[%s17058_s6 + $0xa8] sm:$0xff] }
 0x28d   : > { %5243 = vmatpush.bf16.msra.mxu2 %v12883_v46  ;;  %3246 = vst [vmem:[#allocation3 + $0x1c] sm:$0x1] %v3245_v24  ;;  %v5306_v30 = vpop.permute.xlu0 %5305  ;;  %v15287_v31 = vld [vmem:[%s17058_s6] sm:$0xff]  ;;  %v3695_v17 = vadd.f32 %v13294_v36, %v3694_v34  ;;  %v15316_v24 = vld [vmem:[%s17058_s6 + $0xf8] sm:$0xff]  ;;  %v15381_v34 = vld [vmem:[%s17058_s6 + $0x90] sm:$0xff] }
 0x28e   : > { %5703 = vmatpush.bf16.msra.mxu3 %v12900_v11  ;;  %v5412_v12 = vsel %vm1383_vm3, %v5410_v3, %v5306_v30  ;;  %v6216_v33 = vpack.c.b16 %v6215_v18, %v6215_v18  ;;  %v12926_v11 = vld [vmem:[%s17115_s0 + $0xd8] sm:$0xff]  ;;  %v15325_v30 = vld [vmem:[%s17058_s6 + $0xa0] sm:$0xff]  ;;  %v15331_v3 = vld [vmem:[%s17058_s6 + $0x50] sm:$0xff] }
 0x28f   : > { %5713 = vmatpush.bf16.msrb.mxu1 %v12912_v8  ;;  %v15211_v8 = vld [vmem:[%s17058_s6 + $0x78] sm:$0xff] }
 0x290   : > { %6321 = vrot.lane.b32.xlu2 %v6216_v33, %s17117_s23  ;;  %v6220_v42 = vshll.u32 %v6216_v33, 16  ;;  %v6218_v2 = vshrl.u32 %v6216_v33, 16  ;;  %v15342_v33 = vld [vmem:[%s17058_s6 + $0xf0] sm:$0xff] }
 0x291   : > { %5725 = vmatpush.bf16.msrb.mxu2 %v12922_v56  ;;  %v4893_v22 = vpop.permute.xlu1 %4892 }
 0x292   : > { %5704 = vmatpush.bf16.msra.mxu3 %v12899_v14  ;;  %v6222_v7 = vrot.slane %v6220_v42, 1  ;;  %v15272_v14 = vld [vmem:[%s17058_s6 + $0xb0] sm:$0xff] }
 0x293   : > { %5714 = vmatpush.bf16.msrb.mxu1 %v12911_v57  ;;  %v4903_v57 = vpop.permute.xlu2 %4902 }
 0x294   : > { %v15214_v46 = vor.u32 %v6222_v7, %v6218_v2  ;;  %v12970_v56 = vld [vmem:[#allocation3 + $0x18] sm:$0x10]  ;;  %v15360_v2 = vld [vmem:[%s17058_s6 + $0x108] sm:$0xff] }
 0x295   : > { %5726 = vmatpush.bf16.msrb.mxu2 %v12921_v52  ;;  %5705 = vmatmul.bf16.vlgmr.msra.gmra.mxu3 %v5412_v12  ;;  %v4883_v38 = vpop.permute.xlu0 %4882  ;;  %v11472_v48 = vor.u32 %v12970_v56, %v11471_v55  ;;  %v3722_v40 = vpop.f32.mrf.mxu1  ;;  %v15366_v56 = vld [vmem:[%s17058_s6 + $0xe8] sm:$0xff] }
 0x296   : > { %5739 = vmatpush.bf16.msrb.mxu3 %v12930_v13  ;;  %v4928_v45 = vsel %vm1378_vm2, %v4875_v44, %v4883_v38  ;;  %6224 = vrot.lane.b32.xlu1 %v15214_v46, %s17117_s23  ;;  %v12924_v13 = vld [vmem:[%s17115_s0 + $0xc8] sm:$0xff] }
 0x297   : > { %5715 = vmatpush.bf16.msrb.mxu1 %v12910_v25  ;;  %v4930_v35 = vsel %vm869_vm0, %v4928_v45, %v4893_v22  ;;  %v15226_v28 = vrot.slane %v11472_v48, 1  ;;  %v15246_v25 = vld [vmem:[%s17058_s6 + $0x10] sm:$0xff]  ;;  %v15374_v22 = vld [vmem:[%s17058_s6 + $0x100] sm:$0xff] }
 0x298   : > { %v4932_v52 = vsel %vm1383_vm3, %v4930_v35, %v4903_v57  ;;  %6143 = vmatpush.bf16.msrb.mxu0 %v15246_v25 }
 0x299   : > { %5727 = vmatpush.bf16.msrb.mxu2 %v12920_v9  ;;  %6323 = vrot.lane.b32.xlu0 %v15226_v28, %s17117_s23  ;;  %v15266_v9 = vld [vmem:[%s17058_s6 + $0x8] sm:$0xff] }
 0x29a   : > { %5740 = vmatpush.bf16.msrb.mxu3 %v12929_v6  ;;  %5244 = vmatmul.bf16.vlgmr.msra.gmra.mxu2 %v4932_v52 }
 0x29b   : > { %5716 = vmatpush.bf16.msrb.mxu1 %v12909_v53  ;;  %v3708_v53 = vpop.f32.mrf.mxu3  ;;  %v15319_v6 = vpop.permute.xlu2 %5319 }
 0x29c   : > { %6144 = vmatpush.bf16.msrb.mxu0 %v15266_v9  ;;  %v3709_v18 = vadd.f32 %v3708_v53, %v3695_v17  ;;  %v15409_v53 = vld [vmem:[%s17058_s6 + $0xd8] sm:$0xff]  ;;  %v15415_v17 = vld [vmem:[%s17058_s6 + $0x80] sm:$0xff] }
 0x29d   : > { %5728 = vmatpush.bf16.msrb.mxu2 %v12919_v21  ;;  %v12923_v21 = vld [vmem:[%s17115_s0 + $0xc0] sm:$0xff]  ;;  %s9581_s0 = sshll.u32 %s17123_s30, 4  ;;  %s9582_s0 = int_to_ptr.vmem [resolvable:$true] %s9581_s0 }
 0x29e   : > { %5741 = vmatpush.bf16.msrb.mxu3 %v12928_v62  ;;  %v3723_v12 = vadd.f32 %v3722_v40, %v3709_v18  ;;  %v15349_v62 = vld [vmem:[%s17058_s6 + $0x98] sm:$0xff]  ;;  %v3747_v40 = vld [vmem:[#allocation3 + $0x24] sm:$0x1] }
 0x29f   : > { %5717 = vmatpush.bf16.msrb.mxu1 %v12908_v32  ;;  %v15336_v32 = vld [vmem:[%s17058_s6 + $0x110] sm:$0xff] }
 0x2a0   : > { %6145 = vmatpush.bf16.msrb.mxu0 %v15287_v31 }
 0x2a1   : > { %5729 = vmatpush.bf16.msrb.mxu2 %v12918_v10 }
 0x2a2   : > { %5742 = vmatpush.bf16.msrb.mxu3 %v12927_v47  ;;  %v3724_v47 = vpop.f32.mrf.mxu1 }
 0x2a3   : > { %5718 = vmatpush.bf16.msrb.mxu1 %v12907_v43  ;;  %v15355_v43 = vld [vmem:[%s17058_s6 + $0x48] sm:$0xff]  ;;  %v3710_v7 = vpop.f32.mrf.mxu3 }
 0x2a4   : > { %6194 = vmatpush.bf16.msra.mxu0 %v15295_v49 }
 0x2a5   : > { %5730 = vmatpush.bf16.msrb.mxu2 %v12917_v20  ;;  %v3697_v20 = vadd.f32 %v13294_v36, %v3696_v63  ;;  %v15402_v36 = vld [vmem:[%s17058_s6 + $0x88] sm:$0xff] }
 0x2a6   : > { %5743 = vmatpush.bf16.msrb.mxu3 %v12926_v11 }
 0x2a7   : > { %6151 = vmatpush.bf16.msra.mxu1 %v15211_v8  ;;  %v3711_v45 = vadd.f32 %v3710_v7, %v3697_v20  ;;  %v15426_v7 = vld [vmem:[%s17058_s6 + $0xd0] sm:$0xff] }
 0x2a8   : > { %6195 = vmatpush.bf16.msra.mxu0 %v15336_v32  ;;  %v5362_v38 = vpop.permute.xlu1 %5361 }
 0x2a9   : > { %5731 = vmatpush.bf16.msrb.mxu2 %v12916_v37  ;;  %v3736_v10 = vpop.f32.mrf.mxu2  ;;  %v5372_v37 = vpop.permute.xlu2 %5371  ;;  %v3725_v11 = vadd.f32 %v3724_v47, %v3711_v45  ;;  %v15435_v47 = vld [vmem:[%s17058_s6 + $0xc8] sm:$0xff] }
 0x2aa   : > { %5744 = vmatpush.bf16.msrb.mxu3 %v12925_v1  ;;  %v3737_v42 = vadd.f32 %v3736_v10, %v3723_v12 }
 0x2ab   : > { %6152 = vmatpush.bf16.msra.mxu1 %v15232_v19 }
 0x2ac   : > { %v3741_v44 = vmax.f32 %v3737_v42, 0.0  ;;  %v5353_v55 = vpop.permute.xlu0 %5352  ;;  %6196 = vmatpush.bf16.msra.mxu0 %v15360_v2 }
 0x2ad   : > { %5732 = vmatpush.bf16.msrb.mxu2 %v12915_v54  ;;  %v5423_v48 = vsel %vm1378_vm2, %v14838_v23, %v5353_v55  ;;  %v15387_v23 = vld [vmem:[%s17058_s6 + $0x40] sm:$0xff] }
 0x2ae   : > { %5745 = vmatpush.bf16.msrb.mxu3 %v12924_v13  ;;  %v3743_v57 = vpack.c.bf16 %v3741_v44, %v3741_v44  ;;  %v5425_v35 = vsel %vm869_vm0, %v5423_v48, %v5362_v38  ;;  %v15395_v54 = vld [vmem:[%s17058_s6 + $0xe0] sm:$0xff]  ;;  %v5312_v38 = vrot.slane %v14912_v16, 2  ;;  %v4197_v16 = vpop.f32.mrf.mxu3 }
 0x2af   : > { %6153 = vmatpush.bf16.msra.mxu1 %v15257_v60  ;;  %v5427_v52 = vsel %vm1383_vm3, %v5425_v35, %v5372_v37  ;;  %v5378_v37 = vrot.slane %v14900_v0, 2 }
 0x2b0   : > { %3746 = vst.msk [vmem:[#allocation3 + $0x20] sm:$0xf] %vm1730_vm4, %v3743_v57  ;;  %5733 = vmatmul.bf16.vlgmr.msrb.gmra.mxu2 %v5427_v52  ;;  %6197 = vmatpush.bf16.msra.mxu0 %v15374_v22  ;;  %v5416_v57 = vsel %vm1378_vm2, %v5312_v38, %v15319_v6 }
 0x2b1   : > { %6164 = vmatpush.bf16.msra.mxu2 %v15251_v58  ;;  %v3738_v1 = vpop.f32.mrf.mxu2 }
 0x2b2   : > { %5746 = vmatpush.bf16.msrb.mxu3 %v12923_v21  ;;  %v3739_v13 = vadd.f32 %v3738_v1, %v3725_v11  ;;  %v15448_v11 = vld [vmem:[%s17058_s6 + $0xc0] sm:$0xff]  ;;  %v5340_v1 = vpop.permute.xlu2 %5339 }
 0x2b3   : > { %6154 = vmatpush.bf16.msra.mxu1 %v15278_v15 }
 0x2b4   : > { %v3742_v63 = vmax.f32 %v3739_v13, 0.0 }
 0x2b5   : > { %6165 = vmatpush.bf16.msra.mxu2 %v15272_v14 }
 0x2b6   : > { %6177 = vmatpush.bf16.msra.mxu3 %v15316_v24  ;;  %v3744_v21 = vpack.c.bf16 %v3742_v63, %v3742_v63 }
 0x2b7   : > { %6155 = vmatpush.bf16.msra.mxu1 %v15307_v59  ;;  %v15417_v18 = vld [vmem:[#allocation3 + $0x20] sm:$0xf] }
 0x2b8   : > { %v3748_v12 = vsel %vm14717_vm7, %v3744_v21, %v3747_v40  ;;  %v6326_v42 = vunpack.c.l.b16 %v15417_v18  ;;  %v11476_v40 = vld [vmem:[#allocation3 + $0x20] sm:$0xe] }
 0x2b9   : > { %6166 = vmatpush.bf16.msra.mxu2 %v15301_v39  ;;  %v5396_v10 = vpop.permute.xlu1 %5395  ;;  %3749 = vst [vmem:[#allocation3 + $0x24] sm:$0x1] %v3748_v12 }
 0x2ba   : > { %6178 = vmatpush.bf16.msra.mxu3 %v15342_v33  ;;  %v6327_v20 = vpack.c.b16 %v6326_v42, %v6326_v42  ;;  %v15460_v42 = vld [vmem:[%s17058_s6 + $0x38] sm:$0xff] }
 0x2bb   : > { %6156 = vmatpush.bf16.msra.mxu1 %v15331_v3 }
 0x2bc   : > { %6427 = vrot.lane.b32.xlu0 %v6327_v20, %s17117_s23  ;;  %v6331_v55 = vshll.u32 %v6327_v20, 16  ;;  %v6329_v48 = vshrl.u32 %v6327_v20, 16 }
 0x2bd   : > { %6167 = vmatpush.bf16.msra.mxu2 %v15325_v30 }
 0x2be   : > { %6179 = vmatpush.bf16.msra.mxu3 %v15366_v56  ;;  %v5386_v44 = vpop.permute.xlu0 %5385  ;;  %v6333_v45 = vrot.slane %v6331_v55, 1 }
 0x2bf   : > { %6157 = vmatpush.bf16.msra.mxu1 %v15355_v43  ;;  %v5431_v13 = vsel %vm1378_vm2, %v5378_v37, %v5386_v44  ;;  %v13295_v37 = vld [vmem:[%s17119_s5] ss:$0 sm:$0xff] }
 0x2c0   : > { %v15442_v52 = vor.u32 %v6333_v45, %v6329_v48  ;;  %v12971_v63 = vld [vmem:[#allocation3 + $0x20] sm:$0x10]  ;;  %v5433_v12 = vsel %vm869_vm0, %v5431_v13, %v5396_v10  ;;  %v15470_v10 = vld [vmem:[%s17058_s6 + $0x30] sm:$0xff] }
 0x2c1   : > { %6168 = vmatpush.bf16.msra.mxu2 %v15349_v62  ;;  %v5330_v35 = vpop.permute.xlu1 %5329  ;;  %v11477_v20 = vor.u32 %v12971_v63, %v11476_v40  ;;  %v12931_v48 = vld [vmem:[#allocation3] sm:$0x10]  ;;  %v4198_v40 = vadd.f32 %v13295_v37, %v4197_v16 }
 0x2c2   : > { %6180 = vmatpush.bf16.msra.mxu3 %v15395_v54  ;;  %v5418_v0 = vsel %vm869_vm0, %v5416_v57, %v5330_v35  ;;  %6335 = vrot.lane.b32.xlu1 %v15442_v52, %s17117_s23  ;;  %v4211_v57 = vpop.f32.mrf.mxu1  ;;  %v4199_v35 = vpop.f32.mrf.mxu3 }
 0x2c3   : > { %6158 = vmatpush.bf16.msra.mxu1 %v15387_v23  ;;  %v5420_v6 = vsel %vm1383_vm3, %v5418_v0, %v5340_v1  ;;  %v15473_v38 = vrot.slane %v11477_v20, 1  ;;  %v11314_v1 = vld [vmem:[#allocation3] sm:$0xe] }
 0x2c4   : > { %5719 = vmatmul.bf16.vlgmr.msrb.gmra.mxu1 %v5420_v6  ;;  %v11315_v13 = vor.u32 %v12931_v48, %v11314_v1 }
 0x2c5   : > { %6169 = vmatpush.bf16.msra.mxu2 %v15381_v34 }
 0x2c6   : > { %6181 = vmatpush.bf16.msra.mxu3 %v15409_v53  ;;  %v5406_v21 = vpop.permute.xlu0 %5405  ;;  %v5788_v20 = vrot.slane %v11315_v13, 1 }
 0x2c7   : > { %6251 = vmatpush.bf16.msrb.mxu1 %v15460_v42  ;;  %v5435_v44 = vsel %vm1383_vm3, %v5433_v12, %v5406_v21  ;;  %v5793_v21 = vpop.permute.xlu2 %5792  ;;  %v4212_v12 = vadd.f32 %v4211_v57, %v4198_v40  ;;  %v4200_v57 = vadd.f32 %v13295_v37, %v4199_v35 }
 0x2c8   : > { %5747 = vmatmul.bf16.vlgmr.msrb.gmra.mxu3 %v5435_v44  ;;  %v15498_v44 = vld [vmem:[%s17058_s6 + $0x20] sm:$0xff] }
 0x2c9   : > { %6170 = vmatpush.bf16.msra.mxu2 %v15402_v36  ;;  %v5782_v55 = vpop.permute.xlu1 %5781 }
 0x2ca   : > { %6182 = vmatpush.bf16.msra.mxu3 %v15426_v7  ;;  %v5829_v45 = vsel %vm869_vm0, %v14920_v50, %v5782_v55  ;;  %6429 = vrot.lane.b32.xlu1 %v15473_v38, %s17117_s23  ;;  %v15487_v50 = vld [vmem:[%s17058_s6 + $0x28] sm:$0xff]  ;;  %v4213_v48 = vpop.f32.mrf.mxu1 }
 0x2cb   : > { %6252 = vmatpush.bf16.msrb.mxu1 %v15470_v10  ;;  %6146 = vmatmul.bf16.vlgmr.msrb.gmra.mxu0 %v5829_v45  ;;  %v4225_v63 = vpop.f32.mrf.mxu2 }
 0x2cc   : > { %6290 = vmatpush.bf16.msrb.mxu0 %v15316_v24  ;;  %v4226_v16 = vadd.f32 %v4225_v63, %v4212_v12 }
 0x2cd   : > { %6171 = vmatpush.bf16.msra.mxu2 %v15415_v17 }
 0x2ce   : > { %6183 = vmatpush.bf16.msra.mxu3 %v15435_v47  ;;  %v5808_v0 = vpop.permute.xlu0 %5807 }
 0x2cf   : > { %6253 = vmatpush.bf16.msrb.mxu1 %v15487_v50  ;;  %v5837_v6 = vsel %vm869_vm0, %v14988_v61, %v5808_v0  ;;  %v5833_v61 = vsel %vm869_vm0, %v5788_v20, %v5793_v21  ;;  %v4214_v0 = vadd.f32 %v4213_v48, %v4200_v57 }
 0x2d0   : > { %6172 = vmatmul.bf16.vlgmr.msra.gmra.mxu2 %v5837_v6  ;;  %6291 = vmatpush.bf16.msrb.mxu0 %v15342_v33 }
 0x2d1   : > { %6264 = vmatpush.bf16.msrb.mxu2 %v15211_v8 }
 0x2d2   : > { %6184 = vmatpush.bf16.msra.mxu3 %v15448_v11  ;;  %v4700_v35 = vpop.f32.mrf.mxu1 }
 0x2d3   : > { %6254 = vmatpush.bf16.msrb.mxu1 %v15498_v44  ;;  %v4239_v55 = vpop.f32.mrf.mxu3  ;;  %v4227_v13 = vpop.f32.mrf.mxu2 }
 0x2d4   : > { %6159 = vmatmul.bf16.vlgmr.msra.gmra.mxu1 %v5833_v61  ;;  %v4240_v45 = vadd.f32 %v4239_v55, %v4226_v16  ;;  %6292 = vmatpush.bf16.msrb.mxu0 %v15366_v56  ;;  %v4228_v63 = vadd.f32 %v4227_v13, %v4214_v0  ;;  %v4250_v61 = vld [vmem:[#allocation3 + $0x2c] sm:$0x1]  ;;  %v6209_v16 = vpop.permute.xlu2 %6208 }
 0x2d5   : > { %6265 = vmatpush.bf16.msrb.mxu2 %v15232_v19 }
 0x2d6   : > { %6277 = vmatpush.bf16.msrb.mxu3 %v15251_v58  ;;  %v4244_v1 = vmax.f32 %v4240_v45, 0.0 }
 0x2d7   : > { %6255 = vmatpush.bf16.msrb.mxu1 %v15082_v26 }
 0x2d8   : > { %v4246_v6 = vpack.c.bf16 %v4244_v1, %v4244_v1  ;;  %6293 = vmatpush.bf16.msrb.mxu0 %v15395_v54  ;;  %v13307_v1 = vld [vmem:[#allocation3 + $0x8] sm:$0xf] }
 0x2d9   : > { %6266 = vmatpush.bf16.msrb.mxu2 %v15257_v60  ;;  %v6234_v13 = vsel %vm869_vm0, %v13307_v1, %v6209_v16 }
 0x2da   : > { %6278 = vmatpush.bf16.msrb.mxu3 %v15272_v14  ;;  %4249 = vst.msk [vmem:[#allocation3 + $0x28] sm:$0xf] %vm1730_vm4, %v4246_v6 }
 0x2db   : > { %6256 = vmatpush.bf16.msrb.mxu1 %v15246_v25  ;;  %11468 = vmatmul.msk.bf16.vlgmr.msra.gmra.mxu0 %vm869_vm0, %v15119_v29  ;;  %v4241_v37 = vpop.f32.mrf.mxu3 }
 0x2dc   : > { %v4242_v40 = vadd.f32 %v4241_v37, %v4228_v63  ;;  %6294 = vmatpush.bf16.msrb.mxu0 %v15409_v53  ;;  %v13296_v63 = vld [vmem:[%s17119_s5] ss:$0 sm:$0xff]  ;;  %v4702_v37 = vpop.f32.mrf.mxu1 }
 0x2dd   : > { %6267 = vmatpush.bf16.msrb.mxu2 %v15278_v15  ;;  %v6211_v21 = vpop.permute.xlu1 %6210 }
 0x2de   : > { %6279 = vmatpush.bf16.msrb.mxu3 %v15301_v39  ;;  %v6238_v12 = vsel %vm869_vm0, %v15008_v41, %v6211_v21  ;;  %v4245_v20 = vmax.f32 %v4242_v40, 0.0  ;;  %v4714_v40 = vpop.f32.mrf.mxu2 }
 0x2df   : > { %6257 = vmatpush.bf16.msrb.mxu1 %v15266_v9 }
 0x2e0   : > { %v4247_v55 = vpack.c.bf16 %v4245_v20, %v4245_v20  ;;  %6295 = vmatpush.bf16.msrb.mxu0 %v15426_v7 }
 0x2e1   : > { %6268 = vmatpush.bf16.msrb.mxu2 %v15307_v59  ;;  %v15525_v48 = vld [vmem:[#allocation3 + $0x28] sm:$0xf] }
 0x2e2   : > { %6280 = vmatpush.bf16.msrb.mxu3 %v15325_v30  ;;  %v4251_v41 = vsel %vm14717_vm7, %v4247_v55, %v4250_v61  ;;  %v6432_v57 = vunpack.c.l.b16 %v15525_v48  ;;  %v4701_v61 = vadd.f32 %v13296_v63, %v4700_v35  ;;  %v11481_v35 = vld [vmem:[#allocation3 + $0x28] sm:$0xe] }
 0x2e3   : > { %6258 = vmatpush.bf16.msrb.mxu1 %v15287_v31  ;;  %v5820_v45 = vpop.permute.xlu0 %5819  ;;  %4252 = vst [vmem:[#allocation3 + $0x2c] sm:$0x1] %v4251_v41 }
 0x2e4   : > { %v5841_v0 = vsel %vm869_vm0, %v15049_v5, %v5820_v45  ;;  %v6433_v6 = vpack.c.b16 %v6432_v57, %v6432_v57  ;;  %6296 = vmatpush.bf16.msrb.mxu0 %v15435_v47  ;;  %v4728_v5 = vpop.f32.mrf.mxu3  ;;  %v4715_v55 = vadd.f32 %v4714_v40, %v4701_v61  ;;  %v4703_v40 = vadd.f32 %v13296_v63, %v4702_v37 }
 0x2e5   : > { %6269 = vmatpush.bf16.msrb.mxu2 %v15331_v3  ;;  %6185 = vmatmul.bf16.vlgmr.msra.gmra.mxu3 %v5841_v0 }
 0x2e6   : > { %6281 = vmatpush.bf16.msrb.mxu3 %v15349_v62  ;;  %6259 = vmatmul.bf16.vlgmr.msrb.gmra.mxu1 %v6234_v13  ;;  %v6437_v21 = vshll.u32 %v6433_v6, 16  ;;  %v4729_v45 = vadd.f32 %v4728_v5, %v4715_v55 }
 0x2e7   : > { %6307 = vmatpush.bf16.msra.mxu1 %v15295_v49  ;;  %6533 = vrot.lane.b32.xlu0 %v6433_v6, %s17117_s23 }
 0x2e8   : > { %v6439_v20 = vrot.slane %v6437_v21, 1  ;;  %6297 = vmatpush.bf16.msrb.mxu0 %v15448_v11 }
 0x2e9   : > { %6270 = vmatpush.bf16.msrb.mxu2 %v15355_v43 }
 0x2ea   : > { %6282 = vmatpush.bf16.msrb.mxu3 %v15381_v34  ;;  %v12972_v41 = vld [vmem:[#allocation3 + $0x28] sm:$0x10] }
 0x2eb   : > { %6308 = vmatpush.bf16.msra.mxu1 %v15336_v32  ;;  %v11482_v1 = vor.u32 %v12972_v41, %v11481_v35  ;;  %v6213_v5 = vpop.permute.xlu0 %6212  ;;  %v4753_v35 = vld [vmem:[#allocation3 + $0x34] sm:$0x1] }
 0x2ec   : > { %6383 = vmatpush.bf16.msra.mxu0 %v15251_v58  ;;  %v6242_v41 = vsel %vm869_vm0, %v15086_v4, %v6213_v5 }
 0x2ed   : > { %6271 = vmatpush.bf16.msrb.mxu2 %v15387_v23  ;;  %v4742_v57 = vpop.f32.mrf.mxu1 }
 0x2ee   : > { %6283 = vmatpush.bf16.msrb.mxu3 %v15402_v36  ;;  %v4743_v13 = vadd.f32 %v4742_v57, %v4729_v45 }
 0x2ef   : > { %6309 = vmatpush.bf16.msra.mxu1 %v15360_v2 }
 0x2f0   : > { %6272 = vmatmul.bf16.vlgmr.msrb.gmra.mxu2 %v6238_v12  ;;  %v6435_v12 = vshrl.u32 %v6433_v6, 16  ;;  %v4716_v6 = vpop.f32.mrf.mxu2  ;;  %6384 = vmatpush.bf16.msra.mxu0 %v15272_v14  ;;  %v4747_v21 = vmax.f32 %v4743_v13, 0.0 }
 0x2f1   : > { %6357 = vmatpush.bf16.msra.mxu2 %v15460_v42  ;;  %v4717_v61 = vadd.f32 %v4716_v6, %v4703_v40 }
 0x2f2   : > { %6284 = vmatpush.bf16.msrb.mxu3 %v15415_v17  ;;  %v15545_v16 = vor.u32 %v6439_v20, %v6435_v12  ;;  %v4730_v12 = vpop.f32.mrf.mxu3  ;;  %v15559_v20 = vrot.slane %v11482_v1, 1  ;;  %v4749_v55 = vpack.c.bf16 %v4747_v21, %v4747_v21  ;;  %v6322_v21 = vpop.permute.xlu2 %6321 }
 0x2f3   : > { %6310 = vmatpush.bf16.msra.mxu1 %v15374_v22  ;;  %v4731_v63 = vadd.f32 %v4730_v12, %v4717_v61  ;;  %v6344_v61 = vsel %vm869_vm0, %v15119_v29, %v6322_v21 }
 0x2f4   : > { %6441 = vrot.lane.b32.xlu2 %v15545_v16, %s17117_s23  ;;  %6385 = vmatpush.bf16.msra.mxu0 %v15301_v39  ;;  %4752 = vst.msk [vmem:[#allocation3 + $0x30] sm:$0xf] %vm1730_vm4, %v4749_v55 }
 0x2f5   : > { %6358 = vmatpush.bf16.msra.mxu2 %v15470_v10  ;;  %6285 = vmatmul.bf16.vlgmr.msrb.gmra.mxu3 %v6242_v41  ;;  %v4744_v37 = vpop.f32.mrf.mxu1 }
 0x2f6   : > { %6370 = vmatpush.bf16.msra.mxu3 %v15211_v8  ;;  %11473 = vmatmul.msk.bf16.vlgmr.msra.gmra.mxu1 %vm869_vm0, %v15226_v28  ;;  %v4745_v45 = vadd.f32 %v4744_v37, %v4731_v63 }
 0x2f7   : > { %6396 = vmatpush.bf16.msrb.mxu1 %v15316_v24 }
 0x2f8   : > { %6386 = vmatpush.bf16.msra.mxu0 %v15325_v30  ;;  %v4748_v4 = vmax.f32 %v4745_v45, 0.0 }
 0x2f9   : > { %6359 = vmatpush.bf16.msra.mxu2 %v15487_v50 }
 0x2fa   : > { %6371 = vmatpush.bf16.msra.mxu3 %v15232_v19  ;;  %v4750_v57 = vpack.c.bf16 %v4748_v4, %v4748_v4 }
 0x2fb   : > { %6397 = vmatpush.bf16.msrb.mxu1 %v15342_v33  ;;  %v15578_v1 = vld [vmem:[#allocation3 + $0x30] sm:$0xf] }
 0x2fc   : > { %6535 = vrot.lane.b32.xlu2 %v15559_v20, %s17117_s23  ;;  %6387 = vmatpush.bf16.msra.mxu0 %v15349_v62  ;;  %v4754_v13 = vsel %vm14717_vm7, %v4750_v57, %v4753_v35  ;;  %v11486_v41 = vld [vmem:[#allocation3 + $0x30] sm:$0xe]  ;;  %v5203_v35 = vpop.f32.mrf.mxu2 }
 0x2fd   : > { %6360 = vmatpush.bf16.msra.mxu2 %v15498_v44  ;;  %4755 = vst [vmem:[#allocation3 + $0x34] sm:$0x1] %v4754_v13  ;;  %v5217_v13 = vpop.f32.mrf.mxu3 }
 0x2fe   : > { %6372 = vmatpush.bf16.msra.mxu3 %v15257_v60 }
 0x2ff   : > { %6398 = vmatpush.bf16.msrb.mxu1 %v15366_v56 }
 0x300   : > { %6388 = vmatpush.bf16.msra.mxu0 %v15381_v34 }
 0x301   : > { %6361 = vmatpush.bf16.msra.mxu2 %v15082_v26 }
 0x302   : > { %6373 = vmatpush.bf16.msra.mxu3 %v15278_v15 }
 0x303   : > { %6399 = vmatpush.bf16.msrb.mxu1 %v15395_v54 }
 0x304   : > { %6389 = vmatpush.bf16.msra.mxu0 %v15402_v36  ;;  %v12973_v63 = vld [vmem:[#allocation3 + $0x30] sm:$0x10]  ;;  %v5205_v57 = vpop.f32.mrf.mxu2 }
 0x305   : > { %6362 = vmatpush.bf16.msra.mxu2 %v15246_v25  ;;  %v11487_v37 = vor.u32 %v12973_v63, %v11486_v41  ;;  %v5219_v41 = vpop.f32.mrf.mxu3 }
 0x306   : > { %6374 = vmatpush.bf16.msra.mxu3 %v15307_v59 }
 0x307   : > { %6400 = vmatpush.bf16.msrb.mxu1 %v15409_v53  ;;  %v15606_v29 = vrot.slane %v11487_v37, 1 }
 0x308   : > { %v6225_v45 = vpop.permute.xlu1 %6224  ;;  %6390 = vmatpush.bf16.msra.mxu0 %v15415_v17 }
 0x309   : > { %6363 = vmatpush.bf16.msra.mxu2 %v15266_v9  ;;  %v6246_v4 = vsel %vm869_vm0, %v15182_v27, %v6225_v45  ;;  %6641 = vrot.lane.b32.xlu0 %v15606_v29, %s17117_s23  ;;  %v13297_v27 = vld [vmem:[%s17119_s5] ss:$0 sm:$0xff] }
 0x30a   : > { %6375 = vmatpush.bf16.msra.mxu3 %v15331_v3  ;;  %6298 = vmatmul.bf16.vlgmr.msrb.gmra.mxu0 %v6246_v4  ;;  %v5206_v63 = vadd.f32 %v13297_v27, %v5205_v57 }
 0x30b   : > { %6401 = vmatpush.bf16.msrb.mxu1 %v15426_v7 }
 0x30c   : > { %6476 = vmatpush.bf16.msrb.mxu0 %v15211_v8 }
 0x30d   : > { %6364 = vmatpush.bf16.msra.mxu2 %v15287_v31 }
 0x30e   : > { %6376 = vmatpush.bf16.msra.mxu3 %v15355_v43 }
 0x30f   : > { %6402 = vmatpush.bf16.msrb.mxu1 %v15435_v47 }
 0x310   : > { %6365 = vmatmul.bf16.vlgmr.msra.gmra.mxu2 %v5841_v0  ;;  %v6538_v0 = vunpack.c.l.b16 %v15578_v1  ;;  %6477 = vmatpush.bf16.msrb.mxu0 %v15232_v19 }
 0x311   : > { %6413 = vmatpush.bf16.msrb.mxu2 %v15295_v49 }
 0x312   : > { %v6539_v6 = vpack.c.b16 %v6538_v0, %v6538_v0  ;;  %6377 = vmatpush.bf16.msra.mxu3 %v15387_v23  ;;  %v5231_v0 = vpop.f32.mrf.mxu1 }
 0x313   : > { %6403 = vmatpush.bf16.msrb.mxu1 %v15448_v11 }
 0x314   : > { %6639 = vrot.lane.b32.xlu2 %v6539_v6, %s17117_s23  ;;  %v6543_v40 = vshll.u32 %v6539_v6, 16  ;;  %v6541_v5 = vshrl.u32 %v6539_v6, 16  ;;  %6478 = vmatpush.bf16.msrb.mxu0 %v15257_v60  ;;  %v5204_v6 = vadd.f32 %v13297_v27, %v5203_v35 }
 0x315   : > { %6414 = vmatpush.bf16.msrb.mxu2 %v15336_v32  ;;  %6378 = vmatmul.bf16.vlgmr.msra.gmra.mxu3 %v6344_v61 }
 0x316   : > { %v6545_v12 = vrot.slane %v6543_v40, 1  ;;  %6463 = vmatpush.bf16.msrb.mxu3 %v15460_v42  ;;  %v6324_v40 = vpop.permute.xlu0 %6323  ;;  %v5218_v21 = vadd.f32 %v5217_v13, %v5204_v6  ;;  %v5256_v6 = vld [vmem:[#allocation3 + $0x3c] sm:$0x1] }
 0x317   : > { %6489 = vmatpush.bf16.msra.mxu1 %v15251_v58 }
 0x318   : > { %v15595_v55 = vor.u32 %v6545_v12, %v6541_v5  ;;  %6479 = vmatpush.bf16.msrb.mxu0 %v15278_v15  ;;  %v6348_v5 = vsel %vm869_vm0, %v15214_v46, %v6324_v40  ;;  %v5220_v46 = vadd.f32 %v5219_v41, %v5206_v63 }
 0x319   : > { %6415 = vmatpush.bf16.msrb.mxu2 %v15360_v2 }
 0x31a   : > { %6547 = vrot.lane.b32.xlu1 %v15595_v55, %s17117_s23  ;;  %6464 = vmatpush.bf16.msrb.mxu3 %v15470_v10  ;;  %v5233_v45 = vpop.f32.mrf.mxu1 }
 0x31b   : > { %6490 = vmatpush.bf16.msra.mxu1 %v15272_v14  ;;  %6391 = vmatmul.bf16.vlgmr.msra.gmra.mxu0 %v6348_v5  ;;  %v5234_v13 = vadd.f32 %v5233_v45, %v5220_v46 }
 0x31c   : > { %6480 = vmatpush.bf16.msrb.mxu0 %v15307_v59 }
 0x31d   : > { %6416 = vmatpush.bf16.msrb.mxu2 %v15374_v22  ;;  %v5245_v12 = vpop.f32.mrf.mxu2 }
 0x31e   : > { %6465 = vmatpush.bf16.msrb.mxu3 %v15487_v50 }
 0x31f   : > { %6491 = vmatpush.bf16.msra.mxu1 %v15301_v39 }
 0x320   : > { %11478 = vmatmul.msk.bf16.vlgmr.msrb.gmra.mxu2 %vm869_vm0, %v15473_v38  ;;  %6481 = vmatpush.bf16.msrb.mxu0 %v15331_v3 }
 0x321   : > { %6502 = vmatpush.bf16.msra.mxu2 %v15316_v24 }
 0x322   : > { %6466 = vmatpush.bf16.msrb.mxu3 %v15498_v44 }
 0x323   : > { %6492 = vmatpush.bf16.msra.mxu1 %v15325_v30 }
 0x324   : > { %6482 = vmatpush.bf16.msrb.mxu0 %v15355_v43 }
 0x325   : > { %6503 = vmatpush.bf16.msra.mxu2 %v15342_v33  ;;  %v5247_v27 = vpop.f32.mrf.mxu2 }
 0x326   : > { %6467 = vmatpush.bf16.msrb.mxu3 %v15082_v26  ;;  %v5232_v26 = vadd.f32 %v5231_v0, %v5218_v21  ;;  %v5248_v57 = vadd.f32 %v5247_v27, %v5234_v13 }
 0x327   : > { %6493 = vmatpush.bf16.msra.mxu1 %v15349_v62 }
 0x328   : > { %v5246_v61 = vadd.f32 %v5245_v12, %v5232_v26  ;;  %v5251_v0 = vmax.f32 %v5248_v57, 0.0  ;;  %6483 = vmatpush.bf16.msrb.mxu0 %v15387_v23 }
 0x329   : > { %6504 = vmatpush.bf16.msra.mxu2 %v15366_v56 }
 0x32a   : > { %6468 = vmatpush.bf16.msrb.mxu3 %v15246_v25  ;;  %v5250_v37 = vmax.f32 %v5246_v61, 0.0  ;;  %v5253_v40 = vpack.c.bf16 %v5251_v0, %v5251_v0  ;;  %v5706_v0 = vpop.f32.mrf.mxu3 }
 0x32b   : > { %6494 = vmatpush.bf16.msra.mxu1 %v15381_v34 }
 0x32c   : > { %v5252_v35 = vpack.c.bf16 %v5250_v37, %v5250_v37  ;;  %6569 = vmatpush.bf16.msra.mxu0 %v15460_v42  ;;  %v5257_v21 = vsel %vm14717_vm7, %v5253_v40, %v5256_v6  ;;  %v15688_v6 = vld [vmem:[%s17058_s6 + $0x18] sm:$0xff] }
 0x32d   : > { %6505 = vmatpush.bf16.msra.mxu2 %v15395_v54  ;;  %5258 = vst [vmem:[#allocation3 + $0x3c] sm:$0x1] %v5257_v21 }
 0x32e   : > { %6469 = vmatpush.bf16.msrb.mxu3 %v15266_v9  ;;  %5255 = vst.msk [vmem:[#allocation3 + $0x38] sm:$0xf] %vm1730_vm4, %v5252_v35  ;;  %v6428_v12 = vpop.permute.xlu0 %6427 }
 0x32f   : > { %6495 = vmatpush.bf16.msra.mxu1 %v15402_v36  ;;  %v6450_v41 = vsel %vm869_vm0, %v15226_v28, %v6428_v12 }
 0x330   : > { %6570 = vmatpush.bf16.msra.mxu0 %v15470_v10 }
 0x331   : > { %6506 = vmatpush.bf16.msra.mxu2 %v15409_v53  ;;  %6484 = vmatmul.bf16.vlgmr.msrb.gmra.mxu0 %v6450_v41 }
 0x332   : > { %6470 = vmatpush.bf16.msrb.mxu3 %v15287_v31 }
 0x333   : > { %6496 = vmatpush.bf16.msra.mxu1 %v15415_v17  ;;  %v5734_v40 = vpop.f32.mrf.mxu2 }
 0x334   : > { %6571 = vmatpush.bf16.msra.mxu0 %v15487_v50  ;;  %v12974_v35 = vld [vmem:[#allocation3 + $0x38] sm:$0x10]  ;;  %v6336_v28 = vpop.permute.xlu1 %6335 }
 0x335   : > { %6507 = vmatpush.bf16.msra.mxu2 %v15426_v7  ;;  %6471 = vmatmul.bf16.vlgmr.msrb.gmra.mxu3 %v6246_v4  ;;  %v15653_v4 = vld [vmem:[#allocation3 + $0x38] sm:$0xf]  ;;  %v6352_v27 = vsel %vm869_vm0, %v15417_v18, %v6336_v28 }
 0x336   : > { %6519 = vmatpush.bf16.msra.mxu3 %v15295_v49  ;;  %v6644_v5 = vunpack.c.l.b16 %v15653_v4  ;;  %v11491_v46 = vld [vmem:[#allocation3 + $0x38] sm:$0xe]  ;;  %6404 = vmatmul.bf16.vlgmr.msrb.gmra.mxu1 %v6352_v27  ;;  %v13298_v18 = vld [vmem:[%s17119_s5] ss:$0 sm:$0xff] }
 0x337   : > { %v11492_v13 = vor.u32 %v12974_v35, %v11491_v46  ;;  %6582 = vmatpush.bf16.msrb.mxu1 %v15211_v8 }
 0x338   : > { %v6645_v26 = vpack.c.b16 %v6644_v5, %v6644_v5  ;;  %6572 = vmatpush.bf16.msra.mxu0 %v15498_v44  ;;  %v5708_v5 = vpop.f32.mrf.mxu3 }
 0x339   : > { %6508 = vmatpush.bf16.msra.mxu2 %v15435_v47  ;;  %v15678_v57 = vrot.slane %v11492_v13, 1  ;;  %v5709_v46 = vadd.f32 %v13298_v18, %v5708_v5 }
 0x33a   : > { %6520 = vmatpush.bf16.msra.mxu3 %v15336_v32  ;;  %6745 = vrot.lane.b32.xlu2 %v6645_v26, %s17117_s23  ;;  %v6649_v61 = vshll.u32 %v6645_v26, 16  ;;  %v6647_v63 = vshrl.u32 %v6645_v26, 16  ;;  %v5707_v26 = vadd.f32 %v13298_v18, %v5706_v0 }
 0x33b   : > { %6747 = vrot.lane.b32.xlu0 %v15678_v57, %s17117_s23  ;;  %6583 = vmatpush.bf16.msrb.mxu1 %v15232_v19 }
 0x33c   : > { %v6651_v37 = vrot.slane %v6649_v61, 1  ;;  %6573 = vmatpush.bf16.msra.mxu0 %v15688_v6  ;;  %v6430_v12 = vpop.permute.xlu1 %6429 }
 0x33d   : > { %6509 = vmatpush.bf16.msra.mxu2 %v15448_v11  ;;  %v6454_v61 = vsel %vm869_vm0, %v15442_v52, %v6430_v12  ;;  %v5736_v52 = vpop.f32.mrf.mxu2 }
 0x33e   : > { %6521 = vmatpush.bf16.msra.mxu3 %v15360_v2  ;;  %v15668_v45 = vor.u32 %v6651_v37, %v6647_v63 }
 0x33f   : > { %6584 = vmatpush.bf16.msrb.mxu1 %v15257_v60 }
 0x340   : > { %6653 = vrot.lane.b32.xlu1 %v15668_v45, %s17117_s23  ;;  %6574 = vmatpush.bf16.msra.mxu0 %v15246_v25 }
 0x341   : > { %6595 = vmatpush.bf16.msrb.mxu2 %v15251_v58  ;;  %v5720_v21 = vpop.f32.mrf.mxu1 }
 0x342   : > { %6522 = vmatpush.bf16.msra.mxu3 %v15374_v22  ;;  %v5721_v25 = vadd.f32 %v5720_v21, %v5707_v26 }
 0x343   : > { %6585 = vmatpush.bf16.msrb.mxu1 %v15278_v15 }
 0x344   : > { %6575 = vmatpush.bf16.msra.mxu0 %v15266_v9  ;;  %v5735_v37 = vadd.f32 %v5734_v40, %v5721_v25 }
 0x345   : > { %6596 = vmatpush.bf16.msrb.mxu2 %v15272_v14  ;;  %11483 = vmatmul.msk.bf16.vlgmr.msra.gmra.mxu3 %vm869_vm0, %v15559_v20 }
 0x346   : > { %6608 = vmatpush.bf16.msrb.mxu3 %v15316_v24  ;;  %6497 = vmatmul.bf16.vlgmr.msra.gmra.mxu1 %v6454_v61 }
 0x347   : > { %6586 = vmatpush.bf16.msrb.mxu1 %v15307_v59 }
 0x348   : > { %6576 = vmatpush.bf16.msra.mxu0 %v15287_v31  ;;  %v15714_v63 = vpop.f32.mrf.mxu0 }
 0x349   : > { %6597 = vmatpush.bf16.msrb.mxu2 %v15301_v39  ;;  %v5722_v31 = vpop.f32.mrf.mxu1 }
 0x34a   : > { %6609 = vmatpush.bf16.msrb.mxu3 %v15342_v33 }
 0x34b   : > { %6577 = vmatmul.bf16.vlgmr.msra.gmra.mxu0 %v6352_v27  ;;  %6587 = vmatpush.bf16.msrb.mxu1 %v15331_v3 }
 0x34c   : > { %6625 = vmatpush.bf16.msrb.mxu0 %v15295_v49  ;;  %v5748_v49 = vpop.f32.mrf.mxu3 }
 0x34d   : > { %6598 = vmatpush.bf16.msrb.mxu2 %v15325_v30  ;;  %v5749_v35 = vadd.f32 %v5748_v49, %v5735_v37 }
 0x34e   : > { %6610 = vmatpush.bf16.msrb.mxu3 %v15366_v56  ;;  %v6442_v41 = vpop.permute.xlu2 %6441 }
 0x34f   : > { %v15711_v9 = vsel %vm869_vm0, %v15525_v48, %v6442_v41  ;;  %v5723_v48 = vadd.f32 %v5722_v31, %v5709_v46  ;;  %v5753_v13 = vmax.f32 %v5749_v35, 0.0  ;;  %6588 = vmatpush.bf16.msrb.mxu1 %v15355_v43 }
 0x350   : > { %6510 = vmatmul.bf16.vlgmr.msra.gmra.mxu2 %v15711_v9  ;;  %6626 = vmatpush.bf16.msrb.mxu0 %v15336_v32 }
 0x351   : > { %6599 = vmatpush.bf16.msrb.mxu2 %v15349_v62  ;;  %v5755_v28 = vpack.c.bf16 %v5753_v13, %v5753_v13  ;;  %v6160_v32 = vpop.f32.mrf.mxu1  ;;  %v5737_v27 = vadd.f32 %v5736_v52, %v5723_v48  ;;  %v13314_v48 = vld [vmem:[%s17058_s6 + $0xb0] sm:$0xff] }
 0x352   : > { %6611 = vmatpush.bf16.msrb.mxu3 %v15395_v54 }
 0x353   : > { %5758 = vst.msk [vmem:[#allocation3 + $0x40] sm:$0xf] %vm1730_vm4, %v5755_v28  ;;  %v6173_v18 = vpop.f32.mrf.mxu2  ;;  %6589 = vmatpush.bf16.msrb.mxu1 %v15387_v23  ;;  %v13315_v28 = vld [vmem:[%s17058_s6 + $0x110] sm:$0xff] }
 0x354   : > { %6627 = vmatpush.bf16.msrb.mxu0 %v15360_v2  ;;  %v5750_v0 = vpop.f32.mrf.mxu3 }
 0x355   : > { %6600 = vmatpush.bf16.msrb.mxu2 %v15381_v34 }
 0x356   : > { %6612 = vmatpush.bf16.msrb.mxu3 %v15409_v53  ;;  %v6536_v40 = vpop.permute.xlu2 %6535 }
 0x357   : > { %6675 = vmatpush.bf16.msra.mxu1 %v15460_v42 }
 0x358   : > { %6628 = vmatpush.bf16.msrb.mxu0 %v15374_v22 }
 0x359   : > { %6601 = vmatpush.bf16.msrb.mxu2 %v15402_v36  ;;  %v6534_v12 = vpop.permute.xlu0 %6533 }
 0x35a   : > { %6613 = vmatpush.bf16.msrb.mxu3 %v15426_v7  ;;  %v15739_v26 = vld [vmem:[#allocation3 + $0x40] sm:$0xf] }
 0x35b   : > { %11488 = vmatmul.msk.bf16.vlgmr.msrb.gmra.mxu0 %vm869_vm0, %v15606_v29  ;;  %6676 = vmatpush.bf16.msra.mxu1 %v15470_v10  ;;  %v6175_v25 = vpop.f32.mrf.mxu2 }
 0x35c   : > { %6714 = vmatpush.bf16.msra.mxu0 %v15316_v24  ;;  %v13326_v25 = vld [vmem:[%s17058_s6 + $0x60] sm:$0xff] }
 0x35d   : > { %6602 = vmatpush.bf16.msrb.mxu2 %v15415_v17 }
 0x35e   : > { %6614 = vmatpush.bf16.msrb.mxu3 %v15435_v47 }
 0x35f   : > { %6677 = vmatpush.bf16.msra.mxu1 %v15487_v50 }
 0x360   : > { %6715 = vmatpush.bf16.msra.mxu0 %v15342_v33  ;;  %v6750_v33 = vunpack.c.l.b16 %v15739_v26 }
 0x361   : > { %6688 = vmatpush.bf16.msra.mxu2 %v15211_v8  ;;  %v6149_v8 = vpop.f32.mrf.mxu0 }
 0x362   : > { %6615 = vmatpush.bf16.msrb.mxu3 %v15448_v11  ;;  %v6751_v61 = vpack.c.b16 %v6750_v33, %v6750_v33 }
 0x363   : > { %6678 = vmatpush.bf16.msra.mxu1 %v15498_v44 }
 0x364   : > { %6716 = vmatpush.bf16.msra.mxu0 %v15366_v56  ;;  %v6755_v51 = vshll.u32 %v6751_v61, 16 }
 0x365   : > { %6689 = vmatpush.bf16.msra.mxu2 %v15232_v19  ;;  %v5751_v19 = vadd.f32 %v5750_v0, %v5737_v27 }
 0x366   : > { %6701 = vmatpush.bf16.msra.mxu3 %v15251_v58  ;;  %v5759_v58 = vld [vmem:[#allocation3 + $0x44] sm:$0x1]  ;;  %v6757_v41 = vrot.slane %v6755_v51, 1 }
 0x367   : > { %v5754_v21 = vmax.f32 %v5751_v19, 0.0  ;;  %6679 = vmatpush.bf16.msra.mxu1 %v15688_v6  ;;  %v13318_v19 = vld [vmem:[%s17058_s6 + $0x78] sm:$0xff] }
 0x368   : > { %6717 = vmatpush.bf16.msra.mxu0 %v15395_v54 }
 0x369   : > { %6690 = vmatpush.bf16.msra.mxu2 %v15257_v60  ;;  %v5756_v5 = vpack.c.bf16 %v5754_v21, %v5754_v21  ;;  %v6560_v60 = vsel %vm869_vm0, %v15545_v16, %v6536_v40  ;;  %v6199_v24 = vpop.f32.mrf.mxu0  ;;  %v6556_v16 = vsel %vm869_vm0, %v15473_v38, %v6534_v12  ;;  %v6753_v38 = vshrl.u32 %v6751_v61, 16  ;;  %v13321_v21 = vld [vmem:[%s17058_s6 + $0x70] sm:$0xff] }
 0x36a   : > { %6702 = vmatpush.bf16.msra.mxu3 %v15272_v14  ;;  %6603 = vmatmul.bf16.vlgmr.msrb.gmra.mxu2 %v6560_v60 }
 0x36b   : > { %v5760_v14 = vsel %vm14717_vm7, %v5756_v5, %v5759_v58  ;;  %6590 = vmatmul.bf16.vlgmr.msrb.gmra.mxu1 %v6556_v16  ;;  %v13322_v58 = vld [vmem:[%s17058_s6 + $0xf0] sm:$0xff] }
 0x36c   : > { %5761 = vst [vmem:[#allocation3 + $0x44] sm:$0x1] %v5760_v14  ;;  %6718 = vmatpush.bf16.msra.mxu0 %v15409_v53  ;;  %v13324_v14 = vld [vmem:[%s17058_s6 + $0x90] sm:$0xff] }
 0x36d   : > { %6691 = vmatpush.bf16.msra.mxu2 %v15278_v15  ;;  %v6162_v15 = vpop.f32.mrf.mxu1 }
 0x36e   : > { %6703 = vmatpush.bf16.msra.mxu3 %v15301_v39  ;;  %v15755_v39 = vld [vmem:[%s17059_s7] ss:$0 sm:$0xff]  ;;  %v13325_v15 = vld [vmem:[%s17058_s6 + $0xe8] sm:$0xff] }
 0x36f   : > { %v6148_v56 = vadd.f32 %v15755_v39, %v15714_v63  ;;  %v6186_v63 = vpop.f32.mrf.mxu3 }
 0x370   : > { %6719 = vmatpush.bf16.msra.mxu0 %v15426_v7 }
 0x371   : > { %6692 = vmatpush.bf16.msra.mxu2 %v15307_v59  ;;  %v6201_v59 = vpop.f32.mrf.mxu0 }
 0x372   : > { %6704 = vmatpush.bf16.msra.mxu3 %v15325_v30  ;;  %v6758_v30 = vor.u32 %v6757_v41, %v6753_v38  ;;  %v13327_v41 = vld [vmem:[%s17058_s6 + $0xe0] sm:$0xff] }
 0x373   : > { %v15766_v37 = vpop.f32.mrf.mxu2 }
 0x374   : > { %6759 = vrot.lane.b32.xlu1 %v6758_v30, %s17117_s23  ;;  %6720 = vmatpush.bf16.msra.mxu0 %v15435_v47  ;;  %v13328_v30 = vld [vmem:[%s17058_s6 + $0x108] sm:$0xff] }
 0x375   : > { %6693 = vmatpush.bf16.msra.mxu2 %v15331_v3  ;;  %v15764_v31 = vpop.f32.mrf.mxu1  ;;  %v6161_v3 = vadd.f32 %v6160_v32, %v6148_v56  ;;  %v13329_v56 = vld [vmem:[%s17058_s6 + $0x58] sm:$0xff] }
 0x376   : > { %6705 = vmatpush.bf16.msra.mxu3 %v15349_v62  ;;  %v6640_v62 = vpop.permute.xlu2 %6639  ;;  %v6261_v40 = vadd.f32 %v15755_v39, %v15764_v31  ;;  %v13330_v31 = vld [vmem:[%s17058_s6 + $0x80] sm:$0xff] }
 0x377   : > { %v6662_v54 = vsel %vm869_vm0, %v15559_v20, %v6640_v62  ;;  %v6188_v47 = vpop.f32.mrf.mxu3  ;;  %v13331_v62 = vld [vmem:[%s17058_s6 + $0xd8] sm:$0xff] }
 0x378   : > { %6721 = vmatpush.bf16.msra.mxu0 %v15448_v11  ;;  %v6274_v60 = vadd.f32 %v15766_v37, %v6261_v40 }
 0x379   : > { %6694 = vmatpush.bf16.msra.mxu2 %v15355_v43  ;;  %v6174_v43 = vadd.f32 %v6173_v18, %v6161_v3  ;;  %v13317_v18 = vld [vmem:[%s17058_s6 + $0xa0] sm:$0xff]  ;;  %v11496_v3 = vld [vmem:[#allocation3 + $0x40] sm:$0xe] }
 0x37a   : > { %6706 = vmatpush.bf16.msra.mxu3 %v15381_v34  ;;  %v13309_v34 = vld [vmem:[%s17058_s6 + $0x10] sm:$0xff] }
 0x37b   : > { %6680 = vmatpush.bf16.msra.mxu1 %v13309_v34  ;;  %v6187_v53 = vadd.f32 %v6186_v63, %v6174_v43 }
 0x37d   : > { %6695 = vmatpush.bf16.msra.mxu2 %v15387_v23  ;;  %v6262_v52 = vpop.f32.mrf.mxu1  ;;  %v6275_v23 = vpop.f32.mrf.mxu2  ;;  %v6200_v7 = vadd.f32 %v6199_v24, %v6187_v53  ;;  %v13323_v24 = vld [vmem:[%s17058_s6 + $0x68] sm:$0xff]  ;;  %v13333_v53 = vld [vmem:[%s17058_s6 + $0x50] sm:$0xff] }
 0x37e   : > { %6707 = vmatpush.bf16.msra.mxu3 %v15402_v36 }
 0x37f   : > { %v6203_v20 = vmax.f32 %v6200_v7, 0.0  ;;  %v6286_v8 = vpop.f32.mrf.mxu3  ;;  %v13334_v7 = vld [vmem:[%s17058_s6 + $0xd0] sm:$0xff] }
 0x380   : > { %6696 = vmatmul.bf16.vlgmr.msra.gmra.mxu2 %v6662_v54  ;;  %v6287_v12 = vadd.f32 %v6286_v8, %v6274_v60  ;;  %v13332_v54 = vld [vmem:[%s17058_s6 + $0x100] sm:$0xff] }
 0x381   : > { %6781 = vmatpush.bf16.msrb.mxu2 %v15460_v42  ;;  %v13310_v42 = vld [vmem:[%s17058_s6 + $0x8] sm:$0xff]  ;;  %v15789_v49 = vpack.c.bf16 %v6203_v20, %v6203_v20  ;;  %v13338_v8 = vld [vmem:[%s17058_s6 + $0xc0] sm:$0xff] }
 0x382   : > { %6708 = vmatpush.bf16.msra.mxu3 %v15415_v17  ;;  %6681 = vmatpush.bf16.msra.mxu1 %v13310_v42  ;;  %v13312_v17 = vld [vmem:[%s17058_s6] sm:$0xff] }
 0x383   : > { %v6849_v46 = vunpack.c.l.b16 %v15789_v49 }
 0x385   : > { %6782 = vmatpush.bf16.msrb.mxu2 %v15470_v10  ;;  %v13311_v10 = vld [vmem:[%s17058_s6 + $0xb8] sm:$0xff]  ;;  %v6312_v11 = vpop.f32.mrf.mxu1  ;;  %v15802_v35 = vpack.c.b16 %v6849_v46, %v6849_v46  ;;  %v13336_v46 = vld [vmem:[%s17058_s6 + $0xc8] sm:$0xff] }
 0x386   : > { %6807 = vmatpush.bf16.msrb.mxu0 %v13311_v10  ;;  %6682 = vmatpush.bf16.msra.mxu1 %v13312_v17  ;;  %v13335_v10 = vld [vmem:[%s17058_s6 + $0x48] sm:$0xff] }
 0x387   : > { %v15809_v13 = vshrl.u32 %v15802_v35, 16  ;;  %v6299_v33 = vpop.f32.mrf.mxu0 }
 0x388   : > { %v6300_v16 = vadd.f32 %v6299_v33, %v6287_v12  ;;  %v12988_v12 = vld [vmem:[%s17060_s8 + $0x60] sm:$0xff] }
 0x389   : > { %6783 = vmatpush.bf16.msrb.mxu2 %v15487_v50  ;;  %v13313_v50 = vld [vmem:[%s17058_s6 + $0x118] sm:$0xff]  ;;  %6683 = vmatmul.bf16.vlgmr.msra.gmra.mxu1 %v15711_v9  ;;  %v13316_v9 = vld [vmem:[%s17058_s6 + $0xa8] sm:$0xff] }
 0x38a   : > { %6731 = vmatpush.bf16.msrb.mxu1 %v13313_v50  ;;  %6808 = vmatpush.bf16.msrb.mxu0 %v13314_v48  ;;  %v6313_v38 = vadd.f32 %v6312_v11, %v6300_v16  ;;  %v13337_v48 = vld [vmem:[%s17058_s6 + $0x40] sm:$0xff] }
 0x38b   : > { %6854 = vrot.lane.b32.xlu2 %v15809_v13, %s17117_s23 }
 0x38c   : > { %v6548_v32 = vpop.permute.xlu1 %6547 }
 0x38d   : > { %6784 = vmatpush.bf16.msrb.mxu2 %v15498_v44  ;;  %v6857_v44 = vrot.slane %v15809_v13, 1  ;;  %v6564_v27 = vsel %vm869_vm0, %v15578_v1, %v6548_v32  ;;  %v13320_v1 = vld [vmem:[%s17058_s6 + $0x98] sm:$0xff] }
 0x38e   : > { %6732 = vmatpush.bf16.msrb.mxu1 %v13315_v28  ;;  %6809 = vmatpush.bf16.msrb.mxu0 %v13316_v9  ;;  %v12982_v9 = vld [vmem:[%s17060_s8 + $0x30] sm:$0xff] }
 0x38f   : > { %6858 = vrot.lane.b32.xlu1 %v6857_v44, %s17117_s23  ;;  %6616 = vmatmul.bf16.vlgmr.msrb.gmra.mxu3 %v6564_v27  ;;  %v6301_v43 = vpop.f32.mrf.mxu0  ;;  %v6861_v44 = vrot.slane %v15809_v13, 2 }
 0x390   : > { %6794 = vmatpush.bf16.msrb.mxu3 %v13318_v19  ;;  %v12979_v19 = vld [vmem:[%s17060_s8 + $0x18] sm:$0xff] }
 0x391   : > { %6785 = vmatpush.bf16.msrb.mxu2 %v15688_v6  ;;  %v6314_v6 = vpop.f32.mrf.mxu1 }
 0x392   : > { %6733 = vmatpush.bf16.msrb.mxu1 %v15360_v2  ;;  %6810 = vmatpush.bf16.msrb.mxu0 %v13317_v18  ;;  %v13319_v2 = vld [vmem:[%s17058_s6 + $0xf8] sm:$0xff] }
 0x393   : > { %v15825_v0 = vpop.f32.mrf.mxu2  ;;  %v12991_v18 = vld [vmem:[%s17060_s8 + $0x78] sm:$0xff] }
 0x394   : > { %6795 = vmatpush.bf16.msrb.mxu3 %v13321_v21  ;;  %v12990_v21 = vld [vmem:[%s17060_s8 + $0x70] sm:$0xff] }
 0x395   : > { %6786 = vmatpush.bf16.msrb.mxu2 %v13309_v34 }
 0x396   : > { %6734 = vmatpush.bf16.msrb.mxu1 %v15374_v22  ;;  %6811 = vmatpush.bf16.msrb.mxu0 %v13320_v1  ;;  %v6288_v22 = vpop.f32.mrf.mxu3 }
 0x397   : > { %v12978_v22 = vld [vmem:[%s17060_s8 + $0x10] sm:$0xff] }
 0x398   : > { %6796 = vmatpush.bf16.msrb.mxu3 %v13323_v24  ;;  %v6392_v11 = vpop.f32.mrf.mxu0  ;;  %v12977_v24 = vld [vmem:[%s17060_s8 + $0x8] sm:$0xff] }
 0x399   : > { %6787 = vmatpush.bf16.msrb.mxu2 %v13310_v42  ;;  %11493 = vmatmul.msk.bf16.vlgmr.msrb.gmra.mxu1 %vm869_vm0, %v15678_v57  ;;  %v6642_v57 = vpop.permute.xlu0 %6641 }
 0x39a   : > { %6820 = vmatpush.bf16.msra.mxu1 %v13319_v2  ;;  %6812 = vmatpush.bf16.msrb.mxu0 %v13324_v14  ;;  %v6666_v51 = vsel %vm869_vm0, %v15595_v55, %v6642_v57  ;;  %v12975_v55 = vld [vmem:[#allocation3 + $0x40] sm:$0x10]  ;;  %v12976_v57 = vld [vmem:[%s17060_s8] sm:$0xff] }
 0x39b   : > { %v6368_v5 = vpop.f32.mrf.mxu2  ;;  %v11497_v63 = vor.u32 %v12975_v55, %v11496_v3  ;;  %v12986_v55 = vld [vmem:[%s17060_s8 + $0x50] sm:$0xff]  ;;  %v13013_v3 = vld [vmem:[%s17060_s8 + $0x128] sm:$0xff] }
 0x39c   : > { %6797 = vmatpush.bf16.msrb.mxu3 %v13326_v25  ;;  %v13015_v25 = vld [vmem:[%s17060_s8 + $0x138] sm:$0xff] }
 0x39d   : > { %6788 = vmatpush.bf16.msrb.mxu2 %v13312_v17  ;;  %v6766_v20 = vrot.slane %v11497_v63, 1  ;;  %v12983_v17 = vld [vmem:[%s17060_s8 + $0x38] sm:$0xff] }
 0x39e   : > { %6821 = vmatpush.bf16.msra.mxu1 %v13322_v58  ;;  %6813 = vmatpush.bf16.msrb.mxu0 %v15402_v36  ;;  %v15864_v61 = vpop.f32.mrf.mxu3  ;;  %v6316_v36 = vmax.f32 %v6313_v38, 0.0  ;;  %v12989_v58 = vld [vmem:[%s17060_s8 + $0x68] sm:$0xff] }
 0x39f   : > { %6709 = vmatmul.bf16.vlgmr.msra.gmra.mxu3 %v6666_v51 }
 0x3a0   : > { %6789 = vmatmul.bf16.vlgmr.msrb.gmra.mxu2 %v6564_v27  ;;  %6798 = vmatpush.bf16.msrb.mxu3 %v13329_v56  ;;  %v6317_v37 = vpack.c.bf16 %v6316_v36, %v6316_v36  ;;  %v6394_v13 = vpop.f32.mrf.mxu0  ;;  %v12980_v27 = vld [vmem:[%s17060_s8 + $0x20] sm:$0xff] }
 0x3a1   : > { %6837 = vmatpush.bf16.msra.mxu2 %v13313_v50  ;;  %v6746_v50 = vpop.permute.xlu2 %6745 }
 0x3a2   : > { %6822 = vmatpush.bf16.msra.mxu1 %v13325_v15  ;;  %6814 = vmatpush.bf16.msrb.mxu0 %v13330_v31  ;;  %v6866_v34 = vunpack.c.l.b16 %v6317_v37 }
 0x3a3   : > { %v15871_v59 = vpop.f32.mrf.mxu2 }
 0x3a4   : > { %6799 = vmatpush.bf16.msrb.mxu3 %v13333_v53  ;;  %v15891_v23 = vpack.c.b16 %v6866_v34, %v6866_v34  ;;  %v12984_v34 = vld [vmem:[%s17060_s8 + $0x40] sm:$0xff] }
 0x3a5   : > { %6838 = vmatpush.bf16.msra.mxu2 %v13315_v28  ;;  %v6768_v28 = vsel %vm869_vm0, %v15606_v29, %v6746_v50  ;;  %v12981_v29 = vld [vmem:[%s17060_s8 + $0x28] sm:$0xff]  ;;  %v13022_v50 = vld [vmem:[%s17060_s8 + $0x170] sm:$0xff] }
 0x3a6   : > { %6823 = vmatpush.bf16.msra.mxu1 %v13327_v41  ;;  %v6381_v52 = vpop.f32.mrf.mxu3  ;;  %6868 = vrot.lane.b32.xlu0 %v15891_v23, %s17117_s23  ;;  %v6873_v47 = vrot.slane %v15891_v23, 1  ;;  %v6877_v32 = vrot.slane %v15891_v23, 2  ;;  %v6881_v6 = vrot.slane %v15891_v23, 3 }
 0x3a7   : > { %v13023_v52 = vld [vmem:[%s17060_s8 + $0x178] sm:$0xff] }
 0x3a8   : > { %6800 = vmatpush.bf16.msrb.mxu3 %v13335_v10  ;;  %6874 = vrot.lane.b32.xlu2 %v6873_v47, %s17117_s23  ;;  %v13007_v47 = vld [vmem:[%s17060_s8 + $0xf8] sm:$0xff] }
 0x3a9   : > { %6839 = vmatpush.bf16.msra.mxu2 %v13328_v30  ;;  %v13014_v30 = vld [vmem:[%s17060_s8 + $0x130] sm:$0xff] }
 0x3aa   : > { %6824 = vmatpush.bf16.msra.mxu1 %v13331_v62 }
 0x3ab   : > { %v6420_v42 = vpop.f32.mrf.mxu2 }
 0x3ac   : > { %6801 = vmatpush.bf16.msrb.mxu3 %v13337_v48 }
 0x3ad   : > { %6840 = vmatpush.bf16.msra.mxu2 %v13332_v54  ;;  %v6748_v33 = vpop.permute.xlu0 %6747  ;;  %v13012_v54 = vld [vmem:[%s17060_s8 + $0x120] sm:$0xff] }
 0x3ae   : > { %6825 = vmatpush.bf16.msra.mxu1 %v13334_v7  ;;  %6862 = vrot.lane.b32.xlu0 %v6861_v44, %s17117_s23  ;;  %v6485_v60 = vpop.f32.mrf.mxu0  ;;  %v6772_v36 = vsel %vm869_vm0, %v15668_v45, %v6748_v33  ;;  %v12985_v45 = vld [vmem:[%s17060_s8 + $0x48] sm:$0xff]  ;;  %v13011_v7 = vld [vmem:[%s17060_s8 + $0x118] sm:$0xff]  ;;  %v13018_v33 = vld [vmem:[%s17060_s8 + $0x150] sm:$0xff] }
 0x3af   : > { %6802 = vmatmul.bf16.vlgmr.msrb.gmra.mxu3 %v6768_v28  ;;  %v13021_v44 = vld [vmem:[%s17060_s8 + $0x168] sm:$0xff] }
 0x3b0   : > { %11498 = vmatmul.msk.bf16.vlgmr.msra.gmra.mxu2 %vm869_vm0, %v6766_v20  ;;  %8658 = vmatpush.bf16.msra.mxu3 %v12983_v17  ;;  %v12999_v20 = vld [vmem:[%s17060_s8 + $0xb8] sm:$0xff]  ;;  %v12998_v17 = vld [vmem:[%s17060_s8 + $0xb0] sm:$0xff] }
 0x3b1   : > { %6878 = vrot.lane.b32.xlu2 %v6877_v32, %s17117_s23  ;;  %8697 = vmatpush.bf16.msrb.mxu2 %v13007_v47 }
 0x3b2   : > { %6826 = vmatpush.bf16.msra.mxu1 %v13336_v46  ;;  %v6654_v1 = vpop.permute.xlu1 %6653 }
 0x3b3   : > { %v6670_v40 = vsel %vm869_vm0, %v15653_v4, %v6654_v1  ;;  %v6367_v4 = vadd.f32 %v15755_v39, %v15825_v0  ;;  %v6405_v0 = vpop.f32.mrf.mxu1  ;;  %v12996_v1 = vld [vmem:[%s17060_s8 + $0xa0] sm:$0xff] }
 0x3b4   : > { %8659 = vmatpush.bf16.msra.mxu3 %v12982_v9  ;;  %6722 = vmatmul.bf16.vlgmr.msra.gmra.mxu0 %v6670_v40  ;;  %v13009_v9 = vld [vmem:[%s17060_s8 + $0x108] sm:$0xff] }
 0x3b5   : > { %8671 = vmatpush.bf16.msra.mxu0 %v12991_v18  ;;  %v6380_v14 = vadd.f32 %v15864_v61, %v6367_v4  ;;  %v12987_v61 = vld [vmem:[%s17060_s8 + $0x58] sm:$0xff] }
 0x3b6   : > { %6827 = vmatpush.bf16.msra.mxu1 %v13338_v8  ;;  %6882 = vrot.lane.b32.xlu0 %v6881_v6, %s17117_s23  ;;  %v6487_v41 = vpop.f32.mrf.mxu0  ;;  %v13006_v6 = vld [vmem:[%s17060_s8 + $0xf0] sm:$0xff] }
 0x3b7   : > { %v6393_v15 = vadd.f32 %v6392_v11, %v6380_v14  ;;  %v13010_v11 = vld [vmem:[%s17060_s8 + $0x110] sm:$0xff]  ;;  %8698 = vmatpush.bf16.msrb.mxu2 %v13006_v6  ;;  %v12993_v41 = vld [vmem:[%s17060_s8 + $0x88] sm:$0xff] }
 0x3b8   : > { %8660 = vmatpush.bf16.msra.mxu3 %v12981_v29  ;;  %v15939_v2 = vpop.f32.mrf.mxu3  ;;  %v13046_v6 = vld [vmem:[%s17060_s8 + $0x230] sm:$0xff] }
 0x3b9   : > { %8672 = vmatpush.bf16.msra.mxu0 %v12990_v21  ;;  %v6406_v16 = vadd.f32 %v6405_v0, %v6393_v15  ;;  %v6473_v46 = vadd.f32 %v15755_v39, %v15939_v2  ;;  %v13008_v2 = vld [vmem:[%s17060_s8 + $0x100] sm:$0xff] }
 0x3ba   : > { %8684 = vmatpush.bf16.msrb.mxu1 %v12999_v20 }
 0x3bb   : > { %v6419_v51 = vadd.f32 %v15871_v59, %v6406_v16  ;;  %v6407_v59 = vpop.f32.mrf.mxu1  ;;  %v6486_v48 = vadd.f32 %v6485_v60, %v6473_v46  ;;  %v13054_v46 = vld [vmem:[%s17060_s8 + $0x270] sm:$0xff] }
 0x3bc   : > { %8661 = vmatpush.bf16.msra.mxu3 %v12980_v27  ;;  %v12997_v27 = vld [vmem:[%s17060_s8 + $0xa8] sm:$0xff] }
 0x3bd   : > { %8673 = vmatpush.bf16.msra.mxu0 %v12989_v58  ;;  %v6422_v56 = vmax.f32 %v6419_v51, 0.0  ;;  %v13017_v51 = vld [vmem:[%s17060_s8 + $0x148] sm:$0xff] }
 0x3be   : > { %8685 = vmatpush.bf16.msrb.mxu1 %v12998_v17  ;;  %v13028_v17 = vld [vmem:[%s17060_s8 + $0x1a0] sm:$0xff] }
 0x3bf   : > { %v15979_v31 = vpack.c.bf16 %v6422_v56, %v6422_v56 }
 0x3c0   : > { %8662 = vmatpush.bf16.msra.mxu3 %v12979_v19  ;;  %v6474_v5 = vpop.f32.mrf.mxu3  ;;  %v13020_v19 = vld [vmem:[%s17060_s8 + $0x160] sm:$0xff] }
 0x3c1   : > { %8674 = vmatpush.bf16.msra.mxu0 %v12988_v12  ;;  %v6885_v37 = vunpack.c.l.b16 %v15979_v31  ;;  %v13019_v5 = vld [vmem:[%s17060_s8 + $0x158] sm:$0xff] }
 0x3c2   : > { %8686 = vmatpush.bf16.msrb.mxu1 %v12997_v27  ;;  %v13038_v27 = vld [vmem:[%s17060_s8 + $0x1f0] sm:$0xff] }
 0x3c3   : > { %v15988_v62 = vpack.c.b16 %v6885_v37, %v6885_v37  ;;  %v6498_v42 = vpop.f32.mrf.mxu1 }
 0x3c4   : > { %8663 = vmatpush.bf16.msra.mxu3 %v12978_v22  ;;  %6815 = vmatmul.bf16.vlgmr.msrb.gmra.mxu0 %v6772_v36  ;;  %v6499_v28 = vadd.f32 %v6498_v42, %v6486_v48  ;;  %v13005_v22 = vld [vmem:[%s17060_s8 + $0xe8] sm:$0xff]  ;;  %v13002_v36 = vld [vmem:[%s17060_s8 + $0xd0] sm:$0xff] }
 0x3c5   : > { %8675 = vmatpush.bf16.msra.mxu0 %v12987_v61  ;;  %v6888_v63 = vshrl.u32 %v15988_v62, 16  ;;  %8699 = vmatpush.bf16.msrb.mxu2 %v13005_v22  ;;  %v13003_v61 = vld [vmem:[%s17060_s8 + $0xd8] sm:$0xff] }
 0x3c6   : > { %8687 = vmatpush.bf16.msrb.mxu1 %v12996_v1  ;;  %v13051_v22 = vld [vmem:[%s17060_s8 + $0x258] sm:$0xff] }
 0x3c7   : > { %6890 = vrot.lane.b32.xlu1 %v6888_v63, %s17117_s23  ;;  %v6925_v53 = vrot.slane %v6888_v63, 1  ;;  %v13000_v63 = vld [vmem:[%s17060_s8 + $0xc0] sm:$0xff] }
 0x3c8   : > { %8664 = vmatpush.bf16.msra.mxu3 %v12977_v24  ;;  %v6524_v38 = vpop.f32.mrf.mxu3  ;;  %v16007_v10 = vpop.f32.mrf.mxu0  ;;  %v12995_v24 = vld [vmem:[%s17060_s8 + $0x98] sm:$0xff] }
 0x3c9   : > { %8676 = vmatpush.bf16.msra.mxu0 %v12986_v55  ;;  %6926 = vrot.lane.b32.xlu2 %v6925_v53, %s17117_s23  ;;  %v13016_v55 = vld [vmem:[%s17060_s8 + $0x140] sm:$0xff]  ;;  %v13029_v53 = vld [vmem:[%s17060_s8 + $0x1a8] sm:$0xff] }
 0x3ca   : > { %8688 = vmatpush.bf16.msrb.mxu1 %v12995_v24 }
 0x3cb   : > { %v6500_v32 = vpop.f32.mrf.mxu1 }
 0x3cc   : > { %8665 = vmatpush.bf16.msra.mxu3 %v12976_v57 }
 0x3cd   : > { %8677 = vmatpush.bf16.msra.mxu0 %v12985_v45  ;;  %v13001_v45 = vld [vmem:[%s17060_s8 + $0xc8] sm:$0xff] }
 0x3d0   : > { %8710 = vmatpush.bf16.msrb.mxu3 %v13015_v25  ;;  %v6526_v43 = vpop.f32.mrf.mxu3  ;;  %v6580_v29 = vpop.f32.mrf.mxu0  ;;  %v12994_v25 = vld [vmem:[%s17060_s8 + $0x90] sm:$0xff] }
 0x3d1   : > { %8678 = vmatpush.bf16.msra.mxu0 %v12984_v34  ;;  %8689 = vmatpush.bf16.msrb.mxu1 %v12994_v25  ;;  %v13031_v43 = vld [vmem:[%s17060_s8 + $0x1b8] sm:$0xff]  ;;  %v13030_v34 = vld [vmem:[%s17060_s8 + $0x1b0] sm:$0xff] }
 0x3d2   : > { %v13026_v29 = vld [vmem:[%s17060_s8 + $0x190] sm:$0xff]  ;;  %v13035_v25 = vld [vmem:[%s17060_s8 + $0x1d8] sm:$0xff] }
 0x3d3   : > { %v6511_v8 = vpop.f32.mrf.mxu2 }
 0x3d4   : > { %8711 = vmatpush.bf16.msrb.mxu3 %v13014_v30  ;;  %v6512_v13 = vadd.f32 %v6511_v8, %v6499_v28  ;;  %v13027_v28 = vld [vmem:[%s17060_s8 + $0x198] sm:$0xff]  ;;  %v13053_v8 = vld [vmem:[%s17060_s8 + $0x268] sm:$0xff] }
 0x3d5   : > { %8723 = vmatpush.bf16.msrb.mxu0 %v13023_v52  ;;  %8690 = vmatpush.bf16.msrb.mxu1 %v12993_v41  ;;  %v6856_v52 = vrot.slane %v15802_v35, 1 }
 0x3d6   : > { %v6525_v18 = vadd.f32 %v6524_v38, %v6512_v13  ;;  %v13052_v13 = vld [vmem:[%s17060_s8 + $0x260] sm:$0xff] }
 0x3d8   : > { %8712 = vmatpush.bf16.msrb.mxu3 %v13013_v3  ;;  %v6528_v40 = vmax.f32 %v6525_v18, 0.0  ;;  %v16056_v12 = vpop.f32.mrf.mxu0  ;;  %v12992_v3 = vld [vmem:[%s17060_s8 + $0x80] sm:$0xff] }
 0x3d9   : > { %8724 = vmatpush.bf16.msrb.mxu0 %v13022_v50  ;;  %8691 = vmatpush.bf16.msrb.mxu1 %v12992_v3  ;;  %v16130_v50 = vshrl.u32 %v15891_v23, 16  ;;  %v13047_v23 = vld [vmem:[%s17060_s8 + $0x238] sm:$0xff]  ;;  %v13034_v3 = vld [vmem:[%s17060_s8 + $0x1d0] sm:$0xff] }
 0x3da   : > { %v6529_v58 = vpack.c.bf16 %v6528_v40, %v6528_v40  ;;  %v13037_v40 = vld [vmem:[%s17060_s8 + $0x1e8] sm:$0xff] }
 0x3db   : > { %v6513_v60 = vpop.f32.mrf.mxu2 }
 0x3dc   : > { %8713 = vmatpush.bf16.msrb.mxu3 %v13012_v54  ;;  %v6930_v14 = vunpack.c.l.b16 %v6529_v58  ;;  %v13045_v58 = vld [vmem:[%s17060_s8 + $0x228] sm:$0xff] }
 0x3dd   : > { %8725 = vmatpush.bf16.msrb.mxu0 %v13021_v44  ;;  %v13039_v44 = vld [vmem:[%s17060_s8 + $0x1f8] sm:$0xff] }
 0x3de   : > { %v16063_v0 = vpack.c.b16 %v6930_v14, %v6930_v14  ;;  %v13050_v14 = vld [vmem:[%s17060_s8 + $0x250] sm:$0xff] }
 0x3e0   : > { %8714 = vmatpush.bf16.msrb.mxu3 %v13011_v7  ;;  %6939 = vrot.lane.b32.xlu1 %v16063_v0, %s17117_s23  ;;  %v6632_v30 = vpop.f32.mrf.mxu0  ;;  %v6932_v56 = vrot.slane %v16063_v0, 7  ;;  %v6945_v37 = vrot.slane %v16063_v0, 2  ;;  %v13055_v7 = vld [vmem:[%s17060_s8 + $0x278] sm:$0xff] }
 0x3e1   : > { %8726 = vmatpush.bf16.msrb.mxu0 %v13020_v19  ;;  %v13025_v19 = vld [vmem:[%s17060_s8 + $0x188] sm:$0xff] }
 0x3e4   : > { %8715 = vmatpush.bf16.msrb.mxu3 %v13010_v11 }
 0x3e5   : > { %v6855_v21 = vpop.permute.xlu2 %6854  ;;  %8727 = vmatpush.bf16.msrb.mxu0 %v13019_v5  ;;  %v13024_v5 = vld [vmem:[%s17060_s8 + $0x180] sm:$0xff] }
 0x3e6   : > { %v6894_v4 = vsel %vm869_vm0, %v15789_v49, %v6855_v21  ;;  %v6760_v15 = vpop.permute.xlu1 %6759  ;;  %v13004_v49 = vld [vmem:[%s17060_s8 + $0xe0] sm:$0xff]  ;;  %v6876_v21 = vrot.slane %v16130_v50, 1 }
 0x3e7   : > { %8666 = vmatmul.bf16.vlgmr.msra.gmra.mxu3 %v6894_v4  ;;  %v6776_v57 = vsel %vm869_vm0, %v15739_v26, %v6760_v15  ;;  %v6941_v26 = vrot.slane %v16063_v0, 1  ;;  %8700 = vmatpush.bf16.msrb.mxu2 %v13004_v49  ;;  %v13036_v49 = vld [vmem:[%s17060_s8 + $0x1e0] sm:$0xff] }
 0x3e8   : > { %8716 = vmatpush.bf16.msrb.mxu3 %v13009_v9  ;;  %6828 = vmatmul.bf16.vlgmr.msra.gmra.mxu1 %v6776_v57  ;;  %v16068_v16 = vpop.f32.mrf.mxu1  ;;  %v13044_v57 = vld [vmem:[%s17060_s8 + $0x220] sm:$0xff] }
 0x3e9   : > { %6942 = vrot.lane.b32.xlu0 %v6941_v26, %s17117_s23  ;;  %8728 = vmatpush.bf16.msrb.mxu0 %v13018_v33  ;;  %v13049_v26 = vld [vmem:[%s17060_s8 + $0x248] sm:$0xff] }
 0x3ea   : > { %6933 = vrot.lane.b32.xlu1 %v6932_v56, %s17117_s23  ;;  %8736 = vmatpush.bf16.msra.mxu1 %v13031_v43 }
 0x3eb   : > { %8701 = vmatpush.bf16.msrb.mxu2 %v13003_v61  ;;  %v13043_v61 = vld [vmem:[%s17060_s8 + $0x218] sm:$0xff] }
 0x3ec   : > { %8717 = vmatpush.bf16.msrb.mxu3 %v13008_v2  ;;  %v6579_v2 = vadd.f32 %v15755_v39, %v16007_v10 }
 0x3ed   : > { %v16083_v38 = vpop.f32.mrf.mxu2  ;;  %8729 = vmatpush.bf16.msrb.mxu0 %v13017_v51 }
 0x3ee   : > { %8737 = vmatpush.bf16.msra.mxu1 %v13030_v34  ;;  %v6592_v10 = vadd.f32 %v16068_v16, %v6579_v2  ;;  %v13041_v34 = vld [vmem:[%s17060_s8 + $0x208] sm:$0xff] }
 0x3ef   : > { %8702 = vmatpush.bf16.msrb.mxu2 %v13002_v36  ;;  %v13048_v36 = vld [vmem:[%s17060_s8 + $0x240] sm:$0xff] }
 0x3f0   : > { %v6593_v59 = vpop.f32.mrf.mxu1  ;;  %8762 = vmatpush.bf16.msra.mxu3 %v13047_v23  ;;  %v6605_v60 = vadd.f32 %v16083_v38, %v6592_v10 }
 0x3f1   : > { %6946 = vrot.lane.b32.xlu0 %v6945_v37, %s17117_s23  ;;  %8730 = vmatpush.bf16.msrb.mxu0 %v13016_v55 }
 0x3f2   : > { %8738 = vmatpush.bf16.msra.mxu1 %v13029_v53  ;;  %v6860_v53 = vrot.slane %v15802_v35, 2 }
 0x3f3   : > { %8703 = vmatpush.bf16.msrb.mxu2 %v13001_v45  ;;  %v13042_v45 = vld [vmem:[%s17060_s8 + $0x210] sm:$0xff] }
 0x3f4   : > { %8763 = vmatpush.bf16.msra.mxu3 %v13046_v6  ;;  %v13062_v6 = vld [vmem:[%s17060_s8 + $0x2b0] sm:$0xff] }
 0x3f5   : > { %v6606_v54 = vpop.f32.mrf.mxu2 }
 0x3f6   : > { %8739 = vmatpush.bf16.msra.mxu1 %v13028_v17 }
 0x3f7   : > { %8704 = vmatpush.bf16.msrb.mxu2 %v13000_v63  ;;  %v13033_v63 = vld [vmem:[%s17060_s8 + $0x1c8] sm:$0xff] }
 0x3f8   : > { %8764 = vmatpush.bf16.msra.mxu3 %v13045_v58 }
 0x3fa   : > { %8740 = vmatpush.bf16.msra.mxu1 %v13027_v28  ;;  %v13079_v28 = vld [vmem:[%s17060_s8 + $0x338] sm:$0xff] }
 0x3fb   : > { %8749 = vmatpush.bf16.msra.mxu2 %v13039_v44  ;;  %v13070_v44 = vld [vmem:[%s17060_s8 + $0x2f0] sm:$0xff] }
 0x3fc   : > { %8765 = vmatpush.bf16.msra.mxu3 %v13044_v57  ;;  %v13066_v57 = vld [vmem:[%s17060_s8 + $0x2d0] sm:$0xff] }
 0x3fe   : > { %8741 = vmatpush.bf16.msra.mxu1 %v13026_v29 }
 0x3ff   : > { %8750 = vmatpush.bf16.msra.mxu2 %v13038_v27  ;;  %v13087_v27 = vld [vmem:[%s17060_s8 + $0x378] sm:$0xff] }
 0x400   : > { %8766 = vmatpush.bf16.msra.mxu3 %v13043_v61 }
 0x401   : > { %v6859_v42 = vpop.permute.xlu1 %6858 }
 0x402   : > { %v6898_v47 = vsel %vm869_vm0, %v6856_v52, %v6859_v42  ;;  %v6875_v11 = vpop.permute.xlu2 %6874  ;;  %8742 = vmatpush.bf16.msra.mxu1 %v13025_v19  ;;  %v13068_v19 = vld [vmem:[%s17060_s8 + $0x2e0] sm:$0xff] }
 0x403   : > { %v16120_v20 = vpop.f32.mrf.mxu2  ;;  %8679 = vmatmul.bf16.vlgmr.msra.gmra.mxu0 %v6898_v47  ;;  %v6910_v9 = vsel %vm869_vm0, %v16130_v50, %v6875_v11  ;;  %8751 = vmatpush.bf16.msra.mxu2 %v13037_v40  ;;  %v13071_v11 = vld [vmem:[%s17060_s8 + $0x2f8] sm:$0xff]  ;;  %v6880_v40 = vrot.slane %v16130_v50, 2 }
 0x404   : > { %8775 = vmatpush.bf16.msra.mxu0 %v13055_v7  ;;  %8718 = vmatmul.bf16.vlgmr.msrb.gmra.mxu3 %v6910_v9  ;;  %v13078_v9 = vld [vmem:[%s17060_s8 + $0x330] sm:$0xff]  ;;  %v13067_v50 = vld [vmem:[%s17060_s8 + $0x2d8] sm:$0xff] }
 0x405   : > { %8767 = vmatpush.bf16.msra.mxu3 %v13042_v45  ;;  %v13064_v45 = vld [vmem:[%s17060_s8 + $0x2c0] sm:$0xff] }
 0x406   : > { %v16132_v48 = vpop.f32.mrf.mxu1  ;;  %8743 = vmatpush.bf16.msra.mxu1 %v13024_v5 }
 0x407   : > { %8752 = vmatpush.bf16.msra.mxu2 %v13036_v49  ;;  %v6685_v58 = vadd.f32 %v15755_v39, %v16132_v48  ;;  %v13075_v48 = vld [vmem:[%s17060_s8 + $0x318] sm:$0xff] }
 0x408   : > { %8776 = vmatpush.bf16.msra.mxu0 %v13054_v46  ;;  %v13032_v46 = vld [vmem:[%s17060_s8 + $0x1c0] sm:$0xff] }
 0x409   : > { %8768 = vmatpush.bf16.msra.mxu3 %v13041_v34  ;;  %v6698_v49 = vadd.f32 %v16120_v20, %v6685_v58  ;;  %v13059_v20 = vld [vmem:[%s17060_s8 + $0x298] sm:$0xff]  ;;  %v13082_v34 = vld [vmem:[%s17060_s8 + $0x350] sm:$0xff]  ;;  %v13093_v58 = vld [vmem:[%s17060_s8 + $0x3a8] sm:$0xff] }
 0x40b   : > { %v6699_v32 = vpop.f32.mrf.mxu2  ;;  %v6879_v1 = vpop.permute.xlu2 %6878  ;;  %8753 = vmatpush.bf16.msra.mxu2 %v13035_v25 }
 0x40c   : > { %8777 = vmatpush.bf16.msra.mxu0 %v13053_v8  ;;  %v6914_v4 = vsel %vm869_vm0, %v6876_v21, %v6879_v1  ;;  %v13063_v8 = vld [vmem:[%s17060_s8 + $0x2b8] sm:$0xff]  ;;  %v13069_v32 = vld [vmem:[%s17060_s8 + $0x2e8] sm:$0xff]  ;;  %v13076_v1 = vld [vmem:[%s17060_s8 + $0x320] sm:$0xff]  ;;  %v6924_v21 = vrot.slane %v15988_v62, 1 }
 0x40e   : > { %v6686_v18 = vpop.f32.mrf.mxu1 }
 0x40f   : > { %8754 = vmatpush.bf16.msra.mxu2 %v13034_v3  ;;  %v13086_v18 = vld [vmem:[%s17060_s8 + $0x370] sm:$0xff] }
 0x410   : > { %8778 = vmatpush.bf16.msra.mxu0 %v13052_v13  ;;  %v13077_v13 = vld [vmem:[%s17060_s8 + $0x328] sm:$0xff]  ;;  %v13058_v3 = vld [vmem:[%s17060_s8 + $0x290] sm:$0xff] }
 0x412   : > { %v6617_v24 = vpop.f32.mrf.mxu3 }
 0x413   : > { %8731 = vmatmul.bf16.vlgmr.msrb.gmra.mxu0 %v6914_v4  ;;  %v6618_v15 = vadd.f32 %v6617_v24, %v6605_v60  ;;  %8755 = vmatpush.bf16.msra.mxu2 %v13033_v63  ;;  %v13085_v24 = vld [vmem:[%s17060_s8 + $0x368] sm:$0xff] }
 0x414   : > { %8779 = vmatpush.bf16.msra.mxu0 %v13051_v22  ;;  %v13061_v22 = vld [vmem:[%s17060_s8 + $0x2a8] sm:$0xff] }
 0x415   : > { %v6631_v16 = vadd.f32 %v16056_v12, %v6618_v15  ;;  %v6864_v12 = vrot.slane %v15802_v35, 3  ;;  %v13040_v35 = vld [vmem:[%s17060_s8 + $0x200] sm:$0xff] }
 0x416   : > { %v16190_v33 = vpop.f32.mrf.mxu1  ;;  %8769 = vmatpush.bf16.msra.mxu3 %v13040_v35  ;;  %v13060_v15 = vld [vmem:[%s17060_s8 + $0x2a0] sm:$0xff] }
 0x417   : > { %v6634_v51 = vmax.f32 %v6631_v16, 0.0  ;;  %8756 = vmatpush.bf16.msra.mxu2 %v13032_v46  ;;  %v13084_v16 = vld [vmem:[%s17060_s8 + $0x360] sm:$0xff] }
 0x418   : > { %8780 = vmatpush.bf16.msra.mxu0 %v13050_v14  ;;  %v6869_v41 = vpop.permute.xlu0 %6868  ;;  %v13056_v35 = vld [vmem:[%s17060_s8 + $0x280] sm:$0xff] }
 0x419   : > { %v16202_v38 = vpack.c.bf16 %v6634_v51, %v6634_v51  ;;  %v6906_v55 = vsel %vm869_vm0, %v6864_v12, %v6869_v41  ;;  %v13065_v41 = vld [vmem:[%s17060_s8 + $0x2c8] sm:$0xff] }
 0x41a   : > { %v6619_v30 = vpop.f32.mrf.mxu3  ;;  %8705 = vmatmul.bf16.vlgmr.msrb.gmra.mxu2 %v6906_v55  ;;  %8814 = vmatpush.bf16.msrb.mxu3 %v13079_v28 }
 0x41b   : > { %v6949_v56 = vunpack.c.l.b16 %v16202_v38  ;;  %8801 = vmatpush.bf16.msrb.mxu2 %v13071_v11  ;;  %v13083_v30 = vld [vmem:[%s17060_s8 + $0x358] sm:$0xff] }
 0x41c   : > { %8781 = vmatpush.bf16.msra.mxu0 %v13049_v26  ;;  %v13074_v26 = vld [vmem:[%s17060_s8 + $0x310] sm:$0xff] }
 0x41d   : > { %v16218_v43 = vpack.c.b16 %v6949_v56, %v6949_v56  ;;  %v13073_v56 = vld [vmem:[%s17060_s8 + $0x308] sm:$0xff] }
 0x41e   : > { %v6738_v37 = vpop.f32.mrf.mxu1  ;;  %8815 = vmatpush.bf16.msrb.mxu3 %v13078_v9 }
 0x41f   : > { %v6953_v54 = vshrl.u32 %v16218_v43, 16  ;;  %8802 = vmatpush.bf16.msrb.mxu2 %v13070_v44  ;;  %v13111_v44 = vld [vmem:[%s17060_s8 + $0x438] sm:$0xff] }
 0x420   : > { %8782 = vmatpush.bf16.msra.mxu0 %v13048_v36  ;;  %v6863_v7 = vpop.permute.xlu0 %6862 }
 0x421   : > { %6958 = vrot.lane.b32.xlu2 %v6953_v54, %s17117_s23  ;;  %v6955_v52 = vrot.slane %v6953_v54, 7  ;;  %v6902_v47 = vsel %vm869_vm0, %v6860_v53, %v6863_v7  ;;  %v13057_v53 = vld [vmem:[%s17060_s8 + $0x288] sm:$0xff] }
 0x422   : > { %v6710_v42 = vpop.f32.mrf.mxu3  ;;  %8692 = vmatmul.bf16.vlgmr.msrb.gmra.mxu1 %v6902_v47  ;;  %8816 = vmatpush.bf16.msrb.mxu3 %v13077_v13  ;;  %v13081_v7 = vld [vmem:[%s17060_s8 + $0x348] sm:$0xff] }
 0x423   : > { %v16210_v59 = vpop.f32.mrf.mxu2  ;;  %6956 = vrot.lane.b32.xlu1 %v6955_v52, %s17117_s23  ;;  %8788 = vmatpush.bf16.msrb.mxu1 %v13063_v8  ;;  %v6927_v4 = vpop.permute.xlu2 %6926  ;;  %v6711_v25 = vadd.f32 %v6710_v42, %v6698_v49  ;;  %v13080_v8 = vld [vmem:[%s17060_s8 + $0x340] sm:$0xff]  ;;  %v13101_v13 = vld [vmem:[%s17060_s8 + $0x3e8] sm:$0xff] }
 0x424   : > { %8827 = vmatpush.bf16.msrb.mxu0 %v13087_v27  ;;  %8803 = vmatpush.bf16.msrb.mxu2 %v13069_v32  ;;  %v6962_v60 = vsel %vm869_vm0, %v6924_v21, %v6927_v4  ;;  %v13110_v32 = vld [vmem:[%s17060_s8 + $0x430] sm:$0xff]  ;;  %v6936_v21 = vshrl.u32 %v16063_v0, 16  ;;  %v13105_v49 = vld [vmem:[%s17060_s8 + $0x408] sm:$0xff] }
 0x425   : > { %v7047_v39 = vrot.slane %v6962_v60, 1  ;;  %v13098_v4 = vld [vmem:[%s17060_s8 + $0x3d0] sm:$0xff]  ;;  %v13092_v60 = vld [vmem:[%s17060_s8 + $0x3a0] sm:$0xff] }
 0x426   : > { %8817 = vmatpush.bf16.msrb.mxu3 %v13076_v1  ;;  %v13094_v1 = vld [vmem:[%s17060_s8 + $0x3b0] sm:$0xff] }
 0x427   : > { %8789 = vmatpush.bf16.msrb.mxu1 %v13062_v6  ;;  %8783 = vmatmul.bf16.vlgmr.msra.gmra.mxu0 %v7047_v39  ;;  %v13109_v6 = vld [vmem:[%s17060_s8 + $0x428] sm:$0xff]  ;;  %v13106_v0 = vld [vmem:[%s17060_s8 + $0x410] sm:$0xff] }
 0x428   : > { %v6883_v2 = vpop.permute.xlu0 %6882  ;;  %8828 = vmatpush.bf16.msrb.mxu0 %v13086_v18  ;;  %8804 = vmatpush.bf16.msrb.mxu2 %v13068_v19  ;;  %v13100_v18 = vld [vmem:[%s17060_s8 + $0x3e0] sm:$0xff]  ;;  %v13095_v19 = vld [vmem:[%s17060_s8 + $0x3b8] sm:$0xff] }
 0x429   : > { %v6918_v5 = vsel %vm869_vm0, %v6880_v40, %v6883_v2  ;;  %v13108_v2 = vld [vmem:[%s17060_s8 + $0x420] sm:$0xff]  ;;  %v13099_v40 = vld [vmem:[%s17060_s8 + $0x3d8] sm:$0xff] }
 0x42a   : > { %v6712_v23 = vpop.f32.mrf.mxu3  ;;  %8818 = vmatpush.bf16.msrb.mxu3 %v13075_v48 }
 0x42b   : > { %v6792_v17 = vpop.f32.mrf.mxu2  ;;  %8790 = vmatpush.bf16.msrb.mxu1 %v13061_v22  ;;  %v13102_v23 = vld [vmem:[%s17060_s8 + $0x3f0] sm:$0xff]  ;;  %v13107_v22 = vld [vmem:[%s17060_s8 + $0x418] sm:$0xff] }
 0x42c   : > { %8805 = vmatpush.bf16.msrb.mxu2 %v13067_v50  ;;  %8829 = vmatpush.bf16.msrb.mxu0 %v13085_v24  ;;  %v13103_v17 = vld [vmem:[%s17060_s8 + $0x3f8] sm:$0xff] }
 0x42e   : > { %8819 = vmatpush.bf16.msrb.mxu3 %v13074_v26 }
 0x42f   : > { %8791 = vmatpush.bf16.msrb.mxu1 %v13060_v15 }
 0x430   : > { %8806 = vmatpush.bf16.msrb.mxu2 %v13066_v57  ;;  %8830 = vmatpush.bf16.msrb.mxu0 %v13084_v16  ;;  %v13091_v57 = vld [vmem:[%s17060_s8 + $0x398] sm:$0xff]  ;;  %v13339_v16 = vld [vmem:[%s17059_s7] ss:$0 sm:$0xff] }
 0x431   : > { %v6723_v61 = vpop.f32.mrf.mxu0 }
 0x432   : > { %v16282_v10 = vpop.f32.mrf.mxu3  ;;  %8744 = vmatmul.bf16.vlgmr.msra.gmra.mxu1 %v6918_v5  ;;  %v6724_v51 = vadd.f32 %v6723_v61, %v6711_v25  ;;  %8820 = vmatpush.bf16.msrb.mxu3 %v13073_v56  ;;  %v6938_v5 = vrot.slane %v6936_v21, 7  ;;  %v6791_v25 = vadd.f32 %v13339_v16, %v16210_v59  ;;  %v13096_v61 = vld [vmem:[%s17060_s8 + $0x3c0] sm:$0xff]  ;;  %v13090_v59 = vld [vmem:[%s17060_s8 + $0x390] sm:$0xff]  ;;  %v6944_v56 = vrot.slane %v6936_v21, 1 }
 0x433   : > { %v16255_v29 = vpop.f32.mrf.mxu2  ;;  %8792 = vmatpush.bf16.msrb.mxu1 %v13059_v20  ;;  %v13120_v16 = vld [vmem:[%s17060_s8 + $0x480] sm:$0xff] }
 0x434   : > { %v6737_v36 = vadd.f32 %v16190_v33, %v6724_v51  ;;  %8807 = vmatpush.bf16.msrb.mxu2 %v13065_v41  ;;  %8831 = vmatpush.bf16.msrb.mxu0 %v13083_v30  ;;  %v13072_v33 = vld [vmem:[%s17060_s8 + $0x300] sm:$0xff]  ;;  %v6804_v20 = vadd.f32 %v16282_v10, %v6791_v25  ;;  %v6928_v51 = vrot.slane %v15988_v62, 2  ;;  %v13135_v10 = vld [vmem:[%s17060_s8 + $0x4f8] sm:$0xff] }
 0x435   : > { %v13116_v25 = vld [vmem:[%s17060_s8 + $0x460] sm:$0xff] }
 0x436   : > { %v6740_v55 = vmax.f32 %v6737_v36, 0.0  ;;  %8821 = vmatpush.bf16.msrb.mxu3 %v13072_v33  ;;  %v13089_v33 = vld [vmem:[%s17060_s8 + $0x388] sm:$0xff] }
 0x437   : > { %8793 = vmatpush.bf16.msrb.mxu1 %v13058_v3 }
 0x438   : > { %v6741_v37 = vpack.c.bf16 %v6740_v55, %v6740_v55  ;;  %8808 = vmatpush.bf16.msrb.mxu2 %v13064_v45  ;;  %8832 = vmatpush.bf16.msrb.mxu0 %v13082_v34 }
 0x439   : > { %v6725_v54 = vpop.f32.mrf.mxu0  ;;  %v6891_v46 = vpop.permute.xlu1 %6890 }
 0x43a   : > { %v6805_v12 = vpop.f32.mrf.mxu3  ;;  %v6983_v63 = vunpack.c.l.b16 %v6741_v37  ;;  %v6922_v11 = vsel %vm869_vm0, %v15979_v31, %v6891_v46  ;;  %v13134_v54 = vld [vmem:[%s17060_s8 + $0x4f0] sm:$0xff] }
 0x43b   : > { %v6844_v14 = vpop.f32.mrf.mxu2  ;;  %8794 = vmatpush.bf16.msrb.mxu1 %v13057_v53  ;;  %v7046_v9 = vrot.slane %v6922_v11, 1  ;;  %8757 = vmatmul.bf16.vlgmr.msra.gmra.mxu2 %v6922_v11  ;;  %v13104_v12 = vld [vmem:[%s17060_s8 + $0x400] sm:$0xff] }
 0x43c   : > { %v16336_v52 = vpack.c.b16 %v6983_v63, %v6983_v63  ;;  %8833 = vmatpush.bf16.msrb.mxu0 %v13081_v7  ;;  %8853 = vmatpush.bf16.msra.mxu2 %v13103_v17  ;;  %v13097_v14 = vld [vmem:[%s17060_s8 + $0x3c8] sm:$0xff]  ;;  %v13127_v17 = vld [vmem:[%s17060_s8 + $0x4b8] sm:$0xff]  ;;  %v13132_v11 = vld [vmem:[%s17060_s8 + $0x4e0] sm:$0xff] }
 0x43d   : > { %8770 = vmatmul.bf16.vlgmr.msra.gmra.mxu3 %v7046_v9  ;;  %v13126_v9 = vld [vmem:[%s17060_s8 + $0x4b0] sm:$0xff] }
 0x43e   : > { %6996 = vrot.lane.b32.xlu2 %v16336_v52, %s17117_s23  ;;  %v6998_v42 = vrot.slane %v16336_v52, 1  ;;  %v6985_v47 = vrot.slane %v16336_v52, 6  ;;  %v6992_v31 = vrot.slane %v16336_v52, 7  ;;  %8866 = vmatpush.bf16.msra.mxu3 %v13111_v44 }
 0x43f   : > { %8795 = vmatpush.bf16.msrb.mxu1 %v13056_v35 }
 0x440   : > { %6999 = vrot.lane.b32.xlu1 %v6998_v42, %s17117_s23  ;;  %6986 = vrot.lane.b32.xlu0 %v6985_v47, %s17117_s23  ;;  %v13088_v42 = vld [vmem:[%s17060_s8 + $0x380] sm:$0xff] }
 0x441   : > { %v16355_v28 = vpop.f32.mrf.mxu0  ;;  %8834 = vmatpush.bf16.msrb.mxu0 %v13080_v8  ;;  %8854 = vmatpush.bf16.msra.mxu2 %v13102_v23 }
 0x442   : > { %8867 = vmatpush.bf16.msra.mxu3 %v13110_v32  ;;  %v6817_v41 = vadd.f32 %v16355_v28, %v6804_v20  ;;  %v13125_v32 = vld [vmem:[%s17060_s8 + $0x4a8] sm:$0xff] }
 0x443   : > { %8840 = vmatpush.bf16.msra.mxu1 %v13095_v19 }
 0x445   : > { %8855 = vmatpush.bf16.msra.mxu2 %v13101_v13  ;;  %v13131_v13 = vld [vmem:[%s17060_s8 + $0x4d8] sm:$0xff] }
 0x446   : > { %6993 = vrot.lane.b32.xlu2 %v6992_v31, %s17117_s23  ;;  %8868 = vmatpush.bf16.msra.mxu3 %v13109_v6  ;;  %v7478_v6 = vld [vmem:[%s17061_s9] sm:$0x1] }
 0x447   : > { %8841 = vmatpush.bf16.msra.mxu1 %v13094_v1 }
 0x449   : > { %v6818_v27 = vpop.f32.mrf.mxu0  ;;  %8856 = vmatpush.bf16.msra.mxu2 %v13100_v18  ;;  %v13124_v18 = vld [vmem:[%s17060_s8 + $0x4a0] sm:$0xff] }
 0x44a   : > { %8869 = vmatpush.bf16.msra.mxu3 %v13108_v2  ;;  %v13130_v27 = vld [vmem:[%s17060_s8 + $0x4d0] sm:$0xff] }
 0x44b   : > { %8842 = vmatpush.bf16.msra.mxu1 %v13093_v58 }
 0x44d   : > { %8857 = vmatpush.bf16.msra.mxu2 %v13099_v40 }
 0x44e   : > { %8870 = vmatpush.bf16.msra.mxu3 %v13107_v22 }
 0x44f   : > { %8843 = vmatpush.bf16.msra.mxu1 %v13092_v60  ;;  %v13122_v60 = vld [vmem:[%s17060_s8 + $0x490] sm:$0xff] }
 0x451   : > { %8858 = vmatpush.bf16.msra.mxu2 %v13098_v4  ;;  %v13123_v4 = vld [vmem:[%s17060_s8 + $0x498] sm:$0xff] }
 0x452   : > { %v6940_v50 = vpop.permute.xlu1 %6939  ;;  %8871 = vmatpush.bf16.msra.mxu3 %v13106_v0  ;;  %v13143_v0 = vld [vmem:[%s17060_s8 + $0x538] sm:$0xff] }
 0x453   : > { %v6968_v24 = vsel %vm869_vm0, %v6938_v5, %v6940_v50  ;;  %8844 = vmatpush.bf16.msra.mxu1 %v13091_v57  ;;  %v13129_v5 = vld [vmem:[%s17060_s8 + $0x4c8] sm:$0xff]  ;;  %v13128_v50 = vld [vmem:[%s17060_s8 + $0x4c0] sm:$0xff] }
 0x454   : > { %v7049_v39 = vrot.slane %v6968_v24, 1  ;;  %v13118_v24 = vld [vmem:[%s17060_s8 + $0x470] sm:$0xff]  ;;  %v13141_v57 = vld [vmem:[%s17060_s8 + $0x528] sm:$0xff] }
 0x455   : > { %8859 = vmatpush.bf16.msra.mxu2 %v13097_v14  ;;  %v13142_v14 = vld [vmem:[%s17060_s8 + $0x530] sm:$0xff] }
 0x456   : > { %8809 = vmatmul.bf16.vlgmr.msrb.gmra.mxu2 %v7049_v39  ;;  %8872 = vmatpush.bf16.msra.mxu3 %v13105_v49  ;;  %v13117_v49 = vld [vmem:[%s17060_s8 + $0x468] sm:$0xff] }
 0x457   : > { %8845 = vmatpush.bf16.msra.mxu1 %v13090_v59  ;;  %v6951_v59 = vrot.slane %v16218_v43, 7 }
 0x459   : > { %8860 = vmatpush.bf16.msra.mxu2 %v13096_v61 }
 0x45a   : > { %8873 = vmatpush.bf16.msra.mxu3 %v13104_v12  ;;  %v13139_v12 = vld [vmem:[%s17060_s8 + $0x518] sm:$0xff] }
 0x45b   : > { %v6943_v48 = vpop.permute.xlu0 %6942  ;;  %8846 = vmatpush.bf16.msra.mxu1 %v13089_v33  ;;  %v13112_v33 = vld [vmem:[%s17060_s8 + $0x440] sm:$0xff] }
 0x45c   : > { %v6971_v15 = vsel %vm869_vm0, %v6936_v21, %v6943_v48  ;;  %v6934_v30 = vpop.permute.xlu1 %6933  ;;  %v13121_v48 = vld [vmem:[%s17060_s8 + $0x488] sm:$0xff] }
 0x45d   : > { %v7050_v26 = vrot.slane %v6971_v15, 1  ;;  %v6965_v36 = vsel %vm869_vm0, %v6928_v51, %v6934_v30  ;;  %8905 = vmatpush.bf16.msrb.mxu2 %v13135_v10  ;;  %v13115_v51 = vld [vmem:[%s17060_s8 + $0x458] sm:$0xff]  ;;  %v13138_v30 = vld [vmem:[%s17060_s8 + $0x510] sm:$0xff] }
 0x45e   : > { %v7048_v55 = vrot.slane %v6965_v36, 1 }
 0x45f   : > { %8822 = vmatmul.bf16.vlgmr.msrb.gmra.mxu3 %v7050_v26  ;;  %8847 = vmatpush.bf16.msra.mxu1 %v13088_v42  ;;  %v13140_v26 = vld [vmem:[%s17060_s8 + $0x520] sm:$0xff] }
 0x460   : > { %8796 = vmatmul.bf16.vlgmr.msrb.gmra.mxu1 %v7048_v55  ;;  %8918 = vmatpush.bf16.msrb.mxu3 %v13143_v0  ;;  %v13113_v55 = vld [vmem:[%s17060_s8 + $0x448] sm:$0xff] }
 0x461   : > { %8906 = vmatpush.bf16.msrb.mxu2 %v13134_v54  ;;  %v13136_v54 = vld [vmem:[%s17060_s8 + $0x500] sm:$0xff] }
 0x463   : > { %v6947_v3 = vpop.permute.xlu0 %6946  ;;  %8892 = vmatpush.bf16.msrb.mxu1 %v13127_v17 }
 0x464   : > { %v6974_v45 = vsel %vm869_vm0, %v6944_v56, %v6947_v3  ;;  %8919 = vmatpush.bf16.msrb.mxu3 %v13142_v14  ;;  %v13159_v3 = vld [vmem:[%s17060_s8 + $0x5b8] sm:$0xff]  ;;  %v13149_v14 = vld [vmem:[%s17060_s8 + $0x568] sm:$0xff] }
 0x465   : > { %v6829_v62 = vpop.f32.mrf.mxu1  ;;  %v7051_v34 = vrot.slane %v6974_v45, 1  ;;  %v16556_v45 = vshrl.u32 %v16336_v52, 16  ;;  %v13171_v52 = vld [vmem:[%s17060_s8 + $0x618] sm:$0xff] }
 0x466   : > { %v6830_v37 = vadd.f32 %v6829_v62, %v6817_v41  ;;  %v13114_v41 = vld [vmem:[%s17060_s8 + $0x450] sm:$0xff] }
 0x467   : > { %8835 = vmatmul.bf16.vlgmr.msrb.gmra.mxu0 %v7051_v34  ;;  %8893 = vmatpush.bf16.msrb.mxu1 %v13126_v9 }
 0x468   : > { %v6843_v63 = vadd.f32 %v16255_v29, %v6830_v37  ;;  %v13133_v29 = vld [vmem:[%s17060_s8 + $0x4e8] sm:$0xff]  ;;  %8920 = vmatpush.bf16.msrb.mxu3 %v13141_v57 }
 0x469   : > { %8907 = vmatpush.bf16.msrb.mxu2 %v13133_v29  ;;  %v13137_v37 = vld [vmem:[%s17060_s8 + $0x508] sm:$0xff] }
 0x46a   : > { %v8667_v53 = vpop.f32.mrf.mxu3  ;;  %v6846_v7 = vmax.f32 %v6843_v63, 0.0  ;;  %v13158_v63 = vld [vmem:[%s17060_s8 + $0x5b0] sm:$0xff] }
 0x46b   : > { %8894 = vmatpush.bf16.msrb.mxu1 %v13125_v32  ;;  %v8668_v1 = vadd.f32 %v8667_v53, %v7478_v6  ;;  %v6995_v53 = vrot.slane %v16556_v45, 7  ;;  %v6991_v32 = vrot.slane %v16556_v45, 6 }
 0x46c   : > { %v16450_v47 = vpack.c.bf16 %v6846_v7, %v6846_v7  ;;  %8921 = vmatpush.bf16.msrb.mxu3 %v13140_v26  ;;  %v13157_v7 = vld [vmem:[%s17060_s8 + $0x5a8] sm:$0xff] }
 0x46d   : > { %v6831_v46 = vpop.f32.mrf.mxu1  ;;  %8908 = vmatpush.bf16.msrb.mxu2 %v13132_v11 }
 0x46e   : > { %v7002_v35 = vunpack.c.l.b16 %v16450_v47  ;;  %v13170_v46 = vld [vmem:[%s17060_s8 + $0x610] sm:$0xff] }
 0x46f   : > { %8895 = vmatpush.bf16.msrb.mxu1 %v13124_v18 }
 0x470   : > { %v16462_v28 = vpack.c.b16 %v7002_v35, %v7002_v35  ;;  %8922 = vmatpush.bf16.msrb.mxu3 %v13139_v12  ;;  %v13147_v12 = vld [vmem:[%s17060_s8 + $0x558] sm:$0xff] }
 0x471   : > { %8909 = vmatpush.bf16.msrb.mxu2 %v13131_v13  ;;  %v13155_v13 = vld [vmem:[%s17060_s8 + $0x598] sm:$0xff] }
 0x472   : > { %v8669_v44 = vpop.f32.mrf.mxu3  ;;  %v7006_v23 = vshrl.u32 %v16462_v28, 16 }
 0x473   : > { %8896 = vmatpush.bf16.msrb.mxu1 %v13123_v4  ;;  %v13156_v44 = vld [vmem:[%s17060_s8 + $0x5a0] sm:$0xff]  ;;  %v13166_v4 = vld [vmem:[%s17060_s8 + $0x5f0] sm:$0xff] }
 0x474   : > { %7015 = vrot.lane.b32.xlu0 %v7006_v23, %s17117_s23  ;;  %v7012_v8 = vrot.slane %v7006_v23, 7  ;;  %v7008_v31 = vrot.slane %v7006_v23, 6  ;;  %8923 = vmatpush.bf16.msrb.mxu3 %v13138_v30  ;;  %v13169_v23 = vld [vmem:[%s17060_s8 + $0x608] sm:$0xff] }
 0x475   : > { %8910 = vmatpush.bf16.msrb.mxu2 %v13130_v27  ;;  %v13161_v30 = vld [vmem:[%s17060_s8 + $0x5c8] sm:$0xff] }
 0x476   : > { %7013 = vrot.lane.b32.xlu2 %v7012_v8, %s17117_s23  ;;  %7009 = vrot.lane.b32.xlu1 %v7008_v31, %s17117_s23 }
 0x477   : > { %8897 = vmatpush.bf16.msrb.mxu1 %v13122_v60  ;;  %v13150_v60 = vld [vmem:[%s17060_s8 + $0x570] sm:$0xff] }
 0x478   : > { %8924 = vmatpush.bf16.msrb.mxu3 %v13137_v37  ;;  %v13144_v37 = vld [vmem:[%s17060_s8 + $0x540] sm:$0xff] }
 0x479   : > { %8911 = vmatpush.bf16.msrb.mxu2 %v13129_v5 }
 0x47b   : > { %v6959_v19 = vpop.permute.xlu2 %6958  ;;  %8898 = vmatpush.bf16.msrb.mxu1 %v13121_v48 }
 0x47c   : > { %v6980_v2 = vsel %vm869_vm0, %v16202_v38, %v6959_v19  ;;  %v13119_v38 = vld [vmem:[%s17060_s8 + $0x478] sm:$0xff]  ;;  %8925 = vmatpush.bf16.msrb.mxu3 %v13136_v54 }
 0x47d   : > { %v7053_v40 = vrot.slane %v6980_v2, 1  ;;  %v7069_v21 = vrot.slane %v6980_v2, 2  ;;  %8879 = vmatpush.bf16.msra.mxu0 %v13119_v38  ;;  %8912 = vmatpush.bf16.msrb.mxu2 %v13128_v50  ;;  %v13168_v2 = vld [vmem:[%s17060_s8 + $0x600] sm:$0xff] }
 0x47e   : > { %v13152_v50 = vld [vmem:[%s17060_s8 + $0x580] sm:$0xff] }
 0x47f   : > { %8861 = vmatmul.bf16.vlgmr.msra.gmra.mxu2 %v7053_v40  ;;  %8874 = vmatmul.bf16.vlgmr.msra.gmra.mxu3 %v7069_v21  ;;  %v13154_v40 = vld [vmem:[%s17060_s8 + $0x590] sm:$0xff]  ;;  %v13167_v21 = vld [vmem:[%s17060_s8 + $0x5f8] sm:$0xff] }
 0x480   : > { %v8680_v22 = vpop.f32.mrf.mxu0  ;;  %8899 = vmatpush.bf16.msrb.mxu1 %v13120_v16  ;;  %8974 = vmatpush.bf16.msra.mxu3 %v13171_v52 }
 0x481   : > { %v16488_v58 = vadd.f32 %v8680_v22, %v8668_v1  ;;  %8880 = vmatpush.bf16.msra.mxu0 %v13118_v24  ;;  %8957 = vmatpush.bf16.msra.mxu2 %v13167_v21  ;;  %v13151_v22 = vld [vmem:[%s17060_s8 + $0x578] sm:$0xff]  ;;  %v13165_v24 = vld [vmem:[%s17060_s8 + $0x5e8] sm:$0xff] }
 0x484   : > { %8975 = vmatpush.bf16.msra.mxu3 %v13170_v46 }
 0x485   : > { %8881 = vmatpush.bf16.msra.mxu0 %v13117_v49  ;;  %8958 = vmatpush.bf16.msra.mxu2 %v13166_v4 }
 0x487   : > { %v8719_v15 = vpop.f32.mrf.mxu3 }
 0x488   : > { %v8682_v39 = vpop.f32.mrf.mxu0  ;;  %8976 = vmatpush.bf16.msra.mxu3 %v13169_v23 }
 0x489   : > { %8882 = vmatpush.bf16.msra.mxu0 %v13116_v25  ;;  %8959 = vmatpush.bf16.msra.mxu2 %v13165_v24  ;;  %v13164_v39 = vld [vmem:[%s17060_s8 + $0x5e0] sm:$0xff]  ;;  %v13187_v24 = vld [vmem:[%s17062_s10 + $0x74] sm:$0xf0] }
 0x48c   : > { %8977 = vmatpush.bf16.msra.mxu3 %v13168_v2 }
 0x48d   : > { %8883 = vmatpush.bf16.msra.mxu0 %v13115_v51  ;;  %8960 = vmatpush.bf16.msra.mxu2 %v13164_v39 }
 0x48f   : > { %v8721_v20 = vpop.f32.mrf.mxu3 }
 0x490   : > { %v8732_v61 = vpop.f32.mrf.mxu0 }
 0x491   : > { %8884 = vmatpush.bf16.msra.mxu0 %v13114_v41  ;;  %v13146_v41 = vld [vmem:[%s17060_s8 + $0x550] sm:$0xff] }
 0x495   : > { %v6957_v10 = vpop.permute.xlu1 %6956  ;;  %8885 = vmatpush.bf16.msra.mxu0 %v13113_v55 }
 0x496   : > { %v6977_v36 = vsel %vm869_vm0, %v6951_v59, %v6957_v10  ;;  %v13162_v59 = vld [vmem:[%s17060_s8 + $0x5d0] sm:$0xff]  ;;  %v13145_v10 = vld [vmem:[%s17060_s8 + $0x548] sm:$0xff] }
 0x497   : > { %v7052_v56 = vrot.slane %v6977_v36, 1  ;;  %v7085_v36 = vrot.slane %v16462_v28, 3 }
 0x498   : > { %v8734_v62 = vpop.f32.mrf.mxu0  ;;  %v6997_v42 = vpop.permute.xlu2 %6996 }
 0x499   : > { %8848 = vmatmul.bf16.vlgmr.msra.gmra.mxu1 %v7052_v56  ;;  %8886 = vmatpush.bf16.msra.mxu0 %v13112_v33  ;;  %v7025_v29 = vsel %vm869_vm0, %v6995_v53, %v6997_v42  ;;  %v13160_v62 = vld [vmem:[%s17060_s8 + $0x5c0] sm:$0xff]  ;;  %v7011_v33 = vrot.slane %v16462_v28, 7 }
 0x49a   : > { %8944 = vmatpush.bf16.msra.mxu1 %v13159_v3  ;;  %v7072_v11 = vrot.slane %v7025_v29, 2 }
 0x49c   : > { %8913 = vmatmul.bf16.vlgmr.msrb.gmra.mxu2 %v7072_v11 }
 0x49d   : > { %v8706_v34 = vpop.f32.mrf.mxu2  ;;  %8931 = vmatpush.bf16.msrb.mxu0 %v13151_v22 }
 0x49e   : > { %8945 = vmatpush.bf16.msra.mxu1 %v13158_v63 }
 0x49f   : > { %v8693_v17 = vpop.f32.mrf.mxu1 }
 0x4a0   : > { %v8694_v35 = vadd.f32 %v8693_v17, %v16488_v58  ;;  %v6994_v27 = vpop.permute.xlu2 %6993  ;;  %v13153_v58 = vld [vmem:[%s17060_s8 + $0x588] sm:$0xff] }
 0x4a1   : > { %v7022_v19 = vsel %vm869_vm0, %v6991_v32, %v6994_v27  ;;  %8932 = vmatpush.bf16.msrb.mxu0 %v13150_v60 }
 0x4a2   : > { %8946 = vmatpush.bf16.msra.mxu1 %v13157_v7  ;;  %v8707_v9 = vadd.f32 %v8706_v34, %v8694_v35  ;;  %v7071_v1 = vrot.slane %v7022_v19, 2 }
 0x4a4   : > { %v8720_v8 = vadd.f32 %v8719_v15, %v8707_v9  ;;  %v8784_v0 = vpop.f32.mrf.mxu0  ;;  %v6981_v15 = vrot.slane %v16218_v43, 1  ;;  %v13163_v43 = vld [vmem:[%s17060_s8 + $0x5d8] sm:$0xff]  ;;  %v7004_v9 = vrot.slane %v16462_v28, 6 }
 0x4a5   : > { %v8708_v31 = vpop.f32.mrf.mxu2  ;;  %8933 = vmatpush.bf16.msrb.mxu0 %v13149_v14  ;;  %8961 = vmatpush.bf16.msra.mxu2 %v13163_v43  ;;  %v13186_v14 = vld [vmem:[%s17062_s10 + $0x74] sm:$0xf]  ;;  %v12326_v43 = vld [vmem:[%s17062_s10 + $0x50] sm:$0xf] }
 0x4a6   : > { %8947 = vmatpush.bf16.msra.mxu1 %v13156_v44  ;;  %v8733_v6 = vadd.f32 %v8732_v61, %v8720_v8  ;;  %v13148_v61 = vld [vmem:[%s17060_s8 + $0x560] sm:$0xff] }
 0x4a7   : > { %v8695_v18 = vpop.f32.mrf.mxu1 }
 0x4a9   : > { %8900 = vmatmul.bf16.vlgmr.msrb.gmra.mxu1 %v7071_v1  ;;  %8934 = vmatpush.bf16.msrb.mxu0 %v13148_v61 }
 0x4aa   : > { %8948 = vmatpush.bf16.msra.mxu1 %v13155_v13  ;;  %8962 = vmatpush.bf16.msra.mxu2 %v13162_v59  ;;  %v13182_v59 = vld [vmem:[%s17062_s10 + $0x54] sm:$0xf] }
 0x4ac   : > { %v8786_v26 = vpop.f32.mrf.mxu0 }
 0x4ad   : > { %8935 = vmatpush.bf16.msrb.mxu0 %v13147_v12  ;;  %v13183_v12 = vld [vmem:[%s17062_s10 + $0x54] sm:$0xf0] }
 0x4ae   : > { %8949 = vmatpush.bf16.msra.mxu1 %v13154_v40  ;;  %8963 = vmatpush.bf16.msra.mxu2 %v13161_v30  ;;  %v12328_v30 = vld [vmem:[%s17062_s10 + $0x58] sm:$0xf0] }
 0x4af   : > { %v8745_v5 = vpop.f32.mrf.mxu1 }
 0x4b0   : > { %v8746_v38 = vadd.f32 %v8745_v5, %v8733_v6 }
 0x4b1   : > { %8936 = vmatpush.bf16.msrb.mxu0 %v13146_v41  ;;  %v12327_v41 = vor.u32 %v13183_v12, %v12326_v43  ;;  %v13213_v43 = vld [vmem:[%s17066_s14 + $0x44] sm:$0xf0]  ;;  %v13212_v12 = vld [vmem:[%s17066_s14 + $0x44] sm:$0xf] }
 0x4b2   : > { %8950 = vmatpush.bf16.msra.mxu1 %v13153_v58  ;;  %v7000_v49 = vpop.permute.xlu1 %6999  ;;  %v6987_v57 = vpop.permute.xlu0 %6986  ;;  %8964 = vmatpush.bf16.msra.mxu2 %v13160_v62  ;;  %v13181_v62 = vld [vmem:[%s17062_s10 + $0x44] sm:$0xf0] }
 0x4b3   : > { %v7028_v16 = vsel %vm869_vm0, %v16556_v45, %v7000_v49  ;;  %v7019_v25 = vsel %vm869_vm0, %v6981_v15, %v6987_v57  ;;  %v12334_v15 = vld [vmem:[%s17062_s10 + $0x60] sm:$0xf]  ;;  %v13185_v49 = vld [vmem:[%s17062_s10 + $0x64] sm:$0xf0] }
 0x4b4   : > { %v7073_v20 = vrot.slane %v7028_v16, 2  ;;  %v7070_v51 = vrot.slane %v7019_v25, 2  ;;  %v13184_v16 = vld [vmem:[%s17062_s10 + $0x64] sm:$0xf]  ;;  %v12336_v25 = vld [vmem:[%s17062_s10 + $0x68] sm:$0xf0]  ;;  %v12335_v26 = vor.u32 %v13185_v49, %v12334_v15 }
 0x4b5   : > { %8937 = vmatpush.bf16.msrb.mxu0 %v13145_v10  ;;  %v12339_v61 = vor.u32 %v13184_v16, %v12336_v25  ;;  %v12331_v10 = vor.u32 %v13182_v59, %v12328_v30  ;;  %v12454_v49 = vld [vmem:[%s17066_s14 + $0x50] sm:$0xf]  ;;  %v13214_v16 = vld [vmem:[%s17066_s14 + $0x54] sm:$0xf] }
 0x4b6   : > { %8951 = vmatpush.bf16.msra.mxu1 %v13152_v50  ;;  %8887 = vmatmul.bf16.vlgmr.msra.gmra.mxu0 %v7070_v51  ;;  %v12342_v50 = vld [vmem:[%s17062_s10 + $0x70] sm:$0xf] }
 0x4b7   : > { %v8747_v48 = vpop.f32.mrf.mxu1  ;;  %8926 = vmatmul.bf16.vlgmr.msrb.gmra.mxu3 %v7073_v20  ;;  %v12343_v39 = vor.u32 %v13187_v24, %v12342_v50  ;;  %v13217_v50 = vld [vmem:[%s17066_s14 + $0x64] sm:$0xf0]  ;;  %v13216_v24 = vld [vmem:[%s17066_s14 + $0x64] sm:$0xf] }
 0x4b8   : > { %v12344_v48 = vld [vmem:[%s17062_s10 + $0x78] sm:$0xf0] }
 0x4b9   : > { %8938 = vmatpush.bf16.msrb.mxu0 %v13144_v37  ;;  %v12347_v57 = vor.u32 %v13186_v14, %v12344_v48  ;;  %v12320_v37 = vld [vmem:[%s17062_s10 + $0x48] sm:$0xf0] }
 0x4bb   : > { %9099 = vmatpush.bf16.msrb.mxu1 %v12347_v57  ;;  %v13215_v57 = vld [vmem:[%s17066_s14 + $0x54] sm:$0xf0] }
 0x4bc   : > { %v12455_v25 = vor.u32 %v13215_v57, %v12454_v49  ;;  %v13196_v49 = vld [vmem:[%s17064_s12 + $0x40] sm:$0xff]  ;;  %v13227_v57 = vld [vmem:[%s17068_s16 + $0x38] sm:$0xff] }
 0x4bd   : > { %9086 = vmatpush.bf16.msra.mxu0 %v12343_v39  ;;  %v12464_v39 = vld [vmem:[%s17066_s14 + $0x68] sm:$0xf0] }
 0x4be   : > { %v8758_v56 = vpop.f32.mrf.mxu2  ;;  %v12467_v48 = vor.u32 %v13216_v24, %v12464_v39  ;;  %v13190_v24 = vld [vmem:[%s17064_s12 + $0x10] sm:$0xff]  ;;  %v13189_v39 = vld [vmem:[%s17064_s12 + $0x8] sm:$0xff] }
 0x4bf   : > { %v8759_v55 = vadd.f32 %v8758_v56, %v8746_v38  ;;  %9100 = vmatpush.bf16.msrb.mxu1 %v12339_v61  ;;  %v13180_v56 = vld [vmem:[%s17062_s10 + $0x44] sm:$0xf] }
 0x4c0   : > { %v8771_v3 = vpop.f32.mrf.mxu3 }
 0x4c1   : > { %v8772_v45 = vadd.f32 %v8771_v3, %v8759_v55  ;;  %9087 = vmatpush.bf16.msra.mxu0 %v12335_v26  ;;  %v12323_v3 = vor.u32 %v13180_v56, %v12320_v37  ;;  %v12456_v26 = vld [vmem:[%s17066_s14 + $0x58] sm:$0xf0] }
 0x4c3   : > { %v8785_v63 = vadd.f32 %v8784_v0, %v8772_v45  ;;  %9101 = vmatpush.bf16.msrb.mxu1 %v12331_v10  ;;  %v12310_v45 = vld [vmem:[%s17062_s10 + $0x30] sm:$0xf] }
 0x4c4   : > { %v12438_v10 = vld [vmem:[%s17066_s14 + $0x30] sm:$0xf] }
 0x4c5   : > { %9088 = vmatpush.bf16.msra.mxu0 %v12327_v41  ;;  %v12448_v41 = vld [vmem:[%s17066_s14 + $0x48] sm:$0xf0] }
 0x4c6   : > { %v8760_v53 = vpop.f32.mrf.mxu2  ;;  %v12451_v30 = vor.u32 %v13212_v12, %v12448_v41  ;;  %v13232_v12 = vld [vmem:[%s17068_s16 + $0x60] sm:$0xff]  ;;  %v13231_v41 = vld [vmem:[%s17068_s16 + $0x58] sm:$0xff] }
 0x4c7   : > { %12283 = vmatmul.msk.bf16.vlgmr.msra.gmra.mxu3 %vm869_vm0, %v7085_v36  ;;  %v12318_v36 = vld [vmem:[%s17062_s10 + $0x40] sm:$0xf]  ;;  %9102 = vmatpush.bf16.msrb.mxu1 %v12323_v3 }
 0x4c8   : > { %v8773_v7 = vpop.f32.mrf.mxu3  ;;  %v12319_v55 = vor.u32 %v13181_v62, %v12318_v36  ;;  %v13211_v36 = vld [vmem:[%s17066_s14 + $0x34] sm:$0xf0]  ;;  %v13210_v62 = vld [vmem:[%s17066_s14 + $0x34] sm:$0xf] }
 0x4c9   : > { %v12302_v7 = vld [vmem:[%s17062_s10 + $0x20] sm:$0xf]  ;;  %v12439_v56 = vor.u32 %v13211_v36, %v12438_v10  ;;  %v13230_v10 = vld [vmem:[%s17068_s16 + $0x50] sm:$0xff]  ;;  %v13221_v36 = vld [vmem:[%s17068_s16 + $0x8] sm:$0xff] }
 0x4ca   : > { %9089 = vmatpush.bf16.msra.mxu0 %v12319_v55  ;;  %v12440_v55 = vld [vmem:[%s17066_s14 + $0x38] sm:$0xf0] }
 0x4cb   : > { %v12443_v3 = vor.u32 %v13210_v62, %v12440_v55  ;;  %v13229_v62 = vld [vmem:[%s17068_s16 + $0x48] sm:$0xff]  ;;  %v13228_v55 = vld [vmem:[%s17068_s16 + $0x40] sm:$0xff] }
 0x4d0   : > { %v7014_v54 = vpop.permute.xlu2 %7013 }
 0x4d1   : > { %v7034_v52 = vsel %vm869_vm0, %v7011_v33, %v7014_v54  ;;  %v13179_v33 = vld [vmem:[%s17062_s10 + $0x34] sm:$0xf0]  ;;  %v13178_v54 = vld [vmem:[%s17062_s10 + $0x34] sm:$0xf] }
 0x4d2   : > { %v7075_v34 = vrot.slane %v7034_v52, 2  ;;  %v12312_v52 = vld [vmem:[%s17062_s10 + $0x38] sm:$0xf0] }
 0x4d3   : > { %v12315_v53 = vor.u32 %v13178_v54, %v12312_v52  ;;  %v13208_v54 = vld [vmem:[%s17066_s14 + $0x24] sm:$0xf] }
 0x4d4   : > { %8952 = vmatmul.bf16.vlgmr.msra.gmra.mxu1 %v7075_v34 }
 0x4d5   : > { %9103 = vmatpush.bf16.msrb.mxu1 %v12315_v53 }
 0x4d9   : > { %v8810_v42 = vpop.f32.mrf.mxu2 }
 0x4dd   : > { %v8797_v17 = vpop.f32.mrf.mxu1 }
 0x4de   : > { %v8798_v46 = vadd.f32 %v8797_v17, %v8785_v63  ;;  %v12311_v63 = vor.u32 %v13179_v33, %v12310_v45  ;;  %v13176_v17 = vld [vmem:[%s17062_s10 + $0x24] sm:$0xf]  ;;  %v12430_v45 = vld [vmem:[%s17066_s14 + $0x20] sm:$0xf]  ;;  %v13209_v33 = vld [vmem:[%s17066_s14 + $0x24] sm:$0xf0] }
 0x4e0   : > { %v8811_v23 = vadd.f32 %v8810_v42, %v8798_v46  ;;  %v13177_v42 = vld [vmem:[%s17062_s10 + $0x24] sm:$0xf0]  ;;  %9090 = vmatpush.bf16.msra.mxu0 %v12311_v63  ;;  %v12432_v63 = vld [vmem:[%s17066_s14 + $0x28] sm:$0xf0] }
 0x4e1   : > { %v8812_v6 = vpop.f32.mrf.mxu2  ;;  %v12303_v46 = vor.u32 %v13177_v42, %v12302_v7  ;;  %v12435_v53 = vor.u32 %v13208_v54, %v12432_v63  ;;  %v12422_v7 = vld [vmem:[%s17066_s14 + $0x10] sm:$0xf]  ;;  %v13207_v42 = vld [vmem:[%s17066_s14 + $0x14] sm:$0xf0] }
 0x4e2   : > { %v8823_v29 = vpop.f32.mrf.mxu3 }
 0x4e3   : > { %v8824_v13 = vadd.f32 %v8823_v29, %v8811_v23 }
 0x4e4   : > { %v8836_v44 = vpop.f32.mrf.mxu0  ;;  %9091 = vmatpush.bf16.msra.mxu0 %v12303_v46  ;;  %v12423_v46 = vor.u32 %v13207_v42, %v12422_v7 }
 0x4e5   : > { %v8837_v18 = vadd.f32 %v8836_v44, %v8824_v13  ;;  %v8799_v19 = vpop.f32.mrf.mxu1  ;;  %v12294_v44 = vld [vmem:[%s17062_s10 + $0x10] sm:$0xf] }
 0x4e6   : > { %v7016_v35 = vpop.permute.xlu0 %7015  ;;  %v13173_v19 = vld [vmem:[%s17062_s10 + $0x4] sm:$0xf0] }
 0x4e7   : > { %v7037_v11 = vsel %vm869_vm0, %v16450_v47, %v7016_v35  ;;  %v12304_v35 = vld [vmem:[%s17062_s10 + $0x28] sm:$0xf0] }
 0x4e8   : > { %v7076_v8 = vrot.slane %v7037_v11, 2  ;;  %v7010_v31 = vpop.permute.xlu1 %7009  ;;  %v12307_v11 = vor.u32 %v13176_v17, %v12304_v35  ;;  %v13206_v17 = vld [vmem:[%s17066_s14 + $0x14] sm:$0xf] }
 0x4e9   : > { %v7031_v32 = vsel %vm869_vm0, %v7004_v9, %v7010_v31  ;;  %v13175_v9 = vld [vmem:[%s17062_s10 + $0x14] sm:$0xf0]  ;;  %v12296_v31 = vld [vmem:[%s17062_s10 + $0x18] sm:$0xf0] }
 0x4ea   : > { %v7074_v27 = vrot.slane %v7031_v32, 2  ;;  %8965 = vmatmul.bf16.vlgmr.msra.gmra.mxu2 %v7076_v8  ;;  %v8825_v2 = vpop.f32.mrf.mxu3  ;;  %v13174_v8 = vld [vmem:[%s17062_s10 + $0x14] sm:$0xf]  ;;  %v12295_v13 = vor.u32 %v13175_v9, %v12294_v44  ;;  %9104 = vmatpush.bf16.msrb.mxu1 %v12307_v11  ;;  %v12414_v11 = vld [vmem:[%s17066_s14] sm:$0xf] }
 0x4eb   : > { %v12299_v6 = vor.u32 %v13174_v8, %v12296_v31  ;;  %v13172_v2 = vld [vmem:[%s17062_s10 + $0x4] sm:$0xf]  ;;  %v13205_v44 = vld [vmem:[%s17066_s14 + $0x4] sm:$0xf0] }
 0x4ec   : > { %8939 = vmatmul.bf16.vlgmr.msrb.gmra.mxu0 %v7074_v27  ;;  %v8838_v1 = vpop.f32.mrf.mxu0  ;;  %v13204_v9 = vld [vmem:[%s17066_s14 + $0x4] sm:$0xf]  ;;  %v12415_v8 = vor.u32 %v13205_v44, %v12414_v11 }
 0x4ed   : > { %v12288_v1 = vld [vmem:[%s17062_s10 + $0x8] sm:$0xf0]  ;;  %9092 = vmatpush.bf16.msra.mxu0 %v12295_v13  ;;  %v13195_v13 = vld [vmem:[%s17064_s12 + $0x38] sm:$0xff] }
 0x4ee   : > { %9105 = vmatpush.bf16.msrb.mxu1 %v12299_v6  ;;  %v13203_v6 = vld [vmem:[%s17064_s12 + $0x78] sm:$0xff]  ;;  %9245 = vmatpush.bf16.msrb.mxu2 %v13195_v13 }
 0x4ef   : > { %9258 = vmatpush.bf16.msrb.mxu3 %v13203_v6 }
 0x502   : > { %v8862_v40 = vpop.f32.mrf.mxu2  ;;  %v8875_v21 = vpop.f32.mrf.mxu3 }
 0x50a   : > { %v8864_v47 = vpop.f32.mrf.mxu2  ;;  %v8877_v22 = vpop.f32.mrf.mxu3 }
 0x50b   : > { %v13218_v22 = vld [vmem:[%s17066_s14 + $0x74] sm:$0xf] }
 0x516   : > { %v8849_v58 = vpop.f32.mrf.mxu1 }
 0x517   : > { %v8850_v28 = vadd.f32 %v8849_v58, %v8837_v18  ;;  %v12286_v18 = vld [vmem:[%s17062_s10] sm:$0xf]  ;;  %v12472_v58 = vld [vmem:[%s17066_s14 + $0x78] sm:$0xf0] }
 0x519   : > { %v8863_v4 = vadd.f32 %v8862_v40, %v8850_v28  ;;  %v12470_v40 = vld [vmem:[%s17066_s14 + $0x70] sm:$0xf]  ;;  %v12287_v28 = vor.u32 %v13173_v19, %v12286_v18 }
 0x51a   : > { %v13194_v18 = vld [vmem:[%s17064_s12 + $0x30] sm:$0xff] }
 0x51b   : > { %v8876_v5 = vadd.f32 %v8875_v21, %v8863_v4  ;;  %v13219_v21 = vld [vmem:[%s17066_s14 + $0x74] sm:$0xf0]  ;;  %v12291_v4 = vor.u32 %v13172_v2, %v12288_v1  ;;  %9093 = vmatpush.bf16.msra.mxu0 %v12287_v28  ;;  %v13202_v19 = vld [vmem:[%s17064_s12 + $0x70] sm:$0xff]  ;;  %9246 = vmatpush.bf16.msrb.mxu2 %v13194_v18 }
 0x51c   : > { %9259 = vmatpush.bf16.msrb.mxu3 %v13202_v19 }
 0x51d   : > { %9106 = vmatpush.bf16.msrb.mxu1 %v12291_v4 }
 0x51e   : > { %v8851_v38 = vpop.f32.mrf.mxu1 }
 0x51f   : > { %v8914_v0 = vpop.f32.mrf.mxu2  ;;  %v12475_v38 = vor.u32 %v13218_v22, %v12472_v58 }
 0x521   : > { %9389 = vmatpush.bf16.msra.mxu1 %v12475_v38 }
 0x525   : > { %9390 = vmatpush.bf16.msra.mxu1 %v12467_v48  ;;  %v13197_v48 = vld [vmem:[%s17064_s12 + $0x48] sm:$0xff] }
 0x526   : > { %v8901_v60 = vpop.f32.mrf.mxu1 }
 0x527   : > { %v8916_v20 = vpop.f32.mrf.mxu2 }
 0x528   : > { %v12459_v20 = vor.u32 %v13214_v16, %v12456_v26  ;;  %v13226_v26 = vld [vmem:[%s17068_s16 + $0x30] sm:$0xff] }
 0x52a   : > { %9391 = vmatpush.bf16.msra.mxu1 %v12459_v20  ;;  %v13225_v20 = vld [vmem:[%s17068_s16 + $0x28] sm:$0xff] }
 0x52e   : > { %v8903_v51 = vpop.f32.mrf.mxu1  ;;  %9392 = vmatpush.bf16.msra.mxu1 %v12451_v30  ;;  %v13222_v30 = vld [vmem:[%s17068_s16 + $0x10] sm:$0xff] }
 0x52f   : > { %v12446_v51 = vld [vmem:[%s17066_s14 + $0x40] sm:$0xf] }
 0x530   : > { %v12447_v59 = vor.u32 %v13213_v43, %v12446_v51  ;;  %v13233_v51 = vld [vmem:[%s17068_s16 + $0x68] sm:$0xff]  ;;  %v13224_v43 = vld [vmem:[%s17068_s16 + $0x20] sm:$0xff] }
 0x532   : > { %9393 = vmatpush.bf16.msra.mxu1 %v12443_v3 }
 0x533   : > { %v8888_v34 = vpop.f32.mrf.mxu0 }
 0x534   : > { %v8889_v29 = vadd.f32 %v8888_v34, %v8876_v5  ;;  %v12471_v5 = vor.u32 %v13219_v21, %v12470_v40  ;;  %v12431_v34 = vor.u32 %v13209_v33, %v12430_v45  ;;  %v13193_v21 = vld [vmem:[%s17064_s12 + $0x28] sm:$0xff] }
 0x535   : > { %9247 = vmatpush.bf16.msrb.mxu2 %v13193_v21 }
 0x536   : > { %v8902_v23 = vadd.f32 %v8901_v60, %v8889_v29  ;;  %9376 = vmatpush.bf16.msrb.mxu0 %v12471_v5  ;;  %v12462_v60 = vld [vmem:[%s17066_s14 + $0x60] sm:$0xf]  ;;  %v12424_v29 = vld [vmem:[%s17066_s14 + $0x18] sm:$0xf0]  ;;  %9394 = vmatpush.bf16.msra.mxu1 %v12435_v53 }
 0x537   : > { %v12463_v14 = vor.u32 %v13217_v50, %v12462_v60  ;;  %v12427_v35 = vor.u32 %v13206_v17, %v12424_v29  ;;  %v13199_v60 = vld [vmem:[%s17064_s12 + $0x58] sm:$0xff] }
 0x538   : > { %v16746_v32 = vadd.f32 %v8914_v0, %v8902_v23  ;;  %v12416_v23 = vld [vmem:[%s17066_s14 + $0x8] sm:$0xf0] }
 0x539   : > { %v12419_v31 = vor.u32 %v13204_v9, %v12416_v23 }
 0x53a   : > { %v16748_v27 = vpop.f32.mrf.mxu3  ;;  %9377 = vmatpush.bf16.msrb.mxu0 %v12463_v14  ;;  %9395 = vmatpush.bf16.msra.mxu1 %v12427_v35  ;;  %v13198_v14 = vld [vmem:[%s17064_s12 + $0x50] sm:$0xff] }
 0x53b   : > { %v8890_v47 = vpop.f32.mrf.mxu0  ;;  %v8928_v2 = vadd.f32 %v16748_v27, %v16746_v32  ;;  %v13192_v32 = vld [vmem:[%s17064_s12 + $0x20] sm:$0xff] }
 0x53c   : > { %v13201_v47 = vld [vmem:[%s17064_s12 + $0x68] sm:$0xff]  ;;  %v13200_v27 = vld [vmem:[%s17064_s12 + $0x60] sm:$0xff]  ;;  %9248 = vmatpush.bf16.msrb.mxu2 %v13192_v32 }
 0x53d   : > { %9260 = vmatpush.bf16.msrb.mxu3 %v13201_v47 }
 0x53e   : > { %9378 = vmatpush.bf16.msrb.mxu0 %v12455_v25  ;;  %9396 = vmatpush.bf16.msra.mxu1 %v12419_v31  ;;  %v13235_v25 = vld [vmem:[%s17068_s16 + $0x78] sm:$0xff] }
 0x541   : > { %9261 = vmatpush.bf16.msrb.mxu3 %v13200_v27 }
 0x542   : > { %v8929_v0 = vpop.f32.mrf.mxu3  ;;  %9379 = vmatpush.bf16.msrb.mxu0 %v12447_v59  ;;  %v13223_v59 = vld [vmem:[%s17068_s16 + $0x18] sm:$0xff] }
 0x543   : > { %v13191_v0 = vld [vmem:[%s17064_s12 + $0x18] sm:$0xff] }
 0x544   : > { %9249 = vmatpush.bf16.msrb.mxu2 %v13191_v0 }
 0x545   : > { %9262 = vmatpush.bf16.msrb.mxu3 %v13199_v60 }
 0x546   : > { %9380 = vmatpush.bf16.msrb.mxu0 %v12439_v56  ;;  %v13220_v56 = vld [vmem:[%s17068_s16] sm:$0xff] }
 0x548   : > { %9250 = vmatpush.bf16.msrb.mxu2 %v13190_v24 }
 0x549   : > { %9263 = vmatpush.bf16.msrb.mxu3 %v13198_v14 }
 0x54a   : > { %v16786_v15 = vpop.f32.mrf.mxu3  ;;  %9381 = vmatpush.bf16.msrb.mxu0 %v12431_v34 }
 0x54c   : > { %9251 = vmatpush.bf16.msrb.mxu2 %v13189_v39 }
 0x54d   : > { %9264 = vmatpush.bf16.msrb.mxu3 %v13197_v48 }
 0x54e   : > { %9382 = vmatpush.bf16.msrb.mxu0 %v12423_v46  ;;  %v9290_v46 = vld [vmem:[%s17067_s15] sm:$0x3] }
 0x54f   : > { %v9372_v35 = vperm.slane %v9290_v46, 0  ;;  %v9373_v11 = vperm.slane %v9290_v46, 1 }
 0x551   : > { %v8953_v61 = vpop.f32.mrf.mxu1  ;;  %9265 = vmatpush.bf16.msrb.mxu3 %v13196_v49 }
 0x552   : > { %v8981_v37 = vpop.f32.mrf.mxu3  ;;  %9383 = vmatpush.bf16.msrb.mxu0 %v12415_v8 }
 0x553   : > { %v9000_v37 = vld [vmem:[%s17063_s11] sm:$0x3] }
 0x554   : > { %v9082_v3 = vperm.slane %v9000_v37, 0  ;;  %v9083_v45 = vperm.slane %v9000_v37, 1 }
 0x555   : > { %9548 = vmatpush.bf16.msra.mxu3 %v13235_v25 }
 0x559   : > { %v8955_v52 = vpop.f32.mrf.mxu1 }
 0x569   : > { %v8940_v1 = vpop.f32.mrf.mxu0 }
 0x56a   : > { %v8941_v40 = vadd.f32 %v8940_v1, %v8928_v2 }
 0x56c   : > { %v8954_v22 = vadd.f32 %v8953_v61, %v8941_v40  ;;  %v13234_v61 = vld [vmem:[%s17068_s16 + $0x70] sm:$0xff] }
 0x56d   : > { %v8966_v58 = vpop.f32.mrf.mxu2  ;;  %9549 = vmatpush.bf16.msra.mxu3 %v13234_v61 }
 0x56e   : > { %v8967_v28 = vadd.f32 %v8966_v58, %v8954_v22 }
 0x570   : > { %v8980_v4 = vadd.f32 %v16786_v15, %v8967_v28  ;;  %v13188_v15 = vld [vmem:[%s17064_s12] sm:$0xff] }
 0x571   : > { %v8942_v5 = vpop.f32.mrf.mxu0  ;;  %9252 = vmatpush.bf16.msrb.mxu2 %v13188_v15  ;;  %9550 = vmatpush.bf16.msra.mxu3 %v13233_v51 }
 0x572   : > { %v8983_v38 = vpack.c.bf16 %v8980_v4, %v8980_v4  ;;  %9271 = vst [vmem:[%s17093_s28] sm:$0x1] %v8980_v4  ;;  %s17122_s28 = sld [smem:[#allocation18_spill]] }
 0x574   : > { %9094 = vmatmul.bf16.vlgmr.msra.gmra.mxu0 %v8983_v38  ;;  %9107 = vmatmul.bf16.vlgmr.msrb.gmra.mxu1 %v8983_v38 }
 0x575   : > { %v8968_v50 = vpop.f32.mrf.mxu2  ;;  %9535 = vmatpush.bf16.msra.mxu2 %v13227_v57  ;;  %9551 = vmatpush.bf16.msra.mxu3 %v13232_v12 }
 0x578   : > { %s656_s23 = scalar_lea.vmem %s17122_s28, %s13630_s25  ;;  %s13354_s25 = sshra.s32 %s9584_s20, 4  ;;  %s13355_s25 = int_to_ptr.hbm [resolvable:$true] %s13354_s25 }
 0x579   : > { %v9273_v16 = vld [vmem:[%s656_s23] sm:$0x1]  ;;  %9536 = vmatpush.bf16.msra.mxu2 %v13226_v26  ;;  %9552 = vmatpush.bf16.msra.mxu3 %v13231_v41  ;;  %s13356_s3 = scalar_lea.hbm %s13355_s25, 1  ;;  %p13361_p0 = scmp.lt.s32.totalorder %s13355_s25, %s17070_s18 }
 0x57a   : > { %p13357_p11 = scmp.ne.s32.totalorder %s13355_s25, %s13356_s3  ;;  %p13362_p1 = scmp.lt.s32.totalorder %s13360_s24, %s13356_s3 }
 0x57c   : > { %p13358_p12 = pnand %p13357_p11, %p13612_p5  ;;  %p13363_p2 = por %p13362_p1, %p13361_p0 }
 0x57d   : > { %9537 = vmatpush.bf16.msra.mxu2 %v13225_v20  ;;  %9553 = vmatpush.bf16.msra.mxu3 %v13230_v10 }
 0x57e   : > { %p13359_p13 = pneg %p13358_p12 }
 0x580   : > { %p13364_p3 = pnand %p13363_p2, %p13359_p13 }
 0x581   : > { %9538 = vmatpush.bf16.msra.mxu2 %v13224_v43  ;;  %9554 = vmatpush.bf16.msra.mxu3 %v13229_v62 }
 0x584   : > { %9384 = vmatmul.bf16.vlgmr.msrb.gmra.mxu0 %v9273_v16  ;;  %9397 = vmatmul.bf16.vlgmr.msra.gmra.mxu1 %v9273_v16 }
 0x585   : > { %9539 = vmatpush.bf16.msra.mxu2 %v13223_v59  ;;  %9555 = vmatpush.bf16.msra.mxu3 %v13228_v55 }
 0x589   : > { %9540 = vmatpush.bf16.msra.mxu2 %v13222_v30 }
 0x58d   : > { %9541 = vmatpush.bf16.msra.mxu2 %v13221_v36 }
 0x591   : > { %9542 = vmatpush.bf16.msra.mxu2 %v13220_v56 }
 0x5f1   : > { %v9095_v33 = vpop.f32.mrf.mxu0  ;;  %v9108_v54 = vpop.f32.mrf.mxu1 }
 0x5f2   : > { %v9096_v63 = vadd.f32 %v9095_v33, %v9082_v3  ;;  %v9109_v52 = vadd.f32 %v9108_v54, %v9083_v45 }
 0x5f4   : > { %v9112_v34 = vmax.f32 %v9096_v63, 0.0  ;;  %v9113_v53 = vmax.f32 %v9109_v52, 0.0 }
 0x5f6   : > { %v9114_v7 = vpack.c.bf16 %v9112_v34, %v9112_v34  ;;  %v9115_v42 = vpack.c.bf16 %v9113_v53, %v9113_v53 }
 0x5f8   : > { %9253 = vmatmul.bf16.vlgmr.msrb.gmra.mxu2 %v9114_v7  ;;  %9266 = vmatmul.bf16.vlgmr.msrb.gmra.mxu3 %v9115_v42 }
 0x5f9   : > { %v9097_v17 = vpop.f32.mrf.mxu0  ;;  %v9110_v29 = vpop.f32.mrf.mxu1 }
 0x601   : > { %v9385_v44 = vpop.f32.mrf.mxu0  ;;  %v9398_v9 = vpop.f32.mrf.mxu1 }
 0x602   : > { %v9386_v23 = vadd.f32 %v9385_v44, %v9372_v35  ;;  %v9399_v8 = vadd.f32 %v9398_v9, %v9373_v11 }
 0x604   : > { %v9402_v31 = vmax.f32 %v9386_v23, 0.0  ;;  %v9403_v13 = vmax.f32 %v9399_v8, 0.0 }
 0x606   : > { %v9404_v6 = vpack.c.bf16 %v9402_v31, %v9402_v31  ;;  %v9405_v18 = vpack.c.bf16 %v9403_v13, %v9403_v13 }
 0x608   : > { %9543 = vmatmul.bf16.vlgmr.msra.gmra.mxu2 %v9404_v6  ;;  %9556 = vmatmul.bf16.vlgmr.msra.gmra.mxu3 %v9405_v18 }
 0x609   : > { %v9387_v19 = vpop.f32.mrf.mxu0  ;;  %v9400_v2 = vpop.f32.mrf.mxu1 }
 0x60a   : > { %13367 = shalt.err (!%p13364_p3)
}
 0x60b   : > { %13237 = dma.vmem_to_hbm [thread:$0]  (%p13612_p5), %s9582_s0, 16, %s9584_s20, %s9563_s29   ;;  %v9148_v1 = vld [vmem:[%s17065_s13] sm:$0x1] }
 0x60c   : > { %s9592_s30 = scalar_lea.hbm %s17071_s19, %s13593_s2  ;;  %s9566_s23 = sand.u32 1, %s13593_s2  }
 0x60d   : > { %s642_s25 = scalar_lea.vmem [#allocation6], %s16881_s27  ;;  %s9596_s24 = sshll.u32 %s9592_s30, 4  ;;  %s9597_s24 = int_to_ptr.hbm [resolvable:$true] %s9596_s24 }
 0x60e   : > { %s9594_s3 = sshll.u32 %s642_s25, 4  ;;  %s17001_s0 = scalar_lea.sflag [#allocation7], %s9566_s23  ;;  %s9595_s3 = int_to_ptr.vmem [resolvable:$true] %s9594_s3 }
 0x60f   : > { %s13382_s20 = sshra.s32 %s9597_s24, 4  ;;  %s13388_s17 = scalar_lea.hbm %s17071_s19, 2  ;;  %s13383_s20 = int_to_ptr.hbm [resolvable:$true] %s13382_s20 }
 0x610   : > { %s13384_s29 = scalar_lea.hbm %s13383_s20, 1  ;;  %p13389_p9 = scmp.lt.s32.totalorder %s13383_s20, %s17071_s19 }
 0x611   : > { %p13385_p4 = scmp.ne.s32.totalorder %s13383_s20, %s13384_s29  ;;  %p13390_p10 = scmp.lt.s32.totalorder %s13388_s17, %s13384_s29 }
 0x613   : > { %p13386_p7 = pnand %p13385_p4, %p13612_p5  ;;  %p13391_p11 = por %p13390_p10, %p13389_p9 }
 0x615   : > { %p13387_p8 = pneg %p13386_p7 }
 0x617   : > { %p13392_p12 = pnand %p13391_p11, %p13387_p8 }
 0x67b   : > { %v9254_v40 = vpop.f32.mrf.mxu2  ;;  %v9267_v21 = vpop.f32.mrf.mxu3 }
 0x67c   : > { %v9255_v47 = vadd.f32 %v9254_v40, %v9148_v1 }
 0x67e   : > { %v9268_v22 = vadd.f32 %v9267_v21, %v9255_v47 }
 0x680   : > { %9272 = vst [vmem:[%s642_s25] sm:$0x1] %v9268_v22 }
 0x681   : > { %13395 = shalt.err (!%p13392_p12)
}
 0x682   : > { %13238 = dma.vmem_to_hbm [thread:$0]  (%p13612_p5), %s9595_s3, 16, %s9597_s24, %s17001_s0  }
 0x683   : > { %v9256_v58 = vpop.f32.mrf.mxu2  ;;  %v9269_v28 = vpop.f32.mrf.mxu3  ;;  %s17124_s25 = sld [smem:[#allocation24_spill]]  ;;  %s648_s20 = scalar_lea.vmem [#allocation8], %s16881_s27 }
 0x684   : > { %s17125_s28 = sld [smem:[#allocation23_spill]]  ;;  %s9607_s29 = sshll.u32 %s648_s20, 4  ;;  %s9608_s29 = int_to_ptr.vmem [resolvable:$true] %s9607_s29 }
 0x689   : > { %s9605_s26 = scalar_lea.hbm %s17124_s25, %s13593_s2  ;;  %s13416_s30 = scalar_lea.hbm %s17124_s25, 2 }
 0x68a   : > { %v9438_v32 = vld [vmem:[%s17125_s28] sm:$0x1]  ;;  %s9609_s17 = sshll.u32 %s9605_s26, 4  ;;  %s9610_s17 = int_to_ptr.hbm [resolvable:$true] %s9609_s17 }
 0x68b   : > { %v9544_v27 = vpop.f32.mrf.mxu2  ;;  %v9557_v4 = vpop.f32.mrf.mxu3  ;;  %s13410_s3 = sshra.s32 %s9610_s17, 4  ;;  %s13411_s3 = int_to_ptr.hbm [resolvable:$true] %s13410_s3 }
 0x68c   : > { %v9545_v5 = vadd.f32 %v9544_v27, %v9438_v32  ;;  %s13412_s24 = scalar_lea.hbm %s13411_s3, 1  ;;  %p13417_p2 = scmp.lt.s32.totalorder %s13411_s3, %s17124_s25 }
 0x68d   : > { %p13413_p13 = scmp.ne.s32.totalorder %s13411_s3, %s13412_s24  ;;  %p13418_p3 = scmp.lt.s32.totalorder %s13416_s30, %s13412_s24 }
 0x68e   : > { %v9558_v38 = vadd.f32 %v9557_v4, %v9545_v5 }
 0x68f   : > { %p13414_p0 = pnand %p13413_p13, %p13612_p5  ;;  %p13419_p4 = por %p13418_p3, %p13417_p2 }
 0x690   : > { %9561 = vst [vmem:[%s648_s20] sm:$0x1] %v9558_v38 }
 0x691   : > { %p13415_p1 = pneg %p13414_p0 }
 0x693   : > { %p13420_p7 = pnand %p13419_p4, %p13415_p1 }
 0x695   : > { %13423 = shalt.err (!%p13420_p7)
}
 0x696   : > { %13239 = dma.vmem_to_hbm [thread:$0]  (%p13612_p5), %s9608_s29, 16, %s9610_s17, %s17001_s0   ;;  %v9546_v0 = vpop.f32.mrf.mxu2  ;;  %v9559_v60 = vpop.f32.mrf.mxu3 }
 0x697 PF: > { %s17126_s23 = sld [smem:[#allocation13_spill]] }
 0x698   : > { %s17127_s26 = sld [smem:[#allocation11_spill]] }
 0x69d   : > { %p13253_p8 = scmp.ge.s32.totalorder %s17126_s23, 2 }
 0x69e   : > { %s9621_s28 = sand.u32 1, %s17127_s26  }
 0x69f   : > { %p13244_p9 = pnand %p13253_p8, %p13616_p6  ;;  %s9622_s20 = scalar_lea.sflag [#allocation5], %s9621_s28 }
 0x6a1   : > { %p13245_p10 = pneg %p13244_p9 }
 0x6a3   : > { %13441 = dma.done.wait (%p13245_p10), %s9622_s20, 16  }
 0x6a4   : > { %13443 = vsyncadd (%p13245_p10), %s9622_s20, 4294967280  ;;  %s17129_s3 = sadd.s32 4294967294, %s17126_s23  }
 0x6a5   : > { %s9630_s24 = sand.u32 1, %s17129_s3  }
 0x6a6   : > { %s9631_s4 = scalar_lea.sflag [#allocation7], %s9630_s24 }
 0x6a7   : > { %13445 = dma.done.wait (%p13245_p10), %s9631_s4, 32  }
 0x6a8   : > { %13447 = vsyncadd (%p13245_p10), %s9631_s4, 4294967264  ;;  %s17130_s24 = sld [smem:[#allocation14_spill]]  ;;  %s17133_s1 = smov %s13454_s22 }
 0x6a9   : > { %s17131_s0 = sld [smem:[#allocation12_spill]] }
 0x6aa   : > { %s17132_s23 = sld [smem:[#allocation15_spill]] }
 0x6ae   : > { %p34_p5 = scmp.ge.s32.totalorder %s17130_s24, 4  }
 0x6af   : > { %s17134_s22 = smov %s17131_s0 }
 0x6b0   :  { %36 = sbr.rel (!%p34_p5) target bundleno = 14 (0xe), region = 170 }
 0x6b5   :  { %9645 = vsyncpa [#allocation5], 1 }
 0x6b6   :  { %9647 = vsyncpa [#allocation5 + $0x1], 1 }
 0x6b7   :  { %9648 = vsyncpa [#allocation7], 1 }
 0x6b8   :  { %9650 = vsyncpa [#allocation7 + $0x1], 1 }

</bundles_post_ra>
